<compile_context>
chip_gen: v7x
topology: tpu7x:2x2x1
jax: 0.10.0
libtpu: 0.0.40
codegen_flags: <defaults>
</compile_context>

<pallas_src>
import math
import numpy as np

import jax
import jax.numpy as jnp
from jax.experimental import pallas as pl
from jax.experimental.pallas import tpu as pltpu

# ---------------- model hyper-parameters (module defaults) ----------------
NUM_LAYERS = 4
LATENT = 32
LC_LENGTH = 128
CH = [128, 64, 32, 16, 4]                          # upsampleChannels
L0 = int(math.ceil(LC_LENGTH / 2 ** NUM_LAYERS))   # 8
EXPANDED = L0 * CH[0]                              # 1024
BN_EPS = 1e-5

_VMEM = pl.BlockSpec(memory_space=pltpu.MemorySpace.VMEM)


# ---------------- in-kernel math helpers ----------------
def _gelu(x):
    # torch.nn.GELU() default = exact erf GELU.
    # erf via Abramowitz-Stegun 7.1.26 (|error| < 1.5e-7 ~ f32 eps).
    a1, a2, a3, a4, a5 = 0.254829592, -0.284496736, 1.421413741, -1.453152027, 1.061405429
    p = 0.3275911
    z = x * 0.7071067811865476
    az = jnp.abs(z)
    t = 1.0 / (1.0 + p * az)
    poly = ((((a5 * t + a4) * t + a3) * t + a2) * t + a1) * t
    erf_abs = 1.0 - poly * jnp.exp(-az * az)          # exp -> EUP slot
    erf = jnp.where(z >= 0.0, erf_abs, -erf_abs)
    return 0.5 * x * (1.0 + erf)


def _bn(y, g_mat, gt_mat, gamma, beta, inv_n):
    """BatchNorm1d (training-mode batch stats) on phase-packed data.

    y: (R, T*C) where channel c lives at lanes {t*C + c}.  Single pass:
    per-lane sum / sum-of-squares (sublane reduction), one tiny matmul with the
    group matrix g_mat:(T*C, C) folds the phases, gamma*inv / shift are hoisted
    and broadcast back to packed lanes with gt_mat:(C, T*C) so the normalize is
    one fused mul-add per element."""
    s = jnp.sum(y, axis=0, keepdims=True)
    ss = jnp.sum(y * y, axis=0, keepdims=True)
    red = jnp.dot(jnp.concatenate([s, ss], axis=0), g_mat,
                  preferred_element_type=jnp.float32) * inv_n       # (2, C)
    mean = red[0:1]
    var = red[1:2] - mean * mean
    scale = gamma * jax.lax.rsqrt(var + BN_EPS)                     # (1, C)
    shift = beta - mean * scale
    sp = jnp.dot(jnp.concatenate([scale, shift], axis=0), gt_mat,
                 preferred_element_type=jnp.float32)                # (2, T*C)
    return y * sp[0:1] + sp[1:2]


def _block(u, w1p, w2p, wrp, g_mat, gt_mat, biases, bn, nb):
    """Fused BasicBlock(decoder) + decoder-level BatchNorm1d + GELU on packed data.

    u: (R, Win) with R = B*8 rows (coarse position m major, batch minor) and
    Win = T*Cin lanes (phase major, channel minor).  Returns (R, Wout) with
    Wout = 2T*Cout (the sequence length doubles inside the lane dimension)."""
    R, Win = u.shape
    Wout, Cout = g_mat.shape
    T2 = Wout // Cout
    inv_n = 1.0 / float(R * T2)                     # elements per channel (B * L_out)

    zi = jnp.zeros((nb, Win), jnp.float32)
    zo = jnp.zeros((nb, Wout), jnp.float32)
    u_next = jnp.concatenate([u[nb:], zi], axis=0)  # coarse position m+1 (zero past end)

    # conv1: ConvTranspose1d(Cin,Cout,k=3,s=2,p=1,op=1) -> ONE matmul (K-concat of taps)
    y1 = jnp.dot(jnp.concatenate([u, u_next], axis=1), w1p,
                 preferred_element_type=jnp.float32) + biases[0:1]
    h = _gelu(_bn(y1, g_mat, gt_mat, bn[0:1], bn[1:2], inv_n))

    # conv2: ConvTranspose1d(Cout,Cout,k=3,s=1,p=1) on the doubled sequence -> ONE matmul
    h_next = jnp.concatenate([h[nb:], zo], axis=0)
    h_prev = jnp.concatenate([zo, h[:-nb]], axis=0)
    y2 = jnp.dot(jnp.concatenate([h, h_next, h_prev], axis=1), w2p,
                 preferred_element_type=jnp.float32) + biases[1:2]
    y2 = _bn(y2, g_mat, gt_mat, bn[2:3], bn[3:4], inv_n)

    # resize: ConvTranspose1d(Cin,Cout,k=1,s=2,op=1) + BN; odd phases are bias-only
    r = jnp.dot(u, wrp, preferred_element_type=jnp.float32) + biases[2:3]
    r = _bn(r, g_mat, gt_mat, bn[4:5], bn[5:6], inv_n)

    # residual add + GELU (BasicBlock tail), then decoder-level BatchNorm1d + GELU
    s = _gelu(y2 + r)
    s = _bn(s, g_mat, gt_mat, bn[6:7], bn[7:8], inv_n)
    return _gelu(s)


# ---------------- the single fused kernel ----------------
def decoder_kernel(*refs):
    x_ref, fcw_ref, fcb_ref = refs[0], refs[1], refs[2]
    finw_ref = refs[3 + 7 * NUM_LAYERS]
    finb_ref = refs[4 + 7 * NUM_LAYERS]
    out_ref = refs[5 + 7 * NUM_LAYERS]
    nb = x_ref.shape[0]

    # fc1 (ungridded (B,32)@(32,1024)) + GELU.  fc weights were column-permuted on
    # the host so lanes [m*128:(m+1)*128] are the 128 channels of position m; the
    # repack to (B*8, 128) is 8 aligned lane slices + an outer-axis concat.
    h = jnp.dot(x_ref[...], fcw_ref[...],
                preferred_element_type=jnp.float32) + fcb_ref[...]
    u = jnp.concatenate([h[:, m * CH[0]:(m + 1) * CH[0]] for m in range(L0)], axis=0)
    u = _gelu(u)                                    # (B*8, 128)

    for i in range(NUM_LAYERS):
        base = 3 + 7 * i
        u = _block(u,
                   refs[base + 0][...], refs[base + 1][...], refs[base + 2][...],
                   refs[base + 3][...], refs[base + 4][...],
                   refs[base + 5][...], refs[base + 6][...], nb)

    # final ConvTranspose1d(4,1,k=1,s=1) folded in as one packed matmul:
    # (B*8, 16 phases * 4 ch) @ (64, 16) -> (B*8, 16 sub-positions).
    out_ref[...] = (jnp.dot(u, finw_ref[...], preferred_element_type=jnp.float32)
                    + finb_ref[...])


# ---------------- wrapper ----------------
def decoder_forward(x, packed):
    B = x.shape[0]
    flat = [x, packed["fc_w"], packed["fc_b"]]
    for blk in packed["blocks"]:
        flat.extend(blk)
    flat.extend([packed["final_w"], packed["final_b"]])

    T2f = 2 ** NUM_LAYERS
    out = pl.pallas_call(
        decoder_kernel,
        out_shape=jax.ShapeDtypeStruct((B * L0, T2f), jnp.float32),
        in_specs=[_VMEM] * len(flat),
        out_specs=_VMEM,
    )(*flat)
    # tiny glue: rows are (coarse m, batch) m-major, lanes are the 2^4 sub-positions
    # of coarse position m  ->  PyTorch NCL output (B, 1, 128).
    return out.reshape(L0, B, T2f).transpose(1, 0, 2).reshape(B, 1, L0 * T2f)


# ---------------- deterministic parameter init (synthetic, PyTorch-like layout) ----------------
def init_params(key):
    keys = iter(jax.random.split(key, 256))

    def nrm(shape, scale):
        return jax.random.normal(next(keys), shape, jnp.float32) * scale

    params = {
        "fc_w": nrm((LATENT, EXPANDED), 1.0 / math.sqrt(LATENT)),
        "fc_b": nrm((1, EXPANDED), 0.02),
        "final_w": nrm((CH[-1], 1), 1.0 / math.sqrt(CH[-1])),
        "final_b": nrm((1, 1), 0.02),
        "blocks": [],
    }
    for i in range(NUM_LAYERS):
        cin, cout = CH[i], CH[i + 1]
        blk = {
            # ConvTranspose1d weights stored as (K, Cin, Cout) (PyTorch layout is (Cin, Cout, K))
            "w1": nrm((3, cin, cout), 1.0 / math.sqrt(3 * cin)),
            "b1": nrm((1, cout), 0.02),
            "g1": 1.0 + nrm((1, cout), 0.1), "be1": nrm((1, cout), 0.1),
            "w2": nrm((3, cout, cout), 1.0 / math.sqrt(3 * cout)),
            "b2": nrm((1, cout), 0.02),
            "g2": 1.0 + nrm((1, cout), 0.1), "be2": nrm((1, cout), 0.1),
            "wr": nrm((cin, cout), 1.0 / math.sqrt(cin)),
            "br": nrm((1, cout), 0.02),
            "gr": 1.0 + nrm((1, cout), 0.1), "ber": nrm((1, cout), 0.1),
            "gp": 1.0 + nrm((1, cout), 0.1), "bp": nrm((1, cout), 0.1),
        }
        params["blocks"].append(blk)
    return params


# ---------------- host-side repacking into the kernel's lane-packed matrices ----------------
def prepare_params(params):
    # fc1: packed column m*128 + c  <-  Linear output feature c*L0 + m
    # (== channel c, position m after Rearrange 'b (c l) -> b c l', c=128).
    perm = np.asarray([c * L0 + m for m in range(L0) for c in range(CH[0])], dtype=np.int64)
    fc_w = np.asarray(params["fc_w"])[:, perm]
    fc_b = np.asarray(params["fc_b"])[:, perm]

    blocks = []
    for i, blk in enumerate(params["blocks"]):
        cin, cout = CH[i], CH[i + 1]
        T = 2 ** i                       # input phases per coarse position
        T2 = 2 * T                       # output phases per coarse position
        win, wout = T * cin, T2 * cout
        w1 = np.asarray(blk["w1"])       # (3, cin, cout)
        w2 = np.asarray(blk["w2"])       # (3, cout, cout)
        wr = np.asarray(blk["wr"])       # (cin, cout)

        # conv1 (k=3,s=2,p=1,op=1): out[2j] = x[j]@w1[1]; out[2j+1] = x[j+1]@w1[0] + x[j]@w1[2]
        a1 = np.zeros((win, wout), np.float32)      # multiplies u   (coarse row m)
        a1n = np.zeros((win, wout), np.float32)     # multiplies u_next (coarse row m+1)
        for t in range(T):
            a1[t * cin:(t + 1) * cin, 2 * t * cout:(2 * t + 1) * cout] = w1[1]
            a1[t * cin:(t + 1) * cin, (2 * t + 1) * cout:(2 * t + 2) * cout] = w1[2]
            if t + 1 < T:
                a1[(t + 1) * cin:(t + 2) * cin, (2 * t + 1) * cout:(2 * t + 2) * cout] = w1[0]
        a1n[0:cin, (T2 - 1) * cout:T2 * cout] = w1[0]
        w1p = np.concatenate([a1, a1n], axis=0)                      # (2*win, wout)

        # conv2 (k=3,s=1,p=1): out[j] = y[j+1]@w2[0] + y[j]@w2[1] + y[j-1]@w2[2]
        c0 = np.zeros((wout, wout), np.float32)     # multiplies h
        cn = np.zeros((wout, wout), np.float32)     # multiplies h_next
        cp = np.zeros((wout, wout), np.float32)     # multiplies h_prev
        for t in range(T2):
            c0[t * cout:(t + 1) * cout, t * cout:(t + 1) * cout] = w2[1]
            if t + 1 < T2:
                c0[(t + 1) * cout:(t + 2) * cout, t * cout:(t + 1) * cout] = w2[0]
            if t > 0:
                c0[(t - 1) * cout:t * cout, t * cout:(t + 1) * cout] = w2[2]
        cn[0:cout, (T2 - 1) * cout:T2 * cout] = w2[0]
        cp[(T2 - 1) * cout:T2 * cout, 0:cout] = w2[2]
        w2p = np.concatenate([c0, cn, cp], axis=0)                   # (3*wout, wout)

        # resize (k=1,s=2,op=1): even output phases = x@wr, odd phases = bias only
        wrp = np.zeros((win, wout), np.float32)
        for t in range(T):
            wrp[t * cin:(t + 1) * cin, 2 * t * cout:(2 * t + 1) * cout] = wr

        # BatchNorm phase-fold / broadcast matrices
        g = np.tile(np.eye(cout, dtype=np.float32), (T2, 1))         # (wout, cout)
        gt = np.ascontiguousarray(g.T)                               # (cout, wout)

        biases = np.concatenate(
            [np.tile(np.asarray(blk[k]), (1, T2)) for k in ("b1", "b2", "br")], axis=0)
        bn = np.concatenate(
            [np.asarray(blk[k]) for k in ("g1", "be1", "g2", "be2", "gr", "ber", "gp", "bp")],
            axis=0)

        blocks.append(tuple(jnp.asarray(a) for a in (w1p, w2p, wrp, g, gt, biases, bn)))

    T2f = 2 ** NUM_LAYERS
    fin_w = np.kron(np.eye(T2f, dtype=np.float32), np.asarray(params["final_w"]))  # (64, 16)
    fin_b = np.tile(np.asarray(params["final_b"]), (1, T2f))                        # (1, 16)

    return {"fc_w": jnp.asarray(fc_w), "fc_b": jnp.asarray(fc_b),
            "blocks": blocks,
            "final_w": jnp.asarray(fin_w), "final_b": jnp.asarray(fin_b)}


# ---------------- plain-JAX reference (straightforward channels-last transcription) ----------------
def reference_forward(x, params):
    prec = jax.lax.Precision.HIGHEST
    gelu = lambda v: jax.nn.gelu(v, approximate=False)

    def bn(v, gamma, beta):                          # (B, L, C), training-mode batch stats
        mu = jnp.mean(v, axis=(0, 1), keepdims=True)
        var = jnp.mean((v - mu) ** 2, axis=(0, 1), keepdims=True)
        return gamma * (v - mu) * jax.lax.rsqrt(var + BN_EPS) + beta

    def mm(v, w):
        return jnp.einsum("blc,cd->bld", v, w, precision=prec)

    B = x.shape[0]
    h = gelu(jnp.dot(x, params["fc_w"], precision=prec) + params["fc_b"])  # (B, 1024)
    h = h.reshape(B, CH[0], L0).transpose(0, 2, 1)                         # (B, 8, 128)

    for i, blk in enumerate(params["blocks"]):
        cin, cout = CH[i], CH[i + 1]
        L = h.shape[1]
        zin = jnp.zeros((B, 1, cin), jnp.float32)
        zo = jnp.zeros((B, 1, cout), jnp.float32)

        x_next = jnp.concatenate([h[:, 1:, :], zin], axis=1)
        y_even = mm(h, blk["w1"][1]) + blk["b1"]
        y_odd = mm(x_next, blk["w1"][0]) + mm(h, blk["w1"][2]) + blk["b1"]
        y1 = jnp.stack([y_even, y_odd], axis=2).reshape(B, 2 * L, cout)
        y1 = gelu(bn(y1, blk["g1"], blk["be1"]))

        y_next = jnp.concatenate([y1[:, 1:, :], zo], axis=1)
        y_prev = jnp.concatenate([zo, y1[:, :-1, :]], axis=1)
        y2 = mm(y_next, blk["w2"][0]) + mm(y1, blk["w2"][1]) + mm(y_prev, blk["w2"][2]) + blk["b2"]
        y2 = bn(y2, blk["g2"], blk["be2"])

        r_even = mm(h, blk["wr"]) + blk["br"]
        r_odd = jnp.zeros((B, L, cout), jnp.float32) + blk["br"]
        r = jnp.stack([r_even, r_odd], axis=2).reshape(B, 2 * L, cout)
        r = bn(r, blk["gr"], blk["ber"])

        h = gelu(bn(gelu(y2 + r), blk["gp"], blk["bp"]))

    y = mm(h, params["final_w"]) + params["final_b"]                        # (B, 128, 1)
    return y.transpose(0, 2, 1)                                             # (B, 1, 128)


if __name__ == "__main__":
    key = jax.random.PRNGKey(0)
    kx, kp = jax.random.split(key)
    params = init_params(kp)
    packed = prepare_params(params)
    x = jax.random.normal(kx, (2, LATENT), jnp.float32)   # decoder input (batch, latent_channel)

    out = jax.jit(decoder_forward)(x, packed)
    out = jax.block_until_ready(out)

    assert out.shape == (2, 1, LC_LENGTH), out.shape
    assert bool(jnp.all(jnp.isfinite(out)))

    ref = reference_forward(x, params)
    max_err = float(jnp.max(jnp.abs(out - ref)))
    assert max_err < 5e-3, f"mismatch vs reference: max abs err = {max_err}"
    print("KERNEL_OK")
</pallas_src>

<mosaic_0001>
module attributes {stable_mosaic.version = 11 : i64} {
  func.func @decoder_kernel(%arg0: memref<2x32xf32, #tpu.memory_space<vmem>>, %arg1: memref<32x1024xf32, #tpu.memory_space<vmem>>, %arg2: memref<1x1024xf32, #tpu.memory_space<vmem>>, %arg3: memref<256x128xf32, #tpu.memory_space<vmem>>, %arg4: memref<384x128xf32, #tpu.memory_space<vmem>>, %arg5: memref<128x128xf32, #tpu.memory_space<vmem>>, %arg6: memref<128x64xf32, #tpu.memory_space<vmem>>, %arg7: memref<64x128xf32, #tpu.memory_space<vmem>>, %arg8: memref<3x128xf32, #tpu.memory_space<vmem>>, %arg9: memref<8x64xf32, #tpu.memory_space<vmem>>, %arg10: memref<256x128xf32, #tpu.memory_space<vmem>>, %arg11: memref<384x128xf32, #tpu.memory_space<vmem>>, %arg12: memref<128x128xf32, #tpu.memory_space<vmem>>, %arg13: memref<128x32xf32, #tpu.memory_space<vmem>>, %arg14: memref<32x128xf32, #tpu.memory_space<vmem>>, %arg15: memref<3x128xf32, #tpu.memory_space<vmem>>, %arg16: memref<8x32xf32, #tpu.memory_space<vmem>>, %arg17: memref<256x128xf32, #tpu.memory_space<vmem>>, %arg18: memref<384x128xf32, #tpu.memory_space<vmem>>, %arg19: memref<128x128xf32, #tpu.memory_space<vmem>>, %arg20: memref<128x16xf32, #tpu.memory_space<vmem>>, %arg21: memref<16x128xf32, #tpu.memory_space<vmem>>, %arg22: memref<3x128xf32, #tpu.memory_space<vmem>>, %arg23: memref<8x16xf32, #tpu.memory_space<vmem>>, %arg24: memref<256x64xf32, #tpu.memory_space<vmem>>, %arg25: memref<192x64xf32, #tpu.memory_space<vmem>>, %arg26: memref<128x64xf32, #tpu.memory_space<vmem>>, %arg27: memref<64x4xf32, #tpu.memory_space<vmem>>, %arg28: memref<4x64xf32, #tpu.memory_space<vmem>>, %arg29: memref<3x64xf32, #tpu.memory_space<vmem>>, %arg30: memref<8x4xf32, #tpu.memory_space<vmem>>, %arg31: memref<64x16xf32, #tpu.memory_space<vmem>>, %arg32: memref<1x16xf32, #tpu.memory_space<vmem>>, %arg33: memref<16x16xf32, #tpu.memory_space<vmem>>) attributes {dimension_semantics = [], scalar_prefetch = 0 : i64, scratch_operands = 0 : i64, tpu.core_type = #tpu.core_type<tc>} {
    %c0 = arith.constant 0 : index
    %c0_0 = arith.constant 0 : index
    %0 = vector.load %arg0[%c0, %c0_0] : memref<2x32xf32, #tpu.memory_space<vmem>>, vector<2x32xf32>
    %c0_1 = arith.constant 0 : index
    %c0_2 = arith.constant 0 : index
    %1 = vector.load %arg1[%c0_1, %c0_2] : memref<32x1024xf32, #tpu.memory_space<vmem>>, vector<32x1024xf32>
    %cst = arith.constant dense<0.000000e+00> : vector<2x1024xf32>
    %2 = tpu.matmul %0, %1, %cst {dimension_numbers = #tpu.dot_dimension_numbers<[1], [0], [0], [1], [0, 0, 1, 1], [], []>} : vector<2x32xf32>, vector<32x1024xf32>, vector<2x1024xf32> -> vector<2x1024xf32>
    %c0_3 = arith.constant 0 : index
    %c0_4 = arith.constant 0 : index
    %3 = vector.load %arg2[%c0_3, %c0_4] : memref<1x1024xf32, #tpu.memory_space<vmem>>, vector<1x1024xf32>
    %4 = vector.broadcast %3 : vector<1x1024xf32> to vector<2x1024xf32>
    %5 = arith.addf %2, %4 : vector<2x1024xf32>
    %6 = vector.extract_strided_slice %5 {offsets = [0, 0], sizes = [2, 128], strides = [1, 1]} : vector<2x1024xf32> to vector<2x128xf32>
    %7 = vector.extract_strided_slice %5 {offsets = [0, 128], sizes = [2, 128], strides = [1, 1]} : vector<2x1024xf32> to vector<2x128xf32>
    %8 = vector.extract_strided_slice %5 {offsets = [0, 256], sizes = [2, 128], strides = [1, 1]} : vector<2x1024xf32> to vector<2x128xf32>
    %9 = vector.extract_strided_slice %5 {offsets = [0, 384], sizes = [2, 128], strides = [1, 1]} : vector<2x1024xf32> to vector<2x128xf32>
    %10 = vector.extract_strided_slice %5 {offsets = [0, 512], sizes = [2, 128], strides = [1, 1]} : vector<2x1024xf32> to vector<2x128xf32>
    %11 = vector.extract_strided_slice %5 {offsets = [0, 640], sizes = [2, 128], strides = [1, 1]} : vector<2x1024xf32> to vector<2x128xf32>
    %12 = vector.extract_strided_slice %5 {offsets = [0, 768], sizes = [2, 128], strides = [1, 1]} : vector<2x1024xf32> to vector<2x128xf32>
    %13 = vector.extract_strided_slice %5 {offsets = [0, 896], sizes = [2, 128], strides = [1, 1]} : vector<2x1024xf32> to vector<2x128xf32>
    %14 = tpu.concatenate %6, %7, %8, %9, %10, %11, %12, %13 in 0 : vector<2x128xf32>, vector<2x128xf32>, vector<2x128xf32>, vector<2x128xf32>, vector<2x128xf32>, vector<2x128xf32>, vector<2x128xf32>, vector<2x128xf32> -> vector<16x128xf32>
    %cst_5 = arith.constant 0.707106769 : f32
    %15 = vector.broadcast %cst_5 : f32 to vector<16x128xf32>
    %16 = arith.mulf %14, %15 : vector<16x128xf32>
    %17 = math.absf %16 : vector<16x128xf32>
    %cst_6 = arith.constant 0.327591091 : f32
    %18 = vector.broadcast %cst_6 : f32 to vector<16x128xf32>
    %19 = arith.mulf %18, %17 : vector<16x128xf32>
    %cst_7 = arith.constant 1.000000e+00 : f32
    %20 = vector.broadcast %cst_7 : f32 to vector<16x128xf32>
    %21 = arith.addf %20, %19 : vector<16x128xf32>
    %cst_8 = arith.constant 1.000000e+00 : f32
    %22 = vector.broadcast %cst_8 : f32 to vector<16x128xf32>
    %23 = arith.divf %22, %21 : vector<16x128xf32>
    %cst_9 = arith.constant 1.06140542 : f32
    %24 = vector.broadcast %cst_9 : f32 to vector<16x128xf32>
    %25 = arith.mulf %24, %23 : vector<16x128xf32>
    %cst_10 = arith.constant -1.45315206 : f32
    %26 = vector.broadcast %cst_10 : f32 to vector<16x128xf32>
    %27 = arith.addf %25, %26 : vector<16x128xf32>
    %28 = arith.mulf %27, %23 : vector<16x128xf32>
    %cst_11 = arith.constant 1.42141378 : f32
    %29 = vector.broadcast %cst_11 : f32 to vector<16x128xf32>
    %30 = arith.addf %28, %29 : vector<16x128xf32>
    %31 = arith.mulf %30, %23 : vector<16x128xf32>
    %cst_12 = arith.constant -0.284496725 : f32
    %32 = vector.broadcast %cst_12 : f32 to vector<16x128xf32>
    %33 = arith.addf %31, %32 : vector<16x128xf32>
    %34 = arith.mulf %33, %23 : vector<16x128xf32>
    %cst_13 = arith.constant 0.254829586 : f32
    %35 = vector.broadcast %cst_13 : f32 to vector<16x128xf32>
    %36 = arith.addf %34, %35 : vector<16x128xf32>
    %37 = arith.mulf %36, %23 : vector<16x128xf32>
    %cst_14 = arith.constant 0.000000e+00 : f32
    %38 = vector.broadcast %cst_14 : f32 to vector<16x128xf32>
    %39 = arith.subf %38, %17 : vector<16x128xf32>
    %40 = arith.mulf %39, %17 : vector<16x128xf32>
    %41 = math.exp %40 : vector<16x128xf32>
    %42 = arith.mulf %37, %41 : vector<16x128xf32>
    %cst_15 = arith.constant 1.000000e+00 : f32
    %43 = vector.broadcast %cst_15 : f32 to vector<16x128xf32>
    %44 = arith.subf %43, %42 : vector<16x128xf32>
    %cst_16 = arith.constant 0.000000e+00 : f32
    %45 = vector.broadcast %cst_16 : f32 to vector<16x128xf32>
    %46 = arith.cmpf oge, %16, %45 : vector<16x128xf32>
    %cst_17 = arith.constant 0.000000e+00 : f32
    %47 = vector.broadcast %cst_17 : f32 to vector<16x128xf32>
    %48 = arith.subf %47, %44 : vector<16x128xf32>
    %49 = arith.select %46, %44, %48 : vector<16x128xi1>, vector<16x128xf32>
    %cst_18 = arith.constant 5.000000e-01 : f32
    %50 = vector.broadcast %cst_18 : f32 to vector<16x128xf32>
    %51 = arith.mulf %50, %14 : vector<16x128xf32>
    %cst_19 = arith.constant 1.000000e+00 : f32
    %52 = vector.broadcast %cst_19 : f32 to vector<16x128xf32>
    %53 = arith.addf %52, %49 : vector<16x128xf32>
    %54 = arith.mulf %51, %53 : vector<16x128xf32>
    %c0_20 = arith.constant 0 : index
    %c0_21 = arith.constant 0 : index
    %55 = vector.load %arg3[%c0_20, %c0_21] : memref<256x128xf32, #tpu.memory_space<vmem>>, vector<256x128xf32>
    %c0_22 = arith.constant 0 : index
    %c0_23 = arith.constant 0 : index
    %56 = vector.load %arg4[%c0_22, %c0_23] : memref<384x128xf32, #tpu.memory_space<vmem>>, vector<384x128xf32>
    %c0_24 = arith.constant 0 : index
    %c0_25 = arith.constant 0 : index
    %57 = vector.load %arg5[%c0_24, %c0_25] : memref<128x128xf32, #tpu.memory_space<vmem>>, vector<128x128xf32>
    %c0_26 = arith.constant 0 : index
    %c0_27 = arith.constant 0 : index
    %58 = vector.load %arg6[%c0_26, %c0_27] : memref<128x64xf32, #tpu.memory_space<vmem>>, vector<128x64xf32>
    %c0_28 = arith.constant 0 : index
    %c0_29 = arith.constant 0 : index
    %59 = vector.load %arg7[%c0_28, %c0_29] : memref<64x128xf32, #tpu.memory_space<vmem>>, vector<64x128xf32>
    %c0_30 = arith.constant 0 : index
    %c0_31 = arith.constant 0 : index
    %60 = vector.load %arg8[%c0_30, %c0_31] : memref<3x128xf32, #tpu.memory_space<vmem>>, vector<3x128xf32>
    %c0_32 = arith.constant 0 : index
    %c0_33 = arith.constant 0 : index
    %61 = vector.load %arg9[%c0_32, %c0_33] : memref<8x64xf32, #tpu.memory_space<vmem>>, vector<8x64xf32>
    %cst_34 = arith.constant 0.000000e+00 : f32
    %62 = vector.broadcast %cst_34 : f32 to vector<2x128xf32>
    %cst_35 = arith.constant 0.000000e+00 : f32
    %63 = vector.broadcast %cst_35 : f32 to vector<2x128xf32>
    %64 = vector.extract_strided_slice %54 {offsets = [2, 0], sizes = [14, 128], strides = [1, 1]} : vector<16x128xf32> to vector<14x128xf32>
    %65 = tpu.concatenate %64, %62 in 0 : vector<14x128xf32>, vector<2x128xf32> -> vector<16x128xf32>
    %66 = tpu.concatenate %54, %65 in 1 : vector<16x128xf32>, vector<16x128xf32> -> vector<16x256xf32>
    %cst_36 = arith.constant dense<0.000000e+00> : vector<16x128xf32>
    %67 = tpu.matmul %66, %55, %cst_36 {dimension_numbers = #tpu.dot_dimension_numbers<[1], [0], [0], [1], [0, 0, 1, 1], [], []>} : vector<16x256xf32>, vector<256x128xf32>, vector<16x128xf32> -> vector<16x128xf32>
    %68 = vector.extract_strided_slice %60 {offsets = [0, 0], sizes = [1, 128], strides = [1, 1]} : vector<3x128xf32> to vector<1x128xf32>
    %69 = vector.broadcast %68 : vector<1x128xf32> to vector<16x128xf32>
    %70 = arith.addf %67, %69 : vector<16x128xf32>
    %71 = vector.extract_strided_slice %61 {offsets = [0, 0], sizes = [1, 64], strides = [1, 1]} : vector<8x64xf32> to vector<1x64xf32>
    %72 = vector.extract_strided_slice %61 {offsets = [1, 0], sizes = [1, 64], strides = [1, 1]} : vector<8x64xf32> to vector<1x64xf32>
    %cst_37 = arith.constant dense<0.000000e+00> : vector<128xf32>
    %73 = vector.multi_reduction <add>, %70, %cst_37 [0] : vector<16x128xf32> to vector<128xf32>
    %74 = vector.shape_cast %73 : vector<128xf32> to vector<1x128xf32>
    %75 = arith.mulf %70, %70 : vector<16x128xf32>
    %cst_38 = arith.constant dense<0.000000e+00> : vector<128xf32>
    %76 = vector.multi_reduction <add>, %75, %cst_38 [0] : vector<16x128xf32> to vector<128xf32>
    %77 = vector.shape_cast %76 : vector<128xf32> to vector<1x128xf32>
    %78 = tpu.concatenate %74, %77 in 0 : vector<1x128xf32>, vector<1x128xf32> -> vector<2x128xf32>
    %cst_39 = arith.constant dense<0.000000e+00> : vector<2x64xf32>
    %79 = tpu.matmul %78, %58, %cst_39 {dimension_numbers = #tpu.dot_dimension_numbers<[1], [0], [0], [1], [0, 0, 1, 1], [], []>} : vector<2x128xf32>, vector<128x64xf32>, vector<2x64xf32> -> vector<2x64xf32>
    %cst_40 = arith.constant 3.125000e-02 : f32
    %80 = vector.broadcast %cst_40 : f32 to vector<2x64xf32>
    %81 = arith.mulf %79, %80 : vector<2x64xf32>
    %82 = vector.extract_strided_slice %81 {offsets = [0, 0], sizes = [1, 64], strides = [1, 1]} : vector<2x64xf32> to vector<1x64xf32>
    %83 = vector.extract_strided_slice %81 {offsets = [1, 0], sizes = [1, 64], strides = [1, 1]} : vector<2x64xf32> to vector<1x64xf32>
    %84 = arith.mulf %82, %82 : vector<1x64xf32>
    %85 = arith.subf %83, %84 : vector<1x64xf32>
    %cst_41 = arith.constant 9.99999974E-6 : f32
    %86 = vector.broadcast %cst_41 : f32 to vector<1x64xf32>
    %87 = arith.addf %85, %86 : vector<1x64xf32>
    %88 = math.rsqrt %87 : vector<1x64xf32>
    %89 = arith.mulf %71, %88 : vector<1x64xf32>
    %90 = arith.mulf %82, %89 : vector<1x64xf32>
    %91 = arith.subf %72, %90 : vector<1x64xf32>
    %92 = tpu.concatenate %89, %91 in 0 : vector<1x64xf32>, vector<1x64xf32> -> vector<2x64xf32>
    %cst_42 = arith.constant dense<0.000000e+00> : vector<2x128xf32>
    %93 = tpu.matmul %92, %59, %cst_42 {dimension_numbers = #tpu.dot_dimension_numbers<[1], [0], [0], [1], [0, 0, 1, 1], [], []>} : vector<2x64xf32>, vector<64x128xf32>, vector<2x128xf32> -> vector<2x128xf32>
    %94 = vector.extract_strided_slice %93 {offsets = [0, 0], sizes = [1, 128], strides = [1, 1]} : vector<2x128xf32> to vector<1x128xf32>
    %95 = vector.broadcast %94 : vector<1x128xf32> to vector<16x128xf32>
    %96 = arith.mulf %70, %95 : vector<16x128xf32>
    %97 = vector.extract_strided_slice %93 {offsets = [1, 0], sizes = [1, 128], strides = [1, 1]} : vector<2x128xf32> to vector<1x128xf32>
    %98 = vector.broadcast %97 : vector<1x128xf32> to vector<16x128xf32>
    %99 = arith.addf %96, %98 : vector<16x128xf32>
    %cst_43 = arith.constant 0.707106769 : f32
    %100 = vector.broadcast %cst_43 : f32 to vector<16x128xf32>
    %101 = arith.mulf %99, %100 : vector<16x128xf32>
    %102 = math.absf %101 : vector<16x128xf32>
    %cst_44 = arith.constant 0.327591091 : f32
    %103 = vector.broadcast %cst_44 : f32 to vector<16x128xf32>
    %104 = arith.mulf %103, %102 : vector<16x128xf32>
    %cst_45 = arith.constant 1.000000e+00 : f32
    %105 = vector.broadcast %cst_45 : f32 to vector<16x128xf32>
    %106 = arith.addf %105, %104 : vector<16x128xf32>
    %cst_46 = arith.constant 1.000000e+00 : f32
    %107 = vector.broadcast %cst_46 : f32 to vector<16x128xf32>
    %108 = arith.divf %107, %106 : vector<16x128xf32>
    %cst_47 = arith.constant 1.06140542 : f32
    %109 = vector.broadcast %cst_47 : f32 to vector<16x128xf32>
    %110 = arith.mulf %109, %108 : vector<16x128xf32>
    %cst_48 = arith.constant -1.45315206 : f32
    %111 = vector.broadcast %cst_48 : f32 to vector<16x128xf32>
    %112 = arith.addf %110, %111 : vector<16x128xf32>
    %113 = arith.mulf %112, %108 : vector<16x128xf32>
    %cst_49 = arith.constant 1.42141378 : f32
    %114 = vector.broadcast %cst_49 : f32 to vector<16x128xf32>
    %115 = arith.addf %113, %114 : vector<16x128xf32>
    %116 = arith.mulf %115, %108 : vector<16x128xf32>
    %cst_50 = arith.constant -0.284496725 : f32
    %117 = vector.broadcast %cst_50 : f32 to vector<16x128xf32>
    %118 = arith.addf %116, %117 : vector<16x128xf32>
    %119 = arith.mulf %118, %108 : vector<16x128xf32>
    %cst_51 = arith.constant 0.254829586 : f32
    %120 = vector.broadcast %cst_51 : f32 to vector<16x128xf32>
    %121 = arith.addf %119, %120 : vector<16x128xf32>
    %122 = arith.mulf %121, %108 : vector<16x128xf32>
    %cst_52 = arith.constant 0.000000e+00 : f32
    %123 = vector.broadcast %cst_52 : f32 to vector<16x128xf32>
    %124 = arith.subf %123, %102 : vector<16x128xf32>
    %125 = arith.mulf %124, %102 : vector<16x128xf32>
    %126 = math.exp %125 : vector<16x128xf32>
    %127 = arith.mulf %122, %126 : vector<16x128xf32>
    %cst_53 = arith.constant 1.000000e+00 : f32
    %128 = vector.broadcast %cst_53 : f32 to vector<16x128xf32>
    %129 = arith.subf %128, %127 : vector<16x128xf32>
    %cst_54 = arith.constant 0.000000e+00 : f32
    %130 = vector.broadcast %cst_54 : f32 to vector<16x128xf32>
    %131 = arith.cmpf oge, %101, %130 : vector<16x128xf32>
    %cst_55 = arith.constant 0.000000e+00 : f32
    %132 = vector.broadcast %cst_55 : f32 to vector<16x128xf32>
    %133 = arith.subf %132, %129 : vector<16x128xf32>
    %134 = arith.select %131, %129, %133 : vector<16x128xi1>, vector<16x128xf32>
    %cst_56 = arith.constant 5.000000e-01 : f32
    %135 = vector.broadcast %cst_56 : f32 to vector<16x128xf32>
    %136 = arith.mulf %135, %99 : vector<16x128xf32>
    %cst_57 = arith.constant 1.000000e+00 : f32
    %137 = vector.broadcast %cst_57 : f32 to vector<16x128xf32>
    %138 = arith.addf %137, %134 : vector<16x128xf32>
    %139 = arith.mulf %136, %138 : vector<16x128xf32>
    %140 = vector.extract_strided_slice %139 {offsets = [2, 0], sizes = [14, 128], strides = [1, 1]} : vector<16x128xf32> to vector<14x128xf32>
    %141 = tpu.concatenate %140, %63 in 0 : vector<14x128xf32>, vector<2x128xf32> -> vector<16x128xf32>
    %142 = vector.extract_strided_slice %139 {offsets = [0, 0], sizes = [14, 128], strides = [1, 1]} : vector<16x128xf32> to vector<14x128xf32>
    %143 = tpu.concatenate %63, %142 in 0 : vector<2x128xf32>, vector<14x128xf32> -> vector<16x128xf32>
    %144 = tpu.concatenate %139, %141, %143 in 1 : vector<16x128xf32>, vector<16x128xf32>, vector<16x128xf32> -> vector<16x384xf32>
    %cst_58 = arith.constant dense<0.000000e+00> : vector<16x128xf32>
    %145 = tpu.matmul %144, %56, %cst_58 {dimension_numbers = #tpu.dot_dimension_numbers<[1], [0], [0], [1], [0, 0, 1, 1], [], []>} : vector<16x384xf32>, vector<384x128xf32>, vector<16x128xf32> -> vector<16x128xf32>
    %146 = vector.extract_strided_slice %60 {offsets = [1, 0], sizes = [1, 128], strides = [1, 1]} : vector<3x128xf32> to vector<1x128xf32>
    %147 = vector.broadcast %146 : vector<1x128xf32> to vector<16x128xf32>
    %148 = arith.addf %145, %147 : vector<16x128xf32>
    %149 = vector.extract_strided_slice %61 {offsets = [2, 0], sizes = [1, 64], strides = [1, 1]} : vector<8x64xf32> to vector<1x64xf32>
    %150 = vector.extract_strided_slice %61 {offsets = [3, 0], sizes = [1, 64], strides = [1, 1]} : vector<8x64xf32> to vector<1x64xf32>
    %cst_59 = arith.constant dense<0.000000e+00> : vector<128xf32>
    %151 = vector.multi_reduction <add>, %148, %cst_59 [0] : vector<16x128xf32> to vector<128xf32>
    %152 = vector.shape_cast %151 : vector<128xf32> to vector<1x128xf32>
    %153 = arith.mulf %148, %148 : vector<16x128xf32>
    %cst_60 = arith.constant dense<0.000000e+00> : vector<128xf32>
    %154 = vector.multi_reduction <add>, %153, %cst_60 [0] : vector<16x128xf32> to vector<128xf32>
    %155 = vector.shape_cast %154 : vector<128xf32> to vector<1x128xf32>
    %156 = tpu.concatenate %152, %155 in 0 : vector<1x128xf32>, vector<1x128xf32> -> vector<2x128xf32>
    %cst_61 = arith.constant dense<0.000000e+00> : vector<2x64xf32>
    %157 = tpu.matmul %156, %58, %cst_61 {dimension_numbers = #tpu.dot_dimension_numbers<[1], [0], [0], [1], [0, 0, 1, 1], [], []>} : vector<2x128xf32>, vector<128x64xf32>, vector<2x64xf32> -> vector<2x64xf32>
    %cst_62 = arith.constant 3.125000e-02 : f32
    %158 = vector.broadcast %cst_62 : f32 to vector<2x64xf32>
    %159 = arith.mulf %157, %158 : vector<2x64xf32>
    %160 = vector.extract_strided_slice %159 {offsets = [0, 0], sizes = [1, 64], strides = [1, 1]} : vector<2x64xf32> to vector<1x64xf32>
    %161 = vector.extract_strided_slice %159 {offsets = [1, 0], sizes = [1, 64], strides = [1, 1]} : vector<2x64xf32> to vector<1x64xf32>
    %162 = arith.mulf %160, %160 : vector<1x64xf32>
    %163 = arith.subf %161, %162 : vector<1x64xf32>
    %cst_63 = arith.constant 9.99999974E-6 : f32
    %164 = vector.broadcast %cst_63 : f32 to vector<1x64xf32>
    %165 = arith.addf %163, %164 : vector<1x64xf32>
    %166 = math.rsqrt %165 : vector<1x64xf32>
    %167 = arith.mulf %149, %166 : vector<1x64xf32>
    %168 = arith.mulf %160, %167 : vector<1x64xf32>
    %169 = arith.subf %150, %168 : vector<1x64xf32>
    %170 = tpu.concatenate %167, %169 in 0 : vector<1x64xf32>, vector<1x64xf32> -> vector<2x64xf32>
    %cst_64 = arith.constant dense<0.000000e+00> : vector<2x128xf32>
    %171 = tpu.matmul %170, %59, %cst_64 {dimension_numbers = #tpu.dot_dimension_numbers<[1], [0], [0], [1], [0, 0, 1, 1], [], []>} : vector<2x64xf32>, vector<64x128xf32>, vector<2x128xf32> -> vector<2x128xf32>
    %172 = vector.extract_strided_slice %171 {offsets = [0, 0], sizes = [1, 128], strides = [1, 1]} : vector<2x128xf32> to vector<1x128xf32>
    %173 = vector.broadcast %172 : vector<1x128xf32> to vector<16x128xf32>
    %174 = arith.mulf %148, %173 : vector<16x128xf32>
    %175 = vector.extract_strided_slice %171 {offsets = [1, 0], sizes = [1, 128], strides = [1, 1]} : vector<2x128xf32> to vector<1x128xf32>
    %176 = vector.broadcast %175 : vector<1x128xf32> to vector<16x128xf32>
    %177 = arith.addf %174, %176 : vector<16x128xf32>
    %cst_65 = arith.constant dense<0.000000e+00> : vector<16x128xf32>
    %178 = tpu.matmul %54, %57, %cst_65 {dimension_numbers = #tpu.dot_dimension_numbers<[1], [0], [0], [1], [0, 0, 1, 1], [], []>} : vector<16x128xf32>, vector<128x128xf32>, vector<16x128xf32> -> vector<16x128xf32>
    %179 = vector.extract_strided_slice %60 {offsets = [2, 0], sizes = [1, 128], strides = [1, 1]} : vector<3x128xf32> to vector<1x128xf32>
    %180 = vector.broadcast %179 : vector<1x128xf32> to vector<16x128xf32>
    %181 = arith.addf %178, %180 : vector<16x128xf32>
    %182 = vector.extract_strided_slice %61 {offsets = [4, 0], sizes = [1, 64], strides = [1, 1]} : vector<8x64xf32> to vector<1x64xf32>
    %183 = vector.extract_strided_slice %61 {offsets = [5, 0], sizes = [1, 64], strides = [1, 1]} : vector<8x64xf32> to vector<1x64xf32>
    %cst_66 = arith.constant dense<0.000000e+00> : vector<128xf32>
    %184 = vector.multi_reduction <add>, %181, %cst_66 [0] : vector<16x128xf32> to vector<128xf32>
    %185 = vector.shape_cast %184 : vector<128xf32> to vector<1x128xf32>
    %186 = arith.mulf %181, %181 : vector<16x128xf32>
    %cst_67 = arith.constant dense<0.000000e+00> : vector<128xf32>
    %187 = vector.multi_reduction <add>, %186, %cst_67 [0] : vector<16x128xf32> to vector<128xf32>
    %188 = vector.shape_cast %187 : vector<128xf32> to vector<1x128xf32>
    %189 = tpu.concatenate %185, %188 in 0 : vector<1x128xf32>, vector<1x128xf32> -> vector<2x128xf32>
    %cst_68 = arith.constant dense<0.000000e+00> : vector<2x64xf32>
    %190 = tpu.matmul %189, %58, %cst_68 {dimension_numbers = #tpu.dot_dimension_numbers<[1], [0], [0], [1], [0, 0, 1, 1], [], []>} : vector<2x128xf32>, vector<128x64xf32>, vector<2x64xf32> -> vector<2x64xf32>
    %cst_69 = arith.constant 3.125000e-02 : f32
    %191 = vector.broadcast %cst_69 : f32 to vector<2x64xf32>
    %192 = arith.mulf %190, %191 : vector<2x64xf32>
    %193 = vector.extract_strided_slice %192 {offsets = [0, 0], sizes = [1, 64], strides = [1, 1]} : vector<2x64xf32> to vector<1x64xf32>
    %194 = vector.extract_strided_slice %192 {offsets = [1, 0], sizes = [1, 64], strides = [1, 1]} : vector<2x64xf32> to vector<1x64xf32>
    %195 = arith.mulf %193, %193 : vector<1x64xf32>
    %196 = arith.subf %194, %195 : vector<1x64xf32>
    %cst_70 = arith.constant 9.99999974E-6 : f32
    %197 = vector.broadcast %cst_70 : f32 to vector<1x64xf32>
    %198 = arith.addf %196, %197 : vector<1x64xf32>
    %199 = math.rsqrt %198 : vector<1x64xf32>
    %200 = arith.mulf %182, %199 : vector<1x64xf32>
    %201 = arith.mulf %193, %200 : vector<1x64xf32>
    %202 = arith.subf %183, %201 : vector<1x64xf32>
    %203 = tpu.concatenate %200, %202 in 0 : vector<1x64xf32>, vector<1x64xf32> -> vector<2x64xf32>
    %cst_71 = arith.constant dense<0.000000e+00> : vector<2x128xf32>
    %204 = tpu.matmul %203, %59, %cst_71 {dimension_numbers = #tpu.dot_dimension_numbers<[1], [0], [0], [1], [0, 0, 1, 1], [], []>} : vector<2x64xf32>, vector<64x128xf32>, vector<2x128xf32> -> vector<2x128xf32>
    %205 = vector.extract_strided_slice %204 {offsets = [0, 0], sizes = [1, 128], strides = [1, 1]} : vector<2x128xf32> to vector<1x128xf32>
    %206 = vector.broadcast %205 : vector<1x128xf32> to vector<16x128xf32>
    %207 = arith.mulf %181, %206 : vector<16x128xf32>
    %208 = vector.extract_strided_slice %204 {offsets = [1, 0], sizes = [1, 128], strides = [1, 1]} : vector<2x128xf32> to vector<1x128xf32>
    %209 = vector.broadcast %208 : vector<1x128xf32> to vector<16x128xf32>
    %210 = arith.addf %207, %209 : vector<16x128xf32>
    %211 = arith.addf %177, %210 : vector<16x128xf32>
    %cst_72 = arith.constant 0.707106769 : f32
    %212 = vector.broadcast %cst_72 : f32 to vector<16x128xf32>
    %213 = arith.mulf %211, %212 : vector<16x128xf32>
    %214 = math.absf %213 : vector<16x128xf32>
    %cst_73 = arith.constant 0.327591091 : f32
    %215 = vector.broadcast %cst_73 : f32 to vector<16x128xf32>
    %216 = arith.mulf %215, %214 : vector<16x128xf32>
    %cst_74 = arith.constant 1.000000e+00 : f32
    %217 = vector.broadcast %cst_74 : f32 to vector<16x128xf32>
    %218 = arith.addf %217, %216 : vector<16x128xf32>
    %cst_75 = arith.constant 1.000000e+00 : f32
    %219 = vector.broadcast %cst_75 : f32 to vector<16x128xf32>
    %220 = arith.divf %219, %218 : vector<16x128xf32>
    %cst_76 = arith.constant 1.06140542 : f32
    %221 = vector.broadcast %cst_76 : f32 to vector<16x128xf32>
    %222 = arith.mulf %221, %220 : vector<16x128xf32>
    %cst_77 = arith.constant -1.45315206 : f32
    %223 = vector.broadcast %cst_77 : f32 to vector<16x128xf32>
    %224 = arith.addf %222, %223 : vector<16x128xf32>
    %225 = arith.mulf %224, %220 : vector<16x128xf32>
    %cst_78 = arith.constant 1.42141378 : f32
    %226 = vector.broadcast %cst_78 : f32 to vector<16x128xf32>
    %227 = arith.addf %225, %226 : vector<16x128xf32>
    %228 = arith.mulf %227, %220 : vector<16x128xf32>
    %cst_79 = arith.constant -0.284496725 : f32
    %229 = vector.broadcast %cst_79 : f32 to vector<16x128xf32>
    %230 = arith.addf %228, %229 : vector<16x128xf32>
    %231 = arith.mulf %230, %220 : vector<16x128xf32>
    %cst_80 = arith.constant 0.254829586 : f32
    %232 = vector.broadcast %cst_80 : f32 to vector<16x128xf32>
    %233 = arith.addf %231, %232 : vector<16x128xf32>
    %234 = arith.mulf %233, %220 : vector<16x128xf32>
    %cst_81 = arith.constant 0.000000e+00 : f32
    %235 = vector.broadcast %cst_81 : f32 to vector<16x128xf32>
    %236 = arith.subf %235, %214 : vector<16x128xf32>
    %237 = arith.mulf %236, %214 : vector<16x128xf32>
    %238 = math.exp %237 : vector<16x128xf32>
    %239 = arith.mulf %234, %238 : vector<16x128xf32>
    %cst_82 = arith.constant 1.000000e+00 : f32
    %240 = vector.broadcast %cst_82 : f32 to vector<16x128xf32>
    %241 = arith.subf %240, %239 : vector<16x128xf32>
    %cst_83 = arith.constant 0.000000e+00 : f32
    %242 = vector.broadcast %cst_83 : f32 to vector<16x128xf32>
    %243 = arith.cmpf oge, %213, %242 : vector<16x128xf32>
    %cst_84 = arith.constant 0.000000e+00 : f32
    %244 = vector.broadcast %cst_84 : f32 to vector<16x128xf32>
    %245 = arith.subf %244, %241 : vector<16x128xf32>
    %246 = arith.select %243, %241, %245 : vector<16x128xi1>, vector<16x128xf32>
    %cst_85 = arith.constant 5.000000e-01 : f32
    %247 = vector.broadcast %cst_85 : f32 to vector<16x128xf32>
    %248 = arith.mulf %247, %211 : vector<16x128xf32>
    %cst_86 = arith.constant 1.000000e+00 : f32
    %249 = vector.broadcast %cst_86 : f32 to vector<16x128xf32>
    %250 = arith.addf %249, %246 : vector<16x128xf32>
    %251 = arith.mulf %248, %250 : vector<16x128xf32>
    %252 = vector.extract_strided_slice %61 {offsets = [6, 0], sizes = [1, 64], strides = [1, 1]} : vector<8x64xf32> to vector<1x64xf32>
    %253 = vector.extract_strided_slice %61 {offsets = [7, 0], sizes = [1, 64], strides = [1, 1]} : vector<8x64xf32> to vector<1x64xf32>
    %cst_87 = arith.constant dense<0.000000e+00> : vector<128xf32>
    %254 = vector.multi_reduction <add>, %251, %cst_87 [0] : vector<16x128xf32> to vector<128xf32>
    %255 = vector.shape_cast %254 : vector<128xf32> to vector<1x128xf32>
    %256 = arith.mulf %251, %251 : vector<16x128xf32>
    %cst_88 = arith.constant dense<0.000000e+00> : vector<128xf32>
    %257 = vector.multi_reduction <add>, %256, %cst_88 [0] : vector<16x128xf32> to vector<128xf32>
    %258 = vector.shape_cast %257 : vector<128xf32> to vector<1x128xf32>
    %259 = tpu.concatenate %255, %258 in 0 : vector<1x128xf32>, vector<1x128xf32> -> vector<2x128xf32>
    %cst_89 = arith.constant dense<0.000000e+00> : vector<2x64xf32>
    %260 = tpu.matmul %259, %58, %cst_89 {dimension_numbers = #tpu.dot_dimension_numbers<[1], [0], [0], [1], [0, 0, 1, 1], [], []>} : vector<2x128xf32>, vector<128x64xf32>, vector<2x64xf32> -> vector<2x64xf32>
    %cst_90 = arith.constant 3.125000e-02 : f32
    %261 = vector.broadcast %cst_90 : f32 to vector<2x64xf32>
    %262 = arith.mulf %260, %261 : vector<2x64xf32>
    %263 = vector.extract_strided_slice %262 {offsets = [0, 0], sizes = [1, 64], strides = [1, 1]} : vector<2x64xf32> to vector<1x64xf32>
    %264 = vector.extract_strided_slice %262 {offsets = [1, 0], sizes = [1, 64], strides = [1, 1]} : vector<2x64xf32> to vector<1x64xf32>
    %265 = arith.mulf %263, %263 : vector<1x64xf32>
    %266 = arith.subf %264, %265 : vector<1x64xf32>
    %cst_91 = arith.constant 9.99999974E-6 : f32
    %267 = vector.broadcast %cst_91 : f32 to vector<1x64xf32>
    %268 = arith.addf %266, %267 : vector<1x64xf32>
    %269 = math.rsqrt %268 : vector<1x64xf32>
    %270 = arith.mulf %252, %269 : vector<1x64xf32>
    %271 = arith.mulf %263, %270 : vector<1x64xf32>
    %272 = arith.subf %253, %271 : vector<1x64xf32>
    %273 = tpu.concatenate %270, %272 in 0 : vector<1x64xf32>, vector<1x64xf32> -> vector<2x64xf32>
    %cst_92 = arith.constant dense<0.000000e+00> : vector<2x128xf32>
    %274 = tpu.matmul %273, %59, %cst_92 {dimension_numbers = #tpu.dot_dimension_numbers<[1], [0], [0], [1], [0, 0, 1, 1], [], []>} : vector<2x64xf32>, vector<64x128xf32>, vector<2x128xf32> -> vector<2x128xf32>
    %275 = vector.extract_strided_slice %274 {offsets = [0, 0], sizes = [1, 128], strides = [1, 1]} : vector<2x128xf32> to vector<1x128xf32>
    %276 = vector.broadcast %275 : vector<1x128xf32> to vector<16x128xf32>
    %277 = arith.mulf %251, %276 : vector<16x128xf32>
    %278 = vector.extract_strided_slice %274 {offsets = [1, 0], sizes = [1, 128], strides = [1, 1]} : vector<2x128xf32> to vector<1x128xf32>
    %279 = vector.broadcast %278 : vector<1x128xf32> to vector<16x128xf32>
    %280 = arith.addf %277, %279 : vector<16x128xf32>
    %cst_93 = arith.constant 0.707106769 : f32
    %281 = vector.broadcast %cst_93 : f32 to vector<16x128xf32>
    %282 = arith.mulf %280, %281 : vector<16x128xf32>
    %283 = math.absf %282 : vector<16x128xf32>
    %cst_94 = arith.constant 0.327591091 : f32
    %284 = vector.broadcast %cst_94 : f32 to vector<16x128xf32>
    %285 = arith.mulf %284, %283 : vector<16x128xf32>
    %cst_95 = arith.constant 1.000000e+00 : f32
    %286 = vector.broadcast %cst_95 : f32 to vector<16x128xf32>
    %287 = arith.addf %286, %285 : vector<16x128xf32>
    %cst_96 = arith.constant 1.000000e+00 : f32
    %288 = vector.broadcast %cst_96 : f32 to vector<16x128xf32>
    %289 = arith.divf %288, %287 : vector<16x128xf32>
    %cst_97 = arith.constant 1.06140542 : f32
    %290 = vector.broadcast %cst_97 : f32 to vector<16x128xf32>
    %291 = arith.mulf %290, %289 : vector<16x128xf32>
    %cst_98 = arith.constant -1.45315206 : f32
    %292 = vector.broadcast %cst_98 : f32 to vector<16x128xf32>
    %293 = arith.addf %291, %292 : vector<16x128xf32>
    %294 = arith.mulf %293, %289 : vector<16x128xf32>
    %cst_99 = arith.constant 1.42141378 : f32
    %295 = vector.broadcast %cst_99 : f32 to vector<16x128xf32>
    %296 = arith.addf %294, %295 : vector<16x128xf32>
    %297 = arith.mulf %296, %289 : vector<16x128xf32>
    %cst_100 = arith.constant -0.284496725 : f32
    %298 = vector.broadcast %cst_100 : f32 to vector<16x128xf32>
    %299 = arith.addf %297, %298 : vector<16x128xf32>
    %300 = arith.mulf %299, %289 : vector<16x128xf32>
    %cst_101 = arith.constant 0.254829586 : f32
    %301 = vector.broadcast %cst_101 : f32 to vector<16x128xf32>
    %302 = arith.addf %300, %301 : vector<16x128xf32>
    %303 = arith.mulf %302, %289 : vector<16x128xf32>
    %cst_102 = arith.constant 0.000000e+00 : f32
    %304 = vector.broadcast %cst_102 : f32 to vector<16x128xf32>
    %305 = arith.subf %304, %283 : vector<16x128xf32>
    %306 = arith.mulf %305, %283 : vector<16x128xf32>
    %307 = math.exp %306 : vector<16x128xf32>
    %308 = arith.mulf %303, %307 : vector<16x128xf32>
    %cst_103 = arith.constant 1.000000e+00 : f32
    %309 = vector.broadcast %cst_103 : f32 to vector<16x128xf32>
    %310 = arith.subf %309, %308 : vector<16x128xf32>
    %cst_104 = arith.constant 0.000000e+00 : f32
    %311 = vector.broadcast %cst_104 : f32 to vector<16x128xf32>
    %312 = arith.cmpf oge, %282, %311 : vector<16x128xf32>
    %cst_105 = arith.constant 0.000000e+00 : f32
    %313 = vector.broadcast %cst_105 : f32 to vector<16x128xf32>
    %314 = arith.subf %313, %310 : vector<16x128xf32>
    %315 = arith.select %312, %310, %314 : vector<16x128xi1>, vector<16x128xf32>
    %cst_106 = arith.constant 5.000000e-01 : f32
    %316 = vector.broadcast %cst_106 : f32 to vector<16x128xf32>
    %317 = arith.mulf %316, %280 : vector<16x128xf32>
    %cst_107 = arith.constant 1.000000e+00 : f32
    %318 = vector.broadcast %cst_107 : f32 to vector<16x128xf32>
    %319 = arith.addf %318, %315 : vector<16x128xf32>
    %320 = arith.mulf %317, %319 : vector<16x128xf32>
    %c0_108 = arith.constant 0 : index
    %c0_109 = arith.constant 0 : index
    %321 = vector.load %arg10[%c0_108, %c0_109] : memref<256x128xf32, #tpu.memory_space<vmem>>, vector<256x128xf32>
    %c0_110 = arith.constant 0 : index
    %c0_111 = arith.constant 0 : index
    %322 = vector.load %arg11[%c0_110, %c0_111] : memref<384x128xf32, #tpu.memory_space<vmem>>, vector<384x128xf32>
    %c0_112 = arith.constant 0 : index
    %c0_113 = arith.constant 0 : index
    %323 = vector.load %arg12[%c0_112, %c0_113] : memref<128x128xf32, #tpu.memory_space<vmem>>, vector<128x128xf32>
    %c0_114 = arith.constant 0 : index
    %c0_115 = arith.constant 0 : index
    %324 = vector.load %arg13[%c0_114, %c0_115] : memref<128x32xf32, #tpu.memory_space<vmem>>, vector<128x32xf32>
    %c0_116 = arith.constant 0 : index
    %c0_117 = arith.constant 0 : index
    %325 = vector.load %arg14[%c0_116, %c0_117] : memref<32x128xf32, #tpu.memory_space<vmem>>, vector<32x128xf32>
    %c0_118 = arith.constant 0 : index
    %c0_119 = arith.constant 0 : index
    %326 = vector.load %arg15[%c0_118, %c0_119] : memref<3x128xf32, #tpu.memory_space<vmem>>, vector<3x128xf32>
    %c0_120 = arith.constant 0 : index
    %c0_121 = arith.constant 0 : index
    %327 = vector.load %arg16[%c0_120, %c0_121] : memref<8x32xf32, #tpu.memory_space<vmem>>, vector<8x32xf32>
    %cst_122 = arith.constant 0.000000e+00 : f32
    %328 = vector.broadcast %cst_122 : f32 to vector<2x128xf32>
    %cst_123 = arith.constant 0.000000e+00 : f32
    %329 = vector.broadcast %cst_123 : f32 to vector<2x128xf32>
    %330 = vector.extract_strided_slice %320 {offsets = [2, 0], sizes = [14, 128], strides = [1, 1]} : vector<16x128xf32> to vector<14x128xf32>
    %331 = tpu.concatenate %330, %328 in 0 : vector<14x128xf32>, vector<2x128xf32> -> vector<16x128xf32>
    %332 = tpu.concatenate %320, %331 in 1 : vector<16x128xf32>, vector<16x128xf32> -> vector<16x256xf32>
    %cst_124 = arith.constant dense<0.000000e+00> : vector<16x128xf32>
    %333 = tpu.matmul %332, %321, %cst_124 {dimension_numbers = #tpu.dot_dimension_numbers<[1], [0], [0], [1], [0, 0, 1, 1], [], []>} : vector<16x256xf32>, vector<256x128xf32>, vector<16x128xf32> -> vector<16x128xf32>
    %334 = vector.extract_strided_slice %326 {offsets = [0, 0], sizes = [1, 128], strides = [1, 1]} : vector<3x128xf32> to vector<1x128xf32>
    %335 = vector.broadcast %334 : vector<1x128xf32> to vector<16x128xf32>
    %336 = arith.addf %333, %335 : vector<16x128xf32>
    %337 = vector.extract_strided_slice %327 {offsets = [0, 0], sizes = [1, 32], strides = [1, 1]} : vector<8x32xf32> to vector<1x32xf32>
    %338 = vector.extract_strided_slice %327 {offsets = [1, 0], sizes = [1, 32], strides = [1, 1]} : vector<8x32xf32> to vector<1x32xf32>
    %cst_125 = arith.constant dense<0.000000e+00> : vector<128xf32>
    %339 = vector.multi_reduction <add>, %336, %cst_125 [0] : vector<16x128xf32> to vector<128xf32>
    %340 = vector.shape_cast %339 : vector<128xf32> to vector<1x128xf32>
    %341 = arith.mulf %336, %336 : vector<16x128xf32>
    %cst_126 = arith.constant dense<0.000000e+00> : vector<128xf32>
    %342 = vector.multi_reduction <add>, %341, %cst_126 [0] : vector<16x128xf32> to vector<128xf32>
    %343 = vector.shape_cast %342 : vector<128xf32> to vector<1x128xf32>
    %344 = tpu.concatenate %340, %343 in 0 : vector<1x128xf32>, vector<1x128xf32> -> vector<2x128xf32>
    %cst_127 = arith.constant dense<0.000000e+00> : vector<2x32xf32>
    %345 = tpu.matmul %344, %324, %cst_127 {dimension_numbers = #tpu.dot_dimension_numbers<[1], [0], [0], [1], [0, 0, 1, 1], [], []>} : vector<2x128xf32>, vector<128x32xf32>, vector<2x32xf32> -> vector<2x32xf32>
    %cst_128 = arith.constant 1.562500e-02 : f32
    %346 = vector.broadcast %cst_128 : f32 to vector<2x32xf32>
    %347 = arith.mulf %345, %346 : vector<2x32xf32>
    %348 = vector.extract_strided_slice %347 {offsets = [0, 0], sizes = [1, 32], strides = [1, 1]} : vector<2x32xf32> to vector<1x32xf32>
    %349 = vector.extract_strided_slice %347 {offsets = [1, 0], sizes = [1, 32], strides = [1, 1]} : vector<2x32xf32> to vector<1x32xf32>
    %350 = arith.mulf %348, %348 : vector<1x32xf32>
    %351 = arith.subf %349, %350 : vector<1x32xf32>
    %cst_129 = arith.constant 9.99999974E-6 : f32
    %352 = vector.broadcast %cst_129 : f32 to vector<1x32xf32>
    %353 = arith.addf %351, %352 : vector<1x32xf32>
    %354 = math.rsqrt %353 : vector<1x32xf32>
    %355 = arith.mulf %337, %354 : vector<1x32xf32>
    %356 = arith.mulf %348, %355 : vector<1x32xf32>
    %357 = arith.subf %338, %356 : vector<1x32xf32>
    %358 = tpu.concatenate %355, %357 in 0 : vector<1x32xf32>, vector<1x32xf32> -> vector<2x32xf32>
    %cst_130 = arith.constant dense<0.000000e+00> : vector<2x128xf32>
    %359 = tpu.matmul %358, %325, %cst_130 {dimension_numbers = #tpu.dot_dimension_numbers<[1], [0], [0], [1], [0, 0, 1, 1], [], []>} : vector<2x32xf32>, vector<32x128xf32>, vector<2x128xf32> -> vector<2x128xf32>
    %360 = vector.extract_strided_slice %359 {offsets = [0, 0], sizes = [1, 128], strides = [1, 1]} : vector<2x128xf32> to vector<1x128xf32>
    %361 = vector.broadcast %360 : vector<1x128xf32> to vector<16x128xf32>
    %362 = arith.mulf %336, %361 : vector<16x128xf32>
    %363 = vector.extract_strided_slice %359 {offsets = [1, 0], sizes = [1, 128], strides = [1, 1]} : vector<2x128xf32> to vector<1x128xf32>
    %364 = vector.broadcast %363 : vector<1x128xf32> to vector<16x128xf32>
    %365 = arith.addf %362, %364 : vector<16x128xf32>
    %cst_131 = arith.constant 0.707106769 : f32
    %366 = vector.broadcast %cst_131 : f32 to vector<16x128xf32>
    %367 = arith.mulf %365, %366 : vector<16x128xf32>
    %368 = math.absf %367 : vector<16x128xf32>
    %cst_132 = arith.constant 0.327591091 : f32
    %369 = vector.broadcast %cst_132 : f32 to vector<16x128xf32>
    %370 = arith.mulf %369, %368 : vector<16x128xf32>
    %cst_133 = arith.constant 1.000000e+00 : f32
    %371 = vector.broadcast %cst_133 : f32 to vector<16x128xf32>
    %372 = arith.addf %371, %370 : vector<16x128xf32>
    %cst_134 = arith.constant 1.000000e+00 : f32
    %373 = vector.broadcast %cst_134 : f32 to vector<16x128xf32>
    %374 = arith.divf %373, %372 : vector<16x128xf32>
    %cst_135 = arith.constant 1.06140542 : f32
    %375 = vector.broadcast %cst_135 : f32 to vector<16x128xf32>
    %376 = arith.mulf %375, %374 : vector<16x128xf32>
    %cst_136 = arith.constant -1.45315206 : f32
    %377 = vector.broadcast %cst_136 : f32 to vector<16x128xf32>
    %378 = arith.addf %376, %377 : vector<16x128xf32>
    %379 = arith.mulf %378, %374 : vector<16x128xf32>
    %cst_137 = arith.constant 1.42141378 : f32
    %380 = vector.broadcast %cst_137 : f32 to vector<16x128xf32>
    %381 = arith.addf %379, %380 : vector<16x128xf32>
    %382 = arith.mulf %381, %374 : vector<16x128xf32>
    %cst_138 = arith.constant -0.284496725 : f32
    %383 = vector.broadcast %cst_138 : f32 to vector<16x128xf32>
    %384 = arith.addf %382, %383 : vector<16x128xf32>
    %385 = arith.mulf %384, %374 : vector<16x128xf32>
    %cst_139 = arith.constant 0.254829586 : f32
    %386 = vector.broadcast %cst_139 : f32 to vector<16x128xf32>
    %387 = arith.addf %385, %386 : vector<16x128xf32>
    %388 = arith.mulf %387, %374 : vector<16x128xf32>
    %cst_140 = arith.constant 0.000000e+00 : f32
    %389 = vector.broadcast %cst_140 : f32 to vector<16x128xf32>
    %390 = arith.subf %389, %368 : vector<16x128xf32>
    %391 = arith.mulf %390, %368 : vector<16x128xf32>
    %392 = math.exp %391 : vector<16x128xf32>
    %393 = arith.mulf %388, %392 : vector<16x128xf32>
    %cst_141 = arith.constant 1.000000e+00 : f32
    %394 = vector.broadcast %cst_141 : f32 to vector<16x128xf32>
    %395 = arith.subf %394, %393 : vector<16x128xf32>
    %cst_142 = arith.constant 0.000000e+00 : f32
    %396 = vector.broadcast %cst_142 : f32 to vector<16x128xf32>
    %397 = arith.cmpf oge, %367, %396 : vector<16x128xf32>
    %cst_143 = arith.constant 0.000000e+00 : f32
    %398 = vector.broadcast %cst_143 : f32 to vector<16x128xf32>
    %399 = arith.subf %398, %395 : vector<16x128xf32>
    %400 = arith.select %397, %395, %399 : vector<16x128xi1>, vector<16x128xf32>
    %cst_144 = arith.constant 5.000000e-01 : f32
    %401 = vector.broadcast %cst_144 : f32 to vector<16x128xf32>
    %402 = arith.mulf %401, %365 : vector<16x128xf32>
    %cst_145 = arith.constant 1.000000e+00 : f32
    %403 = vector.broadcast %cst_145 : f32 to vector<16x128xf32>
    %404 = arith.addf %403, %400 : vector<16x128xf32>
    %405 = arith.mulf %402, %404 : vector<16x128xf32>
    %406 = vector.extract_strided_slice %405 {offsets = [2, 0], sizes = [14, 128], strides = [1, 1]} : vector<16x128xf32> to vector<14x128xf32>
    %407 = tpu.concatenate %406, %329 in 0 : vector<14x128xf32>, vector<2x128xf32> -> vector<16x128xf32>
    %408 = vector.extract_strided_slice %405 {offsets = [0, 0], sizes = [14, 128], strides = [1, 1]} : vector<16x128xf32> to vector<14x128xf32>
    %409 = tpu.concatenate %329, %408 in 0 : vector<2x128xf32>, vector<14x128xf32> -> vector<16x128xf32>
    %410 = tpu.concatenate %405, %407, %409 in 1 : vector<16x128xf32>, vector<16x128xf32>, vector<16x128xf32> -> vector<16x384xf32>
    %cst_146 = arith.constant dense<0.000000e+00> : vector<16x128xf32>
    %411 = tpu.matmul %410, %322, %cst_146 {dimension_numbers = #tpu.dot_dimension_numbers<[1], [0], [0], [1], [0, 0, 1, 1], [], []>} : vector<16x384xf32>, vector<384x128xf32>, vector<16x128xf32> -> vector<16x128xf32>
    %412 = vector.extract_strided_slice %326 {offsets = [1, 0], sizes = [1, 128], strides = [1, 1]} : vector<3x128xf32> to vector<1x128xf32>
    %413 = vector.broadcast %412 : vector<1x128xf32> to vector<16x128xf32>
    %414 = arith.addf %411, %413 : vector<16x128xf32>
    %415 = vector.extract_strided_slice %327 {offsets = [2, 0], sizes = [1, 32], strides = [1, 1]} : vector<8x32xf32> to vector<1x32xf32>
    %416 = vector.extract_strided_slice %327 {offsets = [3, 0], sizes = [1, 32], strides = [1, 1]} : vector<8x32xf32> to vector<1x32xf32>
    %cst_147 = arith.constant dense<0.000000e+00> : vector<128xf32>
    %417 = vector.multi_reduction <add>, %414, %cst_147 [0] : vector<16x128xf32> to vector<128xf32>
    %418 = vector.shape_cast %417 : vector<128xf32> to vector<1x128xf32>
    %419 = arith.mulf %414, %414 : vector<16x128xf32>
    %cst_148 = arith.constant dense<0.000000e+00> : vector<128xf32>
    %420 = vector.multi_reduction <add>, %419, %cst_148 [0] : vector<16x128xf32> to vector<128xf32>
    %421 = vector.shape_cast %420 : vector<128xf32> to vector<1x128xf32>
    %422 = tpu.concatenate %418, %421 in 0 : vector<1x128xf32>, vector<1x128xf32> -> vector<2x128xf32>
    %cst_149 = arith.constant dense<0.000000e+00> : vector<2x32xf32>
    %423 = tpu.matmul %422, %324, %cst_149 {dimension_numbers = #tpu.dot_dimension_numbers<[1], [0], [0], [1], [0, 0, 1, 1], [], []>} : vector<2x128xf32>, vector<128x32xf32>, vector<2x32xf32> -> vector<2x32xf32>
    %cst_150 = arith.constant 1.562500e-02 : f32
    %424 = vector.broadcast %cst_150 : f32 to vector<2x32xf32>
    %425 = arith.mulf %423, %424 : vector<2x32xf32>
    %426 = vector.extract_strided_slice %425 {offsets = [0, 0], sizes = [1, 32], strides = [1, 1]} : vector<2x32xf32> to vector<1x32xf32>
    %427 = vector.extract_strided_slice %425 {offsets = [1, 0], sizes = [1, 32], strides = [1, 1]} : vector<2x32xf32> to vector<1x32xf32>
    %428 = arith.mulf %426, %426 : vector<1x32xf32>
    %429 = arith.subf %427, %428 : vector<1x32xf32>
    %cst_151 = arith.constant 9.99999974E-6 : f32
    %430 = vector.broadcast %cst_151 : f32 to vector<1x32xf32>
    %431 = arith.addf %429, %430 : vector<1x32xf32>
    %432 = math.rsqrt %431 : vector<1x32xf32>
    %433 = arith.mulf %415, %432 : vector<1x32xf32>
    %434 = arith.mulf %426, %433 : vector<1x32xf32>
    %435 = arith.subf %416, %434 : vector<1x32xf32>
    %436 = tpu.concatenate %433, %435 in 0 : vector<1x32xf32>, vector<1x32xf32> -> vector<2x32xf32>
    %cst_152 = arith.constant dense<0.000000e+00> : vector<2x128xf32>
    %437 = tpu.matmul %436, %325, %cst_152 {dimension_numbers = #tpu.dot_dimension_numbers<[1], [0], [0], [1], [0, 0, 1, 1], [], []>} : vector<2x32xf32>, vector<32x128xf32>, vector<2x128xf32> -> vector<2x128xf32>
    %438 = vector.extract_strided_slice %437 {offsets = [0, 0], sizes = [1, 128], strides = [1, 1]} : vector<2x128xf32> to vector<1x128xf32>
    %439 = vector.broadcast %438 : vector<1x128xf32> to vector<16x128xf32>
    %440 = arith.mulf %414, %439 : vector<16x128xf32>
    %441 = vector.extract_strided_slice %437 {offsets = [1, 0], sizes = [1, 128], strides = [1, 1]} : vector<2x128xf32> to vector<1x128xf32>
    %442 = vector.broadcast %441 : vector<1x128xf32> to vector<16x128xf32>
    %443 = arith.addf %440, %442 : vector<16x128xf32>
    %cst_153 = arith.constant dense<0.000000e+00> : vector<16x128xf32>
    %444 = tpu.matmul %320, %323, %cst_153 {dimension_numbers = #tpu.dot_dimension_numbers<[1], [0], [0], [1], [0, 0, 1, 1], [], []>} : vector<16x128xf32>, vector<128x128xf32>, vector<16x128xf32> -> vector<16x128xf32>
    %445 = vector.extract_strided_slice %326 {offsets = [2, 0], sizes = [1, 128], strides = [1, 1]} : vector<3x128xf32> to vector<1x128xf32>
    %446 = vector.broadcast %445 : vector<1x128xf32> to vector<16x128xf32>
    %447 = arith.addf %444, %446 : vector<16x128xf32>
    %448 = vector.extract_strided_slice %327 {offsets = [4, 0], sizes = [1, 32], strides = [1, 1]} : vector<8x32xf32> to vector<1x32xf32>
    %449 = vector.extract_strided_slice %327 {offsets = [5, 0], sizes = [1, 32], strides = [1, 1]} : vector<8x32xf32> to vector<1x32xf32>
    %cst_154 = arith.constant dense<0.000000e+00> : vector<128xf32>
    %450 = vector.multi_reduction <add>, %447, %cst_154 [0] : vector<16x128xf32> to vector<128xf32>
    %451 = vector.shape_cast %450 : vector<128xf32> to vector<1x128xf32>
    %452 = arith.mulf %447, %447 : vector<16x128xf32>
    %cst_155 = arith.constant dense<0.000000e+00> : vector<128xf32>
    %453 = vector.multi_reduction <add>, %452, %cst_155 [0] : vector<16x128xf32> to vector<128xf32>
    %454 = vector.shape_cast %453 : vector<128xf32> to vector<1x128xf32>
    %455 = tpu.concatenate %451, %454 in 0 : vector<1x128xf32>, vector<1x128xf32> -> vector<2x128xf32>
    %cst_156 = arith.constant dense<0.000000e+00> : vector<2x32xf32>
    %456 = tpu.matmul %455, %324, %cst_156 {dimension_numbers = #tpu.dot_dimension_numbers<[1], [0], [0], [1], [0, 0, 1, 1], [], []>} : vector<2x128xf32>, vector<128x32xf32>, vector<2x32xf32> -> vector<2x32xf32>
    %cst_157 = arith.constant 1.562500e-02 : f32
    %457 = vector.broadcast %cst_157 : f32 to vector<2x32xf32>
    %458 = arith.mulf %456, %457 : vector<2x32xf32>
    %459 = vector.extract_strided_slice %458 {offsets = [0, 0], sizes = [1, 32], strides = [1, 1]} : vector<2x32xf32> to vector<1x32xf32>
    %460 = vector.extract_strided_slice %458 {offsets = [1, 0], sizes = [1, 32], strides = [1, 1]} : vector<2x32xf32> to vector<1x32xf32>
    %461 = arith.mulf %459, %459 : vector<1x32xf32>
    %462 = arith.subf %460, %461 : vector<1x32xf32>
    %cst_158 = arith.constant 9.99999974E-6 : f32
    %463 = vector.broadcast %cst_158 : f32 to vector<1x32xf32>
    %464 = arith.addf %462, %463 : vector<1x32xf32>
    %465 = math.rsqrt %464 : vector<1x32xf32>
    %466 = arith.mulf %448, %465 : vector<1x32xf32>
    %467 = arith.mulf %459, %466 : vector<1x32xf32>
    %468 = arith.subf %449, %467 : vector<1x32xf32>
    %469 = tpu.concatenate %466, %468 in 0 : vector<1x32xf32>, vector<1x32xf32> -> vector<2x32xf32>
    %cst_159 = arith.constant dense<0.000000e+00> : vector<2x128xf32>
    %470 = tpu.matmul %469, %325, %cst_159 {dimension_numbers = #tpu.dot_dimension_numbers<[1], [0], [0], [1], [0, 0, 1, 1], [], []>} : vector<2x32xf32>, vector<32x128xf32>, vector<2x128xf32> -> vector<2x128xf32>
    %471 = vector.extract_strided_slice %470 {offsets = [0, 0], sizes = [1, 128], strides = [1, 1]} : vector<2x128xf32> to vector<1x128xf32>
    %472 = vector.broadcast %471 : vector<1x128xf32> to vector<16x128xf32>
    %473 = arith.mulf %447, %472 : vector<16x128xf32>
    %474 = vector.extract_strided_slice %470 {offsets = [1, 0], sizes = [1, 128], strides = [1, 1]} : vector<2x128xf32> to vector<1x128xf32>
    %475 = vector.broadcast %474 : vector<1x128xf32> to vector<16x128xf32>
    %476 = arith.addf %473, %475 : vector<16x128xf32>
    %477 = arith.addf %443, %476 : vector<16x128xf32>
    %cst_160 = arith.constant 0.707106769 : f32
    %478 = vector.broadcast %cst_160 : f32 to vector<16x128xf32>
    %479 = arith.mulf %477, %478 : vector<16x128xf32>
    %480 = math.absf %479 : vector<16x128xf32>
    %cst_161 = arith.constant 0.327591091 : f32
    %481 = vector.broadcast %cst_161 : f32 to vector<16x128xf32>
    %482 = arith.mulf %481, %480 : vector<16x128xf32>
    %cst_162 = arith.constant 1.000000e+00 : f32
    %483 = vector.broadcast %cst_162 : f32 to vector<16x128xf32>
    %484 = arith.addf %483, %482 : vector<16x128xf32>
    %cst_163 = arith.constant 1.000000e+00 : f32
    %485 = vector.broadcast %cst_163 : f32 to vector<16x128xf32>
    %486 = arith.divf %485, %484 : vector<16x128xf32>
    %cst_164 = arith.constant 1.06140542 : f32
    %487 = vector.broadcast %cst_164 : f32 to vector<16x128xf32>
    %488 = arith.mulf %487, %486 : vector<16x128xf32>
    %cst_165 = arith.constant -1.45315206 : f32
    %489 = vector.broadcast %cst_165 : f32 to vector<16x128xf32>
    %490 = arith.addf %488, %489 : vector<16x128xf32>
    %491 = arith.mulf %490, %486 : vector<16x128xf32>
    %cst_166 = arith.constant 1.42141378 : f32
    %492 = vector.broadcast %cst_166 : f32 to vector<16x128xf32>
    %493 = arith.addf %491, %492 : vector<16x128xf32>
    %494 = arith.mulf %493, %486 : vector<16x128xf32>
    %cst_167 = arith.constant -0.284496725 : f32
    %495 = vector.broadcast %cst_167 : f32 to vector<16x128xf32>
    %496 = arith.addf %494, %495 : vector<16x128xf32>
    %497 = arith.mulf %496, %486 : vector<16x128xf32>
    %cst_168 = arith.constant 0.254829586 : f32
    %498 = vector.broadcast %cst_168 : f32 to vector<16x128xf32>
    %499 = arith.addf %497, %498 : vector<16x128xf32>
    %500 = arith.mulf %499, %486 : vector<16x128xf32>
    %cst_169 = arith.constant 0.000000e+00 : f32
    %501 = vector.broadcast %cst_169 : f32 to vector<16x128xf32>
    %502 = arith.subf %501, %480 : vector<16x128xf32>
    %503 = arith.mulf %502, %480 : vector<16x128xf32>
    %504 = math.exp %503 : vector<16x128xf32>
    %505 = arith.mulf %500, %504 : vector<16x128xf32>
    %cst_170 = arith.constant 1.000000e+00 : f32
    %506 = vector.broadcast %cst_170 : f32 to vector<16x128xf32>
    %507 = arith.subf %506, %505 : vector<16x128xf32>
    %cst_171 = arith.constant 0.000000e+00 : f32
    %508 = vector.broadcast %cst_171 : f32 to vector<16x128xf32>
    %509 = arith.cmpf oge, %479, %508 : vector<16x128xf32>
    %cst_172 = arith.constant 0.000000e+00 : f32
    %510 = vector.broadcast %cst_172 : f32 to vector<16x128xf32>
    %511 = arith.subf %510, %507 : vector<16x128xf32>
    %512 = arith.select %509, %507, %511 : vector<16x128xi1>, vector<16x128xf32>
    %cst_173 = arith.constant 5.000000e-01 : f32
    %513 = vector.broadcast %cst_173 : f32 to vector<16x128xf32>
    %514 = arith.mulf %513, %477 : vector<16x128xf32>
    %cst_174 = arith.constant 1.000000e+00 : f32
    %515 = vector.broadcast %cst_174 : f32 to vector<16x128xf32>
    %516 = arith.addf %515, %512 : vector<16x128xf32>
    %517 = arith.mulf %514, %516 : vector<16x128xf32>
    %518 = vector.extract_strided_slice %327 {offsets = [6, 0], sizes = [1, 32], strides = [1, 1]} : vector<8x32xf32> to vector<1x32xf32>
    %519 = vector.extract_strided_slice %327 {offsets = [7, 0], sizes = [1, 32], strides = [1, 1]} : vector<8x32xf32> to vector<1x32xf32>
    %cst_175 = arith.constant dense<0.000000e+00> : vector<128xf32>
    %520 = vector.multi_reduction <add>, %517, %cst_175 [0] : vector<16x128xf32> to vector<128xf32>
    %521 = vector.shape_cast %520 : vector<128xf32> to vector<1x128xf32>
    %522 = arith.mulf %517, %517 : vector<16x128xf32>
    %cst_176 = arith.constant dense<0.000000e+00> : vector<128xf32>
    %523 = vector.multi_reduction <add>, %522, %cst_176 [0] : vector<16x128xf32> to vector<128xf32>
    %524 = vector.shape_cast %523 : vector<128xf32> to vector<1x128xf32>
    %525 = tpu.concatenate %521, %524 in 0 : vector<1x128xf32>, vector<1x128xf32> -> vector<2x128xf32>
    %cst_177 = arith.constant dense<0.000000e+00> : vector<2x32xf32>
    %526 = tpu.matmul %525, %324, %cst_177 {dimension_numbers = #tpu.dot_dimension_numbers<[1], [0], [0], [1], [0, 0, 1, 1], [], []>} : vector<2x128xf32>, vector<128x32xf32>, vector<2x32xf32> -> vector<2x32xf32>
    %cst_178 = arith.constant 1.562500e-02 : f32
    %527 = vector.broadcast %cst_178 : f32 to vector<2x32xf32>
    %528 = arith.mulf %526, %527 : vector<2x32xf32>
    %529 = vector.extract_strided_slice %528 {offsets = [0, 0], sizes = [1, 32], strides = [1, 1]} : vector<2x32xf32> to vector<1x32xf32>
    %530 = vector.extract_strided_slice %528 {offsets = [1, 0], sizes = [1, 32], strides = [1, 1]} : vector<2x32xf32> to vector<1x32xf32>
    %531 = arith.mulf %529, %529 : vector<1x32xf32>
    %532 = arith.subf %530, %531 : vector<1x32xf32>
    %cst_179 = arith.constant 9.99999974E-6 : f32
    %533 = vector.broadcast %cst_179 : f32 to vector<1x32xf32>
    %534 = arith.addf %532, %533 : vector<1x32xf32>
    %535 = math.rsqrt %534 : vector<1x32xf32>
    %536 = arith.mulf %518, %535 : vector<1x32xf32>
    %537 = arith.mulf %529, %536 : vector<1x32xf32>
    %538 = arith.subf %519, %537 : vector<1x32xf32>
    %539 = tpu.concatenate %536, %538 in 0 : vector<1x32xf32>, vector<1x32xf32> -> vector<2x32xf32>
    %cst_180 = arith.constant dense<0.000000e+00> : vector<2x128xf32>
    %540 = tpu.matmul %539, %325, %cst_180 {dimension_numbers = #tpu.dot_dimension_numbers<[1], [0], [0], [1], [0, 0, 1, 1], [], []>} : vector<2x32xf32>, vector<32x128xf32>, vector<2x128xf32> -> vector<2x128xf32>
    %541 = vector.extract_strided_slice %540 {offsets = [0, 0], sizes = [1, 128], strides = [1, 1]} : vector<2x128xf32> to vector<1x128xf32>
    %542 = vector.broadcast %541 : vector<1x128xf32> to vector<16x128xf32>
    %543 = arith.mulf %517, %542 : vector<16x128xf32>
    %544 = vector.extract_strided_slice %540 {offsets = [1, 0], sizes = [1, 128], strides = [1, 1]} : vector<2x128xf32> to vector<1x128xf32>
    %545 = vector.broadcast %544 : vector<1x128xf32> to vector<16x128xf32>
    %546 = arith.addf %543, %545 : vector<16x128xf32>
    %cst_181 = arith.constant 0.707106769 : f32
    %547 = vector.broadcast %cst_181 : f32 to vector<16x128xf32>
    %548 = arith.mulf %546, %547 : vector<16x128xf32>
    %549 = math.absf %548 : vector<16x128xf32>
    %cst_182 = arith.constant 0.327591091 : f32
    %550 = vector.broadcast %cst_182 : f32 to vector<16x128xf32>
    %551 = arith.mulf %550, %549 : vector<16x128xf32>
    %cst_183 = arith.constant 1.000000e+00 : f32
    %552 = vector.broadcast %cst_183 : f32 to vector<16x128xf32>
    %553 = arith.addf %552, %551 : vector<16x128xf32>
    %cst_184 = arith.constant 1.000000e+00 : f32
    %554 = vector.broadcast %cst_184 : f32 to vector<16x128xf32>
    %555 = arith.divf %554, %553 : vector<16x128xf32>
    %cst_185 = arith.constant 1.06140542 : f32
    %556 = vector.broadcast %cst_185 : f32 to vector<16x128xf32>
    %557 = arith.mulf %556, %555 : vector<16x128xf32>
    %cst_186 = arith.constant -1.45315206 : f32
    %558 = vector.broadcast %cst_186 : f32 to vector<16x128xf32>
    %559 = arith.addf %557, %558 : vector<16x128xf32>
    %560 = arith.mulf %559, %555 : vector<16x128xf32>
    %cst_187 = arith.constant 1.42141378 : f32
    %561 = vector.broadcast %cst_187 : f32 to vector<16x128xf32>
    %562 = arith.addf %560, %561 : vector<16x128xf32>
    %563 = arith.mulf %562, %555 : vector<16x128xf32>
    %cst_188 = arith.constant -0.284496725 : f32
    %564 = vector.broadcast %cst_188 : f32 to vector<16x128xf32>
    %565 = arith.addf %563, %564 : vector<16x128xf32>
    %566 = arith.mulf %565, %555 : vector<16x128xf32>
    %cst_189 = arith.constant 0.254829586 : f32
    %567 = vector.broadcast %cst_189 : f32 to vector<16x128xf32>
    %568 = arith.addf %566, %567 : vector<16x128xf32>
    %569 = arith.mulf %568, %555 : vector<16x128xf32>
    %cst_190 = arith.constant 0.000000e+00 : f32
    %570 = vector.broadcast %cst_190 : f32 to vector<16x128xf32>
    %571 = arith.subf %570, %549 : vector<16x128xf32>
    %572 = arith.mulf %571, %549 : vector<16x128xf32>
    %573 = math.exp %572 : vector<16x128xf32>
    %574 = arith.mulf %569, %573 : vector<16x128xf32>
    %cst_191 = arith.constant 1.000000e+00 : f32
    %575 = vector.broadcast %cst_191 : f32 to vector<16x128xf32>
    %576 = arith.subf %575, %574 : vector<16x128xf32>
    %cst_192 = arith.constant 0.000000e+00 : f32
    %577 = vector.broadcast %cst_192 : f32 to vector<16x128xf32>
    %578 = arith.cmpf oge, %548, %577 : vector<16x128xf32>
    %cst_193 = arith.constant 0.000000e+00 : f32
    %579 = vector.broadcast %cst_193 : f32 to vector<16x128xf32>
    %580 = arith.subf %579, %576 : vector<16x128xf32>
    %581 = arith.select %578, %576, %580 : vector<16x128xi1>, vector<16x128xf32>
    %cst_194 = arith.constant 5.000000e-01 : f32
    %582 = vector.broadcast %cst_194 : f32 to vector<16x128xf32>
    %583 = arith.mulf %582, %546 : vector<16x128xf32>
    %cst_195 = arith.constant 1.000000e+00 : f32
    %584 = vector.broadcast %cst_195 : f32 to vector<16x128xf32>
    %585 = arith.addf %584, %581 : vector<16x128xf32>
    %586 = arith.mulf %583, %585 : vector<16x128xf32>
    %c0_196 = arith.constant 0 : index
    %c0_197 = arith.constant 0 : index
    %587 = vector.load %arg17[%c0_196, %c0_197] : memref<256x128xf32, #tpu.memory_space<vmem>>, vector<256x128xf32>
    %c0_198 = arith.constant 0 : index
    %c0_199 = arith.constant 0 : index
    %588 = vector.load %arg18[%c0_198, %c0_199] : memref<384x128xf32, #tpu.memory_space<vmem>>, vector<384x128xf32>
    %c0_200 = arith.constant 0 : index
    %c0_201 = arith.constant 0 : index
    %589 = vector.load %arg19[%c0_200, %c0_201] : memref<128x128xf32, #tpu.memory_space<vmem>>, vector<128x128xf32>
    %c0_202 = arith.constant 0 : index
    %c0_203 = arith.constant 0 : index
    %590 = vector.load %arg20[%c0_202, %c0_203] : memref<128x16xf32, #tpu.memory_space<vmem>>, vector<128x16xf32>
    %c0_204 = arith.constant 0 : index
    %c0_205 = arith.constant 0 : index
    %591 = vector.load %arg21[%c0_204, %c0_205] : memref<16x128xf32, #tpu.memory_space<vmem>>, vector<16x128xf32>
    %c0_206 = arith.constant 0 : index
    %c0_207 = arith.constant 0 : index
    %592 = vector.load %arg22[%c0_206, %c0_207] : memref<3x128xf32, #tpu.memory_space<vmem>>, vector<3x128xf32>
    %c0_208 = arith.constant 0 : index
    %c0_209 = arith.constant 0 : index
    %593 = vector.load %arg23[%c0_208, %c0_209] : memref<8x16xf32, #tpu.memory_space<vmem>>, vector<8x16xf32>
    %cst_210 = arith.constant 0.000000e+00 : f32
    %594 = vector.broadcast %cst_210 : f32 to vector<2x128xf32>
    %cst_211 = arith.constant 0.000000e+00 : f32
    %595 = vector.broadcast %cst_211 : f32 to vector<2x128xf32>
    %596 = vector.extract_strided_slice %586 {offsets = [2, 0], sizes = [14, 128], strides = [1, 1]} : vector<16x128xf32> to vector<14x128xf32>
    %597 = tpu.concatenate %596, %594 in 0 : vector<14x128xf32>, vector<2x128xf32> -> vector<16x128xf32>
    %598 = tpu.concatenate %586, %597 in 1 : vector<16x128xf32>, vector<16x128xf32> -> vector<16x256xf32>
    %cst_212 = arith.constant dense<0.000000e+00> : vector<16x128xf32>
    %599 = tpu.matmul %598, %587, %cst_212 {dimension_numbers = #tpu.dot_dimension_numbers<[1], [0], [0], [1], [0, 0, 1, 1], [], []>} : vector<16x256xf32>, vector<256x128xf32>, vector<16x128xf32> -> vector<16x128xf32>
    %600 = vector.extract_strided_slice %592 {offsets = [0, 0], sizes = [1, 128], strides = [1, 1]} : vector<3x128xf32> to vector<1x128xf32>
    %601 = vector.broadcast %600 : vector<1x128xf32> to vector<16x128xf32>
    %602 = arith.addf %599, %601 : vector<16x128xf32>
    %603 = vector.extract_strided_slice %593 {offsets = [0, 0], sizes = [1, 16], strides = [1, 1]} : vector<8x16xf32> to vector<1x16xf32>
    %604 = vector.extract_strided_slice %593 {offsets = [1, 0], sizes = [1, 16], strides = [1, 1]} : vector<8x16xf32> to vector<1x16xf32>
    %cst_213 = arith.constant dense<0.000000e+00> : vector<128xf32>
    %605 = vector.multi_reduction <add>, %602, %cst_213 [0] : vector<16x128xf32> to vector<128xf32>
    %606 = vector.shape_cast %605 : vector<128xf32> to vector<1x128xf32>
    %607 = arith.mulf %602, %602 : vector<16x128xf32>
    %cst_214 = arith.constant dense<0.000000e+00> : vector<128xf32>
    %608 = vector.multi_reduction <add>, %607, %cst_214 [0] : vector<16x128xf32> to vector<128xf32>
    %609 = vector.shape_cast %608 : vector<128xf32> to vector<1x128xf32>
    %610 = tpu.concatenate %606, %609 in 0 : vector<1x128xf32>, vector<1x128xf32> -> vector<2x128xf32>
    %cst_215 = arith.constant dense<0.000000e+00> : vector<2x16xf32>
    %611 = tpu.matmul %610, %590, %cst_215 {dimension_numbers = #tpu.dot_dimension_numbers<[1], [0], [0], [1], [0, 0, 1, 1], [], []>} : vector<2x128xf32>, vector<128x16xf32>, vector<2x16xf32> -> vector<2x16xf32>
    %cst_216 = arith.constant 7.812500e-03 : f32
    %612 = vector.broadcast %cst_216 : f32 to vector<2x16xf32>
    %613 = arith.mulf %611, %612 : vector<2x16xf32>
    %614 = vector.extract_strided_slice %613 {offsets = [0, 0], sizes = [1, 16], strides = [1, 1]} : vector<2x16xf32> to vector<1x16xf32>
    %615 = vector.extract_strided_slice %613 {offsets = [1, 0], sizes = [1, 16], strides = [1, 1]} : vector<2x16xf32> to vector<1x16xf32>
    %616 = arith.mulf %614, %614 : vector<1x16xf32>
    %617 = arith.subf %615, %616 : vector<1x16xf32>
    %cst_217 = arith.constant 9.99999974E-6 : f32
    %618 = vector.broadcast %cst_217 : f32 to vector<1x16xf32>
    %619 = arith.addf %617, %618 : vector<1x16xf32>
    %620 = math.rsqrt %619 : vector<1x16xf32>
    %621 = arith.mulf %603, %620 : vector<1x16xf32>
    %622 = arith.mulf %614, %621 : vector<1x16xf32>
    %623 = arith.subf %604, %622 : vector<1x16xf32>
    %624 = tpu.concatenate %621, %623 in 0 : vector<1x16xf32>, vector<1x16xf32> -> vector<2x16xf32>
    %cst_218 = arith.constant dense<0.000000e+00> : vector<2x128xf32>
    %625 = tpu.matmul %624, %591, %cst_218 {dimension_numbers = #tpu.dot_dimension_numbers<[1], [0], [0], [1], [0, 0, 1, 1], [], []>} : vector<2x16xf32>, vector<16x128xf32>, vector<2x128xf32> -> vector<2x128xf32>
    %626 = vector.extract_strided_slice %625 {offsets = [0, 0], sizes = [1, 128], strides = [1, 1]} : vector<2x128xf32> to vector<1x128xf32>
    %627 = vector.broadcast %626 : vector<1x128xf32> to vector<16x128xf32>
    %628 = arith.mulf %602, %627 : vector<16x128xf32>
    %629 = vector.extract_strided_slice %625 {offsets = [1, 0], sizes = [1, 128], strides = [1, 1]} : vector<2x128xf32> to vector<1x128xf32>
    %630 = vector.broadcast %629 : vector<1x128xf32> to vector<16x128xf32>
    %631 = arith.addf %628, %630 : vector<16x128xf32>
    %cst_219 = arith.constant 0.707106769 : f32
    %632 = vector.broadcast %cst_219 : f32 to vector<16x128xf32>
    %633 = arith.mulf %631, %632 : vector<16x128xf32>
    %634 = math.absf %633 : vector<16x128xf32>
    %cst_220 = arith.constant 0.327591091 : f32
    %635 = vector.broadcast %cst_220 : f32 to vector<16x128xf32>
    %636 = arith.mulf %635, %634 : vector<16x128xf32>
    %cst_221 = arith.constant 1.000000e+00 : f32
    %637 = vector.broadcast %cst_221 : f32 to vector<16x128xf32>
    %638 = arith.addf %637, %636 : vector<16x128xf32>
    %cst_222 = arith.constant 1.000000e+00 : f32
    %639 = vector.broadcast %cst_222 : f32 to vector<16x128xf32>
    %640 = arith.divf %639, %638 : vector<16x128xf32>
    %cst_223 = arith.constant 1.06140542 : f32
    %641 = vector.broadcast %cst_223 : f32 to vector<16x128xf32>
    %642 = arith.mulf %641, %640 : vector<16x128xf32>
    %cst_224 = arith.constant -1.45315206 : f32
    %643 = vector.broadcast %cst_224 : f32 to vector<16x128xf32>
    %644 = arith.addf %642, %643 : vector<16x128xf32>
    %645 = arith.mulf %644, %640 : vector<16x128xf32>
    %cst_225 = arith.constant 1.42141378 : f32
    %646 = vector.broadcast %cst_225 : f32 to vector<16x128xf32>
    %647 = arith.addf %645, %646 : vector<16x128xf32>
    %648 = arith.mulf %647, %640 : vector<16x128xf32>
    %cst_226 = arith.constant -0.284496725 : f32
    %649 = vector.broadcast %cst_226 : f32 to vector<16x128xf32>
    %650 = arith.addf %648, %649 : vector<16x128xf32>
    %651 = arith.mulf %650, %640 : vector<16x128xf32>
    %cst_227 = arith.constant 0.254829586 : f32
    %652 = vector.broadcast %cst_227 : f32 to vector<16x128xf32>
    %653 = arith.addf %651, %652 : vector<16x128xf32>
    %654 = arith.mulf %653, %640 : vector<16x128xf32>
    %cst_228 = arith.constant 0.000000e+00 : f32
    %655 = vector.broadcast %cst_228 : f32 to vector<16x128xf32>
    %656 = arith.subf %655, %634 : vector<16x128xf32>
    %657 = arith.mulf %656, %634 : vector<16x128xf32>
    %658 = math.exp %657 : vector<16x128xf32>
    %659 = arith.mulf %654, %658 : vector<16x128xf32>
    %cst_229 = arith.constant 1.000000e+00 : f32
    %660 = vector.broadcast %cst_229 : f32 to vector<16x128xf32>
    %661 = arith.subf %660, %659 : vector<16x128xf32>
    %cst_230 = arith.constant 0.000000e+00 : f32
    %662 = vector.broadcast %cst_230 : f32 to vector<16x128xf32>
    %663 = arith.cmpf oge, %633, %662 : vector<16x128xf32>
    %cst_231 = arith.constant 0.000000e+00 : f32
    %664 = vector.broadcast %cst_231 : f32 to vector<16x128xf32>
    %665 = arith.subf %664, %661 : vector<16x128xf32>
    %666 = arith.select %663, %661, %665 : vector<16x128xi1>, vector<16x128xf32>
    %cst_232 = arith.constant 5.000000e-01 : f32
    %667 = vector.broadcast %cst_232 : f32 to vector<16x128xf32>
    %668 = arith.mulf %667, %631 : vector<16x128xf32>
    %cst_233 = arith.constant 1.000000e+00 : f32
    %669 = vector.broadcast %cst_233 : f32 to vector<16x128xf32>
    %670 = arith.addf %669, %666 : vector<16x128xf32>
    %671 = arith.mulf %668, %670 : vector<16x128xf32>
    %672 = vector.extract_strided_slice %671 {offsets = [2, 0], sizes = [14, 128], strides = [1, 1]} : vector<16x128xf32> to vector<14x128xf32>
    %673 = tpu.concatenate %672, %595 in 0 : vector<14x128xf32>, vector<2x128xf32> -> vector<16x128xf32>
    %674 = vector.extract_strided_slice %671 {offsets = [0, 0], sizes = [14, 128], strides = [1, 1]} : vector<16x128xf32> to vector<14x128xf32>
    %675 = tpu.concatenate %595, %674 in 0 : vector<2x128xf32>, vector<14x128xf32> -> vector<16x128xf32>
    %676 = tpu.concatenate %671, %673, %675 in 1 : vector<16x128xf32>, vector<16x128xf32>, vector<16x128xf32> -> vector<16x384xf32>
    %cst_234 = arith.constant dense<0.000000e+00> : vector<16x128xf32>
    %677 = tpu.matmul %676, %588, %cst_234 {dimension_numbers = #tpu.dot_dimension_numbers<[1], [0], [0], [1], [0, 0, 1, 1], [], []>} : vector<16x384xf32>, vector<384x128xf32>, vector<16x128xf32> -> vector<16x128xf32>
    %678 = vector.extract_strided_slice %592 {offsets = [1, 0], sizes = [1, 128], strides = [1, 1]} : vector<3x128xf32> to vector<1x128xf32>
    %679 = vector.broadcast %678 : vector<1x128xf32> to vector<16x128xf32>
    %680 = arith.addf %677, %679 : vector<16x128xf32>
    %681 = vector.extract_strided_slice %593 {offsets = [2, 0], sizes = [1, 16], strides = [1, 1]} : vector<8x16xf32> to vector<1x16xf32>
    %682 = vector.extract_strided_slice %593 {offsets = [3, 0], sizes = [1, 16], strides = [1, 1]} : vector<8x16xf32> to vector<1x16xf32>
    %cst_235 = arith.constant dense<0.000000e+00> : vector<128xf32>
    %683 = vector.multi_reduction <add>, %680, %cst_235 [0] : vector<16x128xf32> to vector<128xf32>
    %684 = vector.shape_cast %683 : vector<128xf32> to vector<1x128xf32>
    %685 = arith.mulf %680, %680 : vector<16x128xf32>
    %cst_236 = arith.constant dense<0.000000e+00> : vector<128xf32>
    %686 = vector.multi_reduction <add>, %685, %cst_236 [0] : vector<16x128xf32> to vector<128xf32>
    %687 = vector.shape_cast %686 : vector<128xf32> to vector<1x128xf32>
    %688 = tpu.concatenate %684, %687 in 0 : vector<1x128xf32>, vector<1x128xf32> -> vector<2x128xf32>
    %cst_237 = arith.constant dense<0.000000e+00> : vector<2x16xf32>
    %689 = tpu.matmul %688, %590, %cst_237 {dimension_numbers = #tpu.dot_dimension_numbers<[1], [0], [0], [1], [0, 0, 1, 1], [], []>} : vector<2x128xf32>, vector<128x16xf32>, vector<2x16xf32> -> vector<2x16xf32>
    %cst_238 = arith.constant 7.812500e-03 : f32
    %690 = vector.broadcast %cst_238 : f32 to vector<2x16xf32>
    %691 = arith.mulf %689, %690 : vector<2x16xf32>
    %692 = vector.extract_strided_slice %691 {offsets = [0, 0], sizes = [1, 16], strides = [1, 1]} : vector<2x16xf32> to vector<1x16xf32>
    %693 = vector.extract_strided_slice %691 {offsets = [1, 0], sizes = [1, 16], strides = [1, 1]} : vector<2x16xf32> to vector<1x16xf32>
    %694 = arith.mulf %692, %692 : vector<1x16xf32>
    %695 = arith.subf %693, %694 : vector<1x16xf32>
    %cst_239 = arith.constant 9.99999974E-6 : f32
    %696 = vector.broadcast %cst_239 : f32 to vector<1x16xf32>
    %697 = arith.addf %695, %696 : vector<1x16xf32>
    %698 = math.rsqrt %697 : vector<1x16xf32>
    %699 = arith.mulf %681, %698 : vector<1x16xf32>
    %700 = arith.mulf %692, %699 : vector<1x16xf32>
    %701 = arith.subf %682, %700 : vector<1x16xf32>
    %702 = tpu.concatenate %699, %701 in 0 : vector<1x16xf32>, vector<1x16xf32> -> vector<2x16xf32>
    %cst_240 = arith.constant dense<0.000000e+00> : vector<2x128xf32>
    %703 = tpu.matmul %702, %591, %cst_240 {dimension_numbers = #tpu.dot_dimension_numbers<[1], [0], [0], [1], [0, 0, 1, 1], [], []>} : vector<2x16xf32>, vector<16x128xf32>, vector<2x128xf32> -> vector<2x128xf32>
    %704 = vector.extract_strided_slice %703 {offsets = [0, 0], sizes = [1, 128], strides = [1, 1]} : vector<2x128xf32> to vector<1x128xf32>
    %705 = vector.broadcast %704 : vector<1x128xf32> to vector<16x128xf32>
    %706 = arith.mulf %680, %705 : vector<16x128xf32>
    %707 = vector.extract_strided_slice %703 {offsets = [1, 0], sizes = [1, 128], strides = [1, 1]} : vector<2x128xf32> to vector<1x128xf32>
    %708 = vector.broadcast %707 : vector<1x128xf32> to vector<16x128xf32>
    %709 = arith.addf %706, %708 : vector<16x128xf32>
    %cst_241 = arith.constant dense<0.000000e+00> : vector<16x128xf32>
    %710 = tpu.matmul %586, %589, %cst_241 {dimension_numbers = #tpu.dot_dimension_numbers<[1], [0], [0], [1], [0, 0, 1, 1], [], []>} : vector<16x128xf32>, vector<128x128xf32>, vector<16x128xf32> -> vector<16x128xf32>
    %711 = vector.extract_strided_slice %592 {offsets = [2, 0], sizes = [1, 128], strides = [1, 1]} : vector<3x128xf32> to vector<1x128xf32>
    %712 = vector.broadcast %711 : vector<1x128xf32> to vector<16x128xf32>
    %713 = arith.addf %710, %712 : vector<16x128xf32>
    %714 = vector.extract_strided_slice %593 {offsets = [4, 0], sizes = [1, 16], strides = [1, 1]} : vector<8x16xf32> to vector<1x16xf32>
    %715 = vector.extract_strided_slice %593 {offsets = [5, 0], sizes = [1, 16], strides = [1, 1]} : vector<8x16xf32> to vector<1x16xf32>
    %cst_242 = arith.constant dense<0.000000e+00> : vector<128xf32>
    %716 = vector.multi_reduction <add>, %713, %cst_242 [0] : vector<16x128xf32> to vector<128xf32>
    %717 = vector.shape_cast %716 : vector<128xf32> to vector<1x128xf32>
    %718 = arith.mulf %713, %713 : vector<16x128xf32>
    %cst_243 = arith.constant dense<0.000000e+00> : vector<128xf32>
    %719 = vector.multi_reduction <add>, %718, %cst_243 [0] : vector<16x128xf32> to vector<128xf32>
    %720 = vector.shape_cast %719 : vector<128xf32> to vector<1x128xf32>
    %721 = tpu.concatenate %717, %720 in 0 : vector<1x128xf32>, vector<1x128xf32> -> vector<2x128xf32>
    %cst_244 = arith.constant dense<0.000000e+00> : vector<2x16xf32>
    %722 = tpu.matmul %721, %590, %cst_244 {dimension_numbers = #tpu.dot_dimension_numbers<[1], [0], [0], [1], [0, 0, 1, 1], [], []>} : vector<2x128xf32>, vector<128x16xf32>, vector<2x16xf32> -> vector<2x16xf32>
    %cst_245 = arith.constant 7.812500e-03 : f32
    %723 = vector.broadcast %cst_245 : f32 to vector<2x16xf32>
    %724 = arith.mulf %722, %723 : vector<2x16xf32>
    %725 = vector.extract_strided_slice %724 {offsets = [0, 0], sizes = [1, 16], strides = [1, 1]} : vector<2x16xf32> to vector<1x16xf32>
    %726 = vector.extract_strided_slice %724 {offsets = [1, 0], sizes = [1, 16], strides = [1, 1]} : vector<2x16xf32> to vector<1x16xf32>
    %727 = arith.mulf %725, %725 : vector<1x16xf32>
    %728 = arith.subf %726, %727 : vector<1x16xf32>
    %cst_246 = arith.constant 9.99999974E-6 : f32
    %729 = vector.broadcast %cst_246 : f32 to vector<1x16xf32>
    %730 = arith.addf %728, %729 : vector<1x16xf32>
    %731 = math.rsqrt %730 : vector<1x16xf32>
    %732 = arith.mulf %714, %731 : vector<1x16xf32>
    %733 = arith.mulf %725, %732 : vector<1x16xf32>
    %734 = arith.subf %715, %733 : vector<1x16xf32>
    %735 = tpu.concatenate %732, %734 in 0 : vector<1x16xf32>, vector<1x16xf32> -> vector<2x16xf32>
    %cst_247 = arith.constant dense<0.000000e+00> : vector<2x128xf32>
    %736 = tpu.matmul %735, %591, %cst_247 {dimension_numbers = #tpu.dot_dimension_numbers<[1], [0], [0], [1], [0, 0, 1, 1], [], []>} : vector<2x16xf32>, vector<16x128xf32>, vector<2x128xf32> -> vector<2x128xf32>
    %737 = vector.extract_strided_slice %736 {offsets = [0, 0], sizes = [1, 128], strides = [1, 1]} : vector<2x128xf32> to vector<1x128xf32>
    %738 = vector.broadcast %737 : vector<1x128xf32> to vector<16x128xf32>
    %739 = arith.mulf %713, %738 : vector<16x128xf32>
    %740 = vector.extract_strided_slice %736 {offsets = [1, 0], sizes = [1, 128], strides = [1, 1]} : vector<2x128xf32> to vector<1x128xf32>
    %741 = vector.broadcast %740 : vector<1x128xf32> to vector<16x128xf32>
    %742 = arith.addf %739, %741 : vector<16x128xf32>
    %743 = arith.addf %709, %742 : vector<16x128xf32>
    %cst_248 = arith.constant 0.707106769 : f32
    %744 = vector.broadcast %cst_248 : f32 to vector<16x128xf32>
    %745 = arith.mulf %743, %744 : vector<16x128xf32>
    %746 = math.absf %745 : vector<16x128xf32>
    %cst_249 = arith.constant 0.327591091 : f32
    %747 = vector.broadcast %cst_249 : f32 to vector<16x128xf32>
    %748 = arith.mulf %747, %746 : vector<16x128xf32>
    %cst_250 = arith.constant 1.000000e+00 : f32
    %749 = vector.broadcast %cst_250 : f32 to vector<16x128xf32>
    %750 = arith.addf %749, %748 : vector<16x128xf32>
    %cst_251 = arith.constant 1.000000e+00 : f32
    %751 = vector.broadcast %cst_251 : f32 to vector<16x128xf32>
    %752 = arith.divf %751, %750 : vector<16x128xf32>
    %cst_252 = arith.constant 1.06140542 : f32
    %753 = vector.broadcast %cst_252 : f32 to vector<16x128xf32>
    %754 = arith.mulf %753, %752 : vector<16x128xf32>
    %cst_253 = arith.constant -1.45315206 : f32
    %755 = vector.broadcast %cst_253 : f32 to vector<16x128xf32>
    %756 = arith.addf %754, %755 : vector<16x128xf32>
    %757 = arith.mulf %756, %752 : vector<16x128xf32>
    %cst_254 = arith.constant 1.42141378 : f32
    %758 = vector.broadcast %cst_254 : f32 to vector<16x128xf32>
    %759 = arith.addf %757, %758 : vector<16x128xf32>
    %760 = arith.mulf %759, %752 : vector<16x128xf32>
    %cst_255 = arith.constant -0.284496725 : f32
    %761 = vector.broadcast %cst_255 : f32 to vector<16x128xf32>
    %762 = arith.addf %760, %761 : vector<16x128xf32>
    %763 = arith.mulf %762, %752 : vector<16x128xf32>
    %cst_256 = arith.constant 0.254829586 : f32
    %764 = vector.broadcast %cst_256 : f32 to vector<16x128xf32>
    %765 = arith.addf %763, %764 : vector<16x128xf32>
    %766 = arith.mulf %765, %752 : vector<16x128xf32>
    %cst_257 = arith.constant 0.000000e+00 : f32
    %767 = vector.broadcast %cst_257 : f32 to vector<16x128xf32>
    %768 = arith.subf %767, %746 : vector<16x128xf32>
    %769 = arith.mulf %768, %746 : vector<16x128xf32>
    %770 = math.exp %769 : vector<16x128xf32>
    %771 = arith.mulf %766, %770 : vector<16x128xf32>
    %cst_258 = arith.constant 1.000000e+00 : f32
    %772 = vector.broadcast %cst_258 : f32 to vector<16x128xf32>
    %773 = arith.subf %772, %771 : vector<16x128xf32>
    %cst_259 = arith.constant 0.000000e+00 : f32
    %774 = vector.broadcast %cst_259 : f32 to vector<16x128xf32>
    %775 = arith.cmpf oge, %745, %774 : vector<16x128xf32>
    %cst_260 = arith.constant 0.000000e+00 : f32
    %776 = vector.broadcast %cst_260 : f32 to vector<16x128xf32>
    %777 = arith.subf %776, %773 : vector<16x128xf32>
    %778 = arith.select %775, %773, %777 : vector<16x128xi1>, vector<16x128xf32>
    %cst_261 = arith.constant 5.000000e-01 : f32
    %779 = vector.broadcast %cst_261 : f32 to vector<16x128xf32>
    %780 = arith.mulf %779, %743 : vector<16x128xf32>
    %cst_262 = arith.constant 1.000000e+00 : f32
    %781 = vector.broadcast %cst_262 : f32 to vector<16x128xf32>
    %782 = arith.addf %781, %778 : vector<16x128xf32>
    %783 = arith.mulf %780, %782 : vector<16x128xf32>
    %784 = vector.extract_strided_slice %593 {offsets = [6, 0], sizes = [1, 16], strides = [1, 1]} : vector<8x16xf32> to vector<1x16xf32>
    %785 = vector.extract_strided_slice %593 {offsets = [7, 0], sizes = [1, 16], strides = [1, 1]} : vector<8x16xf32> to vector<1x16xf32>
    %cst_263 = arith.constant dense<0.000000e+00> : vector<128xf32>
    %786 = vector.multi_reduction <add>, %783, %cst_263 [0] : vector<16x128xf32> to vector<128xf32>
    %787 = vector.shape_cast %786 : vector<128xf32> to vector<1x128xf32>
    %788 = arith.mulf %783, %783 : vector<16x128xf32>
    %cst_264 = arith.constant dense<0.000000e+00> : vector<128xf32>
    %789 = vector.multi_reduction <add>, %788, %cst_264 [0] : vector<16x128xf32> to vector<128xf32>
    %790 = vector.shape_cast %789 : vector<128xf32> to vector<1x128xf32>
    %791 = tpu.concatenate %787, %790 in 0 : vector<1x128xf32>, vector<1x128xf32> -> vector<2x128xf32>
    %cst_265 = arith.constant dense<0.000000e+00> : vector<2x16xf32>
    %792 = tpu.matmul %791, %590, %cst_265 {dimension_numbers = #tpu.dot_dimension_numbers<[1], [0], [0], [1], [0, 0, 1, 1], [], []>} : vector<2x128xf32>, vector<128x16xf32>, vector<2x16xf32> -> vector<2x16xf32>
    %cst_266 = arith.constant 7.812500e-03 : f32
    %793 = vector.broadcast %cst_266 : f32 to vector<2x16xf32>
    %794 = arith.mulf %792, %793 : vector<2x16xf32>
    %795 = vector.extract_strided_slice %794 {offsets = [0, 0], sizes = [1, 16], strides = [1, 1]} : vector<2x16xf32> to vector<1x16xf32>
    %796 = vector.extract_strided_slice %794 {offsets = [1, 0], sizes = [1, 16], strides = [1, 1]} : vector<2x16xf32> to vector<1x16xf32>
    %797 = arith.mulf %795, %795 : vector<1x16xf32>
    %798 = arith.subf %796, %797 : vector<1x16xf32>
    %cst_267 = arith.constant 9.99999974E-6 : f32
    %799 = vector.broadcast %cst_267 : f32 to vector<1x16xf32>
    %800 = arith.addf %798, %799 : vector<1x16xf32>
    %801 = math.rsqrt %800 : vector<1x16xf32>
    %802 = arith.mulf %784, %801 : vector<1x16xf32>
    %803 = arith.mulf %795, %802 : vector<1x16xf32>
    %804 = arith.subf %785, %803 : vector<1x16xf32>
    %805 = tpu.concatenate %802, %804 in 0 : vector<1x16xf32>, vector<1x16xf32> -> vector<2x16xf32>
    %cst_268 = arith.constant dense<0.000000e+00> : vector<2x128xf32>
    %806 = tpu.matmul %805, %591, %cst_268 {dimension_numbers = #tpu.dot_dimension_numbers<[1], [0], [0], [1], [0, 0, 1, 1], [], []>} : vector<2x16xf32>, vector<16x128xf32>, vector<2x128xf32> -> vector<2x128xf32>
    %807 = vector.extract_strided_slice %806 {offsets = [0, 0], sizes = [1, 128], strides = [1, 1]} : vector<2x128xf32> to vector<1x128xf32>
    %808 = vector.broadcast %807 : vector<1x128xf32> to vector<16x128xf32>
    %809 = arith.mulf %783, %808 : vector<16x128xf32>
    %810 = vector.extract_strided_slice %806 {offsets = [1, 0], sizes = [1, 128], strides = [1, 1]} : vector<2x128xf32> to vector<1x128xf32>
    %811 = vector.broadcast %810 : vector<1x128xf32> to vector<16x128xf32>
    %812 = arith.addf %809, %811 : vector<16x128xf32>
    %cst_269 = arith.constant 0.707106769 : f32
    %813 = vector.broadcast %cst_269 : f32 to vector<16x128xf32>
    %814 = arith.mulf %812, %813 : vector<16x128xf32>
    %815 = math.absf %814 : vector<16x128xf32>
    %cst_270 = arith.constant 0.327591091 : f32
    %816 = vector.broadcast %cst_270 : f32 to vector<16x128xf32>
    %817 = arith.mulf %816, %815 : vector<16x128xf32>
    %cst_271 = arith.constant 1.000000e+00 : f32
    %818 = vector.broadcast %cst_271 : f32 to vector<16x128xf32>
    %819 = arith.addf %818, %817 : vector<16x128xf32>
    %cst_272 = arith.constant 1.000000e+00 : f32
    %820 = vector.broadcast %cst_272 : f32 to vector<16x128xf32>
    %821 = arith.divf %820, %819 : vector<16x128xf32>
    %cst_273 = arith.constant 1.06140542 : f32
    %822 = vector.broadcast %cst_273 : f32 to vector<16x128xf32>
    %823 = arith.mulf %822, %821 : vector<16x128xf32>
    %cst_274 = arith.constant -1.45315206 : f32
    %824 = vector.broadcast %cst_274 : f32 to vector<16x128xf32>
    %825 = arith.addf %823, %824 : vector<16x128xf32>
    %826 = arith.mulf %825, %821 : vector<16x128xf32>
    %cst_275 = arith.constant 1.42141378 : f32
    %827 = vector.broadcast %cst_275 : f32 to vector<16x128xf32>
    %828 = arith.addf %826, %827 : vector<16x128xf32>
    %829 = arith.mulf %828, %821 : vector<16x128xf32>
    %cst_276 = arith.constant -0.284496725 : f32
    %830 = vector.broadcast %cst_276 : f32 to vector<16x128xf32>
    %831 = arith.addf %829, %830 : vector<16x128xf32>
    %832 = arith.mulf %831, %821 : vector<16x128xf32>
    %cst_277 = arith.constant 0.254829586 : f32
    %833 = vector.broadcast %cst_277 : f32 to vector<16x128xf32>
    %834 = arith.addf %832, %833 : vector<16x128xf32>
    %835 = arith.mulf %834, %821 : vector<16x128xf32>
    %cst_278 = arith.constant 0.000000e+00 : f32
    %836 = vector.broadcast %cst_278 : f32 to vector<16x128xf32>
    %837 = arith.subf %836, %815 : vector<16x128xf32>
    %838 = arith.mulf %837, %815 : vector<16x128xf32>
    %839 = math.exp %838 : vector<16x128xf32>
    %840 = arith.mulf %835, %839 : vector<16x128xf32>
    %cst_279 = arith.constant 1.000000e+00 : f32
    %841 = vector.broadcast %cst_279 : f32 to vector<16x128xf32>
    %842 = arith.subf %841, %840 : vector<16x128xf32>
    %cst_280 = arith.constant 0.000000e+00 : f32
    %843 = vector.broadcast %cst_280 : f32 to vector<16x128xf32>
    %844 = arith.cmpf oge, %814, %843 : vector<16x128xf32>
    %cst_281 = arith.constant 0.000000e+00 : f32
    %845 = vector.broadcast %cst_281 : f32 to vector<16x128xf32>
    %846 = arith.subf %845, %842 : vector<16x128xf32>
    %847 = arith.select %844, %842, %846 : vector<16x128xi1>, vector<16x128xf32>
    %cst_282 = arith.constant 5.000000e-01 : f32
    %848 = vector.broadcast %cst_282 : f32 to vector<16x128xf32>
    %849 = arith.mulf %848, %812 : vector<16x128xf32>
    %cst_283 = arith.constant 1.000000e+00 : f32
    %850 = vector.broadcast %cst_283 : f32 to vector<16x128xf32>
    %851 = arith.addf %850, %847 : vector<16x128xf32>
    %852 = arith.mulf %849, %851 : vector<16x128xf32>
    %c0_284 = arith.constant 0 : index
    %c0_285 = arith.constant 0 : index
    %853 = vector.load %arg24[%c0_284, %c0_285] : memref<256x64xf32, #tpu.memory_space<vmem>>, vector<256x64xf32>
    %c0_286 = arith.constant 0 : index
    %c0_287 = arith.constant 0 : index
    %854 = vector.load %arg25[%c0_286, %c0_287] : memref<192x64xf32, #tpu.memory_space<vmem>>, vector<192x64xf32>
    %c0_288 = arith.constant 0 : index
    %c0_289 = arith.constant 0 : index
    %855 = vector.load %arg26[%c0_288, %c0_289] : memref<128x64xf32, #tpu.memory_space<vmem>>, vector<128x64xf32>
    %c0_290 = arith.constant 0 : index
    %c0_291 = arith.constant 0 : index
    %856 = vector.load %arg27[%c0_290, %c0_291] : memref<64x4xf32, #tpu.memory_space<vmem>>, vector<64x4xf32>
    %c0_292 = arith.constant 0 : index
    %c0_293 = arith.constant 0 : index
    %857 = vector.load %arg28[%c0_292, %c0_293] : memref<4x64xf32, #tpu.memory_space<vmem>>, vector<4x64xf32>
    %c0_294 = arith.constant 0 : index
    %c0_295 = arith.constant 0 : index
    %858 = vector.load %arg29[%c0_294, %c0_295] : memref<3x64xf32, #tpu.memory_space<vmem>>, vector<3x64xf32>
    %c0_296 = arith.constant 0 : index
    %c0_297 = arith.constant 0 : index
    %859 = vector.load %arg30[%c0_296, %c0_297] : memref<8x4xf32, #tpu.memory_space<vmem>>, vector<8x4xf32>
    %cst_298 = arith.constant 0.000000e+00 : f32
    %860 = vector.broadcast %cst_298 : f32 to vector<2x128xf32>
    %cst_299 = arith.constant 0.000000e+00 : f32
    %861 = vector.broadcast %cst_299 : f32 to vector<2x64xf32>
    %862 = vector.extract_strided_slice %852 {offsets = [2, 0], sizes = [14, 128], strides = [1, 1]} : vector<16x128xf32> to vector<14x128xf32>
    %863 = tpu.concatenate %862, %860 in 0 : vector<14x128xf32>, vector<2x128xf32> -> vector<16x128xf32>
    %864 = tpu.concatenate %852, %863 in 1 : vector<16x128xf32>, vector<16x128xf32> -> vector<16x256xf32>
    %cst_300 = arith.constant dense<0.000000e+00> : vector<16x64xf32>
    %865 = tpu.matmul %864, %853, %cst_300 {dimension_numbers = #tpu.dot_dimension_numbers<[1], [0], [0], [1], [0, 0, 1, 1], [], []>} : vector<16x256xf32>, vector<256x64xf32>, vector<16x64xf32> -> vector<16x64xf32>
    %866 = vector.extract_strided_slice %858 {offsets = [0, 0], sizes = [1, 64], strides = [1, 1]} : vector<3x64xf32> to vector<1x64xf32>
    %867 = vector.broadcast %866 : vector<1x64xf32> to vector<16x64xf32>
    %868 = arith.addf %865, %867 : vector<16x64xf32>
    %869 = vector.extract_strided_slice %859 {offsets = [0, 0], sizes = [1, 4], strides = [1, 1]} : vector<8x4xf32> to vector<1x4xf32>
    %870 = vector.extract_strided_slice %859 {offsets = [1, 0], sizes = [1, 4], strides = [1, 1]} : vector<8x4xf32> to vector<1x4xf32>
    %cst_301 = arith.constant dense<0.000000e+00> : vector<64xf32>
    %871 = vector.multi_reduction <add>, %868, %cst_301 [0] : vector<16x64xf32> to vector<64xf32>
    %872 = vector.shape_cast %871 : vector<64xf32> to vector<1x64xf32>
    %873 = arith.mulf %868, %868 : vector<16x64xf32>
    %cst_302 = arith.constant dense<0.000000e+00> : vector<64xf32>
    %874 = vector.multi_reduction <add>, %873, %cst_302 [0] : vector<16x64xf32> to vector<64xf32>
    %875 = vector.shape_cast %874 : vector<64xf32> to vector<1x64xf32>
    %876 = tpu.concatenate %872, %875 in 0 : vector<1x64xf32>, vector<1x64xf32> -> vector<2x64xf32>
    %cst_303 = arith.constant dense<0.000000e+00> : vector<2x4xf32>
    %877 = tpu.matmul %876, %856, %cst_303 {dimension_numbers = #tpu.dot_dimension_numbers<[1], [0], [0], [1], [0, 0, 1, 1], [], []>} : vector<2x64xf32>, vector<64x4xf32>, vector<2x4xf32> -> vector<2x4xf32>
    %cst_304 = arith.constant 3.906250e-03 : f32
    %878 = vector.broadcast %cst_304 : f32 to vector<2x4xf32>
    %879 = arith.mulf %877, %878 : vector<2x4xf32>
    %880 = vector.extract_strided_slice %879 {offsets = [0, 0], sizes = [1, 4], strides = [1, 1]} : vector<2x4xf32> to vector<1x4xf32>
    %881 = vector.extract_strided_slice %879 {offsets = [1, 0], sizes = [1, 4], strides = [1, 1]} : vector<2x4xf32> to vector<1x4xf32>
    %882 = arith.mulf %880, %880 : vector<1x4xf32>
    %883 = arith.subf %881, %882 : vector<1x4xf32>
    %cst_305 = arith.constant 9.99999974E-6 : f32
    %884 = vector.broadcast %cst_305 : f32 to vector<1x4xf32>
    %885 = arith.addf %883, %884 : vector<1x4xf32>
    %886 = math.rsqrt %885 : vector<1x4xf32>
    %887 = arith.mulf %869, %886 : vector<1x4xf32>
    %888 = arith.mulf %880, %887 : vector<1x4xf32>
    %889 = arith.subf %870, %888 : vector<1x4xf32>
    %890 = tpu.concatenate %887, %889 in 0 : vector<1x4xf32>, vector<1x4xf32> -> vector<2x4xf32>
    %cst_306 = arith.constant dense<0.000000e+00> : vector<2x64xf32>
    %891 = tpu.matmul %890, %857, %cst_306 {dimension_numbers = #tpu.dot_dimension_numbers<[1], [0], [0], [1], [0, 0, 1, 1], [], []>} : vector<2x4xf32>, vector<4x64xf32>, vector<2x64xf32> -> vector<2x64xf32>
    %892 = vector.extract_strided_slice %891 {offsets = [0, 0], sizes = [1, 64], strides = [1, 1]} : vector<2x64xf32> to vector<1x64xf32>
    %893 = vector.broadcast %892 : vector<1x64xf32> to vector<16x64xf32>
    %894 = arith.mulf %868, %893 : vector<16x64xf32>
    %895 = vector.extract_strided_slice %891 {offsets = [1, 0], sizes = [1, 64], strides = [1, 1]} : vector<2x64xf32> to vector<1x64xf32>
    %896 = vector.broadcast %895 : vector<1x64xf32> to vector<16x64xf32>
    %897 = arith.addf %894, %896 : vector<16x64xf32>
    %cst_307 = arith.constant 0.707106769 : f32
    %898 = vector.broadcast %cst_307 : f32 to vector<16x64xf32>
    %899 = arith.mulf %897, %898 : vector<16x64xf32>
    %900 = math.absf %899 : vector<16x64xf32>
    %cst_308 = arith.constant 0.327591091 : f32
    %901 = vector.broadcast %cst_308 : f32 to vector<16x64xf32>
    %902 = arith.mulf %901, %900 : vector<16x64xf32>
    %cst_309 = arith.constant 1.000000e+00 : f32
    %903 = vector.broadcast %cst_309 : f32 to vector<16x64xf32>
    %904 = arith.addf %903, %902 : vector<16x64xf32>
    %cst_310 = arith.constant 1.000000e+00 : f32
    %905 = vector.broadcast %cst_310 : f32 to vector<16x64xf32>
    %906 = arith.divf %905, %904 : vector<16x64xf32>
    %cst_311 = arith.constant 1.06140542 : f32
    %907 = vector.broadcast %cst_311 : f32 to vector<16x64xf32>
    %908 = arith.mulf %907, %906 : vector<16x64xf32>
    %cst_312 = arith.constant -1.45315206 : f32
    %909 = vector.broadcast %cst_312 : f32 to vector<16x64xf32>
    %910 = arith.addf %908, %909 : vector<16x64xf32>
    %911 = arith.mulf %910, %906 : vector<16x64xf32>
    %cst_313 = arith.constant 1.42141378 : f32
    %912 = vector.broadcast %cst_313 : f32 to vector<16x64xf32>
    %913 = arith.addf %911, %912 : vector<16x64xf32>
    %914 = arith.mulf %913, %906 : vector<16x64xf32>
    %cst_314 = arith.constant -0.284496725 : f32
    %915 = vector.broadcast %cst_314 : f32 to vector<16x64xf32>
    %916 = arith.addf %914, %915 : vector<16x64xf32>
    %917 = arith.mulf %916, %906 : vector<16x64xf32>
    %cst_315 = arith.constant 0.254829586 : f32
    %918 = vector.broadcast %cst_315 : f32 to vector<16x64xf32>
    %919 = arith.addf %917, %918 : vector<16x64xf32>
    %920 = arith.mulf %919, %906 : vector<16x64xf32>
    %cst_316 = arith.constant 0.000000e+00 : f32
    %921 = vector.broadcast %cst_316 : f32 to vector<16x64xf32>
    %922 = arith.subf %921, %900 : vector<16x64xf32>
    %923 = arith.mulf %922, %900 : vector<16x64xf32>
    %924 = math.exp %923 : vector<16x64xf32>
    %925 = arith.mulf %920, %924 : vector<16x64xf32>
    %cst_317 = arith.constant 1.000000e+00 : f32
    %926 = vector.broadcast %cst_317 : f32 to vector<16x64xf32>
    %927 = arith.subf %926, %925 : vector<16x64xf32>
    %cst_318 = arith.constant 0.000000e+00 : f32
    %928 = vector.broadcast %cst_318 : f32 to vector<16x64xf32>
    %929 = arith.cmpf oge, %899, %928 : vector<16x64xf32>
    %cst_319 = arith.constant 0.000000e+00 : f32
    %930 = vector.broadcast %cst_319 : f32 to vector<16x64xf32>
    %931 = arith.subf %930, %927 : vector<16x64xf32>
    %932 = arith.select %929, %927, %931 : vector<16x64xi1>, vector<16x64xf32>
    %cst_320 = arith.constant 5.000000e-01 : f32
    %933 = vector.broadcast %cst_320 : f32 to vector<16x64xf32>
    %934 = arith.mulf %933, %897 : vector<16x64xf32>
    %cst_321 = arith.constant 1.000000e+00 : f32
    %935 = vector.broadcast %cst_321 : f32 to vector<16x64xf32>
    %936 = arith.addf %935, %932 : vector<16x64xf32>
    %937 = arith.mulf %934, %936 : vector<16x64xf32>
    %938 = vector.extract_strided_slice %937 {offsets = [2, 0], sizes = [14, 64], strides = [1, 1]} : vector<16x64xf32> to vector<14x64xf32>
    %939 = tpu.concatenate %938, %861 in 0 : vector<14x64xf32>, vector<2x64xf32> -> vector<16x64xf32>
    %940 = vector.extract_strided_slice %937 {offsets = [0, 0], sizes = [14, 64], strides = [1, 1]} : vector<16x64xf32> to vector<14x64xf32>
    %941 = tpu.concatenate %861, %940 in 0 : vector<2x64xf32>, vector<14x64xf32> -> vector<16x64xf32>
    %942 = tpu.concatenate %937, %939, %941 in 1 : vector<16x64xf32>, vector<16x64xf32>, vector<16x64xf32> -> vector<16x192xf32>
    %cst_322 = arith.constant dense<0.000000e+00> : vector<16x64xf32>
    %943 = tpu.matmul %942, %854, %cst_322 {dimension_numbers = #tpu.dot_dimension_numbers<[1], [0], [0], [1], [0, 0, 1, 1], [], []>} : vector<16x192xf32>, vector<192x64xf32>, vector<16x64xf32> -> vector<16x64xf32>
    %944 = vector.extract_strided_slice %858 {offsets = [1, 0], sizes = [1, 64], strides = [1, 1]} : vector<3x64xf32> to vector<1x64xf32>
    %945 = vector.broadcast %944 : vector<1x64xf32> to vector<16x64xf32>
    %946 = arith.addf %943, %945 : vector<16x64xf32>
    %947 = vector.extract_strided_slice %859 {offsets = [2, 0], sizes = [1, 4], strides = [1, 1]} : vector<8x4xf32> to vector<1x4xf32>
    %948 = vector.extract_strided_slice %859 {offsets = [3, 0], sizes = [1, 4], strides = [1, 1]} : vector<8x4xf32> to vector<1x4xf32>
    %cst_323 = arith.constant dense<0.000000e+00> : vector<64xf32>
    %949 = vector.multi_reduction <add>, %946, %cst_323 [0] : vector<16x64xf32> to vector<64xf32>
    %950 = vector.shape_cast %949 : vector<64xf32> to vector<1x64xf32>
    %951 = arith.mulf %946, %946 : vector<16x64xf32>
    %cst_324 = arith.constant dense<0.000000e+00> : vector<64xf32>
    %952 = vector.multi_reduction <add>, %951, %cst_324 [0] : vector<16x64xf32> to vector<64xf32>
    %953 = vector.shape_cast %952 : vector<64xf32> to vector<1x64xf32>
    %954 = tpu.concatenate %950, %953 in 0 : vector<1x64xf32>, vector<1x64xf32> -> vector<2x64xf32>
    %cst_325 = arith.constant dense<0.000000e+00> : vector<2x4xf32>
    %955 = tpu.matmul %954, %856, %cst_325 {dimension_numbers = #tpu.dot_dimension_numbers<[1], [0], [0], [1], [0, 0, 1, 1], [], []>} : vector<2x64xf32>, vector<64x4xf32>, vector<2x4xf32> -> vector<2x4xf32>
    %cst_326 = arith.constant 3.906250e-03 : f32
    %956 = vector.broadcast %cst_326 : f32 to vector<2x4xf32>
    %957 = arith.mulf %955, %956 : vector<2x4xf32>
    %958 = vector.extract_strided_slice %957 {offsets = [0, 0], sizes = [1, 4], strides = [1, 1]} : vector<2x4xf32> to vector<1x4xf32>
    %959 = vector.extract_strided_slice %957 {offsets = [1, 0], sizes = [1, 4], strides = [1, 1]} : vector<2x4xf32> to vector<1x4xf32>
    %960 = arith.mulf %958, %958 : vector<1x4xf32>
    %961 = arith.subf %959, %960 : vector<1x4xf32>
    %cst_327 = arith.constant 9.99999974E-6 : f32
    %962 = vector.broadcast %cst_327 : f32 to vector<1x4xf32>
    %963 = arith.addf %961, %962 : vector<1x4xf32>
    %964 = math.rsqrt %963 : vector<1x4xf32>
    %965 = arith.mulf %947, %964 : vector<1x4xf32>
    %966 = arith.mulf %958, %965 : vector<1x4xf32>
    %967 = arith.subf %948, %966 : vector<1x4xf32>
    %968 = tpu.concatenate %965, %967 in 0 : vector<1x4xf32>, vector<1x4xf32> -> vector<2x4xf32>
    %cst_328 = arith.constant dense<0.000000e+00> : vector<2x64xf32>
    %969 = tpu.matmul %968, %857, %cst_328 {dimension_numbers = #tpu.dot_dimension_numbers<[1], [0], [0], [1], [0, 0, 1, 1], [], []>} : vector<2x4xf32>, vector<4x64xf32>, vector<2x64xf32> -> vector<2x64xf32>
    %970 = vector.extract_strided_slice %969 {offsets = [0, 0], sizes = [1, 64], strides = [1, 1]} : vector<2x64xf32> to vector<1x64xf32>
    %971 = vector.broadcast %970 : vector<1x64xf32> to vector<16x64xf32>
    %972 = arith.mulf %946, %971 : vector<16x64xf32>
    %973 = vector.extract_strided_slice %969 {offsets = [1, 0], sizes = [1, 64], strides = [1, 1]} : vector<2x64xf32> to vector<1x64xf32>
    %974 = vector.broadcast %973 : vector<1x64xf32> to vector<16x64xf32>
    %975 = arith.addf %972, %974 : vector<16x64xf32>
    %cst_329 = arith.constant dense<0.000000e+00> : vector<16x64xf32>
    %976 = tpu.matmul %852, %855, %cst_329 {dimension_numbers = #tpu.dot_dimension_numbers<[1], [0], [0], [1], [0, 0, 1, 1], [], []>} : vector<16x128xf32>, vector<128x64xf32>, vector<16x64xf32> -> vector<16x64xf32>
    %977 = vector.extract_strided_slice %858 {offsets = [2, 0], sizes = [1, 64], strides = [1, 1]} : vector<3x64xf32> to vector<1x64xf32>
    %978 = vector.broadcast %977 : vector<1x64xf32> to vector<16x64xf32>
    %979 = arith.addf %976, %978 : vector<16x64xf32>
    %980 = vector.extract_strided_slice %859 {offsets = [4, 0], sizes = [1, 4], strides = [1, 1]} : vector<8x4xf32> to vector<1x4xf32>
    %981 = vector.extract_strided_slice %859 {offsets = [5, 0], sizes = [1, 4], strides = [1, 1]} : vector<8x4xf32> to vector<1x4xf32>
    %cst_330 = arith.constant dense<0.000000e+00> : vector<64xf32>
    %982 = vector.multi_reduction <add>, %979, %cst_330 [0] : vector<16x64xf32> to vector<64xf32>
    %983 = vector.shape_cast %982 : vector<64xf32> to vector<1x64xf32>
    %984 = arith.mulf %979, %979 : vector<16x64xf32>
    %cst_331 = arith.constant dense<0.000000e+00> : vector<64xf32>
    %985 = vector.multi_reduction <add>, %984, %cst_331 [0] : vector<16x64xf32> to vector<64xf32>
    %986 = vector.shape_cast %985 : vector<64xf32> to vector<1x64xf32>
    %987 = tpu.concatenate %983, %986 in 0 : vector<1x64xf32>, vector<1x64xf32> -> vector<2x64xf32>
    %cst_332 = arith.constant dense<0.000000e+00> : vector<2x4xf32>
    %988 = tpu.matmul %987, %856, %cst_332 {dimension_numbers = #tpu.dot_dimension_numbers<[1], [0], [0], [1], [0, 0, 1, 1], [], []>} : vector<2x64xf32>, vector<64x4xf32>, vector<2x4xf32> -> vector<2x4xf32>
    %cst_333 = arith.constant 3.906250e-03 : f32
    %989 = vector.broadcast %cst_333 : f32 to vector<2x4xf32>
    %990 = arith.mulf %988, %989 : vector<2x4xf32>
    %991 = vector.extract_strided_slice %990 {offsets = [0, 0], sizes = [1, 4], strides = [1, 1]} : vector<2x4xf32> to vector<1x4xf32>
    %992 = vector.extract_strided_slice %990 {offsets = [1, 0], sizes = [1, 4], strides = [1, 1]} : vector<2x4xf32> to vector<1x4xf32>
    %993 = arith.mulf %991, %991 : vector<1x4xf32>
    %994 = arith.subf %992, %993 : vector<1x4xf32>
    %cst_334 = arith.constant 9.99999974E-6 : f32
    %995 = vector.broadcast %cst_334 : f32 to vector<1x4xf32>
    %996 = arith.addf %994, %995 : vector<1x4xf32>
    %997 = math.rsqrt %996 : vector<1x4xf32>
    %998 = arith.mulf %980, %997 : vector<1x4xf32>
    %999 = arith.mulf %991, %998 : vector<1x4xf32>
    %1000 = arith.subf %981, %999 : vector<1x4xf32>
    %1001 = tpu.concatenate %998, %1000 in 0 : vector<1x4xf32>, vector<1x4xf32> -> vector<2x4xf32>
    %cst_335 = arith.constant dense<0.000000e+00> : vector<2x64xf32>
    %1002 = tpu.matmul %1001, %857, %cst_335 {dimension_numbers = #tpu.dot_dimension_numbers<[1], [0], [0], [1], [0, 0, 1, 1], [], []>} : vector<2x4xf32>, vector<4x64xf32>, vector<2x64xf32> -> vector<2x64xf32>
    %1003 = vector.extract_strided_slice %1002 {offsets = [0, 0], sizes = [1, 64], strides = [1, 1]} : vector<2x64xf32> to vector<1x64xf32>
    %1004 = vector.broadcast %1003 : vector<1x64xf32> to vector<16x64xf32>
    %1005 = arith.mulf %979, %1004 : vector<16x64xf32>
    %1006 = vector.extract_strided_slice %1002 {offsets = [1, 0], sizes = [1, 64], strides = [1, 1]} : vector<2x64xf32> to vector<1x64xf32>
    %1007 = vector.broadcast %1006 : vector<1x64xf32> to vector<16x64xf32>
    %1008 = arith.addf %1005, %1007 : vector<16x64xf32>
    %1009 = arith.addf %975, %1008 : vector<16x64xf32>
    %cst_336 = arith.constant 0.707106769 : f32
    %1010 = vector.broadcast %cst_336 : f32 to vector<16x64xf32>
    %1011 = arith.mulf %1009, %1010 : vector<16x64xf32>
    %1012 = math.absf %1011 : vector<16x64xf32>
    %cst_337 = arith.constant 0.327591091 : f32
    %1013 = vector.broadcast %cst_337 : f32 to vector<16x64xf32>
    %1014 = arith.mulf %1013, %1012 : vector<16x64xf32>
    %cst_338 = arith.constant 1.000000e+00 : f32
    %1015 = vector.broadcast %cst_338 : f32 to vector<16x64xf32>
    %1016 = arith.addf %1015, %1014 : vector<16x64xf32>
    %cst_339 = arith.constant 1.000000e+00 : f32
    %1017 = vector.broadcast %cst_339 : f32 to vector<16x64xf32>
    %1018 = arith.divf %1017, %1016 : vector<16x64xf32>
    %cst_340 = arith.constant 1.06140542 : f32
    %1019 = vector.broadcast %cst_340 : f32 to vector<16x64xf32>
    %1020 = arith.mulf %1019, %1018 : vector<16x64xf32>
    %cst_341 = arith.constant -1.45315206 : f32
    %1021 = vector.broadcast %cst_341 : f32 to vector<16x64xf32>
    %1022 = arith.addf %1020, %1021 : vector<16x64xf32>
    %1023 = arith.mulf %1022, %1018 : vector<16x64xf32>
    %cst_342 = arith.constant 1.42141378 : f32
    %1024 = vector.broadcast %cst_342 : f32 to vector<16x64xf32>
    %1025 = arith.addf %1023, %1024 : vector<16x64xf32>
    %1026 = arith.mulf %1025, %1018 : vector<16x64xf32>
    %cst_343 = arith.constant -0.284496725 : f32
    %1027 = vector.broadcast %cst_343 : f32 to vector<16x64xf32>
    %1028 = arith.addf %1026, %1027 : vector<16x64xf32>
    %1029 = arith.mulf %1028, %1018 : vector<16x64xf32>
    %cst_344 = arith.constant 0.254829586 : f32
    %1030 = vector.broadcast %cst_344 : f32 to vector<16x64xf32>
    %1031 = arith.addf %1029, %1030 : vector<16x64xf32>
    %1032 = arith.mulf %1031, %1018 : vector<16x64xf32>
    %cst_345 = arith.constant 0.000000e+00 : f32
    %1033 = vector.broadcast %cst_345 : f32 to vector<16x64xf32>
    %1034 = arith.subf %1033, %1012 : vector<16x64xf32>
    %1035 = arith.mulf %1034, %1012 : vector<16x64xf32>
    %1036 = math.exp %1035 : vector<16x64xf32>
    %1037 = arith.mulf %1032, %1036 : vector<16x64xf32>
    %cst_346 = arith.constant 1.000000e+00 : f32
    %1038 = vector.broadcast %cst_346 : f32 to vector<16x64xf32>
    %1039 = arith.subf %1038, %1037 : vector<16x64xf32>
    %cst_347 = arith.constant 0.000000e+00 : f32
    %1040 = vector.broadcast %cst_347 : f32 to vector<16x64xf32>
    %1041 = arith.cmpf oge, %1011, %1040 : vector<16x64xf32>
    %cst_348 = arith.constant 0.000000e+00 : f32
    %1042 = vector.broadcast %cst_348 : f32 to vector<16x64xf32>
    %1043 = arith.subf %1042, %1039 : vector<16x64xf32>
    %1044 = arith.select %1041, %1039, %1043 : vector<16x64xi1>, vector<16x64xf32>
    %cst_349 = arith.constant 5.000000e-01 : f32
    %1045 = vector.broadcast %cst_349 : f32 to vector<16x64xf32>
    %1046 = arith.mulf %1045, %1009 : vector<16x64xf32>
    %cst_350 = arith.constant 1.000000e+00 : f32
    %1047 = vector.broadcast %cst_350 : f32 to vector<16x64xf32>
    %1048 = arith.addf %1047, %1044 : vector<16x64xf32>
    %1049 = arith.mulf %1046, %1048 : vector<16x64xf32>
    %1050 = vector.extract_strided_slice %859 {offsets = [6, 0], sizes = [1, 4], strides = [1, 1]} : vector<8x4xf32> to vector<1x4xf32>
    %1051 = vector.extract_strided_slice %859 {offsets = [7, 0], sizes = [1, 4], strides = [1, 1]} : vector<8x4xf32> to vector<1x4xf32>
    %cst_351 = arith.constant dense<0.000000e+00> : vector<64xf32>
    %1052 = vector.multi_reduction <add>, %1049, %cst_351 [0] : vector<16x64xf32> to vector<64xf32>
    %1053 = vector.shape_cast %1052 : vector<64xf32> to vector<1x64xf32>
    %1054 = arith.mulf %1049, %1049 : vector<16x64xf32>
    %cst_352 = arith.constant dense<0.000000e+00> : vector<64xf32>
    %1055 = vector.multi_reduction <add>, %1054, %cst_352 [0] : vector<16x64xf32> to vector<64xf32>
    %1056 = vector.shape_cast %1055 : vector<64xf32> to vector<1x64xf32>
    %1057 = tpu.concatenate %1053, %1056 in 0 : vector<1x64xf32>, vector<1x64xf32> -> vector<2x64xf32>
    %cst_353 = arith.constant dense<0.000000e+00> : vector<2x4xf32>
    %1058 = tpu.matmul %1057, %856, %cst_353 {dimension_numbers = #tpu.dot_dimension_numbers<[1], [0], [0], [1], [0, 0, 1, 1], [], []>} : vector<2x64xf32>, vector<64x4xf32>, vector<2x4xf32> -> vector<2x4xf32>
    %cst_354 = arith.constant 3.906250e-03 : f32
    %1059 = vector.broadcast %cst_354 : f32 to vector<2x4xf32>
    %1060 = arith.mulf %1058, %1059 : vector<2x4xf32>
    %1061 = vector.extract_strided_slice %1060 {offsets = [0, 0], sizes = [1, 4], strides = [1, 1]} : vector<2x4xf32> to vector<1x4xf32>
    %1062 = vector.extract_strided_slice %1060 {offsets = [1, 0], sizes = [1, 4], strides = [1, 1]} : vector<2x4xf32> to vector<1x4xf32>
    %1063 = arith.mulf %1061, %1061 : vector<1x4xf32>
    %1064 = arith.subf %1062, %1063 : vector<1x4xf32>
    %cst_355 = arith.constant 9.99999974E-6 : f32
    %1065 = vector.broadcast %cst_355 : f32 to vector<1x4xf32>
    %1066 = arith.addf %1064, %1065 : vector<1x4xf32>
    %1067 = math.rsqrt %1066 : vector<1x4xf32>
    %1068 = arith.mulf %1050, %1067 : vector<1x4xf32>
    %1069 = arith.mulf %1061, %1068 : vector<1x4xf32>
    %1070 = arith.subf %1051, %1069 : vector<1x4xf32>
    %1071 = tpu.concatenate %1068, %1070 in 0 : vector<1x4xf32>, vector<1x4xf32> -> vector<2x4xf32>
    %cst_356 = arith.constant dense<0.000000e+00> : vector<2x64xf32>
    %1072 = tpu.matmul %1071, %857, %cst_356 {dimension_numbers = #tpu.dot_dimension_numbers<[1], [0], [0], [1], [0, 0, 1, 1], [], []>} : vector<2x4xf32>, vector<4x64xf32>, vector<2x64xf32> -> vector<2x64xf32>
    %1073 = vector.extract_strided_slice %1072 {offsets = [0, 0], sizes = [1, 64], strides = [1, 1]} : vector<2x64xf32> to vector<1x64xf32>
    %1074 = vector.broadcast %1073 : vector<1x64xf32> to vector<16x64xf32>
    %1075 = arith.mulf %1049, %1074 : vector<16x64xf32>
    %1076 = vector.extract_strided_slice %1072 {offsets = [1, 0], sizes = [1, 64], strides = [1, 1]} : vector<2x64xf32> to vector<1x64xf32>
    %1077 = vector.broadcast %1076 : vector<1x64xf32> to vector<16x64xf32>
    %1078 = arith.addf %1075, %1077 : vector<16x64xf32>
    %cst_357 = arith.constant 0.707106769 : f32
    %1079 = vector.broadcast %cst_357 : f32 to vector<16x64xf32>
    %1080 = arith.mulf %1078, %1079 : vector<16x64xf32>
    %1081 = math.absf %1080 : vector<16x64xf32>
    %cst_358 = arith.constant 0.327591091 : f32
    %1082 = vector.broadcast %cst_358 : f32 to vector<16x64xf32>
    %1083 = arith.mulf %1082, %1081 : vector<16x64xf32>
    %cst_359 = arith.constant 1.000000e+00 : f32
    %1084 = vector.broadcast %cst_359 : f32 to vector<16x64xf32>
    %1085 = arith.addf %1084, %1083 : vector<16x64xf32>
    %cst_360 = arith.constant 1.000000e+00 : f32
    %1086 = vector.broadcast %cst_360 : f32 to vector<16x64xf32>
    %1087 = arith.divf %1086, %1085 : vector<16x64xf32>
    %cst_361 = arith.constant 1.06140542 : f32
    %1088 = vector.broadcast %cst_361 : f32 to vector<16x64xf32>
    %1089 = arith.mulf %1088, %1087 : vector<16x64xf32>
    %cst_362 = arith.constant -1.45315206 : f32
    %1090 = vector.broadcast %cst_362 : f32 to vector<16x64xf32>
    %1091 = arith.addf %1089, %1090 : vector<16x64xf32>
    %1092 = arith.mulf %1091, %1087 : vector<16x64xf32>
    %cst_363 = arith.constant 1.42141378 : f32
    %1093 = vector.broadcast %cst_363 : f32 to vector<16x64xf32>
    %1094 = arith.addf %1092, %1093 : vector<16x64xf32>
    %1095 = arith.mulf %1094, %1087 : vector<16x64xf32>
    %cst_364 = arith.constant -0.284496725 : f32
    %1096 = vector.broadcast %cst_364 : f32 to vector<16x64xf32>
    %1097 = arith.addf %1095, %1096 : vector<16x64xf32>
    %1098 = arith.mulf %1097, %1087 : vector<16x64xf32>
    %cst_365 = arith.constant 0.254829586 : f32
    %1099 = vector.broadcast %cst_365 : f32 to vector<16x64xf32>
    %1100 = arith.addf %1098, %1099 : vector<16x64xf32>
    %1101 = arith.mulf %1100, %1087 : vector<16x64xf32>
    %cst_366 = arith.constant 0.000000e+00 : f32
    %1102 = vector.broadcast %cst_366 : f32 to vector<16x64xf32>
    %1103 = arith.subf %1102, %1081 : vector<16x64xf32>
    %1104 = arith.mulf %1103, %1081 : vector<16x64xf32>
    %1105 = math.exp %1104 : vector<16x64xf32>
    %1106 = arith.mulf %1101, %1105 : vector<16x64xf32>
    %cst_367 = arith.constant 1.000000e+00 : f32
    %1107 = vector.broadcast %cst_367 : f32 to vector<16x64xf32>
    %1108 = arith.subf %1107, %1106 : vector<16x64xf32>
    %cst_368 = arith.constant 0.000000e+00 : f32
    %1109 = vector.broadcast %cst_368 : f32 to vector<16x64xf32>
    %1110 = arith.cmpf oge, %1080, %1109 : vector<16x64xf32>
    %cst_369 = arith.constant 0.000000e+00 : f32
    %1111 = vector.broadcast %cst_369 : f32 to vector<16x64xf32>
    %1112 = arith.subf %1111, %1108 : vector<16x64xf32>
    %1113 = arith.select %1110, %1108, %1112 : vector<16x64xi1>, vector<16x64xf32>
    %cst_370 = arith.constant 5.000000e-01 : f32
    %1114 = vector.broadcast %cst_370 : f32 to vector<16x64xf32>
    %1115 = arith.mulf %1114, %1078 : vector<16x64xf32>
    %cst_371 = arith.constant 1.000000e+00 : f32
    %1116 = vector.broadcast %cst_371 : f32 to vector<16x64xf32>
    %1117 = arith.addf %1116, %1113 : vector<16x64xf32>
    %1118 = arith.mulf %1115, %1117 : vector<16x64xf32>
    %c0_372 = arith.constant 0 : index
    %c0_373 = arith.constant 0 : index
    %1119 = vector.load %arg31[%c0_372, %c0_373] : memref<64x16xf32, #tpu.memory_space<vmem>>, vector<64x16xf32>
    %cst_374 = arith.constant dense<0.000000e+00> : vector<16x16xf32>
    %1120 = tpu.matmul %1118, %1119, %cst_374 {dimension_numbers = #tpu.dot_dimension_numbers<[1], [0], [0], [1], [0, 0, 1, 1], [], []>} : vector<16x64xf32>, vector<64x16xf32>, vector<16x16xf32> -> vector<16x16xf32>
    %c0_375 = arith.constant 0 : index
    %c0_376 = arith.constant 0 : index
    %1121 = vector.load %arg32[%c0_375, %c0_376] : memref<1x16xf32, #tpu.memory_space<vmem>>, vector<1x16xf32>
    %1122 = vector.broadcast %1121 : vector<1x16xf32> to vector<16x16xf32>
    %1123 = arith.addf %1120, %1122 : vector<16x16xf32>
    %c0_377 = arith.constant 0 : index
    %c0_378 = arith.constant 0 : index
    %1124 = vector.load %arg33[%c0_377, %c0_378] : memref<16x16xf32, #tpu.memory_space<vmem>>, vector<16x16xf32>
    tpu.vector_store %arg33[%c0_377, %c0_378], %1123 {strides = array<i32>} : memref<16x16xf32, #tpu.memory_space<vmem>>, vector<16x16xf32>,
    return
  }
}

</mosaic_0001>

<bundles_post_ra>
// kernel: decoder_forward.1
= control target key start
LH: loop header
LB: loop body
LE: loop exit
PB: predicated region body
PF: predicated region fallthrough
CT: control target
= control target key end

     0   :  { %s9647_s6 = smov 1   ;;  %s9648_s10 = smov 2   ;;  %s11196_s0 = inlined_call_operand.smem [shape: u32[34], index: -1, kind: input, shape index: {}] }
   0x1   :  { %s9710_s5 = sld [smem:[%s11196_s0]]   ;;  %s9649_s14 = smov 3  }
   0x2   :  { %s9715_s9 = sld [smem:[%s11196_s0 + %s9647_s6]]   ;;  %s9650_s18 = smov 4  }
   0x3   :  { %s9720_s13 = sld [smem:[%s11196_s0 + %s9648_s10]]   ;;  %s9651_s22 = smov 5  }
   0x4   :  { %s9725_s17 = sld [smem:[%s11196_s0 + %s9649_s14]]   ;;  %s9652_s26 = smov 6  }
   0x5   :  { %s9730_s21 = sld [smem:[%s11196_s0 + %s9650_s18]]   ;;  %s9653_s30 = smov 7  }
   0x6   :  { %s9735_s25 = sld [smem:[%s11196_s0 + %s9651_s22]]   ;;  %s9654_s4 = smov 8  }
   0x7   :  { %s9740_s29 = sld [smem:[%s11196_s0 + %s9652_s26]]   ;;  %s9655_s10 = smov 9  }
   0x8   :  { %11211 = sst [smem:[#allocation36_spill]] %s9715_s9  ;;  %s9656_s15 = smov 10  }
   0x9   :  { %11212 = sst [smem:[#allocation37_spill]] %s9720_s13  ;;  %s9657_s20 = smov 11  }
   0xa   :  { %s9745_s3 = sld [smem:[%s11196_s0 + %s9653_s30]]   ;;  %s9658_s26 = smov 12  }
   0xb   :  { %11213 = sst [smem:[#allocation38_spill]] %s9730_s21  ;;  %s9659_s1 = smov 13  }
   0xc   :  { %s9750_s8 = sld [smem:[%s11196_s0 + %s9654_s4]]   ;;  %s9660_s7 = smov 14  }
   0xd   :  { %11214 = sst [smem:[#allocation39_spill]] %s9740_s29  ;;  %s9662_s22 = smov 16  }
   0xe   :  { %s9755_s14 = sld [smem:[%s11196_s0 + %s9655_s10]]   ;;  %s9663_s28 = smov 17  }
   0xf   :  { %s9760_s19 = sld [smem:[%s11196_s0 + %s9656_s15]]   ;;  %s9661_s15 = smov 15  }
  0x10   :  { %s9765_s24 = sld [smem:[%s11196_s0 + %s9657_s20]]  }
  0x11   :  { %s9770_s30 = sld [smem:[%s11196_s0 + %s9658_s26]]  }
  0x12   :  { %s9775_s6 = sld [smem:[%s11196_s0 + %s9659_s1]]  }
  0x13   :  { %s9780_s12 = sld [smem:[%s11196_s0 + %s9660_s7]]   ;;  %s9664_s7 = smov 18  }
  0x14   :  { %s9785_s20 = sld [smem:[%s11196_s0 + %s9661_s15]]   ;;  %s9665_s15 = smov 19  }
  0x15   :  { %s9790_s27 = sld [smem:[%s11196_s0 + %s9662_s22]]   ;;  %s9666_s22 = smov 20  }
  0x16   :  { %11215 = sst [smem:[#allocation40_spill]] %s9765_s24 }
  0x17   :  { %s9795_s4 = sld [smem:[%s11196_s0 + %s9663_s28]]   ;;  %s9667_s28 = smov 21  }
  0x18   :  { %11216 = sst [smem:[#allocation41_spill]] %s9775_s6 }
  0x19   :  { %s9800_s24 = sld [smem:[%s11196_s0 + %s9664_s7]]   ;;  %s9668_s7 = smov 22  }
  0x1a   :  { %s9805_s6 = sld [smem:[%s11196_s0 + %s9665_s15]]   ;;  %s9669_s15 = smov 23  }
  0x1b   :  { %s9810_s21 = sld [smem:[%s11196_s0 + %s9666_s22]]   ;;  %s9670_s22 = smov 24  }
  0x1c   :  { %s9815_s13 = sld [smem:[%s11196_s0 + %s9667_s28]]   ;;  %s9671_s28 = smov 25  }
  0x1d   :  { %s9825_s29 = sld [smem:[%s11196_s0 + %s9669_s15]]   ;;  %s9673_s15 = smov 27  }
  0x1f   :  { %11217 = sst [smem:[#allocation42_spill]] %s9800_s24 }
  0x20   :  { %s9820_s24 = sld [smem:[%s11196_s0 + %s9668_s7]]   ;;  %s9672_s7 = smov 26  }
  0x21   :  { %11218 = sst [smem:[#allocation43_spill]] %s9810_s21 }
  0x22   :  { %11219 = sst [smem:[#allocation44_spill]] %s9815_s13 }
  0x23   :  { %11220 = sst [smem:[#allocation45_spill]] %s9825_s29 }
  0x24   :  { %s9830_s21 = sld [smem:[%s11196_s0 + %s9670_s22]]   ;;  %s9674_s22 = smov 28  }
  0x25   :  { %s9835_s13 = sld [smem:[%s11196_s0 + %s9671_s28]]   ;;  %s9675_s28 = smov 29  }
  0x26   :  { %s9840_s9 = sld [smem:[%s11196_s0 + %s9672_s7]]   ;;  %s9676_s7 = smov 30  }
  0x27   :  { %s9845_s29 = sld [smem:[%s11196_s0 + %s9673_s15]]   ;;  %s9677_s15 = smov 31  }
  0x2a   :  { %11221 = sst [smem:[#allocation46_spill]] %s9830_s21 }
  0x2b   :  { %11222 = sst [smem:[#allocation47_spill]] %s9835_s13 }
  0x2c   :  { %11223 = sst [smem:[#allocation48_spill]] %s9840_s9 }
  0x2d   :  { %11224 = sst [smem:[#allocation49_spill]] %s9845_s29 }
  0x2e   :  { %s9850_s21 = sld [smem:[%s11196_s0 + %s9674_s22]]   ;;  %s9678_s22 = smov 32  }
  0x2f   :  { %s9855_s13 = sld [smem:[%s11196_s0 + %s9675_s28]]   ;;  %s9679_s28 = smov 33  }
  0x30   :  { %s9860_s9 = sld [smem:[%s11196_s0 + %s9676_s7]]  }
  0x31   :  { %s9865_s29 = sld [smem:[%s11196_s0 + %s9677_s15]]  }
  0x34   :  { %11225 = sst [smem:[#allocation50_spill]] %s9850_s21 }
  0x35   :  { %11226 = sst [smem:[#allocation51_spill]] %s9855_s13 }
  0x36   :  { %s9870_s21 = sld [smem:[%s11196_s0 + %s9678_s22]]  }
  0x37   :  { %s9875_s13 = sld [smem:[%s11196_s0 + %s9679_s28]]  }
  0x38   :  { %72 = vsyncpa [#allocation3], 0 }
  0x39   :  { %73 = vsyncpa [#allocation5], 0 }
  0x3a   :  { %74 = vsyncpa [#allocation8], 0 }
  0x3b   :  { %75 = vsyncpa [#allocation11], 0 }
  0x3c   :  { %76 = vsyncpa [#allocation14], 0 }
  0x3d   :  { %77 = vsyncpa [#allocation17], 0 }
  0x3e   :  { %78 = vsyncpa [#allocation20], 0 }
  0x3f   :  { %79 = vsyncpa [#allocation23], 0 }
  0x40   :  { %80 = vsyncpa [#allocation26], 0  ;;  %s9680_s7 = smov [#allocation4]   ;;  %s9277_s11 = scalar_lea.hbm %s9725_s17, 4096 }
  0x41   :  { %s100_s10 = sshll.u32 %s9680_s7, 4  ;;  %p9278_p0 = scmp.ne.s32.totalorder %s9725_s17, %s9277_s11  ;;  %s101_s10 = int_to_ptr.vmem [resolvable:$true] %s100_s10 }
  0x42   :  { %p9281_p1 = scmp.lt.u32.totalorder %s9277_s11, %s9725_s17 }
  0x44   :  { %p9283_p2 = pnand %p9281_p1, %p9278_p0 }
  0x46   :  { %9286 = shalt.err (!%p9283_p2)
}
  0x47   :  { %s9287_s0 = scalar_lea.vmem %s101_s10, 4096  ;;  %p9292_p4 = scmp.lt.s32.totalorder %s101_s10, %s101_s10 }
  0x48   :  { %p9288_p3 = scmp.ne.s32.totalorder %s101_s10, %s9287_s0  ;;  %p9293_p5 = scmp.lt.s32.totalorder %s9287_s0, %s9287_s0 }
  0x4a   :  { %p9294_p6 = por %p9293_p5, %p9292_p4 }
  0x4c   :  { %p9295_p7 = pnand %p9294_p6, %p9288_p3 }
  0x4e   :  { %9298 = shalt.err (!%p9295_p7)
}
  0x4f   :  { %s9681_s15 = smov 128   ;;  %s9682_s16 = smov 8  }
  0x50   :  { %106 = dma.hbm_to_vmem [thread:$0]  %s9725_s17, 4096, %s101_s10, [#allocation5], %s9681_s15, %s9681_s15, %s9682_s16  }
  0x51   :  { %s9683_s18 = smov [#allocation7]   ;;  %s9684_s23 = smov [#allocation10]  }
  0x52   :  { %s128_s22 = sshll.u32 %s9683_s18, 4  ;;  %s151_s26 = sshll.u32 %s9684_s23, 4  ;;  %s129_s22 = int_to_ptr.vmem [resolvable:$true] %s128_s22  ;;  %s152_s26 = int_to_ptr.vmem [resolvable:$true] %s151_s26 }
  0x53   :  { %s9299_s28 = scalar_lea.hbm %s9745_s3, 1024 }
  0x54   :  { %p9300_p8 = scmp.ne.s32.totalorder %s9745_s3, %s9299_s28  ;;  %p9303_p9 = scmp.lt.u32.totalorder %s9299_s28, %s9745_s3 }
  0x56   :  { %p9305_p10 = pnand %p9303_p9, %p9300_p8 }
  0x58   :  { %9308 = shalt.err (!%p9305_p10)
}
  0x59   :  { %s9309_s1 = scalar_lea.vmem %s129_s22, 1024  ;;  %p9314_p12 = scmp.lt.s32.totalorder %s129_s22, %s129_s22 }
  0x5a   :  { %p9310_p11 = scmp.ne.s32.totalorder %s129_s22, %s9309_s1  ;;  %p9315_p13 = scmp.lt.s32.totalorder %s9309_s1, %s9309_s1 }
  0x5c   :  { %p9316_p0 = por %p9315_p13, %p9314_p12 }
  0x5e   :  { %p9317_p1 = pnand %p9316_p0, %p9310_p11 }
  0x60   :  { %9320 = shalt.err (!%p9317_p1)
}
  0x61   :  { %134 = dma.hbm_to_vmem [thread:$0]  %s9745_s3, 1024, %s129_s22, [#allocation8], %s9681_s15, %s9681_s15, %s9682_s16  }
  0x62   :  { %s9321_s17 = scalar_lea.hbm %s9755_s14, 128 }
  0x63   :  { %p9322_p2 = scmp.ne.s32.totalorder %s9755_s14, %s9321_s17  ;;  %p9325_p3 = scmp.lt.u32.totalorder %s9321_s17, %s9755_s14 }
  0x65   :  { %p9327_p4 = pnand %p9325_p3, %p9322_p2 }
  0x67   :  { %9330 = shalt.err (!%p9327_p4)
}
  0x68   :  { %s9331_s2 = scalar_lea.vmem %s152_s26, 128  ;;  %p9336_p6 = scmp.lt.s32.totalorder %s152_s26, %s152_s26 }
  0x69   :  { %p9332_p5 = scmp.ne.s32.totalorder %s152_s26, %s9331_s2  ;;  %p9337_p7 = scmp.lt.s32.totalorder %s9331_s2, %s9331_s2 }
  0x6b   :  { %p9338_p8 = por %p9337_p7, %p9336_p6 }
  0x6d   :  { %p9339_p9 = pnand %p9338_p8, %p9332_p5 }
  0x6f   :  { %9342 = shalt.err (!%p9339_p9)
}
  0x70   :  { %154 = dma.hbm_to_vmem [thread:$0]  %s9755_s14, 128, %s152_s26, [#allocation11]  }
  0x71   :  { %s9685_s7 = smov [#allocation13]   ;;  %s9686_s10 = smov [#allocation16]  }
  0x72   :  { %s174_s3 = sshll.u32 %s9685_s7, 4  ;;  %s201_s11 = sshll.u32 %s9686_s10, 4  ;;  %s175_s3 = int_to_ptr.vmem [resolvable:$true] %s174_s3  ;;  %s202_s11 = int_to_ptr.vmem [resolvable:$true] %s201_s11 }
  0x73   :  { %s9343_s0 = scalar_lea.hbm %s9770_s30, 2048 }
  0x74   :  { %p9344_p10 = scmp.ne.s32.totalorder %s9770_s30, %s9343_s0  ;;  %p9347_p11 = scmp.lt.u32.totalorder %s9343_s0, %s9770_s30 }
  0x76   :  { %p9349_p12 = pnand %p9347_p11, %p9344_p10 }
  0x78   :  { %9352 = shalt.err (!%p9349_p12)
}
  0x79   :  { %s9353_s18 = scalar_lea.vmem %s175_s3, 2048  ;;  %p9358_p0 = scmp.lt.s32.totalorder %s175_s3, %s175_s3 }
  0x7a   :  { %p9354_p13 = scmp.ne.s32.totalorder %s175_s3, %s9353_s18  ;;  %p9359_p1 = scmp.lt.s32.totalorder %s9353_s18, %s9353_s18 }
  0x7c   :  { %p9360_p2 = por %p9359_p1, %p9358_p0 }
  0x7e   :  { %p9361_p3 = pnand %p9360_p2, %p9354_p13 }
  0x80   :  { %9364 = shalt.err (!%p9361_p3)
}
  0x81   :  { %180 = dma.hbm_to_vmem [thread:$0]  %s9770_s30, 2048, %s175_s3, [#allocation14], %s9681_s15, %s9681_s15, %s9682_s16  }
  0x82   :  { %s9365_s14 = scalar_lea.hbm %s9785_s20, 64 }
  0x83   :  { %p9366_p4 = scmp.ne.s32.totalorder %s9785_s20, %s9365_s14  ;;  %p9369_p5 = scmp.lt.u32.totalorder %s9365_s14, %s9785_s20 }
  0x85   :  { %p9371_p6 = pnand %p9369_p5, %p9366_p4 }
  0x87   :  { %9374 = shalt.err (!%p9371_p6)
}
  0x88   :  { %s9375_s22 = scalar_lea.vmem %s202_s11, 64  ;;  %p9380_p8 = scmp.lt.s32.totalorder %s202_s11, %s202_s11 }
  0x89   :  { %p9376_p7 = scmp.ne.s32.totalorder %s202_s11, %s9375_s22  ;;  %p9381_p9 = scmp.lt.s32.totalorder %s9375_s22, %s9375_s22 }
  0x8b   :  { %p9382_p10 = por %p9381_p9, %p9380_p8 }
  0x8d   :  { %p9383_p11 = pnand %p9382_p10, %p9376_p7 }
  0x8f   :  { %9386 = shalt.err (!%p9383_p11)
}
  0x90   :  { %204 = dma.hbm_to_vmem [thread:$0]  %s9785_s20, 64, %s202_s11, [#allocation17]  }
  0x91   :  { %s9687_s23 = smov [#allocation19]   ;;  %s9688_s26 = smov [#allocation22]  }
  0x92   :  { %s220_s30 = sshll.u32 %s9687_s23, 4  ;;  %s251_s28 = sshll.u32 %s9688_s26, 4  ;;  %s221_s30 = int_to_ptr.vmem [resolvable:$true] %s220_s30  ;;  %s252_s28 = int_to_ptr.vmem [resolvable:$true] %s251_s28 }
  0x93   :  { %s9387_s1 = scalar_lea.hbm %s9795_s4, 4096 }
  0x94   :  { %p9388_p12 = scmp.ne.s32.totalorder %s9795_s4, %s9387_s1  ;;  %p9391_p13 = scmp.lt.u32.totalorder %s9387_s1, %s9795_s4 }
  0x96   :  { %p9393_p0 = pnand %p9391_p13, %p9388_p12 }
  0x98   :  { %9396 = shalt.err (!%p9393_p0)
}
  0x99   :  { %s9397_s17 = scalar_lea.vmem %s221_s30, 4096  ;;  %p9402_p2 = scmp.lt.s32.totalorder %s221_s30, %s221_s30 }
  0x9a   :  { %p9398_p1 = scmp.ne.s32.totalorder %s221_s30, %s9397_s17  ;;  %p9403_p3 = scmp.lt.s32.totalorder %s9397_s17, %s9397_s17 }
  0x9c   :  { %p9404_p4 = por %p9403_p3, %p9402_p2 }
  0x9e   :  { %p9405_p5 = pnand %p9404_p4, %p9398_p1 }
  0xa0   :  { %9408 = shalt.err (!%p9405_p5)
}
  0xa1   :  { %226 = dma.hbm_to_vmem [thread:$0]  %s9795_s4, 4096, %s221_s30, [#allocation20], %s9681_s15, %s9681_s15, %s9682_s16  }
  0xa2   :  { %s9409_s20 = scalar_lea.hbm %s9820_s24, 64 }
  0xa3   :  { %p9410_p6 = scmp.ne.s32.totalorder %s9820_s24, %s9409_s20  ;;  %p9413_p7 = scmp.lt.u32.totalorder %s9409_s20, %s9820_s24 }
  0xa5   :  { %p9415_p8 = pnand %p9413_p7, %p9410_p6 }
  0xa7   :  { %9418 = shalt.err (!%p9415_p8)
}
  0xa8   :  { %s9419_s2 = scalar_lea.vmem %s252_s28, 64  ;;  %p9424_p10 = scmp.lt.s32.totalorder %s252_s28, %s252_s28 }
  0xa9   :  { %p9420_p9 = scmp.ne.s32.totalorder %s252_s28, %s9419_s2  ;;  %p9425_p11 = scmp.lt.s32.totalorder %s9419_s2, %s9419_s2 }
  0xab   :  { %p9426_p12 = por %p9425_p11, %p9424_p10 }
  0xad   :  { %p9427_p13 = pnand %p9426_p12, %p9420_p9 }
  0xaf   :  { %9430 = shalt.err (!%p9427_p13)
}
  0xb0   :  { %254 = dma.hbm_to_vmem [thread:$0]  %s9820_s24, 64, %s252_s28, [#allocation23]  }
  0xb1   :  { %s9689_s7 = smov [#allocation2]   ;;  %s9690_s3 = smov [#allocation6]  }
  0xb2   :  { %s87_s4 = sshll.u32 %s9689_s7, 4  ;;  %s114_s10 = sshll.u32 %s9690_s3, 4  ;;  %s88_s4 = int_to_ptr.vmem [resolvable:$true] %s87_s4  ;;  %s115_s10 = int_to_ptr.vmem [resolvable:$true] %s114_s10 }
  0xb3   :  { %s9431_s11 = scalar_lea.hbm %s9710_s5, 32 }
  0xb4   :  { %p9432_p0 = scmp.ne.s32.totalorder %s9710_s5, %s9431_s11  ;;  %p9435_p1 = scmp.lt.u32.totalorder %s9431_s11, %s9710_s5 }
  0xb6   :  { %p9437_p2 = pnand %p9435_p1, %p9432_p0 }
  0xb8   :  { %9440 = shalt.err (!%p9437_p2)
}
  0xb9   :  { %s9441_s0 = scalar_lea.vmem %s88_s4, 32  ;;  %p9446_p4 = scmp.lt.s32.totalorder %s88_s4, %s88_s4 }
  0xba   :  { %p9442_p3 = scmp.ne.s32.totalorder %s88_s4, %s9441_s0  ;;  %p9447_p5 = scmp.lt.s32.totalorder %s9441_s0, %s9441_s0 }
  0xbc   :  { %p9448_p6 = por %p9447_p5, %p9446_p4 }
  0xbe   :  { %p9449_p7 = pnand %p9448_p6, %p9442_p3 }
  0xc0   :  { %9452 = shalt.err (!%p9449_p7)
}
  0xc1   :  { %90 = dma.hbm_to_vmem [thread:$0]  %s9710_s5, 32, %s88_s4, [#allocation3]  }
  0xc2   :  { %s9453_s24 = scalar_lea.hbm %s9735_s25, 2048 }
  0xc3   :  { %p9454_p8 = scmp.ne.s32.totalorder %s9735_s25, %s9453_s24  ;;  %p9457_p9 = scmp.lt.u32.totalorder %s9453_s24, %s9735_s25 }
  0xc5   :  { %p9459_p10 = pnand %p9457_p9, %p9454_p8 }
  0xc7   :  { %9462 = shalt.err (!%p9459_p10)
}
  0xc8   :  { %s9463_s18 = scalar_lea.vmem %s115_s10, 2048  ;;  %p9468_p12 = scmp.lt.s32.totalorder %s115_s10, %s115_s10 }
  0xc9   :  { %p9464_p11 = scmp.ne.s32.totalorder %s115_s10, %s9463_s18  ;;  %p9469_p13 = scmp.lt.s32.totalorder %s9463_s18, %s9463_s18 }
  0xcb   :  { %p9470_p0 = por %p9469_p13, %p9468_p12 }
  0xcd   :  { %p9471_p1 = pnand %p9470_p0, %p9464_p11 }
  0xcf   :  { %9474 = shalt.err (!%p9471_p1)
}
  0xd0   :  { %120 = dma.hbm_to_vmem [thread:$0]  %s9735_s25, 2048, %s115_s10, [#allocation5], %s9681_s15, %s9681_s15, %s9682_s16  }
  0xd1   :  { %s9691_s5 = smov [#allocation9]   ;;  %s9692_s22 = smov [#allocation12]  }
  0xd2   :  { %s141_s14 = sshll.u32 %s9691_s5, 4  ;;  %s160_s23 = sshll.u32 %s9692_s22, 4  ;;  %s142_s14 = int_to_ptr.vmem [resolvable:$true] %s141_s14  ;;  %s161_s23 = int_to_ptr.vmem [resolvable:$true] %s160_s23 }
  0xd3   :  { %s9475_s30 = scalar_lea.hbm %s9750_s8, 64 }
  0xd4   :  { %p9476_p2 = scmp.ne.s32.totalorder %s9750_s8, %s9475_s30  ;;  %p9479_p3 = scmp.lt.u32.totalorder %s9475_s30, %s9750_s8 }
  0xd6   :  { %p9481_p4 = pnand %p9479_p3, %p9476_p2 }
  0xd8   :  { %9484 = shalt.err (!%p9481_p4)
}
  0xd9   :  { %s9485_s26 = scalar_lea.vmem %s142_s14, 64  ;;  %p9490_p6 = scmp.lt.s32.totalorder %s142_s14, %s142_s14 }
  0xda   :  { %p9486_p5 = scmp.ne.s32.totalorder %s142_s14, %s9485_s26  ;;  %p9491_p7 = scmp.lt.s32.totalorder %s9485_s26, %s9485_s26 }
  0xdc   :  { %p9492_p8 = por %p9491_p7, %p9490_p6 }
  0xde   :  { %p9493_p9 = pnand %p9492_p8, %p9486_p5 }
  0xe0   :  { %9496 = shalt.err (!%p9493_p9)
}
  0xe1   :  { %144 = dma.hbm_to_vmem [thread:$0]  %s9750_s8, 64, %s142_s14, [#allocation8]  }
  0xe2   :  { %s9497_s25 = scalar_lea.hbm %s9760_s19, 4096 }
  0xe3   :  { %p9498_p10 = scmp.ne.s32.totalorder %s9760_s19, %s9497_s25  ;;  %p9501_p11 = scmp.lt.u32.totalorder %s9497_s25, %s9760_s19 }
  0xe5   :  { %p9503_p12 = pnand %p9501_p11, %p9498_p10 }
  0xe7   :  { %9506 = shalt.err (!%p9503_p12)
}
  0xe8   :  { %s9507_s28 = scalar_lea.vmem %s161_s23, 4096  ;;  %p9512_p0 = scmp.lt.s32.totalorder %s161_s23, %s161_s23 }
  0xe9   :  { %p9508_p13 = scmp.ne.s32.totalorder %s161_s23, %s9507_s28  ;;  %p9513_p1 = scmp.lt.s32.totalorder %s9507_s28, %s9507_s28 }
  0xeb   :  { %p9514_p2 = por %p9513_p1, %p9512_p0 }
  0xed   :  { %p9515_p3 = pnand %p9514_p2, %p9508_p13 }
  0xef   :  { %9518 = shalt.err (!%p9515_p3)
}
  0xf0   :  { %166 = dma.hbm_to_vmem [thread:$0]  %s9760_s19, 4096, %s161_s23, [#allocation11], %s9681_s15, %s9681_s15, %s9682_s16  }
  0xf1   :  { %s9693_s8 = smov [#allocation15]   ;;  %s9694_s17 = smov [#allocation18]  }
  0xf2   :  { %s188_s1 = sshll.u32 %s9693_s8, 4  ;;  %s211_s20 = sshll.u32 %s9694_s17, 4  ;;  %s189_s1 = int_to_ptr.vmem [resolvable:$true] %s188_s1  ;;  %s212_s20 = int_to_ptr.vmem [resolvable:$true] %s211_s20 }
  0xf3   :  { %s9519_s2 = scalar_lea.hbm %s9780_s12, 512 }
  0xf4   :  { %p9520_p4 = scmp.ne.s32.totalorder %s9780_s12, %s9519_s2  ;;  %p9523_p5 = scmp.lt.u32.totalorder %s9519_s2, %s9780_s12 }
  0xf6   :  { %p9525_p6 = pnand %p9523_p5, %p9520_p4 }
  0xf8   :  { %9528 = shalt.err (!%p9525_p6)
}
  0xf9   :  { %s9529_s7 = scalar_lea.vmem %s189_s1, 512  ;;  %p9534_p8 = scmp.lt.s32.totalorder %s189_s1, %s189_s1 }
  0xfa   :  { %p9530_p7 = scmp.ne.s32.totalorder %s189_s1, %s9529_s7  ;;  %p9535_p9 = scmp.lt.s32.totalorder %s9529_s7, %s9529_s7 }
  0xfc   :  { %p9536_p10 = por %p9535_p9, %p9534_p8 }
  0xfe   :  { %p9537_p11 = pnand %p9536_p10, %p9530_p7 }
 0x100   :  { %9540 = shalt.err (!%p9537_p11)
}
 0x101   :  { %194 = dma.hbm_to_vmem [thread:$0]  %s9780_s12, 512, %s189_s1, [#allocation14], %s9681_s15, %s9681_s15, %s9682_s16  }
 0x102   :  { %s9541_s19 = scalar_lea.hbm %s9790_s27, 128 }
 0x103   :  { %p9542_p12 = scmp.ne.s32.totalorder %s9790_s27, %s9541_s19  ;;  %p9545_p13 = scmp.lt.u32.totalorder %s9541_s19, %s9790_s27 }
 0x105   :  { %p9547_p0 = pnand %p9545_p13, %p9542_p12 }
 0x107   :  { %9550 = shalt.err (!%p9547_p0)
}
 0x108   :  { %s9551_s4 = scalar_lea.vmem %s212_s20, 128  ;;  %p9556_p2 = scmp.lt.s32.totalorder %s212_s20, %s212_s20 }
 0x109   :  { %p9552_p1 = scmp.ne.s32.totalorder %s212_s20, %s9551_s4  ;;  %p9557_p3 = scmp.lt.s32.totalorder %s9551_s4, %s9551_s4 }
 0x10b   :  { %p9558_p4 = por %p9557_p3, %p9556_p2 }
 0x10d   :  { %p9559_p5 = pnand %p9558_p4, %p9552_p1 }
 0x10f   :  { %9562 = shalt.err (!%p9559_p5)
}
 0x110   :  { %214 = dma.hbm_to_vmem [thread:$0]  %s9790_s27, 128, %s212_s20, [#allocation17]  }
 0x111   :  { %s9695_s3 = smov [#allocation21]   ;;  %s9696_s10 = smov [#allocation24]  }
 0x112   :  { %s234_s12 = sshll.u32 %s9695_s3, 4  ;;  %s261_s11 = sshll.u32 %s9696_s10, 4  ;;  %s235_s12 = int_to_ptr.vmem [resolvable:$true] %s234_s12  ;;  %s262_s11 = int_to_ptr.vmem [resolvable:$true] %s261_s11 }
 0x113   :  { %s9563_s0 = scalar_lea.hbm %s9805_s6, 2048 }
 0x114   :  { %p9564_p6 = scmp.ne.s32.totalorder %s9805_s6, %s9563_s0  ;;  %p9567_p7 = scmp.lt.u32.totalorder %s9563_s0, %s9805_s6 }
 0x116   :  { %p9569_p8 = pnand %p9567_p7, %p9564_p6 }
 0x118   :  { %9572 = shalt.err (!%p9569_p8)
}
 0x119   :  { %s9573_s24 = scalar_lea.vmem %s235_s12, 2048  ;;  %p9578_p10 = scmp.lt.s32.totalorder %s235_s12, %s235_s12 }
 0x11a   :  { %p9574_p9 = scmp.ne.s32.totalorder %s235_s12, %s9573_s24  ;;  %p9579_p11 = scmp.lt.s32.totalorder %s9573_s24, %s9573_s24 }
 0x11c   :  { %p9580_p12 = por %p9579_p11, %p9578_p10 }
 0x11e   :  { %p9581_p13 = pnand %p9580_p12, %p9574_p9 }
 0x120   :  { %9584 = shalt.err (!%p9581_p13)
}
 0x121   :  { %s11227_s27 = sld [smem:[#allocation45_spill]] }
 0x122   :  { %240 = dma.hbm_to_vmem [thread:$0]  %s9805_s6, 2048, %s235_s12, [#allocation20], %s9681_s15, %s9681_s15, %s9682_s16  }
 0x127   :  { %s9585_s18 = scalar_lea.hbm %s11227_s27, 128 }
 0x128   :  { %p9586_p0 = scmp.ne.s32.totalorder %s11227_s27, %s9585_s18  ;;  %p9589_p1 = scmp.lt.u32.totalorder %s9585_s18, %s11227_s27 }
 0x12a   :  { %p9591_p2 = pnand %p9589_p1, %p9586_p0 }
 0x12c   :  { %9594 = shalt.err (!%p9591_p2)
}
 0x12d   :  { %s9595_s5 = scalar_lea.vmem %s262_s11, 128  ;;  %p9600_p4 = scmp.lt.s32.totalorder %s262_s11, %s262_s11 }
 0x12e   :  { %p9596_p3 = scmp.ne.s32.totalorder %s262_s11, %s9595_s5  ;;  %p9601_p5 = scmp.lt.s32.totalorder %s9595_s5, %s9595_s5 }
 0x130   :  { %p9602_p6 = por %p9601_p5, %p9600_p4 }
 0x132   :  { %p9603_p7 = pnand %p9602_p6, %p9596_p3 }
 0x134   :  { %9606 = shalt.err (!%p9603_p7)
}
 0x135   :  { %s11228_s14 = sld [smem:[#allocation50_spill]]  ;;  %s9697_s22 = smov [#allocation25]  }
 0x136   :  { %264 = dma.hbm_to_vmem [thread:$0]  %s11227_s27, 128, %s262_s11, [#allocation23]  }
 0x137   :  { %s279_s6 = sshll.u32 %s9697_s22, 4  ;;  %s280_s6 = int_to_ptr.vmem [resolvable:$true] %s279_s6 }
 0x13b   :  { %s9607_s15 = scalar_lea.hbm %s11228_s14, 64 }
 0x13c   :  { %p9608_p8 = scmp.ne.s32.totalorder %s11228_s14, %s9607_s15  ;;  %p9611_p9 = scmp.lt.u32.totalorder %s9607_s15, %s11228_s14 }
 0x13e   :  { %p9613_p10 = pnand %p9611_p9, %p9608_p8 }
 0x140   :  { %9616 = shalt.err (!%p9613_p10)
}
 0x141   :  { %s9617_s16 = scalar_lea.vmem %s280_s6, 64  ;;  %p9622_p12 = scmp.lt.s32.totalorder %s280_s6, %s280_s6 }
 0x142   :  { %p9618_p11 = scmp.ne.s32.totalorder %s280_s6, %s9617_s16  ;;  %p9623_p13 = scmp.lt.s32.totalorder %s9617_s16, %s9617_s16 }
 0x144   :  { %p9624_p0 = por %p9623_p13, %p9622_p12 }
 0x146   :  { %p9625_p1 = pnand %p9624_p0, %p9618_p11 }
 0x148   :  { %9628 = shalt.err (!%p9625_p1)
}
 0x149   :  { %282 = dma.hbm_to_vmem [thread:$0]  %s11228_s14, 64, %s280_s6, [#allocation26]  }
 0x14a   :  { %9629 = dma.done.wait [#allocation3], 32  }
 0x14b   :  { %9630 = vsyncadd [#allocation3], 4294967264 }
 0x14c   :  { %9631 = dma.done.wait [#allocation5], 6144  }
 0x14d   :  { %9632 = vsyncadd [#allocation5], 4294961152 }
 0x14e   :  { %9633 = dma.done.wait [#allocation8], 1088  }
 0x14f   :  { %9634 = vsyncadd [#allocation8], 4294966208 }
 0x150   :  { %9635 = dma.done.wait [#allocation11], 4224  }
 0x151   :  { %9636 = vsyncadd [#allocation11], 4294963072 }
 0x152   :  { %9637 = dma.done.wait [#allocation14], 2560  }
 0x153   :  { %9638 = vsyncadd [#allocation14], 4294964736 }
 0x154   :  { %9639 = dma.done.wait [#allocation17], 192  }
 0x155   :  { %9640 = vsyncadd [#allocation17], 4294967104 }
 0x156   :  { %9641 = dma.done.wait [#allocation20], 6144  }
 0x157   :  { %9642 = vsyncadd [#allocation20], 4294961152 }
 0x158   :  { %9643 = dma.done.wait [#allocation23], 192  }
 0x159   :  { %9644 = vsyncadd [#allocation23], 4294967104 }
 0x15a   :  { %9645 = dma.done.wait [#allocation26], 64  }
 0x15b   :  { %9646 = vsyncadd [#allocation26], 4294967232  ;;  %s11229_s23 = sld [smem:[#allocation36_spill]]  ;;  %v9698_v0 = vmov 0.0   ;;  %v339_v29 = vld [vmem:[#allocation2] sm:$0x3] }
 0x15c   :  { %482 = vmatprep.mubr.f32.mxu1 %v9698_v0  ;;  %624 = vmatprep.mubr.f32.mxu0 %v9698_v0  ;;  %vm414_vm0 = vcmask 261120   ;;  %v799_v50 = vld [vmem:[#allocation4 + $0x80] sm:$0xff]  ;;  %v800_v51 = vld [vmem:[#allocation4 + $0x88] sm:$0xff]  ;;  %v801_v56 = vld [vmem:[#allocation4 + $0x90] sm:$0xff]  ;;  %s11230_s30 = sld [smem:[#allocation39_spill]]  ;;  %s11231_s26 = sld [smem:[#allocation37_spill]] }
 0x15d   :  { %v8166_v52 = vpack.c.bf16 %v800_v51, %v799_v50  ;;  %v783_v53 = vld [vmem:[#allocation4] sm:$0xff]  ;;  %v784_v54 = vld [vmem:[#allocation4 + $0x8] sm:$0xff]  ;;  %v802_v57 = vld [vmem:[#allocation4 + $0x98] sm:$0xff]  ;;  %vm720_vm1 = vcmask 1041408   ;;  %vm722_vm2 = vcmask 1043456   ;;  %vm724_vm3 = vcmask 1045504  }
 0x15e   :  { %v8168_v55 = vpack.c.bf16 %v784_v54, %v783_v53  ;;  %v8170_v58 = vpack.c.bf16 %v802_v57, %v801_v56  ;;  %v785_v59 = vld [vmem:[#allocation4 + $0x10] sm:$0xff]  ;;  %v786_v60 = vld [vmem:[#allocation4 + $0x18] sm:$0xff]  ;;  %v803_v62 = vld [vmem:[#allocation4 + $0xa0] sm:$0xff]  ;;  %vm9700_vm6 = vmmov 0   ;;  %vm1008_vm7 = vcmask 1040384   ;;  %s11232_s25 = sld [smem:[#allocation38_spill]] }
 0x15f   :  { %v8172_v61 = vpack.c.bf16 %v786_v60, %v785_v59  ;;  %v804_v63 = vld [vmem:[#allocation4 + $0xa8] sm:$0xff]  ;;  %vm1098_vm8 = vcmask 523264   ;;  %vm10175_vm11 = vmneg %vm720_vm1  ;;  %s11235_s28 = sld [smem:[#allocation41_spill]]  ;;  %s11236_s8 = sld [smem:[#allocation40_spill]] }
 0x160   :  { %s11237_s1 = sld [smem:[#allocation43_spill]]  ;;  %s11238_s17 = sld [smem:[#allocation44_spill]] }
 0x161   :  { %v341_v1 = vld [vmem:[%s11229_s23 + $0x8] sm:$0xff]  ;;  %v340_v3 = vld [vmem:[%s11229_s23] sm:$0xff]  ;;  %v343_v12 = vld [vmem:[%s11229_s23 + $0x18] sm:$0xff]  ;;  %s11239_s20 = sld [smem:[#allocation42_spill]]  ;;  %s11240_s2 = sld [smem:[#allocation46_spill]] }
 0x162   :  { %v349_v2 = vld [vmem:[%s11229_s23 + $0x48] sm:$0xff]  ;;  %v348_v5 = vld [vmem:[%s11229_s23 + $0x40] sm:$0xff]  ;;  %v351_v13 = vld [vmem:[%s11229_s23 + $0x58] sm:$0xff]  ;;  %s11241_s7 = sld [smem:[#allocation49_spill]]  ;;  %s11242_s19 = sld [smem:[#allocation51_spill]] }
 0x163   :  { %v8134_v4 = vpack.c.bf16 %v349_v2, %v341_v1  ;;  %v357_v6 = vld [vmem:[%s11229_s23 + $0x88] sm:$0xff]  ;;  %v8136_v8 = vpack.c.bf16 %v348_v5, %v340_v3  ;;  %v356_v10 = vld [vmem:[%s11229_s23 + $0x80] sm:$0xff]  ;;  %v8142_v17 = vpack.c.bf16 %v351_v13, %v343_v12  ;;  %v342_v18 = vld [vmem:[%s11229_s23 + $0x10] sm:$0xff]  ;;  %v8174_v1 = vpack.c.bf16 %v804_v63, %v803_v62  ;;  %s11243_s4 = sld [smem:[#allocation47_spill]]  ;;  %s11244_s3 = sld [smem:[#allocation48_spill]] }
 0x164   :  { %v365_v7 = vld [vmem:[%s11229_s23 + $0xc8] sm:$0xff]  ;;  %v364_v11 = vld [vmem:[%s11229_s23 + $0xc0] sm:$0xff]  ;;  %v350_v19 = vld [vmem:[%s11229_s23 + $0x50] sm:$0xff] }
 0x165   :  { %v8138_v9 = vpack.c.bf16 %v365_v7, %v357_v6  ;;  %8135 = vmatprep.subr.bf16.mxu1 %v8134_v4  ;;  %v8140_v14 = vpack.c.bf16 %v364_v11, %v356_v10  ;;  %v345_v15 = vld [vmem:[%s11229_s23 + $0x28] sm:$0xff]  ;;  %v344_v21 = vld [vmem:[%s11229_s23 + $0x20] sm:$0xff]  ;;  %v359_v22 = vld [vmem:[%s11229_s23 + $0x98] sm:$0xff]  ;;  %v8144_v30 = vpack.c.bf16 %v350_v19, %v342_v18 }
 0x166   :  { %8137 = vmatpush1.bf16.msra.mxu1 %v8136_v8  ;;  %v353_v16 = vld [vmem:[%s11229_s23 + $0x68] sm:$0xff]  ;;  %v367_v23 = vld [vmem:[%s11229_s23 + $0xd8] sm:$0xff]  ;;  %v352_v24 = vld [vmem:[%s11229_s23 + $0x60] sm:$0xff] }
 0x167   :  { %8139 = vmatprep.subr.bf16.mxu1 %v8138_v9  ;;  %v8150_v20 = vpack.c.bf16 %v353_v16, %v345_v15  ;;  %v8152_v25 = vpack.c.bf16 %v352_v24, %v344_v21  ;;  %v361_v26 = vld [vmem:[%s11229_s23 + $0xa8] sm:$0xff]  ;;  %v360_v28 = vld [vmem:[%s11229_s23 + $0xa0] sm:$0xff]  ;;  %v8146_v33 = vpack.c.bf16 %v367_v23, %v359_v22  ;;  %v358_v34 = vld [vmem:[%s11229_s23 + $0x90] sm:$0xff] }
 0x168   :  { %v369_v27 = vld [vmem:[%s11229_s23 + $0xe8] sm:$0xff]  ;;  %v368_v32 = vld [vmem:[%s11229_s23 + $0xe0] sm:$0xff]  ;;  %v366_v35 = vld [vmem:[%s11229_s23 + $0xd0] sm:$0xff] }
 0x169   :  { %8151 = vmatprep.subr.bf16.mxu0 %v8150_v20  ;;  %v8154_v31 = vpack.c.bf16 %v369_v27, %v361_v26  ;;  %v8156_v36 = vpack.c.bf16 %v368_v32, %v360_v28  ;;  %v347_v37 = vld [vmem:[%s11229_s23 + $0x38] sm:$0xff]  ;;  %v8148_v39 = vpack.c.bf16 %v366_v35, %v358_v34  ;;  %v346_v41 = vld [vmem:[%s11229_s23 + $0x30] sm:$0xff]  ;;  %v787_v2 = vld [vmem:[#allocation4 + $0x20] sm:$0xff] }
 0x16a   :  { %8141 = vmatpush1.bf16.msra.mxu1 %v8140_v14  ;;  %8153 = vmatpush1.bf16.msra.mxu0 %v8152_v25  ;;  %v355_v38 = vld [vmem:[%s11229_s23 + $0x78] sm:$0xff]  ;;  %v354_v42 = vld [vmem:[%s11229_s23 + $0x70] sm:$0xff]  ;;  %v807_v11 = vld [vmem:[#allocation4 + $0xc0] sm:$0xff] }
 0x16b   :  { %8143 = vmatprep.subr.bf16.mxu1 %v8142_v17  ;;  %8155 = vmatprep.subr.bf16.mxu0 %v8154_v31  ;;  %v8158_v40 = vpack.c.bf16 %v355_v38, %v347_v37  ;;  %v363_v43 = vld [vmem:[%s11229_s23 + $0xb8] sm:$0xff]  ;;  %v8160_v45 = vpack.c.bf16 %v354_v42, %v346_v41  ;;  %v362_v47 = vld [vmem:[%s11229_s23 + $0xb0] sm:$0xff]  ;;  %v791_v14 = vld [vmem:[#allocation4 + $0x40] sm:$0xff]  ;;  %v9699_v37 = vmov 0.0|0.0  }
 0x16c   :  { %v371_v44 = vld [vmem:[%s11229_s23 + $0xf8] sm:$0xff]  ;;  %v370_v48 = vld [vmem:[%s11229_s23 + $0xf0] sm:$0xff]  ;;  %v811_v23 = vld [vmem:[#allocation4 + $0xe0] sm:$0xff] }
 0x16d   :  { %6442 = vmatmul.mubr.msk.f32.vlgmr.msra.gmra.mrb[0].mxu1 %vm414_vm0, %v339_v29  ;;  %v8162_v46 = vpack.c.bf16 %v371_v44, %v363_v43  ;;  %v8164_v49 = vpack.c.bf16 %v370_v48, %v362_v47  ;;  %v788_v3 = vld [vmem:[#allocation4 + $0x28] sm:$0xff]  ;;  %v805_v5 = vld [vmem:[#allocation4 + $0xb0] sm:$0xff]  ;;  %v806_v6 = vld [vmem:[#allocation4 + $0xb8] sm:$0xff] }
 0x16e   :  { %8145 = vmatpush1.bf16.msra.mxu1 %v8144_v30  ;;  %553 = vmatprep.mubr.f32.mxu1 %v9698_v0  ;;  %v8176_v4 = vpack.c.bf16 %v788_v3, %v787_v2  ;;  %v8178_v7 = vpack.c.bf16 %v806_v6, %v805_v5  ;;  %v789_v8 = vld [vmem:[#allocation4 + $0x30] sm:$0xff]  ;;  %v790_v9 = vld [vmem:[#allocation4 + $0x38] sm:$0xff]  ;;  %v808_v12 = vld [vmem:[#allocation4 + $0xc8] sm:$0xff] }
 0x16f   :  { %8147 = vmatprep.subr.bf16.mxu1 %v8146_v33  ;;  %8157 = vmatpush1.bf16.msra.mxu0 %v8156_v36  ;;  %v8180_v10 = vpack.c.bf16 %v790_v9, %v789_v8  ;;  %v8182_v13 = vpack.c.bf16 %v808_v12, %v807_v11  ;;  %v792_v15 = vld [vmem:[#allocation4 + $0x48] sm:$0xff]  ;;  %v809_v17 = vld [vmem:[#allocation4 + $0xd0] sm:$0xff]  ;;  %v810_v18 = vld [vmem:[#allocation4 + $0xd8] sm:$0xff] }
 0x170   :  { %8167 = vmatprep.subr.bf16.mxu0 %v8166_v52  ;;  %v8184_v16 = vpack.c.bf16 %v792_v15, %v791_v14  ;;  %v8186_v19 = vpack.c.bf16 %v810_v18, %v809_v17  ;;  %v793_v20 = vld [vmem:[#allocation4 + $0x50] sm:$0xff]  ;;  %v794_v21 = vld [vmem:[#allocation4 + $0x58] sm:$0xff]  ;;  %v812_v24 = vld [vmem:[#allocation4 + $0xe8] sm:$0xff] }
 0x171   :  { %v8188_v22 = vpack.c.bf16 %v794_v21, %v793_v20  ;;  %v8190_v25 = vpack.c.bf16 %v812_v24, %v811_v23  ;;  %v795_v26 = vld [vmem:[#allocation4 + $0x60] sm:$0xff]  ;;  %v796_v27 = vld [vmem:[#allocation4 + $0x68] sm:$0xff]  ;;  %v814_v30 = vld [vmem:[#allocation4 + $0xf8] sm:$0xff] }
 0x172   :  { %8149 = vmatpush1.bf16.msra.mxu1 %v8148_v39  ;;  %6444 = vmatmul.mubr.msk.f32.vlgmr.msra.gmra.mrb[0].mxu0 %vm414_vm0, %v339_v29  ;;  %v8192_v28 = vpack.c.bf16 %v796_v27, %v795_v26  ;;  %v797_v32 = vld [vmem:[#allocation4 + $0x70] sm:$0xff]  ;;  %v798_v33 = vld [vmem:[#allocation4 + $0x78] sm:$0xff]  ;;  %v880_v36 = vld [vmem:[%s11230_s30 + $0x8] sm:$0xff]  ;;  %v374_v39 = vlaneseq }
 0x173   :  { %8159 = vmatprep.subr.bf16.mxu1 %v8158_v40  ;;  %8169 = vmatpush3.bf16.msra.mxu0 %v8168_v55  ;;  %v8196_v34 = vpack.c.bf16 %v798_v33, %v797_v32  ;;  %v879_v35 = vld [vmem:[%s11230_s30] sm:$0xff] }
 0x174   :  { %8171 = vmatprep.subr.bf16.mxu0 %v8170_v58  ;;  %v10008_v38 = vpack.c.bf16 %v880_v36, %v879_v35  ;;  %v375_v40 = vshrl.u32 %v374_v39, 7  ;;  %v372_v42 = vld [vmem:[%s11231_s26] sm:$0xff] }
 0x175   :  { %6443 = vmatmul.mubr.msk.f32.vlgmr.msra.gmra.mrb[2].mxu1 %vm414_vm0, %v339_v29 }
 0x176   :  { %8161 = vmatpush1.bf16.msra.mxu1 %v8160_v45  ;;  %695 = vmatprep.mubr.f32.mxu1 %v9698_v0  ;;  %v10013_v41 = vsub.s32 1, %v375_v40  ;;  %v10016_v43 = vsub.s32 0, %v375_v40  ;;  %v392_v45 = vsub.s32 4, %v375_v40  ;;  %v10020_v50 = vsub.s32 2, %v375_v40 }
 0x177   :  { %8163 = vmatprep.subr.bf16.mxu1 %v8162_v46  ;;  %8173 = vmatpush3.bf16.msra.mxu0 %v8172_v61  ;;  %v396_v46 = vsub.s32 5, %v375_v40  ;;  %v388_v52 = vsub.s32 3, %v375_v40  ;;  %v400_v5 = vsub.s32 6, %v375_v40 }
 0x178   :  { %8175 = vmatprep.subr.bf16.mxu0 %v8174_v1  ;;  %v381_v44 = vrot.slane %v372_v42, %v10013_v41  ;;  %v377_v47 = vrot.slane %v372_v42, %v10016_v43  ;;  %v393_v53 = vrot.slane %v372_v42, %v392_v45  ;;  %v385_v57 = vrot.slane %v372_v42, %v10020_v50 }
 0x179   :  { %v397_v54 = vrot.slane %v372_v42, %v396_v46  ;;  %v389_v60 = vrot.slane %v372_v42, %v388_v52  ;;  %v401_v12 = vrot.slane %v372_v42, %v400_v5 }
 0x17a   :  { %8165 = vmatpush1.bf16.msra.mxu1 %v8164_v49 }
 0x17b   :  { %8177 = vmatpush3.bf16.msra.mxu0 %v8176_v4  ;;  %8198 = vmatprep.subr.bf16.mxu1 %v9699_v37 }
 0x17c   :  { %8179 = vmatprep.subr.bf16.mxu0 %v8178_v7  ;;  %v404_v7 = vsub.s32 7, %v375_v40 }
 0x17d   :  { %6445 = vmatmul.mubr.msk.f32.vlgmr.msra.gmra.mrb[4].mxu1 %vm414_vm0, %v339_v29  ;;  %v813_v29 = vld [vmem:[#allocation4 + $0xf0] sm:$0xff] }
 0x17e   :  { %v8194_v31 = vpack.c.bf16 %v814_v30, %v813_v29  ;;  %8200 = vmatpush3.bf16.msra.mxu1 %v10008_v38  ;;  %v405_v14 = vrot.slane %v372_v42, %v404_v7  ;;  %7238 = vmatprep.mubr.msk.f32.mxu1 %vm9700_vm6, %v9698_v0 }
 0x17f   :  { %8181 = vmatpush3.bf16.msra.mxu0 %v8180_v10  ;;  %8201 = vmatprep.subr.bf16.mxu1 %v9699_v37 }
 0x180   :  { %8183 = vmatprep.subr.bf16.mxu0 %v8182_v13 }
 0x183   :  { %8185 = vmatpush3.bf16.msra.mxu0 %v8184_v16 }
 0x184   :  { %8187 = vmatprep.subr.bf16.mxu0 %v8186_v19 }
 0x187   :  { %8189 = vmatpush3.bf16.msra.mxu0 %v8188_v22 }
 0x188   :  { %8191 = vmatprep.subr.bf16.mxu0 %v8190_v25 }
 0x18b   :  { %8193 = vmatpush3.bf16.msra.mxu0 %v8192_v28 }
 0x18c   :  { %8195 = vmatprep.subr.bf16.mxu0 %v8194_v31 }
 0x18f   :  { %8197 = vmatpush3.bf16.msra.mxu0 %v8196_v34 }
 0x190   :  { %8222 = vmatprep.subr.bf16.mxu0 %v9699_v37 }
 0x240   :  { %v484_v48 = vpop.f32.mrb[0].mxu1 }
 0x241   :  { %v486_v49 = vpop.f32.mrb[1].mxu1  ;;  %v485_v55 = vadd.f32 %v484_v48, %v377_v47 }
 0x242   :  { %v487_v51 = vadd.f32 %v486_v49, %v381_v44 }
 0x244   :  { %v703_v56 = vrot.slane %v487_v51, 6 }
 0x245   :  { %v626_v58 = vpop.f32.mrb[0].mxu0 }
 0x246   :  { %v721_v59 = vsel %vm720_vm1, %v485_v55, %v703_v56  ;;  %v628_v61 = vpop.f32.mrb[1].mxu0  ;;  %v627_v62 = vadd.f32 %v626_v58, %v393_v53 }
 0x247   :  { %v629_v63 = vadd.f32 %v628_v61, %v397_v54 }
 0x248   :  { %v555_v1 = vpop.f32.mrb[2].mxu1 }
 0x249   :  { %v556_v2 = vadd.f32 %v555_v1, %v385_v57  ;;  %v557_v3 = vpop.f32.mrb[3].mxu1  ;;  %v712_v4 = vrot.slane %v629_v63, 6 }
 0x24a   :  { %v558_v6 = vadd.f32 %v557_v3, %v389_v60 }
 0x24b   :  { %v706_v8 = vrot.slane %v556_v2, 4  ;;  %v726_v9 = vsel %vm720_vm1, %v627_v62, %v712_v4 }
 0x24c   :  { %v709_v10 = vrot.slane %v558_v6, 2 }
 0x24d   :  { %v723_v11 = vsel %vm722_vm2, %v721_v59, %v706_v8 }
 0x24e   :  { %v725_v13 = vsel %vm724_vm3, %v723_v11, %v709_v10 }
 0x24f   :  { %v729_v15 = vmul.f32 0.70710677, %v725_v13 }
 0x250   :  { %v697_v16 = vpop.f32.mrb[4].mxu1 }
 0x251   :  { %v731_v17 = vand.u32 2147483647, %v729_v15  ;;  %v698_v18 = vadd.f32 %v697_v16, %v401_v12  ;;  %v699_v19 = vpop.f32.mrb[5].mxu1  ;;  %vm771_vm4 = vcmp.ge.f32.partialorder %v729_v15, 0.0 }
 0x252   :  { %v700_v20 = vadd.f32 %v699_v19, %v405_v14  ;;  %v882_v19 = vld [vmem:[%s11230_s30 + $0x18] sm:$0xff] }
 0x253   :  { %v733_v21 = vmul.f32 0.3275911, %v731_v17  ;;  %v715_v22 = vrot.slane %v698_v18, 4  ;;  %v759_v30 = vsub.f32 0.0, %v731_v17 }
 0x254   :  { %v718_v23 = vrot.slane %v700_v20, 2 }
 0x255   :  { %v735_v24 = vadd.f32 1.0, %v733_v21  ;;  %v727_v25 = vsel %vm722_vm2, %v726_v9, %v715_v22  ;;  %v761_v33 = vmul.f32 %v759_v30, %v731_v17  ;;  %v777_v9 = vmul.f32 0.5, %v725_v13  ;;  %v881_v13 = vld [vmem:[%s11230_s30 + $0x10] sm:$0xff]  ;;  %v883_v21 = vld [vmem:[%s11230_s30 + $0x20] sm:$0xff]  ;;  %v884_v22 = vld [vmem:[%s11230_s30 + $0x28] sm:$0xff] }
 0x256   :  { %v728_v26 = vsel %vm724_vm3, %v727_v25, %v718_v23  ;;  %v10041_v20 = vpack.c.bf16 %v882_v19, %v881_v13  ;;  %v10047_v23 = vpack.c.bf16 %v884_v22, %v883_v21  ;;  %v886_v25 = vld [vmem:[%s11230_s30 + $0x38] sm:$0xff]  ;;  %v889_v30 = vld [vmem:[%s11230_s30 + $0x50] sm:$0xff] }
 0x257   :  { %9141 = vrcp.f32 %v735_v24  ;;  %v730_v27 = vmul.f32 0.70710677, %v728_v26  ;;  %v763_v36 = vmul.f32 1.442695, %v761_v33  ;;  %v778_v12 = vmul.f32 0.5, %v728_v26  ;;  %v885_v24 = vld [vmem:[%s11230_s30 + $0x30] sm:$0xff] }
 0x258   :  { %8203 = vmatpush3.bf16.msra.mxu1 %v10041_v20  ;;  %v10053_v26 = vpack.c.bf16 %v886_v25, %v885_v24  ;;  %v891_v33 = vld [vmem:[%s11230_s30 + $0x60] sm:$0xff]  ;;  %v901_v19 = vld [vmem:[#allocation7 + $0x30] sm:$0xff] }
 0x259   :  { %v732_v28 = vand.u32 2147483647, %v730_v27  ;;  %vm772_vm5 = vcmp.ge.f32.partialorder %v730_v27, 0.0  ;;  %8204 = vmatprep.subr.bf16.mxu1 %v9699_v37  ;;  %v887_v27 = vld [vmem:[%s11230_s30 + $0x40] sm:$0xff] }
 0x25a   :  { %v902_v21 = vld [vmem:[#allocation7 + $0x38] sm:$0xff] }
 0x25b   :  { %v734_v29 = vmul.f32 0.3275911, %v732_v28  ;;  %v760_v39 = vsub.f32 0.0, %v732_v28  ;;  %v10111_v22 = vpack.c.bf16 %v902_v21, %v901_v19  ;;  %v820_v19 = vld [vmem:[%s11232_s25 + $0x28] sm:$0xff] }
 0x25c   :  { %8206 = vmatpush3.bf16.msra.mxu1 %v10047_v23 }
 0x25d   :  { %v736_v31 = vadd.f32 1.0, %v734_v29  ;;  %v762_v45 = vmul.f32 %v760_v39, %v732_v28  ;;  %8207 = vmatprep.subr.bf16.mxu1 %v9699_v37  ;;  %v888_v28 = vld [vmem:[%s11230_s30 + $0x48] sm:$0xff]  ;;  %v894_v39 = vld [vmem:[%s11230_s30 + $0x78] sm:$0xff] }
 0x25e   :  { %v10059_v29 = vpack.c.bf16 %v888_v28, %v887_v27 }
 0x25f   :  { %9143 = vrcp.f32 %v736_v31  ;;  %v765_v51 = vmul.f32 1.442695, %v762_v45  ;;  %v890_v31 = vld [vmem:[%s11230_s30 + $0x58] sm:$0xff] }
 0x260   :  { %9145 = vpow2.f32 %v763_v36  ;;  %8209 = vmatpush3.bf16.msra.mxu1 %v10053_v26  ;;  %v893_v36 = vld [vmem:[%s11230_s30 + $0x70] sm:$0xff] }
 0x261   :  { %v9142_v32 = vpop.eup %9141  ;;  %9147 = vpow2.f32 %v765_v51  ;;  %8210 = vmatprep.subr.bf16.mxu1 %v9699_v37 }
 0x262   :  { %v741_v34 = vmul.f32 1.0614054, %v9142_v32 }
 0x264   :  { %v743_v35 = vadd.f32 -1.4531521, %v741_v34  ;;  %8212 = vmatpush3.bf16.msra.mxu1 %v10059_v29  ;;  %v892_v34 = vld [vmem:[%s11230_s30 + $0x68] sm:$0xff] }
 0x265   :  { %8213 = vmatprep.subr.bf16.mxu1 %v9699_v37 }
 0x266   :  { %v745_v40 = vmul.f32 %v9142_v32, %v743_v35  ;;  %v10071_v35 = vpack.c.bf16 %v892_v34, %v891_v33 }
 0x268   :  { %v747_v42 = vadd.f32 1.4214138, %v745_v40  ;;  %v10080_v40 = vpack.c.bf16 %v894_v39, %v893_v36  ;;  %v10114_v36 = vld [vmem:[#allocation10] sm:$0xff] }
 0x269   :  { %v9144_v44 = vpop.eup %9143 }
 0x26a   :  { %v749_v46 = vmul.f32 %v9142_v32, %v747_v42  ;;  %v742_v47 = vmul.f32 1.0614054, %v9144_v44  ;;  %v9146_v58 = vpop.eup %9145  ;;  %v10084_v42 = vld [vmem:[#allocation9] sm:$0x7] }
 0x26b   :  { %v9148_v3 = vpop.eup %9147 }
 0x26c   :  { %v751_v48 = vadd.f32 -0.28449672, %v749_v46  ;;  %v744_v49 = vadd.f32 -1.4531521, %v742_v47  ;;  %v916_v46 = vrot.slane %v10084_v42, %v10016_v43 }
 0x26e   :  { %v753_v52 = vmul.f32 %v9142_v32, %v751_v48  ;;  %v746_v53 = vmul.f32 %v9144_v44, %v744_v49 }
 0x270   :  { %v755_v54 = vadd.f32 0.2548296, %v753_v52  ;;  %v748_v55 = vadd.f32 1.4214138, %v746_v53 }
 0x272   :  { %v757_v56 = vmul.f32 %v9142_v32, %v755_v54  ;;  %v750_v57 = vmul.f32 %v9144_v44, %v748_v55  ;;  %v10065_v32 = vpack.c.bf16 %v890_v31, %v889_v30 }
 0x274   :  { %v767_v59 = vmul.f32 %v9146_v58, %v757_v56  ;;  %v752_v60 = vadd.f32 -0.28449672, %v750_v57  ;;  %8215 = vmatpush3.bf16.msra.mxu1 %v10065_v32 }
 0x275   :  { %8216 = vmatprep.subr.bf16.mxu1 %v9699_v37 }
 0x276   :  { %v769_v61 = vsub.f32 1.0, %v767_v59  ;;  %v754_v62 = vmul.f32 %v9144_v44, %v752_v60 }
 0x278   :  { %v773_v63 = vsub.f32 0.0, %v769_v61  ;;  %v756_v1 = vadd.f32 0.2548296, %v754_v62  ;;  %8218 = vmatpush3.bf16.msra.mxu1 %v10071_v35 }
 0x279   :  { %8219 = vmatprep.subr.bf16.mxu1 %v9699_v37 }
 0x27a   :  { %v758_v2 = vmul.f32 %v9144_v44, %v756_v1  ;;  %v775_v4 = vsel %vm771_vm4, %v769_v61, %v773_v63 }
 0x27b   :  { %v779_v7 = vadd.f32 1.0, %v775_v4 }
 0x27c   :  { %v768_v5 = vmul.f32 %v9148_v3, %v758_v2  ;;  %8221 = vmatpush3.bf16.msra.mxu1 %v10080_v40 }
 0x27d   :  { %v10029_v11 = vmul.f32 %v779_v7, %v777_v9  ;;  %v896_v9 = vld [vmem:[#allocation7 + $0x8] sm:$0xff] }
 0x27e   :  { %v770_v6 = vsub.f32 1.0, %v768_v5 }
 0x27f   :  { %v907_v15 = vrot.slane %v10029_v11, 2 }
 0x280   :  { %v774_v8 = vsub.f32 0.0, %v770_v6 }
 0x282   :  { %v776_v10 = vsel %vm772_vm5, %v770_v6, %v774_v8  ;;  %v895_v8 = vld [vmem:[#allocation7] sm:$0xff] }
 0x283   :  { %v780_v14 = vadd.f32 1.0, %v776_v10  ;;  %v10099_v10 = vpack.c.bf16 %v896_v9, %v895_v8  ;;  %v852_v8 = vld [vmem:[%s11232_s25 + $0x128] sm:$0xff] }
 0x285   :  { %v10031_v16 = vmul.f32 %v780_v14, %v778_v12  ;;  %v897_v12 = vld [vmem:[#allocation7 + $0x10] sm:$0xff]  ;;  %v898_v14 = vld [vmem:[#allocation7 + $0x18] sm:$0xff] }
 0x287   :  { %v908_v17 = vrot.slane %v10031_v16, 2 }
 0x289   :  { %v909_v18 = vsel %vm724_vm3, %v907_v15, %v908_v17  ;;  %v10103_v15 = vpack.c.bf16 %v898_v14, %v897_v12  ;;  %v835_v12 = vld [vmem:[%s11232_s25 + $0xa0] sm:$0xff]  ;;  %v836_v14 = vld [vmem:[%s11232_s25 + $0xa8] sm:$0xff] }
 0x28a   :  { %981 = vmatprep.mubr.f32.mxu0 %v909_v18  ;;  %v900_v18 = vld [vmem:[#allocation7 + $0x28] sm:$0xff] }
 0x28b   :  { %982 = vmatmul.mubr.f32.vlgmr.msra.gmra.mrb[2].mxu0 %v10029_v11 }
 0x28c   :  { %6446 = vmatprep.mubr.msk.f32.mxu0 %vm724_vm3, %v908_v17  ;;  %8224 = vmatpush3.bf16.msra.mxu0 %v10099_v10  ;;  %v899_v17 = vld [vmem:[#allocation7 + $0x20] sm:$0xff] }
 0x28d   :  { %8225 = vmatprep.subr.bf16.mxu0 %v9699_v37  ;;  %v10107_v13 = vpack.c.bf16 %v900_v18, %v899_v17  ;;  %v8242_v17 = vpack.c.bf16 %v836_v14, %v835_v12  ;;  %v819_v18 = vld [vmem:[%s11232_s25 + $0x20] sm:$0xff]  ;;  %v861_v14 = vld [vmem:[%s11232_s25 + $0x170] sm:$0xff] }
 0x28e   :  { %v8244_v21 = vpack.c.bf16 %v820_v19, %v819_v18  ;;  %v845_v19 = vld [vmem:[%s11232_s25 + $0xf0] sm:$0xff] }
 0x28f   :  { %987 = vmatmul.mubr.f32.gmra.mrb[4].mxu0 %v10031_v16 }
 0x290   :  { %7257 = vmatprep.mubr.msk.f32.mxu0 %vm9700_vm6, %v9698_v0  ;;  %8227 = vmatpush3.bf16.msra.mxu0 %v10103_v15 }
 0x291   :  { %8228 = vmatprep.subr.bf16.mxu0 %v9699_v37 }
 0x294   :  { %8230 = vmatpush3.bf16.msra.mxu0 %v10107_v13 }
 0x295   :  { %8231 = vmatprep.subr.bf16.mxu0 %v9699_v37 }
 0x298   :  { %8233 = vmatpush3.bf16.msra.mxu0 %v10111_v22 }
 0x35e   :  { %v6520_v44 = vpop.f32.mrb[2].mxu0 }
 0x35f   :  { %v6521_v45 = vpop.f32.mrb[3].mxu0 }
 0x360   :  { %v6522_v47 = vadd.f32 %v6521_v45, %v6520_v44 }
 0x362   :  { %v6523_v48 = vpop.f32.mrb[4].mxu0  ;;  %v10088_v51 = vadd.f32 %v6522_v47, %v916_v46 }
 0x363   :  { %v6524_v49 = vpop.f32.mrb[5].mxu0 }
 0x364   :  { %v6525_v52 = vadd.f32 %v6524_v49, %v6523_v48  ;;  %v999_v54 = vmul.f32 %v10088_v51, %v10088_v51  ;;  %v847_v49 = vld [vmem:[%s11232_s25 + $0x100] sm:$0xff] }
 0x366   :  { %v10090_v53 = vadd.f32 %v6525_v52, %v916_v46  ;;  %v848_v52 = vld [vmem:[%s11232_s25 + $0x108] sm:$0xff] }
 0x368   :  { %v992_v55 = vadd.f32 %v10090_v53, %v10088_v51  ;;  %v1000_v56 = vmul.f32 %v10090_v53, %v10090_v53 }
 0x36a   :  { %v993_v57 = vrot.slane %v992_v55, 4  ;;  %v1001_v58 = vadd.f32 %v1000_v56, %v999_v54  ;;  %v8266_v54 = vpack.c.bf16 %v848_v52, %v847_v49  ;;  %v832_v56 = vld [vmem:[%s11232_s25 + $0x88] sm:$0xff]  ;;  %v823_v52 = vld [vmem:[%s11232_s25 + $0x40] sm:$0xff] }
 0x36c   :  { %v994_v59 = vadd.f32 %v993_v57, %v992_v55  ;;  %v1002_v60 = vrot.slane %v1001_v58, 4  ;;  %v831_v55 = vld [vmem:[%s11232_s25 + $0x80] sm:$0xff]  ;;  %8267 = vmatprep.subr.bf16.mxu0 %v8266_v54 }
 0x36d   :  { %v8234_v57 = vpack.c.bf16 %v832_v56, %v831_v55  ;;  %v857_v56 = vld [vmem:[%s11232_s25 + $0x150] sm:$0xff] }
 0x36e   :  { %v995_v61 = vrot.slane %v994_v59, 2  ;;  %v1003_v62 = vadd.f32 %v1002_v60, %v1001_v58  ;;  %v815_v58 = vld [vmem:[%s11232_s25] sm:$0xff] }
 0x36f   :  { %8235 = vmatprep.subr.bf16.mxu1 %v8234_v57  ;;  %v858_v57 = vld [vmem:[%s11232_s25 + $0x158] sm:$0xff] }
 0x370   :  { %v996_v63 = vadd.f32 %v995_v61, %v994_v59  ;;  %v1004_v1 = vrot.slane %v1003_v62, 2  ;;  %v816_v59 = vld [vmem:[%s11232_s25 + $0x8] sm:$0xff]  ;;  %v849_v61 = vld [vmem:[%s11232_s25 + $0x110] sm:$0xff] }
 0x371   :  { %v8236_v60 = vpack.c.bf16 %v816_v59, %v815_v58  ;;  %v8286_v58 = vpack.c.bf16 %v858_v57, %v857_v56  ;;  %v841_v59 = vld [vmem:[%s11232_s25 + $0xd0] sm:$0xff] }
 0x372   :  { %v997_v2 = vrot.slane %v996_v63, 1  ;;  %v1005_v3 = vadd.f32 %v1004_v1, %v1003_v62  ;;  %v850_v62 = vld [vmem:[%s11232_s25 + $0x118] sm:$0xff]  ;;  %v833_v1 = vld [vmem:[%s11232_s25 + $0x90] sm:$0xff] }
 0x374   :  { %v1006_v4 = vrot.slane %v1005_v3, 1  ;;  %v998_v5 = vadd.f32 %v997_v2, %v996_v63  ;;  %v8270_v63 = vpack.c.bf16 %v850_v62, %v849_v61  ;;  %v834_v2 = vld [vmem:[%s11232_s25 + $0x98] sm:$0xff]  ;;  %v825_v62 = vld [vmem:[%s11232_s25 + $0x50] sm:$0xff] }
 0x376   :  { %v1007_v6 = vadd.f32 %v1006_v4, %v1005_v3  ;;  %v8238_v3 = vpack.c.bf16 %v834_v2, %v833_v1  ;;  %v817_v4 = vld [vmem:[%s11232_s25 + $0x10] sm:$0xff]  ;;  %v859_v2 = vld [vmem:[%s11232_s25 + $0x160] sm:$0xff] }
 0x378   :  { %v1009_v7 = vsel %vm1008_vm7, %v998_v5, %v1007_v6  ;;  %v818_v5 = vld [vmem:[%s11232_s25 + $0x18] sm:$0xff] }
 0x379   :  { %7239 = vmatmul.mubr.f32.vlgmr.msra.gmra.mrb[6].mxu1 %v1009_v7  ;;  %v8240_v6 = vpack.c.bf16 %v818_v5, %v817_v4  ;;  %v851_v7 = vld [vmem:[%s11232_s25 + $0x120] sm:$0xff] }
 0x37a   :  { %8237 = vmatpush3.bf16.msra.mxu1 %v8236_v60  ;;  %v8274_v9 = vpack.c.bf16 %v852_v8, %v851_v7  ;;  %v842_v60 = vld [vmem:[%s11232_s25 + $0xd8] sm:$0xff]  ;;  %v843_v5 = vld [vmem:[%s11232_s25 + $0xe0] sm:$0xff] }
 0x37b   :  { %8239 = vmatprep.subr.bf16.mxu1 %v8238_v3  ;;  %v8254_v61 = vpack.c.bf16 %v842_v60, %v841_v59  ;;  %v860_v3 = vld [vmem:[%s11232_s25 + $0x168] sm:$0xff]  ;;  %v827_v8 = vld [vmem:[%s11232_s25 + $0x60] sm:$0xff] }
 0x37c   :  { %v8290_v4 = vpack.c.bf16 %v860_v3, %v859_v2 }
 0x37e   :  { %8241 = vmatpush3.bf16.msra.mxu1 %v8240_v6  ;;  %v844_v6 = vld [vmem:[%s11232_s25 + $0xe8] sm:$0xff] }
 0x37f   :  { %8243 = vmatprep.subr.bf16.mxu1 %v8242_v17  ;;  %v8258_v7 = vpack.c.bf16 %v844_v6, %v843_v5  ;;  %v862_v17 = vld [vmem:[%s11232_s25 + $0x178] sm:$0xff] }
 0x380   :  { %v8294_v18 = vpack.c.bf16 %v862_v17, %v861_v14 }
 0x382   :  { %8245 = vmatpush3.bf16.msra.mxu1 %v8244_v21  ;;  %v846_v21 = vld [vmem:[%s11232_s25 + $0xf8] sm:$0xff] }
 0x44c   :  { %v1076_v24 = vpop.f32.mrb[6].mxu1 }
 0x44d   :  { %v1080_v25 = vmul.f32 0.03125, %v1076_v24  ;;  %v7240_v27 = vpop.f32.mrb[7].mxu1  ;;  %v853_v24 = vld [vmem:[%s11232_s25 + $0x130] sm:$0xff] }
 0x44f   :  { %v1081_v28 = vmul.f32 %v1080_v25, %v1080_v25 }
 0x451   :  { %v1083_v30 = vrot.slane %v1081_v28, 7  ;;  %v837_v28 = vld [vmem:[%s11232_s25 + $0xb0] sm:$0xff] }
 0x453   :  { %v1085_v31 = vsub.f32 %v1080_v25, %v1083_v30  ;;  %v838_v30 = vld [vmem:[%s11232_s25 + $0xb8] sm:$0xff] }
 0x455   :  { %v1086_v33 = vadd.f32 1e-05, %v1085_v31  ;;  %v8246_v31 = vpack.c.bf16 %v838_v30, %v837_v28 }
 0x457   :  { %9149 = vrsqrt.f32 %v1086_v33  ;;  %v821_v33 = vld [vmem:[%s11232_s25 + $0x30] sm:$0xff]  ;;  %8247 = vmatprep.subr.bf16.mxu1 %v8246_v31 }
 0x461   :  { %v9150_v34 = vpop.eup %9149 }
 0x462   :  { %v1089_v39 = vrot.slane %v9150_v34, 1  ;;  %v822_v34 = vld [vmem:[%s11232_s25 + $0x38] sm:$0xff] }
 0x464   :  { %v1091_v44 = vmul.f32 %v1089_v39, %v10114_v36  ;;  %v8248_v39 = vpack.c.bf16 %v822_v34, %v821_v33 }
 0x466   :  { %v1092_v45 = vmul.f32 %v1091_v44, %v1080_v25  ;;  %v854_v25 = vld [vmem:[%s11232_s25 + $0x138] sm:$0xff]  ;;  %8249 = vmatpush3.bf16.msra.mxu1 %v8248_v39 }
 0x467   :  { %v8278_v27 = vpack.c.bf16 %v854_v25, %v853_v24  ;;  %v8262_v24 = vpack.c.bf16 %v846_v21, %v845_v19  ;;  %v829_v25 = vld [vmem:[%s11232_s25 + $0x70] sm:$0xff] }
 0x468   :  { %v1094_v46 = vrot.slane %v1092_v45, 7  ;;  %v856_v45 = vld [vmem:[%s11232_s25 + $0x148] sm:$0xff] }
 0x46a   :  { %v1096_v47 = vsub.f32 %v10114_v36, %v1094_v46 }
 0x46c   :  { %v1097_v48 = vsel %vm1008_vm7, %v1091_v44, %v1096_v47  ;;  %v855_v44 = vld [vmem:[%s11232_s25 + $0x140] sm:$0xff] }
 0x46d   :  { %7258 = vmatmul.mubr.msk.f32.vlgmr.msra.gmra.mrb[6].mxu0 %vm1098_vm8, %v1097_v48  ;;  %v8282_v46 = vpack.c.bf16 %v856_v45, %v855_v44  ;;  %v839_v47 = vld [vmem:[%s11232_s25 + $0xc0] sm:$0xff]  ;;  %v840_v48 = vld [vmem:[%s11232_s25 + $0xc8] sm:$0xff] }
 0x46e   :  { %8269 = vmatpush3.bf16.msra.mxu0 %v8266_v54  ;;  %v8250_v49 = vpack.c.bf16 %v840_v48, %v839_v47  ;;  %v824_v54 = vld [vmem:[%s11232_s25 + $0x48] sm:$0xff] }
 0x46f   :  { %8271 = vmatprep.subr.bf16.mxu0 %v8270_v63  ;;  %v8252_v55 = vpack.c.bf16 %v824_v54, %v823_v52 }
 0x470   :  { %8251 = vmatprep.subr.bf16.mxu1 %v8250_v49 }
 0x471   :  { %8253 = vmatpush3.bf16.msra.mxu1 %v8252_v55 }
 0x472   :  { %8273 = vmatpush3.bf16.msra.mxu0 %v8270_v63  ;;  %v826_v63 = vld [vmem:[%s11232_s25 + $0x58] sm:$0xff]  ;;  %8255 = vmatprep.subr.bf16.mxu1 %v8254_v61 }
 0x473   :  { %8275 = vmatprep.subr.bf16.mxu0 %v8274_v9  ;;  %v8256_v1 = vpack.c.bf16 %v826_v63, %v825_v62 }
 0x475   :  { %8257 = vmatpush3.bf16.msra.mxu1 %v8256_v1 }
 0x476   :  { %8277 = vmatpush3.bf16.msra.mxu0 %v8274_v9  ;;  %v828_v9 = vld [vmem:[%s11232_s25 + $0x68] sm:$0xff]  ;;  %8259 = vmatprep.subr.bf16.mxu1 %v8258_v7 }
 0x477   :  { %8279 = vmatprep.subr.bf16.mxu0 %v8278_v27  ;;  %v8260_v12 = vpack.c.bf16 %v828_v9, %v827_v8 }
 0x479   :  { %8261 = vmatpush3.bf16.msra.mxu1 %v8260_v12 }
 0x47a   :  { %8281 = vmatpush3.bf16.msra.mxu0 %v8278_v27  ;;  %v830_v27 = vld [vmem:[%s11232_s25 + $0x78] sm:$0xff]  ;;  %8263 = vmatprep.subr.bf16.mxu1 %v8262_v24 }
 0x47b   :  { %8283 = vmatprep.subr.bf16.mxu0 %v8282_v46  ;;  %v8264_v28 = vpack.c.bf16 %v830_v27, %v829_v25 }
 0x47d   :  { %8265 = vmatpush3.bf16.msra.mxu1 %v8264_v28 }
 0x47e   :  { %8285 = vmatpush3.bf16.msra.mxu0 %v8282_v46  ;;  %8298 = vmatprep.subr.bf16.mxu1 %v9699_v37 }
 0x47f   :  { %8287 = vmatprep.subr.bf16.mxu0 %v8286_v58 }
 0x482   :  { %8289 = vmatpush3.bf16.msra.mxu0 %v8286_v58 }
 0x483   :  { %8291 = vmatprep.subr.bf16.mxu0 %v8290_v4 }
 0x486   :  { %8293 = vmatpush3.bf16.msra.mxu0 %v8290_v4 }
 0x487   :  { %8295 = vmatprep.subr.bf16.mxu0 %v8294_v18 }
 0x48a   :  { %8297 = vmatpush3.bf16.msra.mxu0 %v8294_v18 }
 0x48b   :  { %8322 = vmatprep.subr.bf16.mxu0 %v9699_v37 }
 0x540   :  { %v1168_v30 = vpop.f32.mrb[6].mxu0 }
 0x541   :  { %v1175_v31 = vrot.slane %v1168_v30, %v10016_v43  ;;  %v7259_v33 = vpop.f32.mrb[7].mxu0  ;;  %v1181_v44 = vrot.slane %v1168_v30, %v10013_v41 }
 0x543   :  { %v1176_v34 = vmul.f32 %v1175_v31, %v10088_v51  ;;  %v1177_v39 = vmul.f32 %v1175_v31, %v10090_v53 }
 0x545   :  { %v1182_v45 = vadd.f32 %v1181_v44, %v1176_v34  ;;  %v1183_v46 = vadd.f32 %v1181_v44, %v1177_v39 }
 0x547   :  { %v1184_v47 = vmul.f32 0.70710677, %v1182_v45  ;;  %v1185_v48 = vmul.f32 0.70710677, %v1183_v46 }
 0x549   :  { %v1186_v49 = vand.u32 2147483647, %v1184_v47  ;;  %v1187_v52 = vand.u32 2147483647, %v1185_v48  ;;  %vm1226_vm9 = vcmp.ge.f32.partialorder %v1184_v47, 0.0  ;;  %vm1227_vm10 = vcmp.ge.f32.partialorder %v1185_v48, 0.0 }
 0x54b   :  { %v1188_v54 = vmul.f32 0.3275911, %v1186_v49  ;;  %v1189_v55 = vmul.f32 0.3275911, %v1187_v52  ;;  %v1214_v58 = vsub.f32 0.0, %v1186_v49  ;;  %v1215_v59 = vsub.f32 0.0, %v1187_v52 }
 0x54d   :  { %v1190_v56 = vadd.f32 1.0, %v1188_v54  ;;  %v1191_v57 = vadd.f32 1.0, %v1189_v55  ;;  %v1216_v51 = vmul.f32 %v1214_v58, %v1186_v49  ;;  %v1217_v62 = vmul.f32 %v1215_v59, %v1187_v52 }
 0x54e   :  { %v1232_v55 = vmul.f32 0.5, %v1182_v45 }
 0x54f   :  { %9151 = vrcp.f32 %v1190_v56  ;;  %v1218_v3 = vmul.f32 1.442695, %v1216_v51  ;;  %v1220_v5 = vmul.f32 1.442695, %v1217_v62 }
 0x550   :  { %9153 = vrcp.f32 %v1191_v57  ;;  %v1233_v57 = vmul.f32 0.5, %v1183_v46 }
 0x551   :  { %9155 = vpow2.f32 %v1218_v3 }
 0x552   :  { %9157 = vpow2.f32 %v1220_v5 }
 0x559   :  { %v9152_v60 = vpop.eup %9151 }
 0x55a   :  { %v9154_v61 = vpop.eup %9153  ;;  %v1196_v53 = vmul.f32 1.0614054, %v9152_v60 }
 0x55b   :  { %v1197_v63 = vmul.f32 1.0614054, %v9154_v61  ;;  %v9156_v27 = vpop.eup %9155 }
 0x55c   :  { %v1198_v1 = vadd.f32 -1.4531521, %v1196_v53  ;;  %v9158_v30 = vpop.eup %9157 }
 0x55d   :  { %v1199_v2 = vadd.f32 -1.4531521, %v1197_v63 }
 0x55e   :  { %v1200_v4 = vmul.f32 %v9152_v60, %v1198_v1 }
 0x55f   :  { %v1201_v6 = vmul.f32 %v9154_v61, %v1199_v2  ;;  %v1255_v2 = vrot.slane %v10084_v42, %v10013_v41 }
 0x560   :  { %v1202_v7 = vadd.f32 1.4214138, %v1200_v4 }
 0x561   :  { %v1203_v8 = vadd.f32 1.4214138, %v1201_v6 }
 0x562   :  { %v1204_v9 = vmul.f32 %v9152_v60, %v1202_v7 }
 0x563   :  { %v1205_v12 = vmul.f32 %v9154_v61, %v1203_v8 }
 0x564   :  { %v1206_v14 = vadd.f32 -0.28449672, %v1204_v9 }
 0x565   :  { %v1207_v17 = vadd.f32 -0.28449672, %v1205_v12 }
 0x566   :  { %v1208_v18 = vmul.f32 %v9152_v60, %v1206_v14 }
 0x567   :  { %v1209_v19 = vmul.f32 %v9154_v61, %v1207_v17 }
 0x568   :  { %v1210_v21 = vadd.f32 0.2548296, %v1208_v18 }
 0x569   :  { %v1211_v24 = vadd.f32 0.2548296, %v1209_v19 }
 0x56a   :  { %v1212_v25 = vmul.f32 %v9152_v60, %v1210_v21 }
 0x56b   :  { %v1213_v28 = vmul.f32 %v9154_v61, %v1211_v24 }
 0x56c   :  { %v1222_v31 = vmul.f32 %v9156_v27, %v1212_v25 }
 0x56d   :  { %v1223_v33 = vmul.f32 %v9158_v30, %v1213_v28 }
 0x56e   :  { %v1224_v34 = vsub.f32 1.0, %v1222_v31 }
 0x56f   :  { %v1225_v39 = vsub.f32 1.0, %v1223_v33 }
 0x570   :  { %v1228_v44 = vsub.f32 0.0, %v1224_v34 }
 0x571   :  { %v1229_v49 = vsub.f32 0.0, %v1225_v39 }
 0x572   :  { %v1230_v52 = vsel %vm1226_vm9, %v1224_v34, %v1228_v44 }
 0x573   :  { %v1231_v54 = vsel %vm1227_vm10, %v1225_v39, %v1229_v49  ;;  %v1234_v56 = vadd.f32 1.0, %v1230_v52 }
 0x574   :  { %v1235_v58 = vadd.f32 1.0, %v1231_v54 }
 0x575   :  { %v1236_v59 = vmul.f32 %v1234_v56, %v1232_v55  ;;  %v863_v55 = vld [vmem:[#allocation6] sm:$0xff]  ;;  %v864_v56 = vld [vmem:[#allocation6 + $0x8] sm:$0xff] }
 0x576   :  { %v1237_v51 = vmul.f32 %v1235_v58, %v1233_v57  ;;  %v8334_v57 = vpack.c.bf16 %v864_v56, %v863_v55  ;;  %v1605_v55 = vrot.slane %v10084_v42, %v10020_v50 }
 0x577   :  { %v1246_v61 = vrot.slane %v1236_v59, 6  ;;  %v1240_v53 = vrot.slane %v1236_v59, 2 }
 0x578   :  { %v1241_v62 = vrot.slane %v1237_v51, 2  ;;  %v1247_v63 = vrot.slane %v1237_v51, 6 }
 0x579   :  { %7292 = vmatprep.mubr.msk.f32.mxu0 %vm10175_vm11, %v1246_v61 }
 0x57a   :  { %v1242_v47 = vsel %vm724_vm3, %v1240_v53, %v1241_v62  ;;  %v1248_v45 = vsel %vm720_vm1, %v1246_v61, %v1247_v63 }
 0x57b   :  { %1320 = vmatprep.mubr.f32.mxu1 %v1242_v47  ;;  %7293 = vmatmul.mubr.f32.vlgmr.msra.gmra.mrb[8].mxu0 %v1248_v45 }
 0x57c   :  { %1321 = vmatmul.mubr.f32.vlgmr.msra.gmra.mrb[8].mxu1 %v1236_v59  ;;  %8324 = vmatpush3.bf16.msra.mxu0 %v10099_v10 }
 0x57d   :  { %6448 = vmatprep.mubr.msk.f32.mxu1 %vm724_vm3, %v1241_v62  ;;  %8300 = vmatpush3.bf16.msra.mxu1 %v10008_v38 }
 0x57e   :  { %8301 = vmatprep.subr.bf16.mxu1 %v9699_v37  ;;  %8325 = vmatprep.subr.bf16.mxu0 %v9699_v37 }
 0x57f   :  { %7346 = vmatprep.mubr.msk.f32.mxu0 %vm9700_vm6, %v9698_v0 }
 0x580   :  { %1326 = vmatmul.mubr.f32.gmra.mrb[10].mxu1 %v1237_v51  ;;  %8327 = vmatpush3.bf16.msra.mxu0 %v10103_v15 }
 0x581   :  { %8303 = vmatpush3.bf16.msra.mxu1 %v10041_v20  ;;  %7327 = vmatprep.mubr.msk.f32.mxu1 %vm9700_vm6, %v9698_v0 }
 0x582   :  { %8304 = vmatprep.subr.bf16.mxu1 %v9699_v37  ;;  %8328 = vmatprep.subr.bf16.mxu0 %v9699_v37 }
 0x584   :  { %8330 = vmatpush3.bf16.msra.mxu0 %v10107_v13 }
 0x585   :  { %8306 = vmatpush3.bf16.msra.mxu1 %v10047_v23  ;;  %8331 = vmatprep.subr.bf16.mxu0 %v9699_v37 }
 0x586   :  { %8307 = vmatprep.subr.bf16.mxu1 %v9699_v37 }
 0x588   :  { %8333 = vmatpush3.bf16.msra.mxu0 %v10111_v22 }
 0x589   :  { %8309 = vmatpush3.bf16.msra.mxu1 %v10053_v26  ;;  %8335 = vmatprep.subr.bf16.mxu0 %v8334_v57 }
 0x58a   :  { %8310 = vmatprep.subr.bf16.mxu1 %v9699_v37 }
 0x58d   :  { %8312 = vmatpush3.bf16.msra.mxu1 %v10059_v29 }
 0x58e   :  { %8313 = vmatprep.subr.bf16.mxu1 %v9699_v37 }
 0x591   :  { %8315 = vmatpush3.bf16.msra.mxu1 %v10065_v32 }
 0x592   :  { %8316 = vmatprep.subr.bf16.mxu1 %v9699_v37 }
 0x595   :  { %8318 = vmatpush3.bf16.msra.mxu1 %v10071_v35 }
 0x596   :  { %8319 = vmatprep.subr.bf16.mxu1 %v9699_v37 }
 0x599   :  { %8321 = vmatpush3.bf16.msra.mxu1 %v10080_v40 }
 0x59a   :  { %8366 = vmatprep.subr.bf16.mxu1 %v9699_v37 }
 0x64e   :  { %v7294_v46 = vpop.f32.mrb[8].mxu0 }
 0x64f   :  { %v6584_v48 = vpop.f32.mrb[8].mxu1  ;;  %v1397_v1 = vpop.f32.mrb[9].mxu0 }
 0x650   :  { %v6585_v3 = vpop.f32.mrb[9].mxu1 }
 0x651   :  { %v6586_v4 = vadd.f32 %v6585_v3, %v6584_v48 }
 0x653   :  { %v1323_v5 = vadd.f32 %v6586_v4, %v1255_v2  ;;  %v6587_v6 = vpop.f32.mrb[10].mxu1  ;;  %v865_v4 = vld [vmem:[#allocation6 + $0x10] sm:$0xff] }
 0x654   :  { %v6588_v7 = vpop.f32.mrb[11].mxu1 }
 0x655   :  { %v10213_v8 = vadd.f32 %v1397_v1, %v1323_v5  ;;  %v6589_v9 = vadd.f32 %v6588_v7, %v6587_v6  ;;  %v866_v5 = vld [vmem:[#allocation6 + $0x18] sm:$0xff] }
 0x656   :  { %v8338_v7 = vpack.c.bf16 %v866_v5, %v865_v4 }
 0x657   :  { %v1328_v12 = vadd.f32 %v6589_v9, %v1255_v2  ;;  %v1413_v17 = vmul.f32 %v10213_v8, %v10213_v8 }
 0x659   :  { %v10215_v14 = vadd.f32 %v7294_v46, %v1328_v12  ;;  %v867_v12 = vld [vmem:[#allocation6 + $0x20] sm:$0xff] }
 0x65b   :  { %v1406_v18 = vadd.f32 %v10215_v14, %v10213_v8  ;;  %v1414_v19 = vmul.f32 %v10215_v14, %v10215_v14 }
 0x65d   :  { %v1407_v21 = vrot.slane %v1406_v18, 4  ;;  %v1415_v24 = vadd.f32 %v1414_v19, %v1413_v17  ;;  %v868_v17 = vld [vmem:[#allocation6 + $0x28] sm:$0xff]  ;;  %v869_v19 = vld [vmem:[#allocation6 + $0x30] sm:$0xff] }
 0x65f   :  { %v1408_v25 = vadd.f32 %v1407_v21, %v1406_v18  ;;  %v1416_v27 = vrot.slane %v1415_v24, 4  ;;  %v8342_v18 = vpack.c.bf16 %v868_v17, %v867_v12  ;;  %v870_v21 = vld [vmem:[#allocation6 + $0x38] sm:$0xff] }
 0x661   :  { %v1409_v28 = vrot.slane %v1408_v25, 2  ;;  %v1417_v30 = vadd.f32 %v1416_v27, %v1415_v24  ;;  %v8346_v24 = vpack.c.bf16 %v870_v21, %v869_v19  ;;  %v872_v27 = vld [vmem:[#allocation6 + $0x48] sm:$0xff] }
 0x663   :  { %v1410_v31 = vadd.f32 %v1409_v28, %v1408_v25  ;;  %v1418_v33 = vrot.slane %v1417_v30, 2  ;;  %v871_v25 = vld [vmem:[#allocation6 + $0x40] sm:$0xff] }
 0x664   :  { %v8350_v28 = vpack.c.bf16 %v872_v27, %v871_v25 }
 0x665   :  { %v1411_v34 = vrot.slane %v1410_v31, 1  ;;  %v1419_v39 = vadd.f32 %v1418_v33, %v1417_v30  ;;  %v873_v30 = vld [vmem:[#allocation6 + $0x50] sm:$0xff] }
 0x667   :  { %v1420_v44 = vrot.slane %v1419_v39, 1  ;;  %v1412_v49 = vadd.f32 %v1411_v34, %v1410_v31  ;;  %v874_v31 = vld [vmem:[#allocation6 + $0x58] sm:$0xff]  ;;  %v875_v34 = vld [vmem:[#allocation6 + $0x60] sm:$0xff] }
 0x668   :  { %v8354_v33 = vpack.c.bf16 %v874_v31, %v873_v30 }
 0x669   :  { %v1421_v52 = vadd.f32 %v1420_v44, %v1419_v39  ;;  %v876_v39 = vld [vmem:[#allocation6 + $0x68] sm:$0xff]  ;;  %v877_v44 = vld [vmem:[#allocation6 + $0x70] sm:$0xff] }
 0x66b   :  { %v1422_v54 = vsel %vm1008_vm7, %v1412_v49, %v1421_v52  ;;  %v878_v49 = vld [vmem:[#allocation6 + $0x78] sm:$0xff] }
 0x66c   :  { %7328 = vmatmul.mubr.f32.vlgmr.msra.gmra.mrb[12].mxu1 %v1422_v54  ;;  %v8362_v52 = vpack.c.bf16 %v878_v49, %v877_v44 }
 0x66d   :  { %8368 = vmatpush3.bf16.msra.mxu1 %v10008_v38  ;;  %7416 = vmatprep.mubr.msk.f32.mxu1 %vm9700_vm6, %v9698_v0 }
 0x66e   :  { %8369 = vmatprep.subr.bf16.mxu1 %v9699_v37 }
 0x671   :  { %8371 = vmatpush3.bf16.msra.mxu1 %v10041_v20 }
 0x672   :  { %8372 = vmatprep.subr.bf16.mxu1 %v9699_v37 }
 0x675   :  { %8374 = vmatpush3.bf16.msra.mxu1 %v10047_v23 }
 0x676   :  { %8375 = vmatprep.subr.bf16.mxu1 %v9699_v37 }
 0x679   :  { %8377 = vmatpush3.bf16.msra.mxu1 %v10053_v26 }
 0x67a   :  { %8378 = vmatprep.subr.bf16.mxu1 %v9699_v37 }
 0x67d   :  { %8380 = vmatpush3.bf16.msra.mxu1 %v10059_v29 }
 0x67e   :  { %8381 = vmatprep.subr.bf16.mxu1 %v9699_v37 }
 0x681   :  { %8383 = vmatpush3.bf16.msra.mxu1 %v10065_v32 }
 0x682   :  { %8384 = vmatprep.subr.bf16.mxu1 %v9699_v37 }
 0x685   :  { %8386 = vmatpush3.bf16.msra.mxu1 %v10071_v35 }
 0x686   :  { %8387 = vmatprep.subr.bf16.mxu1 %v9699_v37 }
 0x689   :  { %8389 = vmatpush3.bf16.msra.mxu1 %v10080_v40 }
 0x68a   :  { %8402 = vmatprep.subr.bf16.mxu1 %v9699_v37 }
 0x73f   :  { %v1489_v58 = vpop.f32.mrb[12].mxu1 }
 0x740   :  { %v1493_v59 = vmul.f32 0.03125, %v1489_v58  ;;  %v7329_v51 = vpop.f32.mrb[13].mxu1 }
 0x742   :  { %v1494_v61 = vmul.f32 %v1493_v59, %v1493_v59 }
 0x744   :  { %v1496_v53 = vrot.slane %v1494_v61, 7 }
 0x746   :  { %v1498_v62 = vsub.f32 %v1493_v59, %v1496_v53 }
 0x748   :  { %v1499_v63 = vadd.f32 1e-05, %v1498_v62 }
 0x74a   :  { %9159 = vrsqrt.f32 %v1499_v63 }
 0x754   :  { %v9160_v47 = vpop.eup %9159 }
 0x755   :  { %v1502_v45 = vrot.slane %v9160_v47, 7 }
 0x757   :  { %v1504_v46 = vmul.f32 %v1502_v45, %v10114_v36 }
 0x759   :  { %v1506_v48 = vrot.slane %v1504_v46, 2 }
 0x75b   :  { %v1508_v1 = vmul.f32 %v1506_v48, %v1493_v59 }
 0x75d   :  { %v1510_v2 = vrot.slane %v1508_v1, 5 }
 0x75f   :  { %v1512_v3 = vsub.f32 %v10114_v36, %v1510_v2 }
 0x761   :  { %v1514_v6 = vrot.slane %v1512_v3, 2 }
 0x763   :  { %v1516_v9 = vsel %vm1008_vm7, %v1506_v48, %v1514_v6 }
 0x764   :  { %7347 = vmatmul.mubr.msk.f32.vlgmr.msra.gmra.mrb[10].mxu0 %vm1098_vm8, %v1516_v9 }
 0x765   :  { %8337 = vmatpush3.bf16.msra.mxu0 %v8334_v57  ;;  %7381 = vmatprep.mubr.f32.mxu0 %v10029_v11  ;;  %v8358_v11 = vpack.c.bf16 %v876_v39, %v875_v34 }
 0x766   :  { %8339 = vmatprep.subr.bf16.mxu0 %v8338_v7 }
 0x769   :  { %8341 = vmatpush3.bf16.msra.mxu0 %v8338_v7 }
 0x76a   :  { %8343 = vmatprep.subr.bf16.mxu0 %v8342_v18 }
 0x76d   :  { %8345 = vmatpush3.bf16.msra.mxu0 %v8342_v18 }
 0x76e   :  { %8347 = vmatprep.subr.bf16.mxu0 %v8346_v24 }
 0x771   :  { %8349 = vmatpush3.bf16.msra.mxu0 %v8346_v24 }
 0x772   :  { %8351 = vmatprep.subr.bf16.mxu0 %v8350_v28 }
 0x775   :  { %8353 = vmatpush3.bf16.msra.mxu0 %v8350_v28 }
 0x776   :  { %8355 = vmatprep.subr.bf16.mxu0 %v8354_v33 }
 0x779   :  { %8357 = vmatpush3.bf16.msra.mxu0 %v8354_v33 }
 0x77a   :  { %8359 = vmatprep.subr.bf16.mxu0 %v8358_v11 }
 0x77d   :  { %8361 = vmatpush3.bf16.msra.mxu0 %v8358_v11 }
 0x77e   :  { %8363 = vmatprep.subr.bf16.mxu0 %v8362_v52 }
 0x781   :  { %8365 = vmatpush3.bf16.msra.mxu0 %v8362_v52 }
 0x782   :  { %8390 = vmatprep.subr.bf16.mxu0 %v9699_v37 }
 0x784   :  { %7382 = vmatmul.mubr.f32.vlgmr.msra.gmra.mrb[12].mxu0 %v10031_v16 }
 0x785   :  { %8392 = vmatpush3.bf16.msra.mxu0 %v10099_v10  ;;  %7435 = vmatprep.mubr.msk.f32.mxu0 %vm9700_vm6, %v9698_v0 }
 0x786   :  { %8393 = vmatprep.subr.bf16.mxu0 %v9699_v37 }
 0x789   :  { %8395 = vmatpush3.bf16.msra.mxu0 %v10103_v15 }
 0x78a   :  { %8396 = vmatprep.subr.bf16.mxu0 %v9699_v37 }
 0x78d   :  { %8398 = vmatpush3.bf16.msra.mxu0 %v10107_v13 }
 0x78e   :  { %8399 = vmatprep.subr.bf16.mxu0 %v9699_v37 }
 0x791   :  { %8401 = vmatpush3.bf16.msra.mxu0 %v10111_v22 }
 0x792   :  { %8426 = vmatprep.subr.bf16.mxu0 %v9699_v37 }
 0x837   :  { %v10259_v16 = vpop.f32.mrb[10].mxu0 }
 0x838   :  { %v7348_v54 = vpop.f32.mrb[11].mxu0  ;;  %v1593_v27 = vrot.slane %v10259_v16, %v10016_v43 }
 0x83a   :  { %v1595_v30 = vmul.f32 %v1593_v27, %v10215_v14 }
 0x857   :  { %v7383_v56 = vpop.f32.mrb[12].mxu0 }
 0x858   :  { %v10263_v57 = vadd.f32 %v7383_v56, %v1605_v55  ;;  %v1672_v58 = vpop.f32.mrb[13].mxu0 }
 0x859   :  { %v10265_v59 = vadd.f32 %v1672_v58, %v1605_v55 }
 0x85a   :  { %v1689_v51 = vmul.f32 %v10263_v57, %v10263_v57 }
 0x85b   :  { %v1681_v61 = vadd.f32 %v10263_v57, %v10265_v59  ;;  %v1688_v53 = vmul.f32 %v10265_v59, %v10265_v59 }
 0x85d   :  { %v1682_v62 = vrot.slane %v1681_v61, 4  ;;  %v1690_v63 = vadd.f32 %v1689_v51, %v1688_v53 }
 0x85f   :  { %v1683_v47 = vadd.f32 %v1682_v62, %v1681_v61  ;;  %v1691_v45 = vrot.slane %v1690_v63, 4 }
 0x861   :  { %v1684_v42 = vrot.slane %v1683_v47, 2  ;;  %v1692_v46 = vadd.f32 %v1691_v45, %v1690_v63 }
 0x863   :  { %v1685_v48 = vadd.f32 %v1684_v42, %v1683_v47  ;;  %v1693_v1 = vrot.slane %v1692_v46, 2 }
 0x865   :  { %v1686_v2 = vrot.slane %v1685_v48, 1  ;;  %v1694_v3 = vadd.f32 %v1693_v1, %v1692_v46 }
 0x867   :  { %v1695_v4 = vrot.slane %v1694_v3, 1  ;;  %v1687_v5 = vadd.f32 %v1686_v2, %v1685_v48 }
 0x869   :  { %v1696_v6 = vadd.f32 %v1695_v4, %v1694_v3 }
 0x86b   :  { %v1697_v7 = vsel %vm1008_vm7, %v1687_v5, %v1696_v6 }
 0x86c   :  { %7417 = vmatmul.mubr.f32.vlgmr.msra.gmra.mrb[14].mxu1 %v1697_v7 }
 0x86d   :  { %8404 = vmatpush3.bf16.msra.mxu1 %v10008_v38  ;;  %7470 = vmatprep.mubr.msk.f32.mxu1 %vm9700_vm6, %v9698_v0 }
 0x86e   :  { %8405 = vmatprep.subr.bf16.mxu1 %v9699_v37 }
 0x871   :  { %8407 = vmatpush3.bf16.msra.mxu1 %v10041_v20 }
 0x872   :  { %8408 = vmatprep.subr.bf16.mxu1 %v9699_v37 }
 0x875   :  { %8410 = vmatpush3.bf16.msra.mxu1 %v10047_v23 }
 0x876   :  { %8411 = vmatprep.subr.bf16.mxu1 %v9699_v37 }
 0x879   :  { %8413 = vmatpush3.bf16.msra.mxu1 %v10053_v26 }
 0x87a   :  { %8414 = vmatprep.subr.bf16.mxu1 %v9699_v37 }
 0x87d   :  { %8416 = vmatpush3.bf16.msra.mxu1 %v10059_v29 }
 0x87e   :  { %8417 = vmatprep.subr.bf16.mxu1 %v9699_v37 }
 0x881   :  { %8419 = vmatpush3.bf16.msra.mxu1 %v10065_v32 }
 0x882   :  { %8420 = vmatprep.subr.bf16.mxu1 %v9699_v37 }
 0x885   :  { %8422 = vmatpush3.bf16.msra.mxu1 %v10071_v35 }
 0x886   :  { %8423 = vmatprep.subr.bf16.mxu1 %v9699_v37 }
 0x889   :  { %8425 = vmatpush3.bf16.msra.mxu1 %v10080_v40 }
 0x88a   :  { %8470 = vmatprep.subr.bf16.mxu1 %v9699_v37 }
 0x93f   :  { %v1764_v38 = vpop.f32.mrb[14].mxu1 }
 0x940   :  { %v1768_v20 = vmul.f32 0.03125, %v1764_v38  ;;  %v7418_v23 = vpop.f32.mrb[15].mxu1 }
 0x942   :  { %v1769_v26 = vmul.f32 %v1768_v20, %v1768_v20 }
 0x944   :  { %v1771_v9 = vrot.slane %v1769_v26, 7 }
 0x946   :  { %v1773_v29 = vsub.f32 %v1768_v20, %v1771_v9 }
 0x948   :  { %v1774_v12 = vadd.f32 1e-05, %v1773_v29 }
 0x94a   :  { %9161 = vrsqrt.f32 %v1774_v12 }
 0x954   :  { %v9162_v17 = vpop.eup %9161 }
 0x955   :  { %v1777_v32 = vrot.slane %v9162_v17, 5 }
 0x957   :  { %v1779_v18 = vmul.f32 %v1777_v32, %v10114_v36 }
 0x959   :  { %v1781_v19 = vrot.slane %v1779_v18, 4 }
 0x95b   :  { %v1783_v35 = vmul.f32 %v1781_v19, %v1768_v20 }
 0x95d   :  { %v1785_v21 = vrot.slane %v1783_v35, 3 }
 0x95f   :  { %v1787_v24 = vsub.f32 %v10114_v36, %v1785_v21 }
 0x961   :  { %v1789_v40 = vrot.slane %v1787_v24, 4 }
 0x963   :  { %v1791_v25 = vsel %vm1008_vm7, %v1781_v19, %v1789_v40 }
 0x964   :  { %7436 = vmatmul.mubr.msk.f32.vlgmr.msra.gmra.mrb[14].mxu0 %vm1098_vm8, %v1791_v25 }
 0x965   :  { %8428 = vmatpush3.bf16.msra.mxu0 %v10099_v10  ;;  %7489 = vmatprep.mubr.msk.f32.mxu0 %vm9700_vm6, %v9698_v0  ;;  %v1594_v10 = vmul.f32 %v1593_v27, %v10213_v8 }
 0x966   :  { %8429 = vmatprep.subr.bf16.mxu0 %v9699_v37 }
 0x969   :  { %8431 = vmatpush3.bf16.msra.mxu0 %v10103_v15  ;;  %v1599_v15 = vrot.slane %v10259_v16, %v10013_v41 }
 0x96a   :  { %8432 = vmatprep.subr.bf16.mxu0 %v9699_v37 }
 0x96b   :  { %v1600_v39 = vadd.f32 %v1599_v15, %v1594_v10  ;;  %v1601_v11 = vadd.f32 %v1599_v15, %v1595_v30 }
 0x96d   :  { %8434 = vmatpush3.bf16.msra.mxu0 %v10107_v13 }
 0x96e   :  { %8435 = vmatprep.subr.bf16.mxu0 %v9699_v37 }
 0x971   :  { %8437 = vmatpush3.bf16.msra.mxu0 %v10111_v22 }
 0xa37   :  { %v1861_v28 = vpop.f32.mrb[14].mxu0 }
 0xa38   :  { %v1868_v31 = vrot.slane %v1861_v28, %v10016_v43  ;;  %v7437_v33 = vpop.f32.mrb[15].mxu0  ;;  %v1874_v22 = vrot.slane %v1861_v28, %v10013_v41 }
 0xa3a   :  { %v1869_v13 = vmul.f32 %v1868_v31, %v10265_v59  ;;  %v1870_v34 = vmul.f32 %v1868_v31, %v10263_v57 }
 0xa3c   :  { %v1875_v44 = vadd.f32 %v1874_v22, %v1869_v13  ;;  %v1876_v49 = vadd.f32 %v1874_v22, %v1870_v34 }
 0xa3e   :  { %v1877_v52 = vadd.f32 %v1875_v44, %v1600_v39  ;;  %v1878_v8 = vadd.f32 %v1876_v49, %v1601_v11 }
 0xa40   :  { %v1879_v54 = vmul.f32 0.70710677, %v1877_v52  ;;  %v1880_v14 = vmul.f32 0.70710677, %v1878_v8  ;;  %v1927_v30 = vmul.f32 0.5, %v1877_v52  ;;  %v1928_v33 = vmul.f32 0.5, %v1878_v8 }
 0xa42   :  { %v1881_v55 = vand.u32 2147483647, %v1879_v54  ;;  %v1882_v56 = vand.u32 2147483647, %v1880_v14  ;;  %vm1921_vm12 = vcmp.ge.f32.partialorder %v1879_v54, 0.0  ;;  %vm1922_vm13 = vcmp.ge.f32.partialorder %v1880_v14, 0.0 }
 0xa44   :  { %v1883_v58 = vmul.f32 0.3275911, %v1881_v55  ;;  %v1884_v51 = vmul.f32 0.3275911, %v1882_v56  ;;  %v1909_v59 = vsub.f32 0.0, %v1881_v55  ;;  %v1910_v57 = vsub.f32 0.0, %v1882_v56 }
 0xa46   :  { %v1885_v61 = vadd.f32 1.0, %v1883_v58  ;;  %v1886_v16 = vadd.f32 1.0, %v1884_v51  ;;  %v1911_v62 = vmul.f32 %v1909_v59, %v1881_v55  ;;  %v1912_v45 = vmul.f32 %v1910_v57, %v1882_v56 }
 0xa48   :  { %9163 = vrcp.f32 %v1885_v61  ;;  %v1913_v1 = vmul.f32 1.442695, %v1911_v62  ;;  %v1915_v3 = vmul.f32 1.442695, %v1912_v45 }
 0xa49   :  { %9165 = vrcp.f32 %v1886_v16 }
 0xa4a   :  { %9167 = vpow2.f32 %v1913_v1 }
 0xa4b   :  { %9169 = vpow2.f32 %v1915_v3 }
 0xa52   :  { %v9164_v53 = vpop.eup %9163 }
 0xa53   :  { %v9166_v63 = vpop.eup %9165  ;;  %v1891_v47 = vmul.f32 1.0614054, %v9164_v53 }
 0xa54   :  { %v1892_v42 = vmul.f32 1.0614054, %v9166_v63  ;;  %v9168_v32 = vpop.eup %9167 }
 0xa55   :  { %v1893_v46 = vadd.f32 -1.4531521, %v1891_v47  ;;  %v9170_v19 = vpop.eup %9169 }
 0xa56   :  { %v1894_v48 = vadd.f32 -1.4531521, %v1892_v42 }
 0xa57   :  { %v1895_v2 = vmul.f32 %v9164_v53, %v1893_v46 }
 0xa58   :  { %v1896_v4 = vmul.f32 %v9166_v63, %v1894_v48 }
 0xa59   :  { %v1897_v5 = vadd.f32 1.4214138, %v1895_v2 }
 0xa5a   :  { %v1898_v6 = vadd.f32 1.4214138, %v1896_v4 }
 0xa5b   :  { %v1899_v7 = vmul.f32 %v9164_v53, %v1897_v5 }
 0xa5c   :  { %v1900_v38 = vmul.f32 %v9166_v63, %v1898_v6 }
 0xa5d   :  { %v1901_v20 = vadd.f32 -0.28449672, %v1899_v7 }
 0xa5e   :  { %v1902_v23 = vadd.f32 -0.28449672, %v1900_v38 }
 0xa5f   :  { %v1903_v26 = vmul.f32 %v9164_v53, %v1901_v20  ;;  %v2199_v20 = vld [vmem:[#allocation12 + $0x80] sm:$0xff] }
 0xa60   :  { %v1904_v9 = vmul.f32 %v9166_v63, %v1902_v23  ;;  %v2200_v23 = vld [vmem:[#allocation12 + $0x88] sm:$0xff] }
 0xa61   :  { %v1905_v29 = vadd.f32 0.2548296, %v1903_v26  ;;  %v8438_v26 = vpack.c.bf16 %v2200_v23, %v2199_v20 }
 0xa62   :  { %v1906_v12 = vadd.f32 0.2548296, %v1904_v9  ;;  %v2183_v9 = vld [vmem:[#allocation12] sm:$0xff] }
 0xa63   :  { %v1907_v17 = vmul.f32 %v9164_v53, %v1905_v29  ;;  %v2184_v29 = vld [vmem:[#allocation12 + $0x8] sm:$0xff]  ;;  %8439 = vmatprep.subr.bf16.mxu0 %v8438_v26 }
 0xa64   :  { %v1908_v18 = vmul.f32 %v9166_v63, %v1906_v12  ;;  %v8440_v12 = vpack.c.bf16 %v2184_v29, %v2183_v9 }
 0xa65   :  { %v1917_v35 = vmul.f32 %v9168_v32, %v1907_v17  ;;  %v2201_v17 = vld [vmem:[#allocation12 + $0x90] sm:$0xff]  ;;  %v2202_v32 = vld [vmem:[#allocation12 + $0x98] sm:$0xff] }
 0xa66   :  { %v1918_v21 = vmul.f32 %v9170_v19, %v1908_v18  ;;  %v8442_v18 = vpack.c.bf16 %v2202_v32, %v2201_v17  ;;  %v2185_v19 = vld [vmem:[#allocation12 + $0x10] sm:$0xff] }
 0xa67   :  { %v1919_v24 = vsub.f32 1.0, %v1917_v35  ;;  %v2186_v35 = vld [vmem:[#allocation12 + $0x18] sm:$0xff] }
 0xa68   :  { %v1920_v40 = vsub.f32 1.0, %v1918_v21  ;;  %v8444_v21 = vpack.c.bf16 %v2186_v35, %v2185_v19 }
 0xa69   :  { %v1923_v25 = vsub.f32 0.0, %v1919_v24 }
 0xa6a   :  { %v1924_v27 = vsub.f32 0.0, %v1920_v40 }
 0xa6b   :  { %v1925_v28 = vsel %vm1921_vm12, %v1919_v24, %v1923_v25  ;;  %v2204_v24 = vld [vmem:[#allocation12 + $0xa8] sm:$0xff]  ;;  %v2187_v25 = vld [vmem:[#allocation12 + $0x20] sm:$0xff] }
 0xa6c   :  { %v1926_v10 = vsel %vm1922_vm13, %v1920_v40, %v1924_v27  ;;  %v1929_v31 = vadd.f32 1.0, %v1925_v28  ;;  %v2188_v27 = vld [vmem:[#allocation12 + $0x28] sm:$0xff]  ;;  %vm3885_vm13 = vcmask 130048  }
 0xa6d   :  { %v1930_v15 = vadd.f32 1.0, %v1926_v10  ;;  %v8448_v28 = vpack.c.bf16 %v2188_v27, %v2187_v25  ;;  %v2205_v10 = vld [vmem:[#allocation12 + $0xb0] sm:$0xff] }
 0xa6e   :  { %v10315_v13 = vmul.f32 %v1929_v31, %v1927_v30  ;;  %v2206_v30 = vld [vmem:[#allocation12 + $0xb8] sm:$0xff] }
 0xa6f   :  { %v10317_v34 = vmul.f32 %v1930_v15, %v1928_v33  ;;  %v8450_v31 = vpack.c.bf16 %v2206_v30, %v2205_v10  ;;  %v2189_v33 = vld [vmem:[#allocation12 + $0x30] sm:$0xff]  ;;  %v2190_v15 = vld [vmem:[#allocation12 + $0x38] sm:$0xff] }
 0xa70   :  { %v1940_v22 = vmul.f32 %v10315_v13, %v10315_v13 }
 0xa71   :  { %v1941_v39 = vmul.f32 %v10317_v34, %v10317_v34  ;;  %v1933_v11 = vadd.f32 %v10317_v34, %v10315_v13 }
 0xa73   :  { %v1934_v44 = vrot.slane %v1933_v11, 4  ;;  %v1942_v49 = vadd.f32 %v1941_v39, %v1940_v22  ;;  %v8452_v22 = vpack.c.bf16 %v2190_v15, %v2189_v33  ;;  %v2207_v39 = vld [vmem:[#allocation12 + $0xc0] sm:$0xff] }
 0xa75   :  { %v1935_v54 = vadd.f32 %v1934_v44, %v1933_v11  ;;  %v1943_v52 = vrot.slane %v1942_v49, 4  ;;  %v2208_v11 = vld [vmem:[#allocation12 + $0xc8] sm:$0xff] }
 0xa76   :  { %v8454_v44 = vpack.c.bf16 %v2208_v11, %v2207_v39 }
 0xa77   :  { %v1936_v14 = vrot.slane %v1935_v54, 2  ;;  %v1944_v8 = vadd.f32 %v1943_v52, %v1942_v49  ;;  %v2191_v49 = vld [vmem:[#allocation12 + $0x40] sm:$0xff] }
 0xa79   :  { %v1937_v55 = vadd.f32 %v1936_v14, %v1935_v54  ;;  %v1945_v56 = vrot.slane %v1944_v8, 2  ;;  %v2192_v54 = vld [vmem:[#allocation12 + $0x48] sm:$0xff]  ;;  %v2209_v14 = vld [vmem:[#allocation12 + $0xd0] sm:$0xff] }
 0xa7a   :  { %v8456_v52 = vpack.c.bf16 %v2192_v54, %v2191_v49 }
 0xa7b   :  { %v1938_v58 = vrot.slane %v1937_v55, 1  ;;  %v1946_v51 = vadd.f32 %v1945_v56, %v1944_v8  ;;  %v2210_v8 = vld [vmem:[#allocation12 + $0xd8] sm:$0xff]  ;;  %v2193_v56 = vld [vmem:[#allocation12 + $0x50] sm:$0xff] }
 0xa7d   :  { %v1947_v61 = vrot.slane %v1946_v51, 1  ;;  %v1939_v16 = vadd.f32 %v1938_v58, %v1937_v55  ;;  %v8458_v55 = vpack.c.bf16 %v2210_v8, %v2209_v14  ;;  %v2194_v58 = vld [vmem:[#allocation12 + $0x58] sm:$0xff] }
 0xa7f   :  { %v1948_v59 = vadd.f32 %v1947_v61, %v1946_v51  ;;  %v8460_v51 = vpack.c.bf16 %v2194_v58, %v2193_v56  ;;  %v2211_v61 = vld [vmem:[#allocation12 + $0xe0] sm:$0xff] }
 0xa81   :  { %v1949_v57 = vsel %vm1008_vm7, %v1939_v16, %v1948_v59  ;;  %v2212_v16 = vld [vmem:[#allocation12 + $0xe8] sm:$0xff] }
 0xa82   :  { %7471 = vmatmul.mubr.f32.vlgmr.msra.gmra.mrb[16].mxu1 %v1949_v57  ;;  %v8462_v59 = vpack.c.bf16 %v2212_v16, %v2211_v61  ;;  %v2195_v57 = vld [vmem:[#allocation12 + $0x60] sm:$0xff] }
 0xa83   :  { %7524 = vmatprep.mubr.msk.f32.mxu1 %vm9700_vm6, %v9698_v0 }
 0xb55   :  { %v2016_v53 = vpop.f32.mrb[16].mxu1 }
 0xb56   :  { %v2020_v62 = vmul.f32 0.03125, %v2016_v53  ;;  %v7472_v63 = vpop.f32.mrb[17].mxu1  ;;  %v2196_v53 = vld [vmem:[#allocation12 + $0x68] sm:$0xff] }
 0xb57   :  { %v2213_v63 = vld [vmem:[#allocation12 + $0xf0] sm:$0xff] }
 0xb58   :  { %v2021_v47 = vmul.f32 %v2020_v62, %v2020_v62 }
 0xb5a   :  { %v2023_v45 = vrot.slane %v2021_v47, 7  ;;  %v2214_v47 = vld [vmem:[#allocation12 + $0xf8] sm:$0xff] }
 0xb5c   :  { %v2025_v42 = vsub.f32 %v2020_v62, %v2023_v45  ;;  %v8466_v45 = vpack.c.bf16 %v2214_v47, %v2213_v63 }
 0xb5e   :  { %v2026_v46 = vadd.f32 1e-05, %v2025_v42  ;;  %v2197_v42 = vld [vmem:[#allocation12 + $0x70] sm:$0xff] }
 0xb60   :  { %9171 = vrsqrt.f32 %v2026_v46  ;;  %v2198_v46 = vld [vmem:[#allocation12 + $0x78] sm:$0xff] }
 0xb6a   :  { %v9172_v48 = vpop.eup %9171 }
 0xb6b   :  { %v2029_v1 = vrot.slane %v9172_v48, 3  ;;  %v8468_v48 = vpack.c.bf16 %v2198_v46, %v2197_v42 }
 0xb6d   :  { %v2031_v2 = vmul.f32 %v2029_v1, %v10114_v36  ;;  %v2279_v1 = vld [vmem:[%s11235_s28] sm:$0xff] }
 0xb6f   :  { %v2033_v3 = vrot.slane %v2031_v2, 6  ;;  %v2280_v2 = vld [vmem:[%s11235_s28 + $0x8] sm:$0xff] }
 0xb71   :  { %v2035_v4 = vmul.f32 %v2033_v3, %v2020_v62  ;;  %v8464_v62 = vpack.c.bf16 %v2196_v53, %v2195_v57 }
 0xb73   :  { %v2037_v5 = vrot.slane %v2035_v4, 1 }
 0xb75   :  { %v2039_v6 = vsub.f32 %v10114_v36, %v2037_v5  ;;  %v2203_v36 = vld [vmem:[#allocation12 + $0xa0] sm:$0xff] }
 0xb76   :  { %v8446_v40 = vpack.c.bf16 %v2204_v24, %v2203_v36 }
 0xb77   :  { %v2041_v7 = vrot.slane %v2039_v6, 6 }
 0xb79   :  { %v2043_v38 = vsel %vm1008_vm7, %v2033_v3, %v2041_v7  ;;  %v10335_v3 = vpack.c.bf16 %v2280_v2, %v2279_v1 }
 0xb7a   :  { %7490 = vmatmul.mubr.msk.f32.vlgmr.msra.gmra.mrb[16].mxu0 %vm1098_vm8, %v2043_v38 }
 0xb7b   :  { %8441 = vmatpush3.bf16.msra.mxu0 %v8440_v12  ;;  %8472 = vmatpush3.bf16.msra.mxu1 %v10335_v3 }
 0xb7c   :  { %8443 = vmatprep.subr.bf16.mxu0 %v8442_v18  ;;  %8473 = vmatprep.subr.bf16.mxu1 %v9699_v37 }
 0xb7f   :  { %8445 = vmatpush3.bf16.msra.mxu0 %v8444_v21 }
 0xb80   :  { %8447 = vmatprep.subr.bf16.mxu0 %v8446_v40 }
 0xb83   :  { %8449 = vmatpush3.bf16.msra.mxu0 %v8448_v28 }
 0xb84   :  { %8451 = vmatprep.subr.bf16.mxu0 %v8450_v31 }
 0xb87   :  { %8453 = vmatpush3.bf16.msra.mxu0 %v8452_v22 }
 0xb88   :  { %8455 = vmatprep.subr.bf16.mxu0 %v8454_v44 }
 0xb8b   :  { %8457 = vmatpush3.bf16.msra.mxu0 %v8456_v52 }
 0xb8c   :  { %8459 = vmatprep.subr.bf16.mxu0 %v8458_v55 }
 0xb8f   :  { %8461 = vmatpush3.bf16.msra.mxu0 %v8460_v51 }
 0xb90   :  { %8463 = vmatprep.subr.bf16.mxu0 %v8462_v59 }
 0xb93   :  { %8465 = vmatpush3.bf16.msra.mxu0 %v8464_v62 }
 0xb94   :  { %8467 = vmatprep.subr.bf16.mxu0 %v8466_v45 }
 0xb97   :  { %8469 = vmatpush3.bf16.msra.mxu0 %v8468_v48 }
 0xb98   :  { %8494 = vmatprep.subr.bf16.mxu0 %v9699_v37 }
 0xc4d   :  { %v2113_v4 = vpop.f32.mrb[16].mxu0 }
 0xc4e   :  { %v2120_v5 = vrot.slane %v2113_v4, %v10016_v43  ;;  %v7491_v6 = vpop.f32.mrb[17].mxu0  ;;  %v2126_v20 = vrot.slane %v2113_v4, %v10013_v41 }
 0xc50   :  { %v2121_v7 = vmul.f32 %v2120_v5, %v10315_v13  ;;  %v2122_v38 = vmul.f32 %v2120_v5, %v10317_v34 }
 0xc52   :  { %v2127_v23 = vadd.f32 %v2126_v20, %v2121_v7  ;;  %v2128_v26 = vadd.f32 %v2126_v20, %v2122_v38  ;;  %v2281_v38 = vld [vmem:[%s11235_s28 + $0x10] sm:$0xff]  ;;  %v2282_v20 = vld [vmem:[%s11235_s28 + $0x18] sm:$0xff] }
 0xc54   :  { %v2129_v9 = vmul.f32 0.70710677, %v2127_v23  ;;  %v2130_v29 = vmul.f32 0.70710677, %v2128_v26  ;;  %v2177_v42 = vmul.f32 0.5, %v2127_v23  ;;  %v2178_v48 = vmul.f32 0.5, %v2128_v26 }
 0xc55   :  { %v10357_v23 = vpack.c.bf16 %v2282_v20, %v2281_v38  ;;  %v2283_v26 = vld [vmem:[%s11235_s28 + $0x20] sm:$0xff] }
 0xc56   :  { %v2131_v12 = vand.u32 2147483647, %v2129_v9  ;;  %v2132_v17 = vand.u32 2147483647, %v2130_v29  ;;  %vm2171_vm14 = vcmp.ge.f32.partialorder %v2129_v9, 0.0  ;;  %vm2172_vm15 = vcmp.ge.f32.partialorder %v2130_v29, 0.0 }
 0xc57   :  { %8475 = vmatpush3.bf16.msra.mxu1 %v10357_v23  ;;  %v2284_v9 = vld [vmem:[%s11235_s28 + $0x28] sm:$0xff] }
 0xc58   :  { %v2133_v32 = vmul.f32 0.3275911, %v2131_v12  ;;  %v2134_v18 = vmul.f32 0.3275911, %v2132_v17  ;;  %v2159_v21 = vsub.f32 0.0, %v2131_v12  ;;  %v2160_v36 = vsub.f32 0.0, %v2132_v17  ;;  %8476 = vmatprep.subr.bf16.mxu1 %v9699_v37 }
 0xc59   :  { %v10363_v29 = vpack.c.bf16 %v2284_v9, %v2283_v26 }
 0xc5a   :  { %v2135_v19 = vadd.f32 1.0, %v2133_v32  ;;  %v2136_v35 = vadd.f32 1.0, %v2134_v18  ;;  %v2161_v13 = vmul.f32 %v2159_v21, %v2131_v12  ;;  %v2162_v25 = vmul.f32 %v2160_v36, %v2132_v17  ;;  %v2285_v12 = vld [vmem:[%s11235_s28 + $0x30] sm:$0xff]  ;;  %v2286_v17 = vld [vmem:[%s11235_s28 + $0x38] sm:$0xff]  ;;  %v2287_v18 = vld [vmem:[%s11235_s28 + $0x40] sm:$0xff] }
 0xc5b   :  { %8478 = vmatpush3.bf16.msra.mxu1 %v10363_v29  ;;  %v10369_v32 = vpack.c.bf16 %v2286_v17, %v2285_v12  ;;  %v2289_v21 = vld [vmem:[%s11235_s28 + $0x50] sm:$0xff]  ;;  %v2290_v36 = vld [vmem:[%s11235_s28 + $0x58] sm:$0xff] }
 0xc5c   :  { %9173 = vrcp.f32 %v2135_v19  ;;  %v2163_v30 = vmul.f32 1.442695, %v2161_v13  ;;  %v2165_v33 = vmul.f32 1.442695, %v2162_v25  ;;  %8479 = vmatprep.subr.bf16.mxu1 %v9699_v37  ;;  %v2288_v19 = vld [vmem:[%s11235_s28 + $0x48] sm:$0xff]  ;;  %v2291_v13 = vld [vmem:[%s11235_s28 + $0x60] sm:$0xff] }
 0xc5d   :  { %9175 = vrcp.f32 %v2136_v35  ;;  %v10375_v35 = vpack.c.bf16 %v2288_v19, %v2287_v18  ;;  %v2293_v25 = vld [vmem:[%s11235_s28 + $0x70] sm:$0xff] }
 0xc5e   :  { %9177 = vpow2.f32 %v2163_v30  ;;  %v10418_v19 = vld [vmem:[#allocation18] sm:$0xff] }
 0xc5f   :  { %9179 = vpow2.f32 %v2165_v33  ;;  %8481 = vmatpush3.bf16.msra.mxu1 %v10369_v32 }
 0xc60   :  { %8482 = vmatprep.subr.bf16.mxu1 %v9699_v37 }
 0xc63   :  { %8484 = vmatpush3.bf16.msra.mxu1 %v10375_v35 }
 0xc64   :  { %8485 = vmatprep.subr.bf16.mxu1 %v9699_v37 }
 0xc66   :  { %v9174_v24 = vpop.eup %9173 }
 0xc67   :  { %v9176_v40 = vpop.eup %9175  ;;  %v2141_v34 = vmul.f32 1.0614054, %v9174_v24 }
 0xc68   :  { %v2142_v27 = vmul.f32 1.0614054, %v9176_v40  ;;  %v9178_v58 = vpop.eup %9177 }
 0xc69   :  { %v2143_v28 = vadd.f32 -1.4531521, %v2141_v34  ;;  %v9180_v61 = vpop.eup %9179 }
 0xc6a   :  { %v2144_v10 = vadd.f32 -1.4531521, %v2142_v27  ;;  %v2294_v27 = vld [vmem:[%s11235_s28 + $0x78] sm:$0xff] }
 0xc6b   :  { %v2145_v31 = vmul.f32 %v9174_v24, %v2143_v28  ;;  %v10392_v28 = vpack.c.bf16 %v2294_v27, %v2293_v25 }
 0xc6c   :  { %v2146_v15 = vmul.f32 %v9176_v40, %v2144_v10  ;;  %v10396_v10 = vld [vmem:[#allocation16] sm:$0x7] }
 0xc6d   :  { %v2147_v22 = vadd.f32 1.4214138, %v2145_v31  ;;  %v2312_v33 = vrot.slane %v10396_v10, %v10016_v43 }
 0xc6e   :  { %v2148_v39 = vadd.f32 1.4214138, %v2146_v15 }
 0xc6f   :  { %v2149_v11 = vmul.f32 %v9174_v24, %v2147_v22 }
 0xc70   :  { %v2150_v44 = vmul.f32 %v9176_v40, %v2148_v39 }
 0xc71   :  { %v2151_v49 = vadd.f32 -0.28449672, %v2149_v11 }
 0xc72   :  { %v2152_v54 = vadd.f32 -0.28449672, %v2150_v44 }
 0xc73   :  { %v2153_v52 = vmul.f32 %v9174_v24, %v2151_v49 }
 0xc74   :  { %v2154_v14 = vmul.f32 %v9176_v40, %v2152_v54 }
 0xc75   :  { %v2155_v8 = vadd.f32 0.2548296, %v2153_v52 }
 0xc76   :  { %v2156_v55 = vadd.f32 0.2548296, %v2154_v14 }
 0xc77   :  { %v2157_v56 = vmul.f32 %v9174_v24, %v2155_v8  ;;  %v10381_v24 = vpack.c.bf16 %v2290_v36, %v2289_v21 }
 0xc78   :  { %v2158_v51 = vmul.f32 %v9176_v40, %v2156_v55  ;;  %v2292_v40 = vld [vmem:[%s11235_s28 + $0x68] sm:$0xff] }
 0xc79   :  { %v2167_v16 = vmul.f32 %v9178_v58, %v2157_v56  ;;  %8487 = vmatpush3.bf16.msra.mxu1 %v10381_v24  ;;  %v10387_v34 = vpack.c.bf16 %v2292_v40, %v2291_v13 }
 0xc7a   :  { %v2168_v59 = vmul.f32 %v9180_v61, %v2158_v51  ;;  %8488 = vmatprep.subr.bf16.mxu1 %v9699_v37 }
 0xc7b   :  { %v2169_v57 = vsub.f32 1.0, %v2167_v16 }
 0xc7c   :  { %v2170_v53 = vsub.f32 1.0, %v2168_v59 }
 0xc7d   :  { %v2173_v62 = vsub.f32 0.0, %v2169_v57  ;;  %8490 = vmatpush3.bf16.msra.mxu1 %v10387_v34 }
 0xc7e   :  { %v2174_v63 = vsub.f32 0.0, %v2170_v53  ;;  %8491 = vmatprep.subr.bf16.mxu1 %v9699_v37 }
 0xc7f   :  { %v2175_v47 = vsel %vm2171_vm14, %v2169_v57, %v2173_v62 }
 0xc80   :  { %v2176_v45 = vsel %vm2172_vm15, %v2170_v53, %v2174_v63  ;;  %v2179_v46 = vadd.f32 1.0, %v2175_v47 }
 0xc81   :  { %v2180_v1 = vadd.f32 1.0, %v2176_v45  ;;  %8493 = vmatpush3.bf16.msra.mxu1 %v10392_v28 }
 0xc82   :  { %v10343_v2 = vmul.f32 %v2179_v46, %v2177_v42  ;;  %v2295_v42 = vld [vmem:[#allocation15] sm:$0xff]  ;;  %v2296_v46 = vld [vmem:[#allocation15 + $0x8] sm:$0xff] }
 0xc83   :  { %v10345_v4 = vmul.f32 %v2180_v1, %v2178_v48  ;;  %v10411_v48 = vpack.c.bf16 %v2296_v46, %v2295_v42  ;;  %v2297_v1 = vld [vmem:[#allocation15 + $0x10] sm:$0xff]  ;;  %v2220_v46 = vld [vmem:[%s11236_s8 + $0x28] sm:$0xff] }
 0xc84   :  { %v2303_v5 = vrot.slane %v10343_v2, 2  ;;  %v2219_v42 = vld [vmem:[%s11236_s8 + $0x20] sm:$0xff] }
 0xc85   :  { %v2304_v6 = vrot.slane %v10345_v4, 2 }
 0xc87   :  { %v2305_v7 = vsel %vm724_vm3, %v2303_v5, %v2304_v6  ;;  %v2298_v5 = vld [vmem:[#allocation15 + $0x18] sm:$0xff] }
 0xc88   :  { %2377 = vmatprep.mubr.f32.mxu0 %v2305_v7 }
 0xc89   :  { %2378 = vmatmul.mubr.f32.vlgmr.msra.gmra.mrb[18].mxu0 %v10343_v2 }
 0xc8a   :  { %6454 = vmatprep.mubr.msk.f32.mxu0 %vm724_vm3, %v2304_v6  ;;  %8496 = vmatpush3.bf16.msra.mxu0 %v10411_v48  ;;  %v10415_v6 = vpack.c.bf16 %v2298_v5, %v2297_v1  ;;  %v8510_v1 = vpack.c.bf16 %v2220_v46, %v2219_v42  ;;  %v2253_v5 = vld [vmem:[%s11236_s8 + $0x130] sm:$0xff]  ;;  %v2246_v46 = vld [vmem:[%s11236_s8 + $0xf8] sm:$0xff] }
 0xc8b   :  { %8497 = vmatprep.subr.bf16.mxu0 %v9699_v37  ;;  %v2245_v42 = vld [vmem:[%s11236_s8 + $0xf0] sm:$0xff] }
 0xc8d   :  { %2383 = vmatmul.mubr.f32.gmra.mrb[20].mxu0 %v10345_v4 }
 0xc8e   :  { %7535 = vmatprep.mubr.msk.f32.mxu0 %vm9700_vm6, %v9698_v0  ;;  %8499 = vmatpush3.bf16.msra.mxu0 %v10415_v6 }
 0xd5c   :  { %v6736_v30 = vpop.f32.mrb[18].mxu0 }
 0xd5d   :  { %v6737_v31 = vpop.f32.mrb[19].mxu0 }
 0xd5e   :  { %v6738_v15 = vadd.f32 %v6737_v31, %v6736_v30  ;;  %v2247_v30 = vld [vmem:[%s11236_s8 + $0x100] sm:$0xff]  ;;  %v2248_v31 = vld [vmem:[%s11236_s8 + $0x108] sm:$0xff] }
 0xd60   :  { %v6739_v22 = vpop.f32.mrb[20].mxu0  ;;  %v10400_v11 = vadd.f32 %v6738_v15, %v2312_v33  ;;  %v2231_v15 = vld [vmem:[%s11236_s8 + $0x80] sm:$0xff] }
 0xd61   :  { %v6740_v39 = vpop.f32.mrb[21].mxu0 }
 0xd62   :  { %v6741_v44 = vadd.f32 %v6740_v39, %v6739_v22  ;;  %v2395_v54 = vmul.f32 %v10400_v11, %v10400_v11  ;;  %v2232_v22 = vld [vmem:[%s11236_s8 + $0x88] sm:$0xff] }
 0xd63   :  { %v8500_v39 = vpack.c.bf16 %v2232_v22, %v2231_v15  ;;  %v2257_v15 = vld [vmem:[%s11236_s8 + $0x150] sm:$0xff]  ;;  %v2258_v22 = vld [vmem:[%s11236_s8 + $0x158] sm:$0xff] }
 0xd64   :  { %v10402_v49 = vadd.f32 %v6741_v44, %v2312_v33  ;;  %v8532_v33 = vpack.c.bf16 %v2248_v31, %v2247_v30  ;;  %v2215_v44 = vld [vmem:[%s11236_s8] sm:$0xff]  ;;  %v2224_v31 = vld [vmem:[%s11236_s8 + $0x48] sm:$0xff] }
 0xd65   :  { %8501 = vmatprep.subr.bf16.mxu1 %v8500_v39  ;;  %v2223_v30 = vld [vmem:[%s11236_s8 + $0x40] sm:$0xff]  ;;  %v8552_v39 = vpack.c.bf16 %v2258_v22, %v2257_v15 }
 0xd66   :  { %v2388_v52 = vadd.f32 %v10402_v49, %v10400_v11  ;;  %v2396_v14 = vmul.f32 %v10402_v49, %v10402_v49  ;;  %8533 = vmatprep.subr.bf16.mxu0 %v8532_v33 }
 0xd68   :  { %v2389_v8 = vrot.slane %v2388_v52, 4  ;;  %v2397_v55 = vadd.f32 %v2396_v14, %v2395_v54  ;;  %v2216_v54 = vld [vmem:[%s11236_s8 + $0x8] sm:$0xff]  ;;  %v2249_v14 = vld [vmem:[%s11236_s8 + $0x110] sm:$0xff] }
 0xd6a   :  { %v2390_v56 = vadd.f32 %v2389_v8, %v2388_v52  ;;  %v2398_v58 = vrot.slane %v2397_v55, 4  ;;  %v8502_v52 = vpack.c.bf16 %v2216_v54, %v2215_v44  ;;  %v2250_v8 = vld [vmem:[%s11236_s8 + $0x118] sm:$0xff]  ;;  %v2241_v44 = vld [vmem:[%s11236_s8 + $0xd0] sm:$0xff] }
 0xd6b   :  { %v2242_v54 = vld [vmem:[%s11236_s8 + $0xd8] sm:$0xff] }
 0xd6c   :  { %v2391_v51 = vrot.slane %v2390_v56, 2  ;;  %v2399_v61 = vadd.f32 %v2398_v58, %v2397_v55  ;;  %v8536_v55 = vpack.c.bf16 %v2250_v8, %v2249_v14  ;;  %v2234_v58 = vld [vmem:[%s11236_s8 + $0x98] sm:$0xff]  ;;  %v2225_v14 = vld [vmem:[%s11236_s8 + $0x50] sm:$0xff] }
 0xd6d   :  { %v2226_v8 = vld [vmem:[%s11236_s8 + $0x58] sm:$0xff] }
 0xd6e   :  { %v2392_v16 = vadd.f32 %v2391_v51, %v2390_v56  ;;  %v2400_v59 = vrot.slane %v2399_v61, 2  ;;  %v2233_v56 = vld [vmem:[%s11236_s8 + $0x90] sm:$0xff] }
 0xd6f   :  { %v8504_v51 = vpack.c.bf16 %v2234_v58, %v2233_v56  ;;  %v2259_v56 = vld [vmem:[%s11236_s8 + $0x160] sm:$0xff]  ;;  %v2260_v58 = vld [vmem:[%s11236_s8 + $0x168] sm:$0xff] }
 0xd70   :  { %v2393_v57 = vrot.slane %v2392_v16, 1  ;;  %v2401_v53 = vadd.f32 %v2400_v59, %v2399_v61  ;;  %v2217_v61 = vld [vmem:[%s11236_s8 + $0x10] sm:$0xff] }
 0xd72   :  { %v2402_v62 = vrot.slane %v2401_v53, 1  ;;  %v2394_v63 = vadd.f32 %v2393_v57, %v2392_v16  ;;  %v2218_v16 = vld [vmem:[%s11236_s8 + $0x18] sm:$0xff]  ;;  %v2251_v57 = vld [vmem:[%s11236_s8 + $0x120] sm:$0xff] }
 0xd73   :  { %v8506_v59 = vpack.c.bf16 %v2218_v16, %v2217_v61  ;;  %v2243_v61 = vld [vmem:[%s11236_s8 + $0xe0] sm:$0xff]  ;;  %v2244_v16 = vld [vmem:[%s11236_s8 + $0xe8] sm:$0xff] }
 0xd74   :  { %v2403_v47 = vadd.f32 %v2402_v62, %v2401_v53  ;;  %v2252_v53 = vld [vmem:[%s11236_s8 + $0x128] sm:$0xff] }
 0xd75   :  { %v8540_v62 = vpack.c.bf16 %v2252_v53, %v2251_v57  ;;  %v2227_v57 = vld [vmem:[%s11236_s8 + $0x60] sm:$0xff]  ;;  %v2228_v53 = vld [vmem:[%s11236_s8 + $0x68] sm:$0xff] }
 0xd76   :  { %v2404_v45 = vsel %vm1008_vm7, %v2394_v63, %v2403_v47  ;;  %v2235_v63 = vld [vmem:[%s11236_s8 + $0xa0] sm:$0xff]  ;;  %v2236_v47 = vld [vmem:[%s11236_s8 + $0xa8] sm:$0xff] }
 0xd77   :  { %7525 = vmatmul.mubr.f32.vlgmr.msra.gmra.mrb[18].mxu1 %v2404_v45  ;;  %v8508_v45 = vpack.c.bf16 %v2236_v47, %v2235_v63  ;;  %v2261_v63 = vld [vmem:[%s11236_s8 + $0x170] sm:$0xff]  ;;  %v2262_v47 = vld [vmem:[%s11236_s8 + $0x178] sm:$0xff] }
 0xd78   :  { %8503 = vmatpush3.bf16.msra.mxu1 %v8502_v52  ;;  %v8520_v52 = vpack.c.bf16 %v2242_v54, %v2241_v44 }
 0xd79   :  { %8505 = vmatprep.subr.bf16.mxu1 %v8504_v51  ;;  %v8556_v51 = vpack.c.bf16 %v2260_v58, %v2259_v56 }
 0xd7c   :  { %8507 = vmatpush3.bf16.msra.mxu1 %v8506_v59  ;;  %v8524_v59 = vpack.c.bf16 %v2244_v16, %v2243_v61 }
 0xd7d   :  { %8509 = vmatprep.subr.bf16.mxu1 %v8508_v45  ;;  %v8560_v45 = vpack.c.bf16 %v2262_v47, %v2261_v63 }
 0xd80   :  { %8511 = vmatpush3.bf16.msra.mxu1 %v8510_v1  ;;  %v8528_v1 = vpack.c.bf16 %v2246_v46, %v2245_v42 }
 0xe4a   :  { %v2471_v7 = vpop.f32.mrb[18].mxu1 }
 0xe4b   :  { %v2475_v38 = vmul.f32 0.015625, %v2471_v7  ;;  %v7526_v20 = vpop.f32.mrb[19].mxu1  ;;  %v2254_v7 = vld [vmem:[%s11236_s8 + $0x138] sm:$0xff] }
 0xe4c   :  { %v2237_v20 = vld [vmem:[%s11236_s8 + $0xb0] sm:$0xff] }
 0xe4d   :  { %v2476_v26 = vmul.f32 %v2475_v38, %v2475_v38 }
 0xe4f   :  { %v2478_v9 = vrot.slane %v2476_v26, 7  ;;  %v2238_v26 = vld [vmem:[%s11236_s8 + $0xb8] sm:$0xff] }
 0xe51   :  { %v2480_v12 = vsub.f32 %v2475_v38, %v2478_v9  ;;  %v8512_v9 = vpack.c.bf16 %v2238_v26, %v2237_v20 }
 0xe53   :  { %v2481_v17 = vadd.f32 1e-05, %v2480_v12  ;;  %v2221_v12 = vld [vmem:[%s11236_s8 + $0x30] sm:$0xff]  ;;  %8513 = vmatprep.subr.bf16.mxu1 %v8512_v9 }
 0xe55   :  { %9181 = vrsqrt.f32 %v2481_v17  ;;  %v2222_v17 = vld [vmem:[%s11236_s8 + $0x38] sm:$0xff] }
 0xe5f   :  { %v9182_v18 = vpop.eup %9181 }
 0xe60   :  { %v2484_v21 = vrot.slane %v9182_v18, 1  ;;  %v8514_v18 = vpack.c.bf16 %v2222_v17, %v2221_v12 }
 0xe62   :  { %v2486_v36 = vmul.f32 %v2484_v21, %v10418_v19  ;;  %v2255_v21 = vld [vmem:[%s11236_s8 + $0x140] sm:$0xff]  ;;  %8515 = vmatpush3.bf16.msra.mxu1 %v8514_v18 }
 0xe64   :  { %v2487_v13 = vmul.f32 %v2486_v36, %v2475_v38  ;;  %v8544_v38 = vpack.c.bf16 %v2254_v7, %v2253_v5  ;;  %v2229_v5 = vld [vmem:[%s11236_s8 + $0x70] sm:$0xff]  ;;  %v2230_v7 = vld [vmem:[%s11236_s8 + $0x78] sm:$0xff] }
 0xe66   :  { %v2489_v40 = vrot.slane %v2487_v13, 7 }
 0xe68   :  { %v2491_v25 = vsub.f32 %v10418_v19, %v2489_v40  ;;  %v2239_v40 = vld [vmem:[%s11236_s8 + $0xc0] sm:$0xff] }
 0xe6a   :  { %v2492_v27 = vsel %vm1008_vm7, %v2486_v36, %v2491_v25  ;;  %v2256_v36 = vld [vmem:[%s11236_s8 + $0x148] sm:$0xff] }
 0xe6b   :  { %7536 = vmatmul.mubr.msk.f32.vlgmr.msra.gmra.mrb[22].mxu0 %vm414_vm0, %v2492_v27  ;;  %v8548_v13 = vpack.c.bf16 %v2256_v36, %v2255_v21  ;;  %v2240_v25 = vld [vmem:[%s11236_s8 + $0xc8] sm:$0xff] }
 0xe6c   :  { %8535 = vmatpush3.bf16.msra.mxu0 %v8532_v33  ;;  %v8516_v27 = vpack.c.bf16 %v2240_v25, %v2239_v40  ;;  %v8518_v33 = vpack.c.bf16 %v2224_v31, %v2223_v30 }
 0xe6d   :  { %8537 = vmatprep.subr.bf16.mxu0 %v8536_v55 }
 0xe6e   :  { %8517 = vmatprep.subr.bf16.mxu1 %v8516_v27 }
 0xe6f   :  { %8519 = vmatpush3.bf16.msra.mxu1 %v8518_v33 }
 0xe70   :  { %8539 = vmatpush3.bf16.msra.mxu0 %v8536_v55  ;;  %v8522_v55 = vpack.c.bf16 %v2226_v8, %v2225_v14  ;;  %8521 = vmatprep.subr.bf16.mxu1 %v8520_v52 }
 0xe71   :  { %8541 = vmatprep.subr.bf16.mxu0 %v8540_v62 }
 0xe73   :  { %8523 = vmatpush3.bf16.msra.mxu1 %v8522_v55 }
 0xe74   :  { %8543 = vmatpush3.bf16.msra.mxu0 %v8540_v62  ;;  %v8526_v62 = vpack.c.bf16 %v2228_v53, %v2227_v57  ;;  %8525 = vmatprep.subr.bf16.mxu1 %v8524_v59 }
 0xe75   :  { %8545 = vmatprep.subr.bf16.mxu0 %v8544_v38 }
 0xe77   :  { %8527 = vmatpush3.bf16.msra.mxu1 %v8526_v62 }
 0xe78   :  { %8547 = vmatpush3.bf16.msra.mxu0 %v8544_v38  ;;  %v8530_v38 = vpack.c.bf16 %v2230_v7, %v2229_v5  ;;  %8529 = vmatprep.subr.bf16.mxu1 %v8528_v1 }
 0xe79   :  { %8549 = vmatprep.subr.bf16.mxu0 %v8548_v13 }
 0xe7b   :  { %8531 = vmatpush3.bf16.msra.mxu1 %v8530_v38 }
 0xe7c   :  { %8551 = vmatpush3.bf16.msra.mxu0 %v8548_v13  ;;  %8564 = vmatprep.subr.bf16.mxu1 %v9699_v37 }
 0xe7d   :  { %8553 = vmatprep.subr.bf16.mxu0 %v8552_v39 }
 0xe80   :  { %8555 = vmatpush3.bf16.msra.mxu0 %v8552_v39 }
 0xe81   :  { %8557 = vmatprep.subr.bf16.mxu0 %v8556_v51 }
 0xe84   :  { %8559 = vmatpush3.bf16.msra.mxu0 %v8556_v51 }
 0xe85   :  { %8561 = vmatprep.subr.bf16.mxu0 %v8560_v45 }
 0xe88   :  { %8563 = vmatpush3.bf16.msra.mxu0 %v8560_v45 }
 0xe89   :  { %8588 = vmatprep.subr.bf16.mxu0 %v9699_v37 }
 0xf3e   :  { %v2562_v20 = vpop.f32.mrb[22].mxu0 }
 0xf3f   :  { %v2569_v26 = vrot.slane %v2562_v20, %v10016_v43  ;;  %v7537_v9 = vpop.f32.mrb[23].mxu0  ;;  %v2575_v18 = vrot.slane %v2562_v20, %v10013_v41 }
 0xf41   :  { %v2570_v12 = vmul.f32 %v2569_v26, %v10400_v11  ;;  %v2571_v17 = vmul.f32 %v2569_v26, %v10402_v49 }
 0xf43   :  { %v2576_v21 = vadd.f32 %v2575_v18, %v2570_v12  ;;  %v2577_v36 = vadd.f32 %v2575_v18, %v2571_v17 }
 0xf45   :  { %v2578_v13 = vmul.f32 0.70710677, %v2576_v21  ;;  %v2579_v40 = vmul.f32 0.70710677, %v2577_v36 }
 0xf47   :  { %v2580_v25 = vand.u32 2147483647, %v2578_v13  ;;  %v2581_v27 = vand.u32 2147483647, %v2579_v40  ;;  %vm2620_vm4 = vcmp.ge.f32.partialorder %v2578_v13, 0.0  ;;  %vm2621_vm5 = vcmp.ge.f32.partialorder %v2579_v40, 0.0 }
 0xf49   :  { %v2582_v30 = vmul.f32 0.3275911, %v2580_v25  ;;  %v2583_v31 = vmul.f32 0.3275911, %v2581_v27  ;;  %v2608_v22 = vsub.f32 0.0, %v2580_v25  ;;  %v2609_v39 = vsub.f32 0.0, %v2581_v27 }
 0xf4b   :  { %v2584_v33 = vadd.f32 1.0, %v2582_v30  ;;  %v2585_v15 = vadd.f32 1.0, %v2583_v31  ;;  %v2610_v11 = vmul.f32 %v2608_v22, %v2580_v25  ;;  %v2611_v52 = vmul.f32 %v2609_v39, %v2581_v27 }
 0xf4c   :  { %v2626_v30 = vmul.f32 0.5, %v2576_v21 }
 0xf4d   :  { %9183 = vrcp.f32 %v2584_v33  ;;  %v2612_v56 = vmul.f32 1.442695, %v2610_v11  ;;  %v2614_v51 = vmul.f32 1.442695, %v2611_v52  ;;  %v2627_v33 = vmul.f32 0.5, %v2577_v36 }
 0xf4e   :  { %9185 = vrcp.f32 %v2585_v15 }
 0xf4f   :  { %9187 = vpow2.f32 %v2612_v56 }
 0xf50   :  { %9189 = vpow2.f32 %v2614_v51 }
 0xf57   :  { %v9184_v44 = vpop.eup %9183 }
 0xf58   :  { %v9186_v54 = vpop.eup %9185  ;;  %v2590_v49 = vmul.f32 1.0614054, %v9184_v44 }
 0xf59   :  { %v2591_v14 = vmul.f32 1.0614054, %v9186_v54  ;;  %v9188_v5 = vpop.eup %9187 }
 0xf5a   :  { %v2592_v8 = vadd.f32 -1.4531521, %v2590_v49  ;;  %v9190_v38 = vpop.eup %9189 }
 0xf5b   :  { %v2593_v55 = vadd.f32 -1.4531521, %v2591_v14  ;;  %v2649_v14 = vrot.slane %v10396_v10, %v10013_v41 }
 0xf5c   :  { %v2594_v58 = vmul.f32 %v9184_v44, %v2592_v8 }
 0xf5d   :  { %v2595_v61 = vmul.f32 %v9186_v54, %v2593_v55 }
 0xf5e   :  { %v2596_v16 = vadd.f32 1.4214138, %v2594_v58 }
 0xf5f   :  { %v2597_v59 = vadd.f32 1.4214138, %v2595_v61 }
 0xf60   :  { %v2598_v57 = vmul.f32 %v9184_v44, %v2596_v16 }
 0xf61   :  { %v2599_v53 = vmul.f32 %v9186_v54, %v2597_v59 }
 0xf62   :  { %v2600_v62 = vadd.f32 -0.28449672, %v2598_v57 }
 0xf63   :  { %v2601_v63 = vadd.f32 -0.28449672, %v2599_v53 }
 0xf64   :  { %v2602_v47 = vmul.f32 %v9184_v44, %v2600_v62 }
 0xf65   :  { %v2603_v45 = vmul.f32 %v9186_v54, %v2601_v63 }
 0xf66   :  { %v2604_v42 = vadd.f32 0.2548296, %v2602_v47 }
 0xf67   :  { %v2605_v46 = vadd.f32 0.2548296, %v2603_v45 }
 0xf68   :  { %v2606_v1 = vmul.f32 %v9184_v44, %v2604_v42 }
 0xf69   :  { %v2607_v7 = vmul.f32 %v9186_v54, %v2605_v46 }
 0xf6a   :  { %v2616_v20 = vmul.f32 %v9188_v5, %v2606_v1 }
 0xf6b   :  { %v2617_v26 = vmul.f32 %v9190_v38, %v2607_v7 }
 0xf6c   :  { %v2618_v9 = vsub.f32 1.0, %v2616_v20 }
 0xf6d   :  { %v2619_v12 = vsub.f32 1.0, %v2617_v26 }
 0xf6e   :  { %v2622_v17 = vsub.f32 0.0, %v2618_v9 }
 0xf6f   :  { %v2623_v18 = vsub.f32 0.0, %v2619_v12 }
 0xf70   :  { %v2624_v25 = vsel %vm2620_vm4, %v2618_v9, %v2622_v17 }
 0xf71   :  { %v2625_v27 = vsel %vm2621_vm5, %v2619_v12, %v2623_v18  ;;  %v2628_v31 = vadd.f32 1.0, %v2624_v25  ;;  %v2263_v25 = vld [vmem:[#allocation13] sm:$0xff] }
 0xf72   :  { %v2629_v15 = vadd.f32 1.0, %v2625_v27  ;;  %v2264_v27 = vld [vmem:[#allocation13 + $0x8] sm:$0xff] }
 0xf73   :  { %v2630_v22 = vmul.f32 %v2628_v31, %v2626_v30  ;;  %v8594_v30 = vpack.c.bf16 %v2264_v27, %v2263_v25 }
 0xf74   :  { %v2631_v39 = vmul.f32 %v2629_v15, %v2627_v33 }
 0xf75   :  { %v2640_v44 = vrot.slane %v2630_v22, 6  ;;  %v2634_v11 = vrot.slane %v2630_v22, 2 }
 0xf76   :  { %v2635_v54 = vrot.slane %v2631_v39, 2  ;;  %v2641_v49 = vrot.slane %v2631_v39, 6 }
 0xf77   :  { %7570 = vmatprep.mubr.msk.f32.mxu0 %vm10175_vm11, %v2640_v44 }
 0xf78   :  { %v2636_v52 = vsel %vm724_vm3, %v2634_v11, %v2635_v54  ;;  %v2642_v13 = vsel %vm720_vm1, %v2640_v44, %v2641_v49 }
 0xf79   :  { %2714 = vmatprep.mubr.f32.mxu1 %v2636_v52  ;;  %7571 = vmatmul.mubr.f32.vlgmr.msra.gmra.mrb[24].mxu0 %v2642_v13 }
 0xf7a   :  { %2715 = vmatmul.mubr.f32.vlgmr.msra.gmra.mrb[20].mxu1 %v2630_v22  ;;  %8590 = vmatpush3.bf16.msra.mxu0 %v10411_v48 }
 0xf7b   :  { %6456 = vmatprep.mubr.msk.f32.mxu1 %vm724_vm3, %v2635_v54  ;;  %8566 = vmatpush3.bf16.msra.mxu1 %v10335_v3 }
 0xf7c   :  { %8567 = vmatprep.subr.bf16.mxu1 %v9699_v37  ;;  %8591 = vmatprep.subr.bf16.mxu0 %v9699_v37 }
 0xf7d   :  { %7616 = vmatprep.mubr.msk.f32.mxu0 %vm9700_vm6, %v9698_v0 }
 0xf7e   :  { %2720 = vmatmul.mubr.f32.gmra.mrb[22].mxu1 %v2631_v39  ;;  %8593 = vmatpush3.bf16.msra.mxu0 %v10415_v6 }
 0xf7f   :  { %8569 = vmatpush3.bf16.msra.mxu1 %v10357_v23  ;;  %7605 = vmatprep.mubr.msk.f32.mxu1 %vm9700_vm6, %v9698_v0 }
 0xf80   :  { %8570 = vmatprep.subr.bf16.mxu1 %v9699_v37  ;;  %8595 = vmatprep.subr.bf16.mxu0 %v8594_v30 }
 0xf83   :  { %8572 = vmatpush3.bf16.msra.mxu1 %v10363_v29 }
 0xf84   :  { %8573 = vmatprep.subr.bf16.mxu1 %v9699_v37 }
 0xf87   :  { %8575 = vmatpush3.bf16.msra.mxu1 %v10369_v32 }
 0xf88   :  { %8576 = vmatprep.subr.bf16.mxu1 %v9699_v37 }
 0xf8b   :  { %8578 = vmatpush3.bf16.msra.mxu1 %v10375_v35 }
 0xf8c   :  { %8579 = vmatprep.subr.bf16.mxu1 %v9699_v37 }
 0xf8f   :  { %8581 = vmatpush3.bf16.msra.mxu1 %v10381_v24 }
 0xf90   :  { %8582 = vmatprep.subr.bf16.mxu1 %v9699_v37 }
 0xf93   :  { %8584 = vmatpush3.bf16.msra.mxu1 %v10387_v34 }
 0xf94   :  { %8585 = vmatprep.subr.bf16.mxu1 %v9699_v37 }
 0xf97   :  { %8587 = vmatpush3.bf16.msra.mxu1 %v10392_v28 }
 0xf98   :  { %8626 = vmatprep.subr.bf16.mxu1 %v9699_v37 }
0x104c   :  { %v7572_v21 = vpop.f32.mrb[24].mxu0 }
0x104d   :  { %v6796_v36 = vpop.f32.mrb[20].mxu1  ;;  %v2791_v40 = vpop.f32.mrb[25].mxu0 }
0x104e   :  { %v6797_v8 = vpop.f32.mrb[21].mxu1 }
0x104f   :  { %v6798_v55 = vadd.f32 %v6797_v8, %v6796_v36  ;;  %v2266_v8 = vld [vmem:[#allocation13 + $0x18] sm:$0xff] }
0x1051   :  { %v2717_v56 = vadd.f32 %v6798_v55, %v2649_v14  ;;  %v6799_v58 = vpop.f32.mrb[22].mxu1 }
0x1052   :  { %v6800_v51 = vpop.f32.mrb[23].mxu1 }
0x1053   :  { %v10508_v61 = vadd.f32 %v2791_v40, %v2717_v56  ;;  %v6801_v16 = vadd.f32 %v6800_v51, %v6799_v58  ;;  %v2267_v51 = vld [vmem:[#allocation13 + $0x20] sm:$0xff] }
0x1055   :  { %v2722_v59 = vadd.f32 %v6801_v16, %v2649_v14  ;;  %v2807_v53 = vmul.f32 %v10508_v61, %v10508_v61  ;;  %v2265_v14 = vld [vmem:[#allocation13 + $0x10] sm:$0xff]  ;;  %v2268_v16 = vld [vmem:[#allocation13 + $0x28] sm:$0xff] }
0x1056   :  { %v8598_v56 = vpack.c.bf16 %v2266_v8, %v2265_v14 }
0x1057   :  { %v10510_v57 = vadd.f32 %v7572_v21, %v2722_v59  ;;  %v8602_v59 = vpack.c.bf16 %v2268_v16, %v2267_v51 }
0x1059   :  { %v2800_v62 = vadd.f32 %v10510_v57, %v10508_v61  ;;  %v2808_v63 = vmul.f32 %v10510_v57, %v10510_v57 }
0x105b   :  { %v2801_v47 = vrot.slane %v2800_v62, 4  ;;  %v2809_v45 = vadd.f32 %v2808_v63, %v2807_v53  ;;  %v2269_v53 = vld [vmem:[#allocation13 + $0x30] sm:$0xff] }
0x105d   :  { %v2802_v42 = vadd.f32 %v2801_v47, %v2800_v62  ;;  %v2810_v46 = vrot.slane %v2809_v45, 4  ;;  %v2270_v62 = vld [vmem:[#allocation13 + $0x38] sm:$0xff]  ;;  %v2271_v47 = vld [vmem:[#allocation13 + $0x40] sm:$0xff] }
0x105e   :  { %v8606_v63 = vpack.c.bf16 %v2270_v62, %v2269_v53 }
0x105f   :  { %v2803_v1 = vrot.slane %v2802_v42, 2  ;;  %v2811_v5 = vadd.f32 %v2810_v46, %v2809_v45  ;;  %v2272_v45 = vld [vmem:[#allocation13 + $0x48] sm:$0xff]  ;;  %v2273_v46 = vld [vmem:[#allocation13 + $0x50] sm:$0xff] }
0x1061   :  { %v2804_v7 = vadd.f32 %v2803_v1, %v2802_v42  ;;  %v2812_v38 = vrot.slane %v2811_v5, 2  ;;  %v8610_v42 = vpack.c.bf16 %v2272_v45, %v2271_v47  ;;  %v2274_v1 = vld [vmem:[#allocation13 + $0x58] sm:$0xff] }
0x1063   :  { %v2805_v20 = vrot.slane %v2804_v7, 1  ;;  %v2813_v26 = vadd.f32 %v2812_v38, %v2811_v5  ;;  %v8614_v5 = vpack.c.bf16 %v2274_v1, %v2273_v46  ;;  %v2276_v38 = vld [vmem:[#allocation13 + $0x68] sm:$0xff] }
0x1065   :  { %v2814_v9 = vrot.slane %v2813_v26, 1  ;;  %v2806_v12 = vadd.f32 %v2805_v20, %v2804_v7  ;;  %v2275_v7 = vld [vmem:[#allocation13 + $0x60] sm:$0xff]  ;;  %v2277_v20 = vld [vmem:[#allocation13 + $0x70] sm:$0xff] }
0x1067   :  { %v2815_v17 = vadd.f32 %v2814_v9, %v2813_v26  ;;  %v2278_v26 = vld [vmem:[#allocation13 + $0x78] sm:$0xff] }
0x1068   :  { %v8622_v9 = vpack.c.bf16 %v2278_v26, %v2277_v20 }
0x1069   :  { %v2816_v18 = vsel %vm1008_vm7, %v2806_v12, %v2815_v17 }
0x106a   :  { %7606 = vmatmul.mubr.f32.vlgmr.msra.gmra.mrb[24].mxu1 %v2816_v18  ;;  %v2999_v18 = vrot.slane %v10396_v10, %v10020_v50 }
0x106b   :  { %8628 = vmatpush3.bf16.msra.mxu1 %v10335_v3  ;;  %7686 = vmatprep.mubr.msk.f32.mxu1 %vm9700_vm6, %v9698_v0 }
0x106c   :  { %8629 = vmatprep.subr.bf16.mxu1 %v9699_v37 }
0x106f   :  { %8631 = vmatpush3.bf16.msra.mxu1 %v10357_v23 }
0x1070   :  { %8632 = vmatprep.subr.bf16.mxu1 %v9699_v37 }
0x1073   :  { %8634 = vmatpush3.bf16.msra.mxu1 %v10363_v29 }
0x1074   :  { %8635 = vmatprep.subr.bf16.mxu1 %v9699_v37 }
0x1077   :  { %8637 = vmatpush3.bf16.msra.mxu1 %v10369_v32 }
0x1078   :  { %8638 = vmatprep.subr.bf16.mxu1 %v9699_v37 }
0x107b   :  { %8640 = vmatpush3.bf16.msra.mxu1 %v10375_v35 }
0x107c   :  { %8641 = vmatprep.subr.bf16.mxu1 %v9699_v37 }
0x107f   :  { %8643 = vmatpush3.bf16.msra.mxu1 %v10381_v24 }
0x1080   :  { %8644 = vmatprep.subr.bf16.mxu1 %v9699_v37 }
0x1083   :  { %8646 = vmatpush3.bf16.msra.mxu1 %v10387_v34 }
0x1084   :  { %8647 = vmatprep.subr.bf16.mxu1 %v9699_v37 }
0x1087   :  { %8649 = vmatpush3.bf16.msra.mxu1 %v10392_v28 }
0x1088   :  { %8680 = vmatprep.subr.bf16.mxu1 %v9699_v37 }
0x113d   :  { %v2883_v31 = vpop.f32.mrb[24].mxu1 }
0x113e   :  { %v2887_v33 = vmul.f32 0.015625, %v2883_v31  ;;  %v7607_v15 = vpop.f32.mrb[25].mxu1 }
0x1140   :  { %v2888_v22 = vmul.f32 %v2887_v33, %v2887_v33 }
0x1142   :  { %v2890_v39 = vrot.slane %v2888_v22, 7 }
0x1144   :  { %v2892_v44 = vsub.f32 %v2887_v33, %v2890_v39 }
0x1146   :  { %v2893_v11 = vadd.f32 1e-05, %v2892_v44 }
0x1148   :  { %9191 = vrsqrt.f32 %v2893_v11 }
0x1152   :  { %v9192_v54 = vpop.eup %9191 }
0x1153   :  { %v2896_v49 = vrot.slane %v9192_v54, 7 }
0x1155   :  { %v2898_v52 = vmul.f32 %v2896_v49, %v10418_v19 }
0x1157   :  { %v2900_v13 = vrot.slane %v2898_v52, 2 }
0x1159   :  { %v2902_v21 = vmul.f32 %v2900_v13, %v2887_v33 }
0x115b   :  { %v2904_v36 = vrot.slane %v2902_v21, 5 }
0x115d   :  { %v2906_v40 = vsub.f32 %v10418_v19, %v2904_v36 }
0x115f   :  { %v2908_v55 = vrot.slane %v2906_v40, 2 }
0x1161   :  { %v2910_v58 = vsel %vm1008_vm7, %v2900_v13, %v2908_v55 }
0x1162   :  { %7617 = vmatmul.mubr.msk.f32.vlgmr.msra.gmra.mrb[26].mxu0 %vm414_vm0, %v2910_v58 }
0x1163   :  { %8597 = vmatpush3.bf16.msra.mxu0 %v8594_v30  ;;  %7651 = vmatprep.mubr.f32.mxu0 %v10343_v2  ;;  %v8618_v2 = vpack.c.bf16 %v2276_v38, %v2275_v7 }
0x1164   :  { %8599 = vmatprep.subr.bf16.mxu0 %v8598_v56 }
0x1167   :  { %8601 = vmatpush3.bf16.msra.mxu0 %v8598_v56 }
0x1168   :  { %8603 = vmatprep.subr.bf16.mxu0 %v8602_v59 }
0x116b   :  { %8605 = vmatpush3.bf16.msra.mxu0 %v8602_v59 }
0x116c   :  { %8607 = vmatprep.subr.bf16.mxu0 %v8606_v63 }
0x116f   :  { %8609 = vmatpush3.bf16.msra.mxu0 %v8606_v63 }
0x1170   :  { %8611 = vmatprep.subr.bf16.mxu0 %v8610_v42 }
0x1173   :  { %8613 = vmatpush3.bf16.msra.mxu0 %v8610_v42 }
0x1174   :  { %8615 = vmatprep.subr.bf16.mxu0 %v8614_v5 }
0x1177   :  { %8617 = vmatpush3.bf16.msra.mxu0 %v8614_v5 }
0x1178   :  { %8619 = vmatprep.subr.bf16.mxu0 %v8618_v2 }
0x117b   :  { %8621 = vmatpush3.bf16.msra.mxu0 %v8618_v2 }
0x117c   :  { %8623 = vmatprep.subr.bf16.mxu0 %v8622_v9 }
0x117f   :  { %8625 = vmatpush3.bf16.msra.mxu0 %v8622_v9 }
0x1180   :  { %8650 = vmatprep.subr.bf16.mxu0 %v9699_v37 }
0x1182   :  { %7652 = vmatmul.mubr.f32.vlgmr.msra.gmra.mrb[28].mxu0 %v10345_v4 }
0x1183   :  { %8652 = vmatpush3.bf16.msra.mxu0 %v10411_v48  ;;  %7697 = vmatprep.mubr.msk.f32.mxu0 %vm9700_vm6, %v9698_v0 }
0x1184   :  { %8653 = vmatprep.subr.bf16.mxu0 %v9699_v37 }
0x1187   :  { %8655 = vmatpush3.bf16.msra.mxu0 %v10415_v6 }
0x1188   :  { %8656 = vmatprep.subr.bf16.mxu0 %v9699_v37 }
0x1235   :  { %v10550_v12 = vpop.f32.mrb[26].mxu0 }
0x1236   :  { %v7618_v17 = vpop.f32.mrb[27].mxu0 }
0x1255   :  { %v7653_v25 = vpop.f32.mrb[28].mxu0 }
0x1256   :  { %v10554_v27 = vadd.f32 %v7653_v25, %v2999_v18  ;;  %v3066_v4 = vpop.f32.mrb[29].mxu0 }
0x1257   :  { %v10556_v30 = vadd.f32 %v3066_v4, %v2999_v18 }
0x1258   :  { %v3083_v31 = vmul.f32 %v10554_v27, %v10554_v27 }
0x1259   :  { %v3075_v33 = vadd.f32 %v10554_v27, %v10556_v30  ;;  %v3082_v15 = vmul.f32 %v10556_v30, %v10556_v30 }
0x125b   :  { %v3076_v22 = vrot.slane %v3075_v33, 4  ;;  %v3084_v39 = vadd.f32 %v3083_v31, %v3082_v15 }
0x125d   :  { %v3077_v44 = vadd.f32 %v3076_v22, %v3075_v33  ;;  %v3085_v11 = vrot.slane %v3084_v39, 4 }
0x125f   :  { %v3078_v10 = vrot.slane %v3077_v44, 2  ;;  %v3086_v54 = vadd.f32 %v3085_v11, %v3084_v39 }
0x1261   :  { %v3079_v49 = vadd.f32 %v3078_v10, %v3077_v44  ;;  %v3087_v52 = vrot.slane %v3086_v54, 2 }
0x1263   :  { %v3080_v13 = vrot.slane %v3079_v49, 1  ;;  %v3088_v21 = vadd.f32 %v3087_v52, %v3086_v54 }
0x1265   :  { %v3089_v36 = vrot.slane %v3088_v21, 1  ;;  %v3081_v40 = vadd.f32 %v3080_v13, %v3079_v49 }
0x1267   :  { %v3090_v14 = vadd.f32 %v3089_v36, %v3088_v21 }
0x1269   :  { %v3091_v8 = vsel %vm1008_vm7, %v3081_v40, %v3090_v14 }
0x126a   :  { %7687 = vmatmul.mubr.f32.vlgmr.msra.gmra.mrb[26].mxu1 %v3091_v8 }
0x126b   :  { %8682 = vmatpush3.bf16.msra.mxu1 %v10411_v48  ;;  %7743 = vmatprep.mubr.msk.f32.mxu1 %vm9700_vm6, %v9698_v0 }
0x126c   :  { %8683 = vmatprep.subr.bf16.mxu1 %v9699_v37 }
0x126f   :  { %8685 = vmatpush3.bf16.msra.mxu1 %v10415_v6 }
0x133d   :  { %v3158_v55 = vpop.f32.mrb[26].mxu1 }
0x133e   :  { %v3162_v56 = vmul.f32 0.015625, %v3158_v55  ;;  %v7688_v58 = vpop.f32.mrb[27].mxu1 }
0x1340   :  { %v3163_v51 = vmul.f32 %v3162_v56, %v3162_v56 }
0x1342   :  { %v3165_v16 = vrot.slane %v3163_v51, 7 }
0x1344   :  { %v3167_v59 = vsub.f32 %v3162_v56, %v3165_v16 }
0x1346   :  { %v3168_v53 = vadd.f32 1e-05, %v3167_v59 }
0x1348   :  { %9193 = vrsqrt.f32 %v3168_v53 }
0x1352   :  { %v9194_v62 = vpop.eup %9193 }
0x1353   :  { %v3171_v63 = vrot.slane %v9194_v62, 5 }
0x1355   :  { %v3173_v47 = vmul.f32 %v3171_v63, %v10418_v19 }
0x1357   :  { %v3175_v48 = vrot.slane %v3173_v47, 4 }
0x1359   :  { %v3177_v45 = vmul.f32 %v3175_v48, %v3162_v56 }
0x135b   :  { %v3179_v42 = vrot.slane %v3177_v45, 3 }
0x135d   :  { %v3181_v46 = vsub.f32 %v10418_v19, %v3179_v42 }
0x135f   :  { %v3183_v1 = vrot.slane %v3181_v46, 4 }
0x1361   :  { %v3185_v6 = vsel %vm1008_vm7, %v3175_v48, %v3183_v1 }
0x1362   :  { %7698 = vmatmul.mubr.msk.f32.vlgmr.msra.gmra.mrb[30].mxu0 %vm414_vm0, %v3185_v6 }
0x1363   :  { %8658 = vmatpush3.bf16.msra.mxu0 %v10335_v3  ;;  %7732 = vmatprep.mubr.msk.f32.mxu0 %vm9700_vm6, %v9698_v0  ;;  %v2987_v3 = vrot.slane %v10550_v12, %v10016_v43 }
0x1364   :  { %8659 = vmatprep.subr.bf16.mxu0 %v9699_v37 }
0x1367   :  { %8661 = vmatpush3.bf16.msra.mxu0 %v10357_v23 }
0x1368   :  { %8662 = vmatprep.subr.bf16.mxu0 %v9699_v37 }
0x136b   :  { %8664 = vmatpush3.bf16.msra.mxu0 %v10363_v29  ;;  %v2988_v29 = vmul.f32 %v2987_v3, %v10508_v61 }
0x136c   :  { %8665 = vmatprep.subr.bf16.mxu0 %v9699_v37 }
0x136f   :  { %8667 = vmatpush3.bf16.msra.mxu0 %v10369_v32  ;;  %v2989_v32 = vmul.f32 %v2987_v3, %v10510_v57 }
0x1370   :  { %8668 = vmatprep.subr.bf16.mxu0 %v9699_v37 }
0x1373   :  { %8670 = vmatpush3.bf16.msra.mxu0 %v10375_v35 }
0x1374   :  { %8671 = vmatprep.subr.bf16.mxu0 %v9699_v37 }
0x1377   :  { %8673 = vmatpush3.bf16.msra.mxu0 %v10381_v24 }
0x1378   :  { %8674 = vmatprep.subr.bf16.mxu0 %v9699_v37 }
0x137b   :  { %8676 = vmatpush3.bf16.msra.mxu0 %v10387_v34  ;;  %v2993_v34 = vrot.slane %v10550_v12, %v10013_v41 }
0x137c   :  { %8677 = vmatprep.subr.bf16.mxu0 %v9699_v37 }
0x137d   :  { %v2994_v38 = vadd.f32 %v2993_v34, %v2988_v29  ;;  %v2995_v2 = vadd.f32 %v2993_v34, %v2989_v32 }
0x137f   :  { %8679 = vmatpush3.bf16.msra.mxu0 %v10392_v28 }
0x1380   :  { %8718 = vmatprep.subr.bf16.mxu0 %v9699_v37 }
0x1435   :  { %v3255_v23 = vpop.f32.mrb[30].mxu0 }
0x1436   :  { %v3262_v35 = vrot.slane %v3255_v23, %v10016_v43  ;;  %v7699_v24 = vpop.f32.mrb[31].mxu0  ;;  %v3268_v7 = vrot.slane %v3255_v23, %v10013_v41 }
0x1438   :  { %v3263_v5 = vmul.f32 %v3262_v35, %v10556_v30  ;;  %v3264_v28 = vmul.f32 %v3262_v35, %v10554_v27 }
0x143a   :  { %v3269_v20 = vadd.f32 %v3268_v7, %v3263_v5  ;;  %v3270_v26 = vadd.f32 %v3268_v7, %v3264_v28 }
0x143c   :  { %v3271_v9 = vadd.f32 %v3269_v20, %v2994_v38  ;;  %v3272_v61 = vadd.f32 %v3270_v26, %v2995_v2 }
0x143e   :  { %v3273_v17 = vmul.f32 0.70710677, %v3271_v9  ;;  %v3274_v57 = vmul.f32 0.70710677, %v3272_v61  ;;  %v3321_v32 = vmul.f32 0.5, %v3271_v9  ;;  %v3322_v24 = vmul.f32 0.5, %v3272_v61 }
0x1440   :  { %v3275_v18 = vand.u32 2147483647, %v3273_v17  ;;  %v3276_v25 = vand.u32 2147483647, %v3274_v57  ;;  %vm3315_vm9 = vcmp.ge.f32.partialorder %v3273_v17, 0.0  ;;  %vm3316_vm10 = vcmp.ge.f32.partialorder %v3274_v57, 0.0 }
0x1442   :  { %v3277_v4 = vmul.f32 0.3275911, %v3275_v18  ;;  %v3278_v31 = vmul.f32 0.3275911, %v3276_v25  ;;  %v3303_v30 = vsub.f32 0.0, %v3275_v18  ;;  %v3304_v27 = vsub.f32 0.0, %v3276_v25 }
0x1444   :  { %v3279_v33 = vadd.f32 1.0, %v3277_v4  ;;  %v3280_v12 = vadd.f32 1.0, %v3278_v31  ;;  %v3305_v22 = vmul.f32 %v3303_v30, %v3275_v18  ;;  %v3306_v11 = vmul.f32 %v3304_v27, %v3276_v25 }
0x1446   :  { %9195 = vrcp.f32 %v3279_v33  ;;  %v3307_v52 = vmul.f32 1.442695, %v3305_v22  ;;  %v3309_v21 = vmul.f32 1.442695, %v3306_v11 }
0x1447   :  { %9197 = vrcp.f32 %v3280_v12 }
0x1448   :  { %9199 = vpow2.f32 %v3307_v52 }
0x1449   :  { %9201 = vpow2.f32 %v3309_v21 }
0x1450   :  { %v9196_v15 = vpop.eup %9195 }
0x1451   :  { %v9198_v39 = vpop.eup %9197  ;;  %v3285_v44 = vmul.f32 1.0614054, %v9196_v15 }
0x1452   :  { %v3286_v10 = vmul.f32 1.0614054, %v9198_v39  ;;  %v9200_v63 = vpop.eup %9199 }
0x1453   :  { %v3287_v54 = vadd.f32 -1.4531521, %v3285_v44  ;;  %v9202_v48 = vpop.eup %9201 }
0x1454   :  { %v3288_v49 = vadd.f32 -1.4531521, %v3286_v10 }
0x1455   :  { %v3289_v13 = vmul.f32 %v9196_v15, %v3287_v54 }
0x1456   :  { %v3290_v36 = vmul.f32 %v9198_v39, %v3288_v49 }
0x1457   :  { %v3291_v40 = vadd.f32 1.4214138, %v3289_v13 }
0x1458   :  { %v3292_v14 = vadd.f32 1.4214138, %v3290_v36 }
0x1459   :  { %v3293_v8 = vmul.f32 %v9196_v15, %v3291_v40 }
0x145a   :  { %v3294_v55 = vmul.f32 %v9198_v39, %v3292_v14 }
0x145b   :  { %v3295_v56 = vadd.f32 -0.28449672, %v3293_v8 }
0x145c   :  { %v3296_v58 = vadd.f32 -0.28449672, %v3294_v55 }
0x145d   :  { %v3297_v51 = vmul.f32 %v9196_v15, %v3295_v56  ;;  %v3593_v56 = vld [vmem:[#allocation19 + $0x80] sm:$0xff] }
0x145e   :  { %v3298_v16 = vmul.f32 %v9198_v39, %v3296_v58  ;;  %v3594_v58 = vld [vmem:[#allocation19 + $0x88] sm:$0xff] }
0x145f   :  { %v3299_v59 = vadd.f32 0.2548296, %v3297_v51  ;;  %v8686_v51 = vpack.c.bf16 %v3594_v58, %v3593_v56 }
0x1460   :  { %v3300_v53 = vadd.f32 0.2548296, %v3298_v16  ;;  %v3577_v16 = vld [vmem:[#allocation19] sm:$0xff] }
0x1461   :  { %v3301_v62 = vmul.f32 %v9196_v15, %v3299_v59  ;;  %v3578_v59 = vld [vmem:[#allocation19 + $0x8] sm:$0xff]  ;;  %8687 = vmatprep.subr.bf16.mxu1 %v8686_v51 }
0x1462   :  { %v3302_v47 = vmul.f32 %v9198_v39, %v3300_v53  ;;  %v8688_v53 = vpack.c.bf16 %v3578_v59, %v3577_v16 }
0x1463   :  { %v3311_v45 = vmul.f32 %v9200_v63, %v3301_v62  ;;  %v3595_v62 = vld [vmem:[#allocation19 + $0x90] sm:$0xff]  ;;  %v3596_v63 = vld [vmem:[#allocation19 + $0x98] sm:$0xff] }
0x1464   :  { %v3312_v42 = vmul.f32 %v9202_v48, %v3302_v47  ;;  %v8690_v47 = vpack.c.bf16 %v3596_v63, %v3595_v62  ;;  %v3579_v48 = vld [vmem:[#allocation19 + $0x10] sm:$0xff] }
0x1465   :  { %v3313_v46 = vsub.f32 1.0, %v3311_v45  ;;  %v3580_v45 = vld [vmem:[#allocation19 + $0x18] sm:$0xff] }
0x1466   :  { %v3314_v1 = vsub.f32 1.0, %v3312_v42  ;;  %v8692_v42 = vpack.c.bf16 %v3580_v45, %v3579_v48 }
0x1467   :  { %v3317_v6 = vsub.f32 0.0, %v3313_v46 }
0x1468   :  { %v3318_v3 = vsub.f32 0.0, %v3314_v1 }
0x1469   :  { %v3319_v23 = vsel %vm3315_vm9, %v3313_v46, %v3317_v6  ;;  %v3598_v46 = vld [vmem:[#allocation19 + $0xa8] sm:$0xff]  ;;  %v3581_v6 = vld [vmem:[#allocation19 + $0x20] sm:$0xff] }
0x146a   :  { %v3320_v29 = vsel %vm3316_vm10, %v3314_v1, %v3318_v3  ;;  %v3323_v35 = vadd.f32 1.0, %v3319_v23  ;;  %v3582_v3 = vld [vmem:[#allocation19 + $0x28] sm:$0xff]  ;;  %vm5252_vm10 = vcmask 31744  }
0x146b   :  { %v3324_v34 = vadd.f32 1.0, %v3320_v29  ;;  %v8696_v23 = vpack.c.bf16 %v3582_v3, %v3581_v6  ;;  %v3599_v29 = vld [vmem:[#allocation19 + $0xb0] sm:$0xff] }
0x146c   :  { %v10602_v5 = vmul.f32 %v3323_v35, %v3321_v32  ;;  %v3600_v32 = vld [vmem:[#allocation19 + $0xb8] sm:$0xff] }
0x146d   :  { %v10604_v28 = vmul.f32 %v3324_v34, %v3322_v24  ;;  %v8698_v35 = vpack.c.bf16 %v3600_v32, %v3599_v29  ;;  %v3583_v24 = vld [vmem:[#allocation19 + $0x30] sm:$0xff]  ;;  %v3584_v34 = vld [vmem:[#allocation19 + $0x38] sm:$0xff] }
0x146e   :  { %v3334_v7 = vmul.f32 %v10602_v5, %v10602_v5 }
0x146f   :  { %v3335_v38 = vmul.f32 %v10604_v28, %v10604_v28  ;;  %v3327_v2 = vadd.f32 %v10604_v28, %v10602_v5 }
0x1471   :  { %v3328_v20 = vrot.slane %v3327_v2, 4  ;;  %v3336_v26 = vadd.f32 %v3335_v38, %v3334_v7  ;;  %v8700_v7 = vpack.c.bf16 %v3584_v34, %v3583_v24  ;;  %v3601_v38 = vld [vmem:[#allocation19 + $0xc0] sm:$0xff] }
0x1473   :  { %v3329_v17 = vadd.f32 %v3328_v20, %v3327_v2  ;;  %v3337_v9 = vrot.slane %v3336_v26, 4  ;;  %v3602_v2 = vld [vmem:[#allocation19 + $0xc8] sm:$0xff] }
0x1474   :  { %v8702_v20 = vpack.c.bf16 %v3602_v2, %v3601_v38 }
0x1475   :  { %v3330_v57 = vrot.slane %v3329_v17, 2  ;;  %v3338_v61 = vadd.f32 %v3337_v9, %v3336_v26  ;;  %v3585_v26 = vld [vmem:[#allocation19 + $0x40] sm:$0xff] }
0x1477   :  { %v3331_v18 = vadd.f32 %v3330_v57, %v3329_v17  ;;  %v3339_v25 = vrot.slane %v3338_v61, 2  ;;  %v3586_v17 = vld [vmem:[#allocation19 + $0x48] sm:$0xff]  ;;  %v3603_v57 = vld [vmem:[#allocation19 + $0xd0] sm:$0xff] }
0x1478   :  { %v8704_v9 = vpack.c.bf16 %v3586_v17, %v3585_v26 }
0x1479   :  { %v3332_v4 = vrot.slane %v3331_v18, 1  ;;  %v3340_v31 = vadd.f32 %v3339_v25, %v3338_v61  ;;  %v3604_v61 = vld [vmem:[#allocation19 + $0xd8] sm:$0xff]  ;;  %v3587_v25 = vld [vmem:[#allocation19 + $0x50] sm:$0xff] }
0x147b   :  { %v3341_v33 = vrot.slane %v3340_v31, 1  ;;  %v3333_v12 = vadd.f32 %v3332_v4, %v3331_v18  ;;  %v8706_v18 = vpack.c.bf16 %v3604_v61, %v3603_v57  ;;  %v3588_v4 = vld [vmem:[#allocation19 + $0x58] sm:$0xff] }
0x147d   :  { %v3342_v30 = vadd.f32 %v3341_v33, %v3340_v31  ;;  %v8708_v31 = vpack.c.bf16 %v3588_v4, %v3587_v25  ;;  %v3605_v33 = vld [vmem:[#allocation19 + $0xe0] sm:$0xff] }
0x147f   :  { %v3343_v27 = vsel %vm1008_vm7, %v3333_v12, %v3342_v30  ;;  %v3606_v12 = vld [vmem:[#allocation19 + $0xe8] sm:$0xff] }
0x1480   :  { %7733 = vmatmul.mubr.f32.vlgmr.msra.gmra.mrb[32].mxu0 %v3343_v27  ;;  %v8710_v30 = vpack.c.bf16 %v3606_v12, %v3605_v33  ;;  %v3589_v27 = vld [vmem:[#allocation19 + $0x60] sm:$0xff] }
0x1481   :  { %7778 = vmatprep.mubr.msk.f32.mxu0 %vm9700_vm6, %v9698_v0 }
0x1553   :  { %v3410_v15 = vpop.f32.mrb[32].mxu0 }
0x1554   :  { %v3414_v22 = vmul.f32 0.015625, %v3410_v15  ;;  %v7734_v39 = vpop.f32.mrb[33].mxu0  ;;  %v3590_v15 = vld [vmem:[#allocation19 + $0x68] sm:$0xff] }
0x1555   :  { %v3607_v39 = vld [vmem:[#allocation19 + $0xf0] sm:$0xff] }
0x1556   :  { %v3415_v44 = vmul.f32 %v3414_v22, %v3414_v22 }
0x1558   :  { %v3417_v11 = vrot.slane %v3415_v44, 7  ;;  %v3608_v44 = vld [vmem:[#allocation19 + $0xf8] sm:$0xff] }
0x155a   :  { %v3419_v10 = vsub.f32 %v3414_v22, %v3417_v11  ;;  %v8714_v11 = vpack.c.bf16 %v3608_v44, %v3607_v39 }
0x155c   :  { %v3420_v54 = vadd.f32 1e-05, %v3419_v10  ;;  %v3591_v10 = vld [vmem:[#allocation19 + $0x70] sm:$0xff] }
0x155e   :  { %9203 = vrsqrt.f32 %v3420_v54  ;;  %v3592_v54 = vld [vmem:[#allocation19 + $0x78] sm:$0xff] }
0x1568   :  { %v9204_v49 = vpop.eup %9203 }
0x1569   :  { %v3423_v52 = vrot.slane %v9204_v49, 3  ;;  %v8716_v49 = vpack.c.bf16 %v3592_v54, %v3591_v10 }
0x156b   :  { %v3425_v13 = vmul.f32 %v3423_v52, %v10418_v19  ;;  %v3673_v52 = vld [vmem:[%s11237_s1] sm:$0xff] }
0x156d   :  { %v3427_v21 = vrot.slane %v3425_v13, 6  ;;  %v3674_v13 = vld [vmem:[%s11237_s1 + $0x8] sm:$0xff] }
0x156f   :  { %v3429_v36 = vmul.f32 %v3427_v21, %v3414_v22  ;;  %v8712_v22 = vpack.c.bf16 %v3590_v15, %v3589_v27 }
0x1571   :  { %v3431_v40 = vrot.slane %v3429_v36, 1 }
0x1573   :  { %v3433_v14 = vsub.f32 %v10418_v19, %v3431_v40  ;;  %v3597_v19 = vld [vmem:[#allocation19 + $0xa0] sm:$0xff] }
0x1574   :  { %v8694_v1 = vpack.c.bf16 %v3598_v46, %v3597_v19 }
0x1575   :  { %v3435_v8 = vrot.slane %v3433_v14, 6 }
0x1577   :  { %v3437_v55 = vsel %vm1008_vm7, %v3427_v21, %v3435_v8  ;;  %v10622_v21 = vpack.c.bf16 %v3674_v13, %v3673_v52 }
0x1578   :  { %7744 = vmatmul.mubr.msk.f32.vlgmr.msra.gmra.mrb[28].mxu1 %vm414_vm0, %v3437_v55 }
0x1579   :  { %8689 = vmatpush3.bf16.msra.mxu1 %v8688_v53  ;;  %8720 = vmatpush3.bf16.msra.mxu0 %v10622_v21 }
0x157a   :  { %8691 = vmatprep.subr.bf16.mxu1 %v8690_v47  ;;  %8721 = vmatprep.subr.bf16.mxu0 %v9699_v37 }
0x157d   :  { %8693 = vmatpush3.bf16.msra.mxu1 %v8692_v42 }
0x157e   :  { %8695 = vmatprep.subr.bf16.mxu1 %v8694_v1 }
0x1581   :  { %8697 = vmatpush3.bf16.msra.mxu1 %v8696_v23 }
0x1582   :  { %8699 = vmatprep.subr.bf16.mxu1 %v8698_v35 }
0x1585   :  { %8701 = vmatpush3.bf16.msra.mxu1 %v8700_v7 }
0x1586   :  { %8703 = vmatprep.subr.bf16.mxu1 %v8702_v20 }
0x1589   :  { %8705 = vmatpush3.bf16.msra.mxu1 %v8704_v9 }
0x158a   :  { %8707 = vmatprep.subr.bf16.mxu1 %v8706_v18 }
0x158d   :  { %8709 = vmatpush3.bf16.msra.mxu1 %v8708_v31 }
0x158e   :  { %8711 = vmatprep.subr.bf16.mxu1 %v8710_v30 }
0x1591   :  { %8713 = vmatpush3.bf16.msra.mxu1 %v8712_v22 }
0x1592   :  { %8715 = vmatprep.subr.bf16.mxu1 %v8714_v11 }
0x1595   :  { %8717 = vmatpush3.bf16.msra.mxu1 %v8716_v49 }
0x1596   :  { %8742 = vmatprep.subr.bf16.mxu1 %v9699_v37 }
0x164b   :  { %v3507_v36 = vpop.f32.mrb[28].mxu1 }
0x164c   :  { %v3514_v40 = vrot.slane %v3507_v36, %v10016_v43  ;;  %v7745_v14 = vpop.f32.mrb[29].mxu1  ;;  %v3520_v56 = vrot.slane %v3507_v36, %v10013_v41 }
0x164e   :  { %v3515_v8 = vmul.f32 %v3514_v40, %v10602_v5  ;;  %v3516_v55 = vmul.f32 %v3514_v40, %v10604_v28 }
0x1650   :  { %v3521_v58 = vadd.f32 %v3520_v56, %v3515_v8  ;;  %v3522_v51 = vadd.f32 %v3520_v56, %v3516_v55  ;;  %v3675_v55 = vld [vmem:[%s11237_s1 + $0x10] sm:$0xff]  ;;  %v3676_v56 = vld [vmem:[%s11237_s1 + $0x18] sm:$0xff] }
0x1652   :  { %v3523_v16 = vmul.f32 0.70710677, %v3521_v58  ;;  %v3524_v59 = vmul.f32 0.70710677, %v3522_v51  ;;  %v3571_v10 = vmul.f32 0.5, %v3521_v58  ;;  %v3572_v49 = vmul.f32 0.5, %v3522_v51 }
0x1653   :  { %v10644_v58 = vpack.c.bf16 %v3676_v56, %v3675_v55  ;;  %v3677_v51 = vld [vmem:[%s11237_s1 + $0x20] sm:$0xff] }
0x1654   :  { %v3525_v53 = vand.u32 2147483647, %v3523_v16  ;;  %v3526_v62 = vand.u32 2147483647, %v3524_v59  ;;  %vm3565_vm0 = vcmp.ge.f32.partialorder %v3523_v16, 0.0  ;;  %vm3566_vm12 = vcmp.ge.f32.partialorder %v3524_v59, 0.0 }
0x1655   :  { %8723 = vmatpush3.bf16.msra.mxu0 %v10644_v58  ;;  %v3678_v16 = vld [vmem:[%s11237_s1 + $0x28] sm:$0xff] }
0x1656   :  { %v3527_v63 = vmul.f32 0.3275911, %v3525_v53  ;;  %v3528_v47 = vmul.f32 0.3275911, %v3526_v62  ;;  %v3553_v42 = vsub.f32 0.0, %v3525_v53  ;;  %v3554_v19 = vsub.f32 0.0, %v3526_v62  ;;  %8724 = vmatprep.subr.bf16.mxu0 %v9699_v37 }
0x1657   :  { %v10650_v59 = vpack.c.bf16 %v3678_v16, %v3677_v51 }
0x1658   :  { %v3529_v48 = vadd.f32 1.0, %v3527_v63  ;;  %v3530_v45 = vadd.f32 1.0, %v3528_v47  ;;  %v3555_v5 = vmul.f32 %v3553_v42, %v3525_v53  ;;  %v3556_v6 = vmul.f32 %v3554_v19, %v3526_v62  ;;  %v3679_v53 = vld [vmem:[%s11237_s1 + $0x30] sm:$0xff]  ;;  %v3680_v62 = vld [vmem:[%s11237_s1 + $0x38] sm:$0xff]  ;;  %v3681_v47 = vld [vmem:[%s11237_s1 + $0x40] sm:$0xff] }
0x1659   :  { %8726 = vmatpush3.bf16.msra.mxu0 %v10650_v59  ;;  %v10656_v63 = vpack.c.bf16 %v3680_v62, %v3679_v53  ;;  %v3683_v42 = vld [vmem:[%s11237_s1 + $0x50] sm:$0xff]  ;;  %v3684_v19 = vld [vmem:[%s11237_s1 + $0x58] sm:$0xff] }
0x165a   :  { %9205 = vrcp.f32 %v3529_v48  ;;  %v3557_v32 = vmul.f32 1.442695, %v3555_v5  ;;  %v3559_v24 = vmul.f32 1.442695, %v3556_v6  ;;  %8727 = vmatprep.subr.bf16.mxu0 %v9699_v37  ;;  %v3682_v48 = vld [vmem:[%s11237_s1 + $0x48] sm:$0xff]  ;;  %v3685_v5 = vld [vmem:[%s11237_s1 + $0x60] sm:$0xff] }
0x165b   :  { %9207 = vrcp.f32 %v3530_v45  ;;  %v10662_v45 = vpack.c.bf16 %v3682_v48, %v3681_v47  ;;  %v3687_v6 = vld [vmem:[%s11237_s1 + $0x70] sm:$0xff]  ;;  %v10703_v53 = vld [vmem:[#allocation24] sm:$0xff] }
0x165c   :  { %9209 = vpow2.f32 %v3557_v32 }
0x165d   :  { %9211 = vpow2.f32 %v3559_v24  ;;  %8729 = vmatpush3.bf16.msra.mxu0 %v10656_v63 }
0x165e   :  { %8730 = vmatprep.subr.bf16.mxu0 %v9699_v37 }
0x1661   :  { %8732 = vmatpush3.bf16.msra.mxu0 %v10662_v45 }
0x1662   :  { %8733 = vmatprep.subr.bf16.mxu0 %v9699_v37 }
0x1664   :  { %v9206_v46 = vpop.eup %9205 }
0x1665   :  { %v9208_v1 = vpop.eup %9207  ;;  %v3535_v28 = vmul.f32 1.0614054, %v9206_v46 }
0x1666   :  { %v3536_v3 = vmul.f32 1.0614054, %v9208_v1  ;;  %v9210_v4 = vpop.eup %9209 }
0x1667   :  { %v3537_v23 = vadd.f32 -1.4531521, %v3535_v28  ;;  %v9212_v33 = vpop.eup %9211 }
0x1668   :  { %v3538_v29 = vadd.f32 -1.4531521, %v3536_v3  ;;  %v3688_v3 = vld [vmem:[%s11237_s1 + $0x78] sm:$0xff] }
0x1669   :  { %v3539_v35 = vmul.f32 %v9206_v46, %v3537_v23  ;;  %v10679_v23 = vpack.c.bf16 %v3688_v3, %v3687_v6  ;;  %v3642_v6 = vld [vmem:[%s11239_s20 + $0x108] sm:$0xff] }
0x166a   :  { %v3540_v34 = vmul.f32 %v9208_v1, %v3538_v29  ;;  %v10683_v29 = vld [vmem:[#allocation22] sm:$0x7] }
0x166b   :  { %v3541_v7 = vadd.f32 1.4214138, %v3539_v35  ;;  %v3704_v24 = vrot.slane %v10683_v29, %v10016_v43 }
0x166c   :  { %v3542_v38 = vadd.f32 1.4214138, %v3540_v34 }
0x166d   :  { %v3543_v2 = vmul.f32 %v9206_v46, %v3541_v7 }
0x166e   :  { %v3544_v20 = vmul.f32 %v9208_v1, %v3542_v38 }
0x166f   :  { %v3545_v26 = vadd.f32 -0.28449672, %v3543_v2 }
0x1670   :  { %v3546_v17 = vadd.f32 -0.28449672, %v3544_v20 }
0x1671   :  { %v3547_v9 = vmul.f32 %v9206_v46, %v3545_v26 }
0x1672   :  { %v3548_v57 = vmul.f32 %v9208_v1, %v3546_v17 }
0x1673   :  { %v3549_v61 = vadd.f32 0.2548296, %v3547_v9 }
0x1674   :  { %v3550_v18 = vadd.f32 0.2548296, %v3548_v57 }
0x1675   :  { %v3551_v25 = vmul.f32 %v9206_v46, %v3549_v61  ;;  %v10668_v46 = vpack.c.bf16 %v3684_v19, %v3683_v42 }
0x1676   :  { %v3552_v31 = vmul.f32 %v9208_v1, %v3550_v18  ;;  %v3686_v1 = vld [vmem:[%s11237_s1 + $0x68] sm:$0xff] }
0x1677   :  { %v3561_v12 = vmul.f32 %v9210_v4, %v3551_v25  ;;  %8735 = vmatpush3.bf16.msra.mxu0 %v10668_v46  ;;  %v10674_v28 = vpack.c.bf16 %v3686_v1, %v3685_v5  ;;  %v3641_v1 = vld [vmem:[%s11239_s20 + $0x100] sm:$0xff] }
0x1678   :  { %v3562_v30 = vmul.f32 %v9212_v33, %v3552_v31  ;;  %8736 = vmatprep.subr.bf16.mxu0 %v9699_v37  ;;  %v8777_v3 = vpack.c.bf16 %v3642_v6, %v3641_v1  ;;  %v3618_v1 = vld [vmem:[%s11239_s20 + $0x48] sm:$0xff] }
0x1679   :  { %v3563_v27 = vsub.f32 1.0, %v3561_v12 }
0x167a   :  { %v3564_v15 = vsub.f32 1.0, %v3562_v30 }
0x167b   :  { %v3567_v22 = vsub.f32 0.0, %v3563_v27  ;;  %8738 = vmatpush3.bf16.msra.mxu0 %v10674_v28 }
0x167c   :  { %v3568_v39 = vsub.f32 0.0, %v3564_v15  ;;  %8739 = vmatprep.subr.bf16.mxu0 %v9699_v37 }
0x167d   :  { %v3569_v44 = vsel %vm3565_vm0, %v3563_v27, %v3567_v22 }
0x167e   :  { %v3570_v11 = vsel %vm3566_vm12, %v3564_v15, %v3568_v39  ;;  %v3573_v54 = vadd.f32 1.0, %v3569_v44 }
0x167f   :  { %v3574_v52 = vadd.f32 1.0, %v3570_v11  ;;  %8741 = vmatpush3.bf16.msra.mxu0 %v10679_v23 }
0x1680   :  { %v10630_v13 = vmul.f32 %v3573_v54, %v3571_v10  ;;  %v3689_v10 = vld [vmem:[%s11238_s17] sm:$0xff]  ;;  %v3690_v54 = vld [vmem:[%s11238_s17 + $0x8] sm:$0xff]  ;;  %8778 = vmatprep.subr.bf16.mxu0 %v8777_v3 }
0x1681   :  { %v10632_v36 = vmul.f32 %v3574_v52, %v3572_v49  ;;  %v10700_v49 = vpack.c.bf16 %v3690_v54, %v3689_v10  ;;  %v3647_v10 = vld [vmem:[%s11239_s20 + $0x130] sm:$0xff]  ;;  %v3648_v54 = vld [vmem:[%s11239_s20 + $0x138] sm:$0xff] }
0x1682   :  { %v3695_v40 = vrot.slane %v10630_v13, 2 }
0x1683   :  { %v3696_v14 = vrot.slane %v10632_v36, 2 }
0x1685   :  { %v3697_v8 = vsel %vm724_vm3, %v3695_v40, %v3696_v14 }
0x1686   :  { %3769 = vmatprep.mubr.f32.mxu1 %v3697_v8 }
0x1687   :  { %3770 = vmatmul.mubr.f32.vlgmr.msra.gmra.mrb[30].mxu1 %v10630_v13 }
0x1688   :  { %6462 = vmatprep.mubr.msk.f32.mxu1 %vm724_vm3, %v3696_v14  ;;  %8744 = vmatpush3.bf16.msra.mxu1 %v10700_v49 }
0x168b   :  { %3775 = vmatmul.mubr.f32.gmra.mrb[32].mxu1 %v10632_v36 }
0x168c   :  { %7785 = vmatprep.mubr.msk.f32.mxu1 %vm9700_vm6, %v9698_v0 }
0x175a   :  { %v6936_v32 = vpop.f32.mrb[30].mxu1 }
0x175b   :  { %v6937_v35 = vpop.f32.mrb[31].mxu1 }
0x175c   :  { %v6938_v34 = vadd.f32 %v6937_v35, %v6936_v32  ;;  %v3625_v32 = vld [vmem:[%s11239_s20 + $0x80] sm:$0xff]  ;;  %v3626_v35 = vld [vmem:[%s11239_s20 + $0x88] sm:$0xff] }
0x175e   :  { %v6939_v7 = vpop.f32.mrb[32].mxu1  ;;  %v10687_v2 = vadd.f32 %v6938_v34, %v3704_v24  ;;  %v3609_v34 = vld [vmem:[%s11239_s20] sm:$0xff] }
0x175f   :  { %v6940_v38 = vpop.f32.mrb[33].mxu1 }
0x1760   :  { %v6941_v20 = vadd.f32 %v6940_v38, %v6939_v7  ;;  %v3787_v17 = vmul.f32 %v10687_v2, %v10687_v2  ;;  %v3610_v7 = vld [vmem:[%s11239_s20 + $0x8] sm:$0xff] }
0x1761   :  { %v8747_v38 = vpack.c.bf16 %v3610_v7, %v3609_v34  ;;  %v3636_v34 = vld [vmem:[%s11239_s20 + $0xd8] sm:$0xff] }
0x1762   :  { %v10689_v26 = vadd.f32 %v6941_v20, %v3704_v24  ;;  %v8745_v24 = vpack.c.bf16 %v3626_v35, %v3625_v32  ;;  %v3643_v20 = vld [vmem:[%s11239_s20 + $0x110] sm:$0xff]  ;;  %v3652_v32 = vld [vmem:[%s11239_s20 + $0x158] sm:$0xff] }
0x1764   :  { %v3780_v9 = vadd.f32 %v10689_v26, %v10687_v2  ;;  %v3788_v57 = vmul.f32 %v10689_v26, %v10689_v26  ;;  %8746 = vmatprep.subr.bf16.mxu1 %v8745_v24  ;;  %v3635_v24 = vld [vmem:[%s11239_s20 + $0xd0] sm:$0xff] }
0x1765   :  { %v8765_v7 = vpack.c.bf16 %v3636_v34, %v3635_v24 }
0x1766   :  { %v3781_v61 = vrot.slane %v3780_v9, 4  ;;  %v3789_v18 = vadd.f32 %v3788_v57, %v3787_v17  ;;  %v3644_v17 = vld [vmem:[%s11239_s20 + $0x118] sm:$0xff]  ;;  %v3627_v57 = vld [vmem:[%s11239_s20 + $0x90] sm:$0xff] }
0x1768   :  { %v3782_v25 = vadd.f32 %v3781_v61, %v3780_v9  ;;  %v3790_v4 = vrot.slane %v3789_v18, 4  ;;  %v8781_v9 = vpack.c.bf16 %v3644_v17, %v3643_v20  ;;  %v3628_v61 = vld [vmem:[%s11239_s20 + $0x98] sm:$0xff] }
0x1769   :  { %v3620_v20 = vld [vmem:[%s11239_s20 + $0x58] sm:$0xff] }
0x176a   :  { %v3783_v31 = vrot.slane %v3782_v25, 2  ;;  %v3791_v33 = vadd.f32 %v3790_v4, %v3789_v18  ;;  %v8749_v18 = vpack.c.bf16 %v3628_v61, %v3627_v57  ;;  %v3612_v4 = vld [vmem:[%s11239_s20 + $0x18] sm:$0xff]  ;;  %v3654_v57 = vld [vmem:[%s11239_s20 + $0x168] sm:$0xff] }
0x176c   :  { %v3784_v12 = vadd.f32 %v3783_v31, %v3782_v25  ;;  %v3792_v30 = vrot.slane %v3791_v33, 2  ;;  %v3611_v25 = vld [vmem:[%s11239_s20 + $0x10] sm:$0xff] }
0x176d   :  { %v8751_v31 = vpack.c.bf16 %v3612_v4, %v3611_v25  ;;  %v3638_v25 = vld [vmem:[%s11239_s20 + $0xe8] sm:$0xff] }
0x176e   :  { %v3785_v27 = vrot.slane %v3784_v12, 1  ;;  %v3793_v15 = vadd.f32 %v3792_v30, %v3791_v33  ;;  %v3645_v33 = vld [vmem:[%s11239_s20 + $0x120] sm:$0xff] }
0x1770   :  { %v3794_v22 = vrot.slane %v3793_v15, 1  ;;  %v3786_v39 = vadd.f32 %v3785_v27, %v3784_v12  ;;  %v3646_v12 = vld [vmem:[%s11239_s20 + $0x128] sm:$0xff]  ;;  %v3629_v27 = vld [vmem:[%s11239_s20 + $0xa0] sm:$0xff] }
0x1771   :  { %v8785_v30 = vpack.c.bf16 %v3646_v12, %v3645_v33  ;;  %v3622_v33 = vld [vmem:[%s11239_s20 + $0x68] sm:$0xff] }
0x1772   :  { %v3795_v44 = vadd.f32 %v3794_v22, %v3793_v15  ;;  %v3630_v15 = vld [vmem:[%s11239_s20 + $0xa8] sm:$0xff] }
0x1773   :  { %v8753_v22 = vpack.c.bf16 %v3630_v15, %v3629_v27  ;;  %v3656_v27 = vld [vmem:[%s11239_s20 + $0x178] sm:$0xff] }
0x1774   :  { %v3796_v11 = vsel %vm1008_vm7, %v3786_v39, %v3795_v44  ;;  %v3613_v39 = vld [vmem:[%s11239_s20 + $0x20] sm:$0xff]  ;;  %v3614_v44 = vld [vmem:[%s11239_s20 + $0x28] sm:$0xff] }
0x1775   :  { %7779 = vmatmul.mubr.f32.vlgmr.msra.gmra.mrb[34].mxu0 %v3796_v11  ;;  %v8755_v11 = vpack.c.bf16 %v3614_v44, %v3613_v39  ;;  %v3640_v39 = vld [vmem:[%s11239_s20 + $0xf8] sm:$0xff] }
0x1776   :  { %8780 = vmatpush3.bf16.msra.mxu0 %v8777_v3  ;;  %v3651_v3 = vld [vmem:[%s11239_s20 + $0x150] sm:$0xff] }
0x1777   :  { %8782 = vmatprep.subr.bf16.mxu0 %v8781_v9  ;;  %v8797_v35 = vpack.c.bf16 %v3652_v32, %v3651_v3 }
0x177a   :  { %8784 = vmatpush3.bf16.msra.mxu0 %v8781_v9  ;;  %v3653_v9 = vld [vmem:[%s11239_s20 + $0x160] sm:$0xff] }
0x177b   :  { %8786 = vmatprep.subr.bf16.mxu0 %v8785_v30  ;;  %v8801_v61 = vpack.c.bf16 %v3654_v57, %v3653_v9 }
0x177e   :  { %8788 = vmatpush3.bf16.msra.mxu0 %v8785_v30  ;;  %v3655_v30 = vld [vmem:[%s11239_s20 + $0x170] sm:$0xff] }
0x177f   :  { %v8805_v15 = vpack.c.bf16 %v3656_v27, %v3655_v30 }
0x1848   :  { %v3863_v52 = vpop.f32.mrb[34].mxu0 }
0x1849   :  { %v3867_v40 = vmul.f32 0.0078125, %v3863_v52  ;;  %v7780_v14 = vpop.f32.mrb[35].mxu0  ;;  %v8789_v52 = vpack.c.bf16 %v3648_v54, %v3647_v10  ;;  %v3624_v10 = vld [vmem:[%s11239_s20 + $0x78] sm:$0xff] }
0x184a   :  { %v3632_v14 = vld [vmem:[%s11239_s20 + $0xb8] sm:$0xff] }
0x184b   :  { %v3868_v8 = vmul.f32 %v3867_v40, %v3867_v40  ;;  %8790 = vmatprep.subr.bf16.mxu0 %v8789_v52 }
0x184c   :  { %8792 = vmatpush3.bf16.msra.mxu0 %v8789_v52 }
0x184d   :  { %v3870_v55 = vrot.slane %v3868_v8, 7 }
0x184f   :  { %v3872_v56 = vsub.f32 %v3867_v40, %v3870_v55  ;;  %v3615_v55 = vld [vmem:[%s11239_s20 + $0x30] sm:$0xff] }
0x1851   :  { %v3873_v51 = vadd.f32 1e-05, %v3872_v56  ;;  %v3616_v56 = vld [vmem:[%s11239_s20 + $0x38] sm:$0xff] }
0x1853   :  { %9213 = vrsqrt.f32 %v3873_v51  ;;  %v8759_v51 = vpack.c.bf16 %v3616_v56, %v3615_v55 }
0x185d   :  { %v9214_v16 = vpop.eup %9213 }
0x185e   :  { %v3876_v62 = vrot.slane %v9214_v16, 1  ;;  %v3649_v16 = vld [vmem:[%s11239_s20 + $0x140] sm:$0xff] }
0x1860   :  { %v3878_v47 = vmul.f32 %v3876_v62, %v10703_v53  ;;  %v3650_v62 = vld [vmem:[%s11239_s20 + $0x148] sm:$0xff] }
0x1862   :  { %v3879_v48 = vmul.f32 %v3878_v47, %v3867_v40  ;;  %v3631_v40 = vld [vmem:[%s11239_s20 + $0xb0] sm:$0xff] }
0x1863   :  { %v8757_v8 = vpack.c.bf16 %v3632_v14, %v3631_v40 }
0x1864   :  { %v3881_v42 = vrot.slane %v3879_v48, 7  ;;  %v3633_v48 = vld [vmem:[%s11239_s20 + $0xc0] sm:$0xff] }
0x1866   :  { %v3883_v19 = vsub.f32 %v10703_v53, %v3881_v42  ;;  %v3634_v42 = vld [vmem:[%s11239_s20 + $0xc8] sm:$0xff] }
0x1868   :  { %v3884_v5 = vsel %vm1008_vm7, %v3878_v47, %v3883_v19  ;;  %v8793_v47 = vpack.c.bf16 %v3650_v62, %v3649_v16  ;;  %v8761_v19 = vpack.c.bf16 %v3634_v42, %v3633_v48 }
0x1869   :  { %7786 = vmatmul.mubr.msk.f32.vlgmr.msra.gmra.mrb[34].mxu1 %vm3885_vm13, %v3884_v5  ;;  %v3617_v5 = vld [vmem:[%s11239_s20 + $0x40] sm:$0xff] }
0x186a   :  { %8748 = vmatpush3.bf16.msra.mxu1 %v8747_v38  ;;  %8794 = vmatprep.subr.bf16.mxu0 %v8793_v47  ;;  %v8763_v6 = vpack.c.bf16 %v3618_v1, %v3617_v5  ;;  %v3619_v38 = vld [vmem:[%s11239_s20 + $0x50] sm:$0xff] }
0x186b   :  { %8750 = vmatprep.subr.bf16.mxu1 %v8749_v18  ;;  %8796 = vmatpush3.bf16.msra.mxu0 %v8793_v47  ;;  %v8767_v17 = vpack.c.bf16 %v3620_v20, %v3619_v38  ;;  %v3637_v18 = vld [vmem:[%s11239_s20 + $0xe0] sm:$0xff] }
0x186c   :  { %8798 = vmatprep.subr.bf16.mxu0 %v8797_v35  ;;  %v8769_v4 = vpack.c.bf16 %v3638_v25, %v3637_v18 }
0x186e   :  { %8752 = vmatpush3.bf16.msra.mxu1 %v8751_v31  ;;  %v3621_v31 = vld [vmem:[%s11239_s20 + $0x60] sm:$0xff] }
0x186f   :  { %8754 = vmatprep.subr.bf16.mxu1 %v8753_v22  ;;  %8800 = vmatpush3.bf16.msra.mxu0 %v8797_v35  ;;  %v8771_v12 = vpack.c.bf16 %v3622_v33, %v3621_v31  ;;  %v3639_v22 = vld [vmem:[%s11239_s20 + $0xf0] sm:$0xff] }
0x1870   :  { %8802 = vmatprep.subr.bf16.mxu0 %v8801_v61  ;;  %v8773_v44 = vpack.c.bf16 %v3640_v39, %v3639_v22 }
0x1872   :  { %8756 = vmatpush3.bf16.msra.mxu1 %v8755_v11  ;;  %v3623_v11 = vld [vmem:[%s11239_s20 + $0x70] sm:$0xff] }
0x1873   :  { %8758 = vmatprep.subr.bf16.mxu1 %v8757_v8  ;;  %8804 = vmatpush3.bf16.msra.mxu0 %v8801_v61  ;;  %v8775_v54 = vpack.c.bf16 %v3624_v10, %v3623_v11 }
0x1874   :  { %8806 = vmatprep.subr.bf16.mxu0 %v8805_v15 }
0x1876   :  { %8760 = vmatpush3.bf16.msra.mxu1 %v8759_v51 }
0x1877   :  { %8762 = vmatprep.subr.bf16.mxu1 %v8761_v19  ;;  %8808 = vmatpush3.bf16.msra.mxu0 %v8805_v15 }
0x1878   :  { %8833 = vmatprep.subr.bf16.mxu0 %v9699_v37 }
0x187a   :  { %8764 = vmatpush3.bf16.msra.mxu1 %v8763_v6 }
0x187b   :  { %8766 = vmatprep.subr.bf16.mxu1 %v8765_v7 }
0x187e   :  { %8768 = vmatpush3.bf16.msra.mxu1 %v8767_v17 }
0x187f   :  { %8770 = vmatprep.subr.bf16.mxu1 %v8769_v4 }
0x1882   :  { %8772 = vmatpush3.bf16.msra.mxu1 %v8771_v12 }
0x1883   :  { %8774 = vmatprep.subr.bf16.mxu1 %v8773_v44 }
0x1886   :  { %8776 = vmatpush3.bf16.msra.mxu1 %v8775_v54 }
0x1887   :  { %8809 = vmatprep.subr.bf16.mxu1 %v9699_v37 }
0x193c   :  { %v3955_v52 = vpop.f32.mrb[34].mxu1 }
0x193d   :  { %v3962_v40 = vrot.slane %v3955_v52, %v10016_v43  ;;  %v7787_v14 = vpop.f32.mrb[35].mxu1  ;;  %v3968_v56 = vrot.slane %v3955_v52, %v10013_v41 }
0x193f   :  { %v3963_v8 = vmul.f32 %v3962_v40, %v10687_v2  ;;  %v3964_v55 = vmul.f32 %v3962_v40, %v10689_v26 }
0x1941   :  { %v3969_v51 = vadd.f32 %v3968_v56, %v3963_v8  ;;  %v3970_v16 = vadd.f32 %v3968_v56, %v3964_v55 }
0x1943   :  { %v3971_v62 = vmul.f32 0.70710677, %v3969_v51  ;;  %v3972_v47 = vmul.f32 0.70710677, %v3970_v16 }
0x1945   :  { %v3973_v48 = vand.u32 2147483647, %v3971_v62  ;;  %v3974_v42 = vand.u32 2147483647, %v3972_v47  ;;  %vm4013_vm14 = vcmp.ge.f32.partialorder %v3971_v62, 0.0  ;;  %vm4014_vm15 = vcmp.ge.f32.partialorder %v3972_v47, 0.0 }
0x1946   :  { %v4042_v47 = vrot.slane %v10683_v29, %v10013_v41 }
0x1947   :  { %v3975_v19 = vmul.f32 0.3275911, %v3973_v48  ;;  %v3976_v5 = vmul.f32 0.3275911, %v3974_v42  ;;  %v4001_v3 = vsub.f32 0.0, %v3973_v48  ;;  %v4002_v32 = vsub.f32 0.0, %v3974_v42 }
0x1949   :  { %v3977_v1 = vadd.f32 1.0, %v3975_v19  ;;  %v3978_v6 = vadd.f32 1.0, %v3976_v5  ;;  %v4003_v2 = vmul.f32 %v4001_v3, %v3973_v48  ;;  %v4004_v34 = vmul.f32 %v4002_v32, %v3974_v42 }
0x194a   :  { %v4019_v42 = vmul.f32 0.5, %v3969_v51  ;;  %v4020_v5 = vmul.f32 0.5, %v3970_v16 }
0x194b   :  { %9215 = vrcp.f32 %v3977_v1  ;;  %v4005_v17 = vmul.f32 1.442695, %v4003_v2  ;;  %v4007_v57 = vmul.f32 1.442695, %v4004_v34 }
0x194c   :  { %9217 = vrcp.f32 %v3978_v6 }
0x194d   :  { %9219 = vpow2.f32 %v4005_v17 }
0x194e   :  { %9221 = vpow2.f32 %v4007_v57 }
0x1955   :  { %v9216_v35 = vpop.eup %9215 }
0x1956   :  { %v9218_v24 = vpop.eup %9217  ;;  %v3983_v26 = vmul.f32 1.0614054, %v9216_v35 }
0x1957   :  { %v3984_v7 = vmul.f32 1.0614054, %v9218_v24  ;;  %v9220_v44 = vpop.eup %9219 }
0x1958   :  { %v3985_v38 = vadd.f32 -1.4531521, %v3983_v26  ;;  %v9222_v10 = vpop.eup %9221 }
0x1959   :  { %v3986_v20 = vadd.f32 -1.4531521, %v3984_v7 }
0x195a   :  { %v3987_v9 = vmul.f32 %v9216_v35, %v3985_v38 }
0x195b   :  { %v3988_v61 = vmul.f32 %v9218_v24, %v3986_v20 }
0x195c   :  { %v3989_v18 = vadd.f32 1.4214138, %v3987_v9 }
0x195d   :  { %v3990_v25 = vadd.f32 1.4214138, %v3988_v61 }
0x195e   :  { %v3991_v4 = vmul.f32 %v9216_v35, %v3989_v18 }
0x195f   :  { %v3992_v31 = vmul.f32 %v9218_v24, %v3990_v25 }
0x1960   :  { %v3993_v33 = vadd.f32 -0.28449672, %v3991_v4 }
0x1961   :  { %v3994_v12 = vadd.f32 -0.28449672, %v3992_v31 }
0x1962   :  { %v3995_v30 = vmul.f32 %v9216_v35, %v3993_v33 }
0x1963   :  { %v3996_v27 = vmul.f32 %v9218_v24, %v3994_v12 }
0x1964   :  { %v3997_v15 = vadd.f32 0.2548296, %v3995_v30 }
0x1965   :  { %v3998_v22 = vadd.f32 0.2548296, %v3996_v27 }
0x1966   :  { %v3999_v39 = vmul.f32 %v9216_v35, %v3997_v15 }
0x1967   :  { %v4000_v11 = vmul.f32 %v9218_v24, %v3998_v22 }
0x1968   :  { %v4009_v54 = vmul.f32 %v9220_v44, %v3999_v39 }
0x1969   :  { %v4010_v52 = vmul.f32 %v9222_v10, %v4000_v11 }
0x196a   :  { %v4011_v40 = vsub.f32 1.0, %v4009_v54 }
0x196b   :  { %v4012_v14 = vsub.f32 1.0, %v4010_v52 }
0x196c   :  { %v4015_v8 = vsub.f32 0.0, %v4011_v40 }
0x196d   :  { %v4016_v55 = vsub.f32 0.0, %v4012_v14 }
0x196e   :  { %v4017_v56 = vsel %vm4013_vm14, %v4011_v40, %v4015_v8  ;;  %v3657_v8 = vld [vmem:[#allocation21] sm:$0xff] }
0x196f   :  { %v4018_v48 = vsel %vm4014_vm15, %v4012_v14, %v4016_v55  ;;  %v4021_v19 = vadd.f32 1.0, %v4017_v56  ;;  %v3658_v55 = vld [vmem:[#allocation21 + $0x8] sm:$0xff] }
0x1970   :  { %v4022_v1 = vadd.f32 1.0, %v4018_v48  ;;  %v8836_v56 = vpack.c.bf16 %v3658_v55, %v3657_v8 }
0x1971   :  { %v4023_v6 = vmul.f32 %v4021_v19, %v4019_v42 }
0x1972   :  { %v4024_v3 = vmul.f32 %v4022_v1, %v4020_v5 }
0x1973   :  { %v4033_v32 = vrot.slane %v4023_v6, 6  ;;  %v4027_v35 = vrot.slane %v4023_v6, 2 }
0x1974   :  { %v4028_v2 = vrot.slane %v4024_v3, 2  ;;  %v4034_v24 = vrot.slane %v4024_v3, 6 }
0x1975   :  { %7820 = vmatprep.mubr.msk.f32.mxu0 %vm10175_vm11, %v4033_v32 }
0x1976   :  { %v4029_v26 = vsel %vm724_vm3, %v4027_v35, %v4028_v2  ;;  %v4035_v62 = vsel %vm720_vm1, %v4033_v32, %v4034_v24 }
0x1977   :  { %4107 = vmatprep.mubr.f32.mxu1 %v4029_v26  ;;  %7821 = vmatmul.mubr.f32.vlgmr.msra.gmra.mrb[36].mxu0 %v4035_v62 }
0x1978   :  { %4108 = vmatmul.mubr.f32.vlgmr.msra.gmra.mrb[36].mxu1 %v4023_v6  ;;  %8835 = vmatpush3.bf16.msra.mxu0 %v10700_v49 }
0x1979   :  { %6464 = vmatprep.mubr.msk.f32.mxu1 %vm724_vm3, %v4028_v2  ;;  %8811 = vmatpush3.bf16.msra.mxu1 %v10622_v21 }
0x197a   :  { %8812 = vmatprep.subr.bf16.mxu1 %v9699_v37  ;;  %7862 = vmatprep.mubr.msk.f32.mxu0 %vm9700_vm6, %v9698_v0 }
0x197b   :  { %8837 = vmatprep.subr.bf16.mxu0 %v8836_v56 }
0x197c   :  { %4113 = vmatmul.mubr.f32.gmra.mrb[38].mxu1 %v4024_v3 }
0x197d   :  { %8814 = vmatpush3.bf16.msra.mxu1 %v10644_v58  ;;  %7855 = vmatprep.mubr.msk.f32.mxu1 %vm9700_vm6, %v9698_v0 }
0x197e   :  { %8815 = vmatprep.subr.bf16.mxu1 %v9699_v37 }
0x1981   :  { %8817 = vmatpush3.bf16.msra.mxu1 %v10650_v59 }
0x1982   :  { %8818 = vmatprep.subr.bf16.mxu1 %v9699_v37 }
0x1985   :  { %8820 = vmatpush3.bf16.msra.mxu1 %v10656_v63 }
0x1986   :  { %8821 = vmatprep.subr.bf16.mxu1 %v9699_v37 }
0x1989   :  { %8823 = vmatpush3.bf16.msra.mxu1 %v10662_v45 }
0x198a   :  { %8824 = vmatprep.subr.bf16.mxu1 %v9699_v37 }
0x198d   :  { %8826 = vmatpush3.bf16.msra.mxu1 %v10668_v46 }
0x198e   :  { %8827 = vmatprep.subr.bf16.mxu1 %v9699_v37 }
0x1991   :  { %8829 = vmatpush3.bf16.msra.mxu1 %v10674_v28 }
0x1992   :  { %8830 = vmatprep.subr.bf16.mxu1 %v9699_v37 }
0x1995   :  { %8832 = vmatpush3.bf16.msra.mxu1 %v10679_v23 }
0x1996   :  { %8868 = vmatprep.subr.bf16.mxu1 %v9699_v37 }
0x1a4a   :  { %v7822_v60 = vpop.f32.mrb[36].mxu0 }
0x1a4b   :  { %v6994_v51 = vpop.f32.mrb[36].mxu1  ;;  %v4184_v16 = vpop.f32.mrb[37].mxu0 }
0x1a4c   :  { %v6995_v34 = vpop.f32.mrb[37].mxu1 }
0x1a4d   :  { %v6996_v7 = vadd.f32 %v6995_v34, %v6994_v51  ;;  %v3659_v51 = vld [vmem:[#allocation21 + $0x10] sm:$0xff] }
0x1a4f   :  { %v4110_v38 = vadd.f32 %v6996_v7, %v4042_v47  ;;  %v6997_v20 = vpop.f32.mrb[38].mxu1 }
0x1a50   :  { %v6998_v17 = vpop.f32.mrb[39].mxu1 }
0x1a51   :  { %v10791_v9 = vadd.f32 %v4184_v16, %v4110_v38  ;;  %v6999_v57 = vadd.f32 %v6998_v17, %v6997_v20  ;;  %v3660_v16 = vld [vmem:[#allocation21 + $0x18] sm:$0xff]  ;;  %v3661_v38 = vld [vmem:[#allocation21 + $0x20] sm:$0xff]  ;;  %v3662_v20 = vld [vmem:[#allocation21 + $0x28] sm:$0xff] }
0x1a52   :  { %v8840_v34 = vpack.c.bf16 %v3660_v16, %v3659_v51  ;;  %v8844_v17 = vpack.c.bf16 %v3662_v20, %v3661_v38 }
0x1a53   :  { %v4115_v61 = vadd.f32 %v6999_v57, %v4042_v47  ;;  %v4200_v25 = vmul.f32 %v10791_v9, %v10791_v9  ;;  %v3663_v57 = vld [vmem:[#allocation21 + $0x30] sm:$0xff] }
0x1a55   :  { %v10793_v18 = vadd.f32 %v7822_v60, %v4115_v61  ;;  %v3664_v61 = vld [vmem:[#allocation21 + $0x38] sm:$0xff] }
0x1a57   :  { %v4193_v4 = vadd.f32 %v10793_v18, %v10791_v9  ;;  %v4201_v31 = vmul.f32 %v10793_v18, %v10793_v18 }
0x1a59   :  { %v4194_v33 = vrot.slane %v4193_v4, 4  ;;  %v4202_v12 = vadd.f32 %v4201_v31, %v4200_v25  ;;  %v8848_v25 = vpack.c.bf16 %v3664_v61, %v3663_v57  ;;  %v3666_v31 = vld [vmem:[#allocation21 + $0x48] sm:$0xff] }
0x1a5b   :  { %v4195_v30 = vadd.f32 %v4194_v33, %v4193_v4  ;;  %v4203_v27 = vrot.slane %v4202_v12, 4  ;;  %v3665_v4 = vld [vmem:[#allocation21 + $0x40] sm:$0xff] }
0x1a5c   :  { %v8852_v33 = vpack.c.bf16 %v3666_v31, %v3665_v4 }
0x1a5d   :  { %v4196_v15 = vrot.slane %v4195_v30, 2  ;;  %v4204_v22 = vadd.f32 %v4203_v27, %v4202_v12  ;;  %v3667_v12 = vld [vmem:[#allocation21 + $0x50] sm:$0xff] }
0x1a5f   :  { %v4197_v39 = vadd.f32 %v4196_v15, %v4195_v30  ;;  %v4205_v44 = vrot.slane %v4204_v22, 2  ;;  %v3668_v30 = vld [vmem:[#allocation21 + $0x58] sm:$0xff]  ;;  %v3669_v15 = vld [vmem:[#allocation21 + $0x60] sm:$0xff] }
0x1a60   :  { %v8856_v27 = vpack.c.bf16 %v3668_v30, %v3667_v12 }
0x1a61   :  { %v4198_v11 = vrot.slane %v4197_v39, 1  ;;  %v4206_v10 = vadd.f32 %v4205_v44, %v4204_v22  ;;  %v3670_v22 = vld [vmem:[#allocation21 + $0x68] sm:$0xff]  ;;  %v3672_v44 = vld [vmem:[#allocation21 + $0x78] sm:$0xff] }
0x1a63   :  { %v4207_v54 = vrot.slane %v4206_v10, 1  ;;  %v4199_v52 = vadd.f32 %v4198_v11, %v4197_v39  ;;  %v3671_v39 = vld [vmem:[#allocation21 + $0x70] sm:$0xff] }
0x1a64   :  { %v8864_v11 = vpack.c.bf16 %v3672_v44, %v3671_v39 }
0x1a65   :  { %v4208_v40 = vadd.f32 %v4207_v54, %v4206_v10 }
0x1a67   :  { %v4209_v14 = vsel %vm1008_vm7, %v4199_v52, %v4208_v40  ;;  %v4392_v52 = vrot.slane %v10683_v29, %v10020_v50 }
0x1a68   :  { %7856 = vmatmul.mubr.f32.vlgmr.msra.gmra.mrb[40].mxu1 %v4209_v14 }
0x1a69   :  { %8870 = vmatpush3.bf16.msra.mxu1 %v10622_v21  ;;  %7932 = vmatprep.mubr.msk.f32.mxu1 %vm9700_vm6, %v9698_v0 }
0x1a6a   :  { %8871 = vmatprep.subr.bf16.mxu1 %v9699_v37 }
0x1a6d   :  { %8873 = vmatpush3.bf16.msra.mxu1 %v10644_v58 }
0x1a6e   :  { %8874 = vmatprep.subr.bf16.mxu1 %v9699_v37 }
0x1a71   :  { %8876 = vmatpush3.bf16.msra.mxu1 %v10650_v59 }
0x1a72   :  { %8877 = vmatprep.subr.bf16.mxu1 %v9699_v37 }
0x1a75   :  { %8879 = vmatpush3.bf16.msra.mxu1 %v10656_v63 }
0x1a76   :  { %8880 = vmatprep.subr.bf16.mxu1 %v9699_v37 }
0x1a79   :  { %8882 = vmatpush3.bf16.msra.mxu1 %v10662_v45 }
0x1a7a   :  { %8883 = vmatprep.subr.bf16.mxu1 %v9699_v37 }
0x1a7d   :  { %8885 = vmatpush3.bf16.msra.mxu1 %v10668_v46 }
0x1a7e   :  { %8886 = vmatprep.subr.bf16.mxu1 %v9699_v37 }
0x1a81   :  { %8888 = vmatpush3.bf16.msra.mxu1 %v10674_v28 }
0x1a82   :  { %8889 = vmatprep.subr.bf16.mxu1 %v9699_v37 }
0x1a85   :  { %8891 = vmatpush3.bf16.msra.mxu1 %v10679_v23 }
0x1a86   :  { %8919 = vmatprep.subr.bf16.mxu1 %v9699_v37 }
0x1b3b   :  { %v4276_v48 = vpop.f32.mrb[40].mxu1 }
0x1b3c   :  { %v4280_v42 = vmul.f32 0.0078125, %v4276_v48  ;;  %v7857_v19 = vpop.f32.mrb[41].mxu1 }
0x1b3e   :  { %v4281_v5 = vmul.f32 %v4280_v42, %v4280_v42 }
0x1b40   :  { %v4283_v1 = vrot.slane %v4281_v5, 7 }
0x1b42   :  { %v4285_v6 = vsub.f32 %v4280_v42, %v4283_v1 }
0x1b44   :  { %v4286_v3 = vadd.f32 1e-05, %v4285_v6 }
0x1b46   :  { %9223 = vrsqrt.f32 %v4286_v3 }
0x1b50   :  { %v9224_v32 = vpop.eup %9223 }
0x1b51   :  { %v4289_v35 = vrot.slane %v9224_v32, 7 }
0x1b53   :  { %v4291_v2 = vmul.f32 %v4289_v35, %v10703_v53 }
0x1b55   :  { %v4293_v24 = vrot.slane %v4291_v2, 2 }
0x1b57   :  { %v4295_v26 = vmul.f32 %v4293_v24, %v4280_v42 }
0x1b59   :  { %v4297_v62 = vrot.slane %v4295_v26, 5 }
0x1b5b   :  { %v4299_v60 = vsub.f32 %v10703_v53, %v4297_v62 }
0x1b5d   :  { %v4301_v47 = vrot.slane %v4299_v60, 2 }
0x1b5f   :  { %v4303_v7 = vsel %vm1008_vm7, %v4293_v24, %v4301_v47 }
0x1b60   :  { %7863 = vmatmul.mubr.msk.f32.vlgmr.msra.gmra.mrb[38].mxu0 %vm3885_vm13, %v4303_v7 }
0x1b61   :  { %8839 = vmatpush3.bf16.msra.mxu0 %v8836_v56  ;;  %7897 = vmatprep.mubr.f32.mxu0 %v10630_v13  ;;  %v8860_v13 = vpack.c.bf16 %v3670_v22, %v3669_v15 }
0x1b62   :  { %8841 = vmatprep.subr.bf16.mxu0 %v8840_v34 }
0x1b65   :  { %8843 = vmatpush3.bf16.msra.mxu0 %v8840_v34 }
0x1b66   :  { %8845 = vmatprep.subr.bf16.mxu0 %v8844_v17 }
0x1b69   :  { %8847 = vmatpush3.bf16.msra.mxu0 %v8844_v17 }
0x1b6a   :  { %8849 = vmatprep.subr.bf16.mxu0 %v8848_v25 }
0x1b6d   :  { %8851 = vmatpush3.bf16.msra.mxu0 %v8848_v25 }
0x1b6e   :  { %8853 = vmatprep.subr.bf16.mxu0 %v8852_v33 }
0x1b71   :  { %8855 = vmatpush3.bf16.msra.mxu0 %v8852_v33 }
0x1b72   :  { %8857 = vmatprep.subr.bf16.mxu0 %v8856_v27 }
0x1b75   :  { %8859 = vmatpush3.bf16.msra.mxu0 %v8856_v27 }
0x1b76   :  { %8861 = vmatprep.subr.bf16.mxu0 %v8860_v13 }
0x1b79   :  { %8863 = vmatpush3.bf16.msra.mxu0 %v8860_v13 }
0x1b7a   :  { %8865 = vmatprep.subr.bf16.mxu0 %v8864_v11 }
0x1b7d   :  { %8867 = vmatpush3.bf16.msra.mxu0 %v8864_v11 }
0x1b7e   :  { %8892 = vmatprep.subr.bf16.mxu0 %v9699_v37 }
0x1b80   :  { %7898 = vmatmul.mubr.f32.vlgmr.msra.gmra.mrb[40].mxu0 %v10632_v36 }
0x1b81   :  { %8894 = vmatpush3.bf16.msra.mxu0 %v10700_v49  ;;  %7939 = vmatprep.mubr.msk.f32.mxu0 %vm9700_vm6, %v9698_v0 }
0x1b82   :  { %8895 = vmatprep.subr.bf16.mxu0 %v9699_v37 }
0x1c33   :  { %v10831_v10 = vpop.f32.mrb[38].mxu0 }
0x1c34   :  { %v7864_v54 = vpop.f32.mrb[39].mxu0 }
0x1c53   :  { %v7899_v40 = vpop.f32.mrb[40].mxu0 }
0x1c54   :  { %v10835_v14 = vadd.f32 %v7899_v40, %v4392_v52  ;;  %v4459_v8 = vpop.f32.mrb[41].mxu0 }
0x1c55   :  { %v10837_v55 = vadd.f32 %v4459_v8, %v4392_v52 }
0x1c56   :  { %v4476_v36 = vmul.f32 %v10835_v14, %v10835_v14 }
0x1c57   :  { %v4468_v56 = vadd.f32 %v10835_v14, %v10837_v55  ;;  %v4475_v48 = vmul.f32 %v10837_v55, %v10837_v55 }
0x1c59   :  { %v4469_v42 = vrot.slane %v4468_v56, 4  ;;  %v4477_v19 = vadd.f32 %v4476_v36, %v4475_v48 }
0x1c5b   :  { %v4470_v5 = vadd.f32 %v4469_v42, %v4468_v56  ;;  %v4478_v1 = vrot.slane %v4477_v19, 4 }
0x1c5d   :  { %v4471_v29 = vrot.slane %v4470_v5, 2  ;;  %v4479_v6 = vadd.f32 %v4478_v1, %v4477_v19 }
0x1c5f   :  { %v4472_v3 = vadd.f32 %v4471_v29, %v4470_v5  ;;  %v4480_v32 = vrot.slane %v4479_v6, 2 }
0x1c61   :  { %v4473_v35 = vrot.slane %v4472_v3, 1  ;;  %v4481_v2 = vadd.f32 %v4480_v32, %v4479_v6 }
0x1c63   :  { %v4482_v24 = vrot.slane %v4481_v2, 1  ;;  %v4474_v26 = vadd.f32 %v4473_v35, %v4472_v3 }
0x1c65   :  { %v4483_v62 = vadd.f32 %v4482_v24, %v4481_v2 }
0x1c67   :  { %v4484_v60 = vsel %vm1008_vm7, %v4474_v26, %v4483_v62 }
0x1c68   :  { %7933 = vmatmul.mubr.f32.vlgmr.msra.gmra.mrb[42].mxu1 %v4484_v60 }
0x1c69   :  { %8921 = vmatpush3.bf16.msra.mxu1 %v10700_v49  ;;  %7981 = vmatprep.mubr.msk.f32.mxu1 %vm9700_vm6, %v9698_v0 }
0x1d3b   :  { %v4551_v51 = vpop.f32.mrb[42].mxu1 }
0x1d3c   :  { %v4555_v16 = vmul.f32 0.0078125, %v4551_v51  ;;  %v7934_v47 = vpop.f32.mrb[43].mxu1 }
0x1d3e   :  { %v4556_v34 = vmul.f32 %v4555_v16, %v4555_v16 }
0x1d40   :  { %v4558_v7 = vrot.slane %v4556_v34, 7 }
0x1d42   :  { %v4560_v38 = vsub.f32 %v4555_v16, %v4558_v7 }
0x1d44   :  { %v4561_v20 = vadd.f32 1e-05, %v4560_v38 }
0x1d46   :  { %9225 = vrsqrt.f32 %v4561_v20 }
0x1d50   :  { %v9226_v17 = vpop.eup %9225 }
0x1d51   :  { %v4564_v57 = vrot.slane %v9226_v17, 5 }
0x1d53   :  { %v4566_v61 = vmul.f32 %v4564_v57, %v10703_v53 }
0x1d55   :  { %v4568_v25 = vrot.slane %v4566_v61, 4 }
0x1d57   :  { %v4570_v4 = vmul.f32 %v4568_v25, %v4555_v16 }
0x1d59   :  { %v4572_v31 = vrot.slane %v4570_v4, 3 }
0x1d5b   :  { %v4574_v49 = vsub.f32 %v10703_v53, %v4572_v31 }
0x1d5d   :  { %v4576_v33 = vrot.slane %v4574_v49, 4 }
0x1d5f   :  { %v4578_v12 = vsel %vm1008_vm7, %v4568_v25, %v4576_v33 }
0x1d60   :  { %7940 = vmatmul.mubr.msk.f32.vlgmr.msra.gmra.mrb[42].mxu0 %vm3885_vm13, %v4578_v12 }
0x1d61   :  { %8897 = vmatpush3.bf16.msra.mxu0 %v10622_v21  ;;  %7974 = vmatprep.mubr.msk.f32.mxu0 %vm9700_vm6, %v9698_v0  ;;  %v4380_v21 = vrot.slane %v10831_v10, %v10016_v43 }
0x1d62   :  { %8898 = vmatprep.subr.bf16.mxu0 %v9699_v37 }
0x1d65   :  { %8900 = vmatpush3.bf16.msra.mxu0 %v10644_v58 }
0x1d66   :  { %8901 = vmatprep.subr.bf16.mxu0 %v9699_v37 }
0x1d69   :  { %8903 = vmatpush3.bf16.msra.mxu0 %v10650_v59  ;;  %v4381_v59 = vmul.f32 %v4380_v21, %v10791_v9 }
0x1d6a   :  { %8904 = vmatprep.subr.bf16.mxu0 %v9699_v37 }
0x1d6d   :  { %8906 = vmatpush3.bf16.msra.mxu0 %v10656_v63  ;;  %v4382_v63 = vmul.f32 %v4380_v21, %v10793_v18 }
0x1d6e   :  { %8907 = vmatprep.subr.bf16.mxu0 %v9699_v37 }
0x1d71   :  { %8909 = vmatpush3.bf16.msra.mxu0 %v10662_v45 }
0x1d72   :  { %8910 = vmatprep.subr.bf16.mxu0 %v9699_v37 }
0x1d75   :  { %8912 = vmatpush3.bf16.msra.mxu0 %v10668_v46 }
0x1d76   :  { %8913 = vmatprep.subr.bf16.mxu0 %v9699_v37 }
0x1d79   :  { %8915 = vmatpush3.bf16.msra.mxu0 %v10674_v28  ;;  %v4386_v28 = vrot.slane %v10831_v10, %v10013_v41 }
0x1d7a   :  { %8916 = vmatprep.subr.bf16.mxu0 %v9699_v37 }
0x1d7b   :  { %v4387_v15 = vadd.f32 %v4386_v28, %v4381_v59  ;;  %v4388_v22 = vadd.f32 %v4386_v28, %v4382_v63 }
0x1d7d   :  { %8918 = vmatpush3.bf16.msra.mxu0 %v10679_v23 }
0x1d7e   :  { %8954 = vmatprep.subr.bf16.mxu0 %v9699_v37 }
0x1e33   :  { %v4648_v58 = vpop.f32.mrb[42].mxu0 }
0x1e34   :  { %v4655_v45 = vrot.slane %v4648_v58, %v10016_v43  ;;  %v7941_v46 = vpop.f32.mrb[43].mxu0  ;;  %v4661_v27 = vrot.slane %v4648_v58, %v10013_v41 }
0x1e36   :  { %v4656_v30 = vmul.f32 %v4655_v45, %v10837_v55  ;;  %v4657_v23 = vmul.f32 %v4655_v45, %v10835_v14 }
0x1e38   :  { %v4662_v13 = vadd.f32 %v4661_v27, %v4656_v30  ;;  %v4663_v39 = vadd.f32 %v4661_v27, %v4657_v23 }
0x1e3a   :  { %v4664_v44 = vadd.f32 %v4662_v13, %v4387_v15  ;;  %v4665_v9 = vadd.f32 %v4663_v39, %v4388_v22 }
0x1e3c   :  { %v4666_v11 = vmul.f32 0.70710677, %v4664_v44  ;;  %v4667_v18 = vmul.f32 0.70710677, %v4665_v9  ;;  %v4714_v59 = vmul.f32 0.5, %v4664_v44  ;;  %v4715_v45 = vmul.f32 0.5, %v4665_v9 }
0x1e3e   :  { %v4668_v54 = vand.u32 2147483647, %v4666_v11  ;;  %v4669_v52 = vand.u32 2147483647, %v4667_v18  ;;  %vm4708_vm11 = vcmp.ge.f32.partialorder %v4666_v11, 0.0  ;;  %vm4709_vm4 = vcmp.ge.f32.partialorder %v4667_v18, 0.0 }
0x1e40   :  { %v4670_v40 = vmul.f32 0.3275911, %v4668_v54  ;;  %v4671_v8 = vmul.f32 0.3275911, %v4669_v52  ;;  %v4696_v55 = vsub.f32 0.0, %v4668_v54  ;;  %v4697_v14 = vsub.f32 0.0, %v4669_v52 }
0x1e42   :  { %v4672_v36 = vadd.f32 1.0, %v4670_v40  ;;  %v4673_v10 = vadd.f32 1.0, %v4671_v8  ;;  %v4698_v48 = vmul.f32 %v4696_v55, %v4668_v54  ;;  %v4699_v5 = vmul.f32 %v4697_v14, %v4669_v52 }
0x1e44   :  { %9227 = vrcp.f32 %v4672_v36  ;;  %v4700_v3 = vmul.f32 1.442695, %v4698_v48  ;;  %v4702_v35 = vmul.f32 1.442695, %v4699_v5 }
0x1e45   :  { %9229 = vrcp.f32 %v4673_v10 }
0x1e46   :  { %9231 = vpow2.f32 %v4700_v3 }
0x1e47   :  { %9233 = vpow2.f32 %v4702_v35 }
0x1e4e   :  { %v9228_v56 = vpop.eup %9227 }
0x1e4f   :  { %v9230_v42 = vpop.eup %9229  ;;  %v4678_v19 = vmul.f32 1.0614054, %v9228_v56 }
0x1e50   :  { %v4679_v1 = vmul.f32 1.0614054, %v9230_v42  ;;  %v9232_v17 = vpop.eup %9231 }
0x1e51   :  { %v4680_v29 = vadd.f32 -1.4531521, %v4678_v19  ;;  %v9234_v61 = vpop.eup %9233 }
0x1e52   :  { %v4681_v6 = vadd.f32 -1.4531521, %v4679_v1 }
0x1e53   :  { %v4682_v32 = vmul.f32 %v9228_v56, %v4680_v29 }
0x1e54   :  { %v4683_v2 = vmul.f32 %v9230_v42, %v4681_v6 }
0x1e55   :  { %v4684_v24 = vadd.f32 1.4214138, %v4682_v32 }
0x1e56   :  { %v4685_v26 = vadd.f32 1.4214138, %v4683_v2 }
0x1e57   :  { %v4686_v62 = vmul.f32 %v9228_v56, %v4684_v24 }
0x1e58   :  { %v4687_v60 = vmul.f32 %v9230_v42, %v4685_v26 }
0x1e59   :  { %v4688_v51 = vadd.f32 -0.28449672, %v4686_v62 }
0x1e5a   :  { %v4689_v16 = vadd.f32 -0.28449672, %v4687_v60  ;;  %v4986_v60 = vld [vmem:[%s11240_s2 + $0x80] sm:$0xff] }
0x1e5b   :  { %v4690_v47 = vmul.f32 %v9228_v56, %v4688_v51  ;;  %v4987_v51 = vld [vmem:[%s11240_s2 + $0x88] sm:$0xff] }
0x1e5c   :  { %v4691_v34 = vmul.f32 %v9230_v42, %v4689_v16  ;;  %v8922_v16 = vpack.c.bf16 %v4987_v51, %v4986_v60 }
0x1e5d   :  { %v4692_v7 = vadd.f32 0.2548296, %v4690_v47  ;;  %v4970_v47 = vld [vmem:[%s11240_s2] sm:$0xff] }
0x1e5e   :  { %v4693_v38 = vadd.f32 0.2548296, %v4691_v34  ;;  %v4971_v34 = vld [vmem:[%s11240_s2 + $0x8] sm:$0xff]  ;;  %8923 = vmatprep.subr.bf16.mxu1 %v8922_v16 }
0x1e5f   :  { %v4694_v20 = vmul.f32 %v9228_v56, %v4692_v7  ;;  %v8924_v7 = vpack.c.bf16 %v4971_v34, %v4970_v47 }
0x1e60   :  { %v4695_v57 = vmul.f32 %v9230_v42, %v4693_v38  ;;  %v4988_v38 = vld [vmem:[%s11240_s2 + $0x90] sm:$0xff] }
0x1e61   :  { %v4704_v25 = vmul.f32 %v9232_v17, %v4694_v20  ;;  %v4972_v17 = vld [vmem:[%s11240_s2 + $0x10] sm:$0xff] }
0x1e62   :  { %v4705_v4 = vmul.f32 %v9234_v61, %v4695_v57  ;;  %v4973_v57 = vld [vmem:[%s11240_s2 + $0x18] sm:$0xff] }
0x1e63   :  { %v4706_v31 = vsub.f32 1.0, %v4704_v25  ;;  %v8928_v61 = vpack.c.bf16 %v4973_v57, %v4972_v17  ;;  %v4990_v25 = vld [vmem:[%s11240_s2 + $0xa0] sm:$0xff] }
0x1e64   :  { %v4707_v49 = vsub.f32 1.0, %v4705_v4  ;;  %v4991_v4 = vld [vmem:[%s11240_s2 + $0xa8] sm:$0xff] }
0x1e65   :  { %v4710_v33 = vsub.f32 0.0, %v4706_v31 }
0x1e66   :  { %v4711_v12 = vsub.f32 0.0, %v4707_v49 }
0x1e67   :  { %v4712_v21 = vsel %vm4708_vm11, %v4706_v31, %v4710_v33  ;;  %v8930_v31 = vpack.c.bf16 %v4991_v4, %v4990_v25  ;;  %v4975_v33 = vld [vmem:[%s11240_s2 + $0x28] sm:$0xff] }
0x1e68   :  { %v4713_v58 = vsel %vm4709_vm4, %v4707_v49, %v4711_v12  ;;  %v4716_v63 = vadd.f32 1.0, %v4712_v21  ;;  %v4974_v49 = vld [vmem:[%s11240_s2 + $0x20] sm:$0xff]  ;;  %v4992_v21 = vld [vmem:[%s11240_s2 + $0xb0] sm:$0xff] }
0x1e69   :  { %v4717_v46 = vadd.f32 1.0, %v4713_v58  ;;  %v8932_v12 = vpack.c.bf16 %v4975_v33, %v4974_v49  ;;  %v4993_v58 = vld [vmem:[%s11240_s2 + $0xb8] sm:$0xff] }
0x1e6a   :  { %v10881_v28 = vmul.f32 %v4716_v63, %v4714_v59  ;;  %v8934_v59 = vpack.c.bf16 %v4993_v58, %v4992_v21  ;;  %v4976_v63 = vld [vmem:[%s11240_s2 + $0x30] sm:$0xff] }
0x1e6b   :  { %v10883_v30 = vmul.f32 %v4717_v46, %v4715_v45  ;;  %v4977_v45 = vld [vmem:[%s11240_s2 + $0x38] sm:$0xff] }
0x1e6c   :  { %v4727_v23 = vmul.f32 %v10881_v28, %v10881_v28  ;;  %v8936_v46 = vpack.c.bf16 %v4977_v45, %v4976_v63 }
0x1e6d   :  { %v4728_v27 = vmul.f32 %v10883_v30, %v10883_v30  ;;  %v4720_v15 = vadd.f32 %v10883_v30, %v10881_v28 }
0x1e6f   :  { %v4721_v22 = vrot.slane %v4720_v15, 4  ;;  %v4729_v13 = vadd.f32 %v4728_v27, %v4727_v23  ;;  %v4994_v23 = vld [vmem:[%s11240_s2 + $0xc0] sm:$0xff]  ;;  %v4995_v27 = vld [vmem:[%s11240_s2 + $0xc8] sm:$0xff] }
0x1e71   :  { %v4722_v39 = vadd.f32 %v4721_v22, %v4720_v15  ;;  %v4730_v44 = vrot.slane %v4729_v13, 4  ;;  %v8938_v15 = vpack.c.bf16 %v4995_v27, %v4994_v23  ;;  %v4978_v22 = vld [vmem:[%s11240_s2 + $0x40] sm:$0xff] }
0x1e73   :  { %v4723_v11 = vrot.slane %v4722_v39, 2  ;;  %v4731_v9 = vadd.f32 %v4730_v44, %v4729_v13  ;;  %v4979_v13 = vld [vmem:[%s11240_s2 + $0x48] sm:$0xff]  ;;  %v4996_v44 = vld [vmem:[%s11240_s2 + $0xd0] sm:$0xff] }
0x1e75   :  { %v4724_v18 = vadd.f32 %v4723_v11, %v4722_v39  ;;  %v4732_v54 = vrot.slane %v4731_v9, 2  ;;  %v8940_v39 = vpack.c.bf16 %v4979_v13, %v4978_v22  ;;  %v4997_v11 = vld [vmem:[%s11240_s2 + $0xd8] sm:$0xff] }
0x1e77   :  { %v4725_v52 = vrot.slane %v4724_v18, 1  ;;  %v4733_v40 = vadd.f32 %v4732_v54, %v4731_v9  ;;  %v8942_v9 = vpack.c.bf16 %v4997_v11, %v4996_v44  ;;  %v4981_v54 = vld [vmem:[%s11240_s2 + $0x58] sm:$0xff] }
0x1e79   :  { %v4734_v8 = vrot.slane %v4733_v40, 1  ;;  %v4726_v36 = vadd.f32 %v4725_v52, %v4724_v18  ;;  %v4980_v18 = vld [vmem:[%s11240_s2 + $0x50] sm:$0xff] }
0x1e7a   :  { %v8944_v52 = vpack.c.bf16 %v4981_v54, %v4980_v18 }
0x1e7b   :  { %v4735_v10 = vadd.f32 %v4734_v8, %v4733_v40  ;;  %v4998_v40 = vld [vmem:[%s11240_s2 + $0xe0] sm:$0xff]  ;;  %v4999_v8 = vld [vmem:[%s11240_s2 + $0xe8] sm:$0xff] }
0x1e7d   :  { %v4736_v55 = vsel %vm1008_vm7, %v4726_v36, %v4735_v10  ;;  %v8946_v36 = vpack.c.bf16 %v4999_v8, %v4998_v40  ;;  %v4982_v10 = vld [vmem:[%s11240_s2 + $0x60] sm:$0xff] }
0x1e7e   :  { %7975 = vmatmul.mubr.f32.vlgmr.msra.gmra.mrb[44].mxu0 %v4736_v55  ;;  %v4983_v55 = vld [vmem:[%s11240_s2 + $0x68] sm:$0xff] }
0x1e7f   :  { %8000 = vmatprep.mubr.msk.f32.mxu0 %vm9700_vm6, %v9698_v0 }
0x1f51   :  { %v4803_v14 = vpop.f32.mrb[44].mxu0 }
0x1f52   :  { %v4807_v56 = vmul.f32 0.0078125, %v4803_v14  ;;  %v7976_v48 = vpop.f32.mrb[45].mxu0  ;;  %v8948_v14 = vpack.c.bf16 %v4983_v55, %v4982_v10 }
0x1f53   :  { %v5001_v48 = vld [vmem:[%s11240_s2 + $0xf8] sm:$0xff] }
0x1f54   :  { %v4808_v42 = vmul.f32 %v4807_v56, %v4807_v56 }
0x1f56   :  { %v4810_v19 = vrot.slane %v4808_v42, 7 }
0x1f58   :  { %v4812_v5 = vsub.f32 %v4807_v56, %v4810_v19  ;;  %v4984_v19 = vld [vmem:[%s11240_s2 + $0x70] sm:$0xff] }
0x1f5a   :  { %v4813_v1 = vadd.f32 1e-05, %v4812_v5  ;;  %v4985_v5 = vld [vmem:[%s11240_s2 + $0x78] sm:$0xff] }
0x1f5c   :  { %9235 = vrsqrt.f32 %v4813_v1  ;;  %v8952_v1 = vpack.c.bf16 %v4985_v5, %v4984_v19 }
0x1f66   :  { %v9236_v29 = vpop.eup %9235 }
0x1f67   :  { %v4816_v6 = vrot.slane %v9236_v29, 3 }
0x1f69   :  { %v4818_v3 = vmul.f32 %v4816_v6, %v10703_v53 }
0x1f6b   :  { %v4820_v32 = vrot.slane %v4818_v3, 6 }
0x1f6d   :  { %v4822_v35 = vmul.f32 %v4820_v32, %v4807_v56  ;;  %v5000_v56 = vld [vmem:[%s11240_s2 + $0xf0] sm:$0xff] }
0x1f6e   :  { %v8950_v42 = vpack.c.bf16 %v5001_v48, %v5000_v56 }
0x1f6f   :  { %v4824_v2 = vrot.slane %v4822_v35, 1 }
0x1f71   :  { %v4826_v24 = vsub.f32 %v10703_v53, %v4824_v2  ;;  %v4989_v53 = vld [vmem:[%s11240_s2 + $0x98] sm:$0xff] }
0x1f72   :  { %v8926_v20 = vpack.c.bf16 %v4989_v53, %v4988_v38 }
0x1f73   :  { %v4828_v26 = vrot.slane %v4826_v24, 6 }
0x1f75   :  { %v4830_v62 = vsel %vm1008_vm7, %v4820_v32, %v4828_v26 }
0x1f76   :  { %7982 = vmatmul.mubr.msk.f32.vlgmr.msra.gmra.mrb[44].mxu1 %vm3885_vm13, %v4830_v62 }
0x1f77   :  { %8925 = vmatpush3.bf16.msra.mxu1 %v8924_v7 }
0x1f78   :  { %8927 = vmatprep.subr.bf16.mxu1 %v8926_v20 }
0x1f7b   :  { %8929 = vmatpush3.bf16.msra.mxu1 %v8928_v61 }
0x1f7c   :  { %8931 = vmatprep.subr.bf16.mxu1 %v8930_v31 }
0x1f7f   :  { %8933 = vmatpush3.bf16.msra.mxu1 %v8932_v12 }
0x1f80   :  { %8935 = vmatprep.subr.bf16.mxu1 %v8934_v59 }
0x1f83   :  { %8937 = vmatpush3.bf16.msra.mxu1 %v8936_v46 }
0x1f84   :  { %8939 = vmatprep.subr.bf16.mxu1 %v8938_v15 }
0x1f87   :  { %8941 = vmatpush3.bf16.msra.mxu1 %v8940_v39 }
0x1f88   :  { %8943 = vmatprep.subr.bf16.mxu1 %v8942_v9 }
0x1f8b   :  { %8945 = vmatpush3.bf16.msra.mxu1 %v8944_v52 }
0x1f8c   :  { %8947 = vmatprep.subr.bf16.mxu1 %v8946_v36 }
0x1f8f   :  { %8949 = vmatpush3.bf16.msra.mxu1 %v8948_v14 }
0x1f90   :  { %8951 = vmatprep.subr.bf16.mxu1 %v8950_v42 }
0x1f93   :  { %8953 = vmatpush3.bf16.msra.mxu1 %v8952_v1 }
0x1f94   :  { %9002 = vmatprep.subr.bf16.mxu1 %v9699_v37 }
0x2049   :  { %v4900_v29 = vpop.f32.mrb[44].mxu1 }
0x204a   :  { %v4907_v6 = vrot.slane %v4900_v29, %v10016_v43  ;;  %v7983_v3 = vpop.f32.mrb[45].mxu1  ;;  %v4913_v2 = vrot.slane %v4900_v29, %v10013_v41 }
0x204b   :  { %v5042_v3 = vld [vmem:[%s11241_s7] sm:$0xff] }
0x204c   :  { %v4908_v32 = vmul.f32 %v4907_v6, %v10881_v28  ;;  %v4909_v35 = vmul.f32 %v4907_v6, %v10883_v30 }
0x204e   :  { %v4914_v24 = vadd.f32 %v4913_v2, %v4908_v32  ;;  %v4915_v26 = vadd.f32 %v4913_v2, %v4909_v35  ;;  %v5043_v32 = vld [vmem:[%s11241_s7 + $0x8] sm:$0xff]  ;;  %v5044_v2 = vld [vmem:[%s11241_s7 + $0x10] sm:$0xff] }
0x204f   :  { %v10949_v35 = vpack.c.bf16 %v5043_v32, %v5042_v3 }
0x2050   :  { %v4916_v62 = vmul.f32 0.70710677, %v4914_v24  ;;  %v4917_v60 = vmul.f32 0.70710677, %v4915_v26  ;;  %v4964_v14 = vmul.f32 0.5, %v4914_v24  ;;  %v4965_v48 = vmul.f32 0.5, %v4915_v26 }
0x2051   :  { %8956 = vmatpush3.bf16.msra.mxu0 %v10949_v35  ;;  %v5045_v24 = vld [vmem:[%s11241_s7 + $0x18] sm:$0xff] }
0x2052   :  { %v4918_v51 = vand.u32 2147483647, %v4916_v62  ;;  %v4919_v16 = vand.u32 2147483647, %v4917_v60  ;;  %vm4958_vm5 = vcmp.ge.f32.partialorder %v4916_v62, 0.0  ;;  %vm4959_vm9 = vcmp.ge.f32.partialorder %v4917_v60, 0.0  ;;  %8957 = vmatprep.subr.bf16.mxu0 %v9699_v37 }
0x2053   :  { %v10957_v26 = vpack.c.bf16 %v5045_v24, %v5044_v2  ;;  %v5046_v62 = vld [vmem:[%s11241_s7 + $0x20] sm:$0xff]  ;;  %v5047_v60 = vld [vmem:[%s11241_s7 + $0x28] sm:$0xff] }
0x2054   :  { %v4920_v47 = vmul.f32 0.3275911, %v4918_v51  ;;  %v4921_v34 = vmul.f32 0.3275911, %v4919_v16  ;;  %v4946_v53 = vsub.f32 0.0, %v4918_v51  ;;  %v4947_v20 = vsub.f32 0.0, %v4919_v16 }
0x2055   :  { %8959 = vmatpush3.bf16.msra.mxu0 %v10957_v26  ;;  %v5002_v2 = vld [vmem:[%s11243_s4] sm:$0xff]  ;;  %v5003_v24 = vld [vmem:[%s11243_s4 + $0x8] sm:$0xff] }
0x2056   :  { %v4922_v7 = vadd.f32 1.0, %v4920_v47  ;;  %v4923_v38 = vadd.f32 1.0, %v4921_v34  ;;  %v4948_v28 = vmul.f32 %v4946_v53, %v4918_v51  ;;  %v4949_v61 = vmul.f32 %v4947_v20, %v4919_v16  ;;  %8960 = vmatprep.subr.bf16.mxu0 %v9699_v37  ;;  %v5048_v16 = vld [vmem:[%s11241_s7 + $0x30] sm:$0xff]  ;;  %v5049_v47 = vld [vmem:[%s11241_s7 + $0x38] sm:$0xff] }
0x2057   :  { %v10965_v51 = vpack.c.bf16 %v5047_v60, %v5046_v62  ;;  %v10970_v34 = vpack.c.bf16 %v5049_v47, %v5048_v16  ;;  %v5004_v62 = vld [vmem:[%s11243_s4 + $0x10] sm:$0xff]  ;;  %v8967_v60 = vpack.c.bf16 %v5003_v24, %v5002_v2  ;;  %v5005_v16 = vld [vmem:[%s11243_s4 + $0x18] sm:$0xff] }
0x2058   :  { %9237 = vrcp.f32 %v4922_v7  ;;  %v4950_v49 = vmul.f32 1.442695, %v4948_v28  ;;  %v4952_v12 = vmul.f32 1.442695, %v4949_v61  ;;  %v10980_v7 = vld [vmem:[%s11242_s19] sm:$0x7]  ;;  %v8970_v47 = vpack.c.bf16 %v5005_v16, %v5004_v62 }
0x2059   :  { %9239 = vrcp.f32 %v4923_v38  ;;  %8962 = vmatpush3.bf16.msra.mxu0 %v10965_v51  ;;  %v5064_v53 = vrot.slane %v10980_v7, %v10016_v43 }
0x205a   :  { %9241 = vpow2.f32 %v4950_v49  ;;  %8963 = vmatprep.subr.bf16.mxu0 %v9699_v37 }
0x205b   :  { %9243 = vpow2.f32 %v4952_v12 }
0x205d   :  { %8965 = vmatpush3.bf16.msra.mxu0 %v10970_v34 }
0x205e   :  { %8003 = vmatprep.subr.mxu0 %v9698_v0 }
0x2062   :  { %v9238_v17 = vpop.eup %9237 }
0x2063   :  { %v9240_v57 = vpop.eup %9239  ;;  %v4928_v30 = vmul.f32 1.0614054, %v9238_v17 }
0x2064   :  { %v4929_v25 = vmul.f32 1.0614054, %v9240_v57  ;;  %v9242_v44 = vpop.eup %9241 }
0x2065   :  { %v4930_v4 = vadd.f32 -1.4531521, %v4928_v30  ;;  %v9244_v9 = vpop.eup %9243 }
0x2066   :  { %v4931_v31 = vadd.f32 -1.4531521, %v4929_v25 }
0x2067   :  { %v4932_v33 = vmul.f32 %v9238_v17, %v4930_v4 }
0x2068   :  { %v4933_v21 = vmul.f32 %v9240_v57, %v4931_v31 }
0x2069   :  { %v4934_v58 = vadd.f32 1.4214138, %v4932_v33 }
0x206a   :  { %v4935_v59 = vadd.f32 1.4214138, %v4933_v21 }
0x206b   :  { %v4936_v63 = vmul.f32 %v9238_v17, %v4934_v58 }
0x206c   :  { %v4937_v45 = vmul.f32 %v9240_v57, %v4935_v59 }
0x206d   :  { %v4938_v46 = vadd.f32 -0.28449672, %v4936_v63 }
0x206e   :  { %v4939_v23 = vadd.f32 -0.28449672, %v4937_v45 }
0x206f   :  { %v4940_v27 = vmul.f32 %v9238_v17, %v4938_v46 }
0x2070   :  { %v4941_v15 = vmul.f32 %v9240_v57, %v4939_v23 }
0x2071   :  { %v4942_v22 = vadd.f32 0.2548296, %v4940_v27 }
0x2072   :  { %v4943_v13 = vadd.f32 0.2548296, %v4941_v15 }
0x2073   :  { %v4944_v39 = vmul.f32 %v9238_v17, %v4942_v22 }
0x2074   :  { %v4945_v11 = vmul.f32 %v9240_v57, %v4943_v13 }
0x2075   :  { %v4954_v18 = vmul.f32 %v9242_v44, %v4944_v39 }
0x2076   :  { %v4955_v54 = vmul.f32 %v9244_v9, %v4945_v11 }
0x2077   :  { %v4956_v52 = vsub.f32 1.0, %v4954_v18 }
0x2078   :  { %v4957_v40 = vsub.f32 1.0, %v4955_v54  ;;  %v11002_v54 = vld [vmem:[#allocation25] sm:$0xf] }
0x2079   :  { %v4960_v8 = vsub.f32 0.0, %v4956_v52 }
0x207a   :  { %v4961_v36 = vsub.f32 0.0, %v4957_v40 }
0x207b   :  { %v4962_v10 = vsel %vm4958_vm5, %v4956_v52, %v4960_v8 }
0x207c   :  { %v4963_v55 = vsel %vm4959_vm9, %v4957_v40, %v4961_v36  ;;  %v4966_v56 = vadd.f32 1.0, %v4962_v10 }
0x207d   :  { %v4967_v42 = vadd.f32 1.0, %v4963_v55 }
0x207e   :  { %v10935_v19 = vmul.f32 %v4966_v56, %v4964_v14 }
0x207f   :  { %v10937_v5 = vmul.f32 %v4967_v42, %v4965_v48  ;;  %v11008_v48 = vld [vmem:[%s9860_s9] sm:$0xff]  ;;  %s9701_s9 = smov 64  }
0x2080   :  { %v5055_v1 = vrot.slane %v10935_v19, 2 }
0x2081   :  { %v5056_v29 = vrot.slane %v10937_v5, 2 }
0x2083   :  { %v5057_v6 = vsel %vm724_vm3, %v5055_v1, %v5056_v29 }
0x2084   :  { %5129 = vmatprep.mubr.f32.mxu1 %v5057_v6 }
0x2085   :  { %5130 = vmatmul.mubr.f32.vlgmr.msra.gmra.mrb[46].mxu1 %v10935_v19 }
0x2086   :  { %6470 = vmatprep.mubr.msk.f32.mxu1 %vm724_vm3, %v5056_v29  ;;  %9004 = vmatpush3.bf16.msra.mxu1 %v10949_v35 }
0x2087   :  { %9005 = vmatprep.subr.bf16.mxu1 %v9699_v37 }
0x2089   :  { %5135 = vmatmul.mubr.f32.gmra.mrb[48].mxu1 %v10937_v5 }
0x208a   :  { %8024 = vmatprep.mubr.msk.f32.mxu1 %vm9700_vm6, %v9698_v0  ;;  %9007 = vmatpush3.bf16.msra.mxu1 %v10957_v26 }
0x208b   :  { %9008 = vmatprep.subr.bf16.mxu1 %v9699_v37 }
0x208e   :  { %9010 = vmatpush3.bf16.msra.mxu1 %v10965_v51 }
0x208f   :  { %9011 = vmatprep.subr.bf16.mxu1 %v9699_v37 }
0x2092   :  { %9013 = vmatpush3.bf16.msra.mxu1 %v10970_v34 }
0x2093   :  { %8027 = vmatprep.subr.mxu1 %v9698_v0 }
0x2158   :  { %v7128_v38 = vpop.f32.mrb[46].mxu1 }
0x2159   :  { %v7129_v20 = vpop.f32.mrb[47].mxu1 }
0x215a   :  { %v7130_v17 = vadd.f32 %v7129_v20, %v7128_v38  ;;  %v5006_v38 = vld [vmem:[%s11243_s4 + $0x20] sm:$0xff] }
0x215c   :  { %v10984_v28 = vadd.f32 %v7130_v17, %v5064_v53  ;;  %v7131_v57 = vpop.f32.mrb[48].mxu1  ;;  %v5008_v17 = vld [vmem:[%s11243_s4 + $0x30] sm:$0xff] }
0x215d   :  { %v7132_v30 = vpop.f32.mrb[49].mxu1 }
0x215e   :  { %v7133_v61 = vadd.f32 %v7132_v30, %v7131_v57  ;;  %v5149_v25 = vmul.f32 %v10984_v28, %v10984_v28  ;;  %v5140_v31 = vsel %vm1098_vm8, %v10984_v28, 0.0  ;;  %v5009_v57 = vld [vmem:[%s11243_s4 + $0x38] sm:$0xff] }
0x215f   :  { %v8976_v30 = vpack.c.bf16 %v5009_v57, %v5008_v17 }
0x2160   :  { %v10988_v4 = vadd.f32 %v7133_v61, %v5064_v53  ;;  %v5151_v21 = vsel %vm1098_vm8, %v5149_v25, 0.0  ;;  %v5007_v53 = vld [vmem:[%s11243_s4 + $0x28] sm:$0xff]  ;;  %v5010_v61 = vld [vmem:[%s11243_s4 + $0x40] sm:$0xff] }
0x2161   :  { %v8973_v20 = vpack.c.bf16 %v5007_v53, %v5006_v38  ;;  %v5011_v25 = vld [vmem:[%s11243_s4 + $0x48] sm:$0xff] }
0x2162   :  { %v5141_v49 = vsel %vm1098_vm8, %v10988_v4, 0.0  ;;  %v5150_v33 = vmul.f32 %v10988_v4, %v10988_v4 }
0x2163   :  { %v5142_v12 = vadd.f32 %v5141_v49, %v5140_v31  ;;  %v8979_v31 = vpack.c.bf16 %v5011_v25, %v5010_v61  ;;  %v5012_v49 = vld [vmem:[%s11243_s4 + $0x50] sm:$0xff] }
0x2164   :  { %v5152_v58 = vsel %vm1098_vm8, %v5150_v33, 0.0  ;;  %v5013_v33 = vld [vmem:[%s11243_s4 + $0x58] sm:$0xff] }
0x2165   :  { %v5143_v59 = vrot.slane %v5142_v12, 4  ;;  %v5153_v63 = vadd.f32 %v5152_v58, %v5151_v21  ;;  %v5014_v21 = vld [vmem:[%s11243_s4 + $0x60] sm:$0xff]  ;;  %v5015_v58 = vld [vmem:[%s11243_s4 + $0x68] sm:$0xff] }
0x2167   :  { %v5144_v45 = vadd.f32 %v5143_v59, %v5142_v12  ;;  %v5154_v46 = vrot.slane %v5153_v63, 4  ;;  %v8982_v12 = vpack.c.bf16 %v5013_v33, %v5012_v49  ;;  %v8985_v59 = vpack.c.bf16 %v5015_v58, %v5014_v21 }
0x2169   :  { %v5145_v23 = vrot.slane %v5144_v45, 2  ;;  %v5155_v27 = vadd.f32 %v5154_v46, %v5153_v63  ;;  %v5016_v63 = vld [vmem:[%s11243_s4 + $0x70] sm:$0xff] }
0x216b   :  { %v5146_v15 = vadd.f32 %v5145_v23, %v5144_v45  ;;  %v5156_v22 = vrot.slane %v5155_v27, 2  ;;  %v5017_v45 = vld [vmem:[%s11243_s4 + $0x78] sm:$0xff]  ;;  %v5018_v23 = vld [vmem:[%s11243_s4 + $0x80] sm:$0xff] }
0x216c   :  { %v8988_v46 = vpack.c.bf16 %v5017_v45, %v5016_v63 }
0x216d   :  { %v5147_v13 = vrot.slane %v5146_v15, 1  ;;  %v5157_v39 = vadd.f32 %v5156_v22, %v5155_v27  ;;  %v5019_v27 = vld [vmem:[%s11243_s4 + $0x88] sm:$0xff]  ;;  %v5020_v22 = vld [vmem:[%s11243_s4 + $0x90] sm:$0xff] }
0x216f   :  { %v5158_v44 = vrot.slane %v5157_v39, 1  ;;  %v5148_v11 = vadd.f32 %v5147_v13, %v5146_v15  ;;  %v8991_v15 = vpack.c.bf16 %v5019_v27, %v5018_v23  ;;  %v5021_v13 = vld [vmem:[%s11243_s4 + $0x98] sm:$0xff] }
0x2171   :  { %v5159_v9 = vadd.f32 %v5158_v44, %v5157_v39  ;;  %v8994_v39 = vpack.c.bf16 %v5021_v13, %v5020_v22  ;;  %v5022_v44 = vld [vmem:[%s11243_s4 + $0xa0] sm:$0xff] }
0x2173   :  { %v5160_v18 = vsel %vm1008_vm7, %v5148_v11, %v5159_v9  ;;  %v5023_v11 = vld [vmem:[%s11243_s4 + $0xa8] sm:$0xff] }
0x2174   :  { %8001 = vmatmul.mubr.msk.f32.vlgmr.msra.gmra.mrb[46].mxu0 %vm1098_vm8, %v5160_v18  ;;  %v8997_v9 = vpack.c.bf16 %v5023_v11, %v5022_v44  ;;  %v5024_v18 = vld [vmem:[%s11243_s4 + $0xb0] sm:$0xff] }
0x2175   :  { %8005 = vmatprep.mubr.msk.f32.mxu0 %vm9700_vm6, %v9698_v0  ;;  %8004 = vmatpush3.msk.msra.mxu0 %vm722_vm2, %v11002_v54 }
0x2176   :  { %8966 = vmatprep.subr.bf16.mxu0 %v9699_v37 }
0x2247   :  { %v5230_v52 = vpop.f32.mrb[46].mxu0 }
0x2248   :  { %v5234_v40 = vmul.f32 0.00390625, %v5230_v52  ;;  %v8002_v8 = vpop.f32.mrb[47].mxu0  ;;  %v5025_v52 = vld [vmem:[%s11243_s4 + $0xb8] sm:$0xff] }
0x224a   :  { %v5235_v36 = vmul.f32 %v5234_v40, %v5234_v40 }
0x224c   :  { %v5237_v10 = vrot.slane %v5235_v36, 7 }
0x224e   :  { %v5239_v55 = vsub.f32 %v5234_v40, %v5237_v10 }
0x2250   :  { %v5240_v14 = vadd.f32 1e-05, %v5239_v55 }
0x2252   :  { %9245 = vrsqrt.f32 %v5240_v14 }
0x225c   :  { %v9246_v56 = vpop.eup %9245 }
0x225d   :  { %v5243_v42 = vrot.slane %v9246_v56, 1 }
0x225f   :  { %v5245_v1 = vmul.f32 %v5243_v42, %v11008_v48 }
0x2261   :  { %v5246_v29 = vmul.f32 %v5245_v1, %v5234_v40  ;;  %v9000_v40 = vpack.c.bf16 %v5025_v52, %v5024_v18 }
0x2263   :  { %v5248_v6 = vrot.slane %v5246_v29, 7 }
0x2265   :  { %v5250_v3 = vsub.f32 %v11008_v48, %v5248_v6 }
0x2267   :  { %v5251_v32 = vsel %vm1008_vm7, %v5245_v1, %v5250_v3 }
0x2268   :  { %8006 = vmatmul.mubr.msk.f32.vlgmr.msra.gmra.mrb[48].mxu0 %vm5252_vm10, %v5251_v32 }
0x2269   :  { %8968 = vmatpush1.bf16.msra.mxu0 %v8967_v60 }
0x226a   :  { %8969 = vmatprep.subr.bf16.mxu0 %v9699_v37 }
0x226d   :  { %8971 = vmatpush1.bf16.msra.mxu0 %v8970_v47 }
0x226e   :  { %8972 = vmatprep.subr.bf16.mxu0 %v9699_v37 }
0x2271   :  { %8974 = vmatpush1.bf16.msra.mxu0 %v8973_v20 }
0x2272   :  { %8975 = vmatprep.subr.bf16.mxu0 %v9699_v37 }
0x2275   :  { %8977 = vmatpush1.bf16.msra.mxu0 %v8976_v30 }
0x2276   :  { %8978 = vmatprep.subr.bf16.mxu0 %v9699_v37 }
0x2279   :  { %8980 = vmatpush1.bf16.msra.mxu0 %v8979_v31 }
0x227a   :  { %8981 = vmatprep.subr.bf16.mxu0 %v9699_v37 }
0x227d   :  { %8983 = vmatpush1.bf16.msra.mxu0 %v8982_v12 }
0x227e   :  { %8984 = vmatprep.subr.bf16.mxu0 %v9699_v37 }
0x2281   :  { %8986 = vmatpush1.bf16.msra.mxu0 %v8985_v59 }
0x2282   :  { %8987 = vmatprep.subr.bf16.mxu0 %v9699_v37 }
0x2285   :  { %8989 = vmatpush1.bf16.msra.mxu0 %v8988_v46 }
0x2286   :  { %8990 = vmatprep.subr.bf16.mxu0 %v9699_v37 }
0x2289   :  { %8992 = vmatpush1.bf16.msra.mxu0 %v8991_v15 }
0x228a   :  { %8993 = vmatprep.subr.bf16.mxu0 %v9699_v37 }
0x228d   :  { %8995 = vmatpush1.bf16.msra.mxu0 %v8994_v39 }
0x228e   :  { %8996 = vmatprep.subr.bf16.mxu0 %v9699_v37 }
0x2291   :  { %8998 = vmatpush1.bf16.msra.mxu0 %v8997_v9 }
0x2292   :  { %8999 = vmatprep.subr.bf16.mxu0 %v9699_v37 }
0x2295   :  { %9001 = vmatpush1.bf16.msra.mxu0 %v9000_v40 }
0x2296   :  { %9046 = vmatprep.subr.bf16.mxu0 %v9699_v37 }
0x233b   :  { %v5325_v8 = vpop.f32.mrb[48].mxu0 }
0x233c   :  { %v5332_v36 = vrot.slane %v5325_v8, %v10016_v43  ;;  %v8007_v10 = vpop.f32.mrb[49].mxu0  ;;  %v5338_v56 = vrot.slane %v5325_v8, %v10013_v41 }
0x233e   :  { %v5333_v55 = vmul.f32 %v5332_v36, %v10984_v28  ;;  %v5334_v14 = vmul.f32 %v5332_v36, %v10988_v4 }
0x2340   :  { %v5339_v42 = vadd.f32 %v5338_v56, %v5333_v55  ;;  %v5340_v1 = vadd.f32 %v5338_v56, %v5334_v14 }
0x2342   :  { %v5341_v29 = vmul.f32 0.70710677, %v5339_v42  ;;  %v5342_v6 = vmul.f32 0.70710677, %v5340_v1  ;;  %v5389_v10 = vmul.f32 0.5, %v5339_v42  ;;  %v5390_v14 = vmul.f32 0.5, %v5340_v1 }
0x2344   :  { %v5343_v3 = vand.u32 2147483647, %v5341_v29  ;;  %v5344_v32 = vand.u32 2147483647, %v5342_v6  ;;  %vm5383_vm0 = vcmp.ge.f32.partialorder %v5341_v29, 0.0  ;;  %vm5384_vm12 = vcmp.ge.f32.partialorder %v5342_v6, 0.0 }
0x2346   :  { %v5345_v2 = vmul.f32 0.3275911, %v5343_v3  ;;  %v5346_v24 = vmul.f32 0.3275911, %v5344_v32  ;;  %v5371_v16 = vsub.f32 0.0, %v5343_v3  ;;  %v5372_v47 = vsub.f32 0.0, %v5344_v32 }
0x2348   :  { %v5347_v62 = vadd.f32 1.0, %v5345_v2  ;;  %v5348_v60 = vadd.f32 1.0, %v5346_v24  ;;  %v5373_v28 = vmul.f32 %v5371_v16, %v5343_v3  ;;  %v5374_v20 = vmul.f32 %v5372_v47, %v5344_v32 }
0x234a   :  { %9247 = vrcp.f32 %v5347_v62  ;;  %v5375_v61 = vmul.f32 1.442695, %v5373_v28  ;;  %v5377_v31 = vmul.f32 1.442695, %v5374_v20 }
0x234b   :  { %9249 = vrcp.f32 %v5348_v60 }
0x234c   :  { %9251 = vpow2.f32 %v5375_v61 }
0x234d   :  { %9253 = vpow2.f32 %v5377_v31 }
0x2354   :  { %v9248_v38 = vpop.eup %9247 }
0x2355   :  { %v9250_v53 = vpop.eup %9249  ;;  %v5353_v4 = vmul.f32 1.0614054, %v9248_v38 }
0x2356   :  { %v5354_v17 = vmul.f32 1.0614054, %v9250_v53  ;;  %v9252_v22 = vpop.eup %9251 }
0x2357   :  { %v5355_v57 = vadd.f32 -1.4531521, %v5353_v4  ;;  %v9254_v39 = vpop.eup %9253 }
0x2358   :  { %v5356_v30 = vadd.f32 -1.4531521, %v5354_v17 }
0x2359   :  { %v5357_v25 = vmul.f32 %v9248_v38, %v5355_v57 }
0x235a   :  { %v5358_v49 = vmul.f32 %v9250_v53, %v5356_v30 }
0x235b   :  { %v5359_v33 = vadd.f32 1.4214138, %v5357_v25 }
0x235c   :  { %v5360_v12 = vadd.f32 1.4214138, %v5358_v49 }
0x235d   :  { %v5361_v21 = vmul.f32 %v9248_v38, %v5359_v33 }
0x235e   :  { %v5362_v58 = vmul.f32 %v9250_v53, %v5360_v12 }
0x235f   :  { %v5363_v59 = vadd.f32 -0.28449672, %v5361_v21 }
0x2360   :  { %v5364_v63 = vadd.f32 -0.28449672, %v5362_v58 }
0x2361   :  { %v5365_v45 = vmul.f32 %v9248_v38, %v5363_v59 }
0x2362   :  { %v5366_v46 = vmul.f32 %v9250_v53, %v5364_v63 }
0x2363   :  { %v5367_v23 = vadd.f32 0.2548296, %v5365_v45 }
0x2364   :  { %v5368_v27 = vadd.f32 0.2548296, %v5366_v46 }
0x2365   :  { %v5369_v15 = vmul.f32 %v9248_v38, %v5367_v23 }
0x2366   :  { %v5370_v13 = vmul.f32 %v9250_v53, %v5368_v27  ;;  %v5419_v53 = vrot.slane %v10980_v7, %v10013_v41 }
0x2367   :  { %v5379_v44 = vmul.f32 %v9252_v22, %v5369_v15 }
0x2368   :  { %v5380_v11 = vmul.f32 %v9254_v39, %v5370_v13 }
0x2369   :  { %v5381_v9 = vsub.f32 1.0, %v5379_v44 }
0x236a   :  { %v5382_v18 = vsub.f32 1.0, %v5380_v11 }
0x236b   :  { %v5385_v52 = vsub.f32 0.0, %v5381_v9 }
0x236c   :  { %v5386_v40 = vsub.f32 0.0, %v5382_v18 }
0x236d   :  { %v5387_v8 = vsel %vm5383_vm0, %v5381_v9, %v5385_v52  ;;  %v5026_v52 = vld [vmem:[%s11244_s3] sm:$0xff] }
0x236e   :  { %v5388_v36 = vsel %vm5384_vm12, %v5382_v18, %v5386_v40  ;;  %v5391_v55 = vadd.f32 1.0, %v5387_v8  ;;  %v5027_v40 = vld [vmem:[%s11244_s3 + $0x8] sm:$0xff] }
0x236f   :  { %v5392_v56 = vadd.f32 1.0, %v5388_v36  ;;  %v9014_v8 = vpack.c.bf16 %v5027_v40, %v5026_v52 }
0x2370   :  { %v5393_v3 = vmul.f32 %v5391_v55, %v5389_v10 }
0x2371   :  { %v5394_v32 = vmul.f32 %v5392_v56, %v5390_v14 }
0x2372   :  { %v5402_v2 = vrot.slane %v5393_v3, 6  ;;  %v5397_v24 = vrot.slane %v5393_v3, 2 }
0x2373   :  { %v5398_v62 = vrot.slane %v5394_v32, 2  ;;  %v5403_v42 = vrot.slane %v5394_v32, 6 }
0x2374   :  { %v5406_v60 = vsel %vm720_vm1, 0.0, %v5402_v2 }
0x2375   :  { %6474 = vmatprep.mubr.msk.f32.mxu0 %vm1098_vm8, %v5406_v60  ;;  %v5399_v16 = vsel %vm724_vm3, %v5397_v24, %v5398_v62  ;;  %v5401_v29 = vsel %vm724_vm3, %v5398_v62, 0.0  ;;  %v5404_v47 = vsel %vm720_vm1, %v5402_v2, %v5403_v42 }
0x2376   :  { %5408 = vrot.lane.b32.xlu0 %v5399_v16, %s9701_s9 }
0x237a   :  { %5410 = vrot.lane.b32.xlu0 %v5401_v29, %s9701_s9 }
0x23e8   :  { %v5409_v6 = vpop.permute.xlu0 %5408 }
0x23e9   :  { %v5414_v1 = vsel %vm1098_vm8, %v5393_v3, %v5409_v6  ;;  %v5028_v6 = vld [vmem:[%s11244_s3 + $0x10] sm:$0xff] }
0x23ea   :  { %5490 = vmatmul.mubr.f32.vlgmr.msra.gmra.mrb[50].mxu0 %v5414_v1  ;;  %v5029_v1 = vld [vmem:[%s11244_s3 + $0x18] sm:$0xff] }
0x23eb   :  { %6475 = vmatprep.mubr.msk.f32.mxu0 %vm1098_vm8, %v5404_v47  ;;  %9048 = vmatpush3.bf16.msra.mxu0 %v10949_v35 }
0x23ec   :  { %v5411_v38 = vpop.permute.xlu0 %5410  ;;  %9049 = vmatprep.subr.bf16.mxu0 %v9699_v37 }
0x23ed   :  { %v5415_v28 = vsel %vm1098_vm8, %v5394_v32, %v5411_v38  ;;  %v9018_v38 = vpack.c.bf16 %v5029_v1, %v5028_v6 }
0x23ee   :  { %5495 = vmatmul.mubr.f32.gmra.mrb[52].mxu0 %v5415_v28 }
0x23ef   :  { %9051 = vmatpush3.bf16.msra.mxu0 %v10957_v26  ;;  %8083 = vmatprep.mubr.msk.f32.mxu0 %vm9700_vm6, %v9698_v0 }
0x23f0   :  { %9052 = vmatprep.subr.bf16.mxu0 %v9699_v37 }
0x23f3   :  { %9054 = vmatpush3.bf16.msra.mxu0 %v10965_v51 }
0x23f4   :  { %9055 = vmatprep.subr.bf16.mxu0 %v9699_v37 }
0x23f7   :  { %9057 = vmatpush3.bf16.msra.mxu0 %v10970_v34 }
0x23f8   :  { %8110 = vmatprep.subr.mxu0 %v9698_v0 }
0x24bd   :  { %v5491_v4 = vpop.f32.mrb[50].mxu0 }
0x24be   :  { %v11074_v20 = vadd.f32 %v5491_v4, %v5419_v53  ;;  %v5493_v17 = vpop.f32.mrb[51].mxu0  ;;  %v5031_v4 = vld [vmem:[%s11244_s3 + $0x28] sm:$0xff] }
0x24c0   :  { %v5509_v30 = vmul.f32 %v11074_v20, %v11074_v20  ;;  %v5500_v31 = vsel %vm1098_vm8, %v11074_v20, 0.0 }
0x24c1   :  { %v5496_v57 = vpop.f32.mrb[52].mxu0 }
0x24c2   :  { %v11078_v61 = vadd.f32 %v5496_v57, %v5419_v53  ;;  %v5498_v25 = vpop.f32.mrb[53].mxu0  ;;  %v5511_v21 = vsel %vm1098_vm8, %v5509_v30, 0.0  ;;  %v5030_v53 = vld [vmem:[%s11244_s3 + $0x20] sm:$0xff]  ;;  %v5032_v57 = vld [vmem:[%s11244_s3 + $0x30] sm:$0xff]  ;;  %v5033_v30 = vld [vmem:[%s11244_s3 + $0x38] sm:$0xff] }
0x24c3   :  { %v9022_v17 = vpack.c.bf16 %v5031_v4, %v5030_v53  ;;  %v9026_v25 = vpack.c.bf16 %v5033_v30, %v5032_v57 }
0x24c4   :  { %v5501_v49 = vsel %vm1098_vm8, %v11078_v61, 0.0  ;;  %v5510_v33 = vmul.f32 %v11078_v61, %v11078_v61 }
0x24c5   :  { %v5502_v12 = vadd.f32 %v5501_v49, %v5500_v31  ;;  %v5034_v31 = vld [vmem:[%s11244_s3 + $0x40] sm:$0xff]  ;;  %v5035_v49 = vld [vmem:[%s11244_s3 + $0x48] sm:$0xff] }
0x24c6   :  { %v5512_v58 = vsel %vm1098_vm8, %v5510_v33, 0.0  ;;  %v9030_v33 = vpack.c.bf16 %v5035_v49, %v5034_v31 }
0x24c7   :  { %v5503_v59 = vrot.slane %v5502_v12, 4  ;;  %v5513_v63 = vadd.f32 %v5512_v58, %v5511_v21  ;;  %v5037_v21 = vld [vmem:[%s11244_s3 + $0x58] sm:$0xff]  ;;  %v5038_v58 = vld [vmem:[%s11244_s3 + $0x60] sm:$0xff] }
0x24c9   :  { %v5504_v45 = vadd.f32 %v5503_v59, %v5502_v12  ;;  %v5514_v46 = vrot.slane %v5513_v63, 4  ;;  %v5036_v12 = vld [vmem:[%s11244_s3 + $0x50] sm:$0xff]  ;;  %v5039_v59 = vld [vmem:[%s11244_s3 + $0x68] sm:$0xff] }
0x24cb   :  { %v5505_v23 = vrot.slane %v5504_v45, 2  ;;  %v5515_v27 = vadd.f32 %v5514_v46, %v5513_v63  ;;  %v9038_v63 = vpack.c.bf16 %v5039_v59, %v5038_v58  ;;  %v5041_v46 = vld [vmem:[%s11244_s3 + $0x78] sm:$0xff] }
0x24cd   :  { %v5506_v15 = vadd.f32 %v5505_v23, %v5504_v45  ;;  %v5516_v22 = vrot.slane %v5515_v27, 2  ;;  %v5040_v45 = vld [vmem:[%s11244_s3 + $0x70] sm:$0xff] }
0x24ce   :  { %v9042_v23 = vpack.c.bf16 %v5041_v46, %v5040_v45 }
0x24cf   :  { %v5507_v13 = vrot.slane %v5506_v15, 1  ;;  %v5517_v39 = vadd.f32 %v5516_v22, %v5515_v27  ;;  %v5706_v22 = vrot.slane %v10980_v7, %v10020_v50 }
0x24d1   :  { %v5518_v44 = vrot.slane %v5517_v39, 1  ;;  %v5508_v11 = vadd.f32 %v5507_v13, %v5506_v15 }
0x24d3   :  { %v5519_v9 = vadd.f32 %v5518_v44, %v5517_v39 }
0x24d5   :  { %v5520_v18 = vsel %vm1008_vm7, %v5508_v11, %v5519_v9 }
0x24d6   :  { %8025 = vmatmul.mubr.msk.f32.vlgmr.msra.gmra.mrb[50].mxu1 %vm1098_vm8, %v5520_v18 }
0x24d7   :  { %8028 = vmatpush3.msk.msra.mxu1 %vm722_vm2, %v11002_v54  ;;  %8029 = vmatprep.mubr.msk.f32.mxu1 %vm9700_vm6, %v9698_v0 }
0x24d8   :  { %9015 = vmatprep.subr.bf16.mxu1 %v9014_v8 }
0x25a9   :  { %v5590_v36 = vpop.f32.mrb[50].mxu1 }
0x25aa   :  { %v5594_v10 = vmul.f32 0.00390625, %v5590_v36  ;;  %v8026_v55 = vpop.f32.mrb[51].mxu1 }
0x25ac   :  { %v5595_v14 = vmul.f32 %v5594_v10, %v5594_v10 }
0x25ae   :  { %v5597_v56 = vrot.slane %v5595_v14, 7 }
0x25b0   :  { %v5599_v3 = vsub.f32 %v5594_v10, %v5597_v56 }
0x25b2   :  { %v5600_v32 = vadd.f32 1e-05, %v5599_v3 }
0x25b4   :  { %9255 = vrsqrt.f32 %v5600_v32 }
0x25be   :  { %v9256_v2 = vpop.eup %9255 }
0x25bf   :  { %v5603_v24 = vrot.slane %v9256_v2, 7 }
0x25c1   :  { %v5605_v62 = vmul.f32 %v5603_v24, %v11008_v48 }
0x25c3   :  { %v5607_v60 = vrot.slane %v5605_v62, 2 }
0x25c5   :  { %v5609_v16 = vmul.f32 %v5607_v60, %v5594_v10 }
0x25c7   :  { %v5611_v29 = vrot.slane %v5609_v16, 5 }
0x25c9   :  { %v5613_v42 = vsub.f32 %v11008_v48, %v5611_v29 }
0x25cb   :  { %v5615_v47 = vrot.slane %v5613_v42, 2 }
0x25cd   :  { %v5617_v28 = vsel %vm1008_vm7, %v5607_v60, %v5615_v47 }
0x25ce   :  { %8030 = vmatmul.mubr.msk.f32.vlgmr.msra.gmra.mrb[52].mxu1 %vm5252_vm10, %v5617_v28 }
0x25cf   :  { %9017 = vmatpush3.bf16.msra.mxu1 %v9014_v8  ;;  %8064 = vmatprep.mubr.f32.mxu1 %v10935_v19  ;;  %v9034_v19 = vpack.c.bf16 %v5037_v21, %v5036_v12 }
0x25d0   :  { %9019 = vmatprep.subr.bf16.mxu1 %v9018_v38 }
0x25d3   :  { %9021 = vmatpush3.bf16.msra.mxu1 %v9018_v38 }
0x25d4   :  { %9023 = vmatprep.subr.bf16.mxu1 %v9022_v17 }
0x25d7   :  { %9025 = vmatpush3.bf16.msra.mxu1 %v9022_v17 }
0x25d8   :  { %9027 = vmatprep.subr.bf16.mxu1 %v9026_v25 }
0x25db   :  { %9029 = vmatpush3.bf16.msra.mxu1 %v9026_v25 }
0x25dc   :  { %9031 = vmatprep.subr.bf16.mxu1 %v9030_v33 }
0x25df   :  { %9033 = vmatpush3.bf16.msra.mxu1 %v9030_v33 }
0x25e0   :  { %9035 = vmatprep.subr.bf16.mxu1 %v9034_v19 }
0x25e3   :  { %9037 = vmatpush3.bf16.msra.mxu1 %v9034_v19 }
0x25e4   :  { %9039 = vmatprep.subr.bf16.mxu1 %v9038_v63 }
0x25e7   :  { %9041 = vmatpush3.bf16.msra.mxu1 %v9038_v63 }
0x25e8   :  { %9043 = vmatprep.subr.bf16.mxu1 %v9042_v23 }
0x25eb   :  { %9045 = vmatpush3.bf16.msra.mxu1 %v9042_v23 }
0x25ec   :  { %8086 = vmatprep.subr.mxu1 %v9698_v0 }
0x25ee   :  { %8065 = vmatmul.mubr.f32.vlgmr.msra.gmra.mrb[54].mxu1 %v10937_v5 }
0x25ef   :  { %8087 = vmatpush3.msk.msra.mxu1 %vm722_vm2, %v11002_v54  ;;  %8088 = vmatprep.mubr.msk.f32.mxu1 %vm9700_vm6, %v9698_v0 }
0x25f0   :  { %9058 = vmatprep.subr.bf16.mxu1 %v9699_v37 }
0x26a1   :  { %v11122_v27 = vpop.f32.mrb[52].mxu1 }
0x26a2   :  { %v8031_v15 = vpop.f32.mrb[53].mxu1  ;;  %v5694_v12 = vrot.slane %v11122_v27, %v10016_v43 }
0x26c1   :  { %v8066_v13 = vpop.f32.mrb[54].mxu1 }
0x26c2   :  { %v5779_v39 = vadd.f32 %v8066_v13, %v5706_v22  ;;  %v5773_v44 = vpop.f32.mrb[55].mxu1 }
0x26c3   :  { %v5774_v11 = vadd.f32 %v5773_v44, %v5706_v22 }
0x26c4   :  { %v5783_v5 = vsel %vm1098_vm8, %v5779_v39, 0.0  ;;  %v5792_v9 = vmul.f32 %v5779_v39, %v5779_v39 }
0x26c5   :  { %v5782_v18 = vsel %vm1098_vm8, %v5774_v11, 0.0  ;;  %v5791_v52 = vmul.f32 %v5774_v11, %v5774_v11 }
0x26c6   :  { %v5794_v40 = vsel %vm1098_vm8, %v5792_v9, 0.0  ;;  %v5784_v8 = vadd.f32 %v5783_v5, %v5782_v18 }
0x26c7   :  { %v5793_v36 = vsel %vm1098_vm8, %v5791_v52, 0.0 }
0x26c8   :  { %v5785_v10 = vrot.slane %v5784_v8, 4  ;;  %v5795_v55 = vadd.f32 %v5794_v40, %v5793_v36 }
0x26ca   :  { %v5786_v14 = vadd.f32 %v5785_v10, %v5784_v8  ;;  %v5796_v56 = vrot.slane %v5795_v55, 4 }
0x26cc   :  { %v5787_v50 = vrot.slane %v5786_v14, 2  ;;  %v5797_v7 = vadd.f32 %v5796_v56, %v5795_v55 }
0x26ce   :  { %v5788_v3 = vadd.f32 %v5787_v50, %v5786_v14  ;;  %v5798_v32 = vrot.slane %v5797_v7, 2 }
0x26d0   :  { %v5789_v2 = vrot.slane %v5788_v3, 1  ;;  %v5799_v24 = vadd.f32 %v5798_v32, %v5797_v7 }
0x26d2   :  { %v5800_v62 = vrot.slane %v5799_v24, 1  ;;  %v5790_v60 = vadd.f32 %v5789_v2, %v5788_v3 }
0x26d4   :  { %v5801_v16 = vadd.f32 %v5800_v62, %v5799_v24 }
0x26d6   :  { %v5802_v29 = vsel %vm1008_vm7, %v5790_v60, %v5801_v16 }
0x26d7   :  { %8084 = vmatmul.mubr.msk.f32.vlgmr.msra.gmra.mrb[54].mxu0 %vm1098_vm8, %v5802_v29 }
0x26d8   :  { %8111 = vmatpush3.msk.msra.mxu0 %vm722_vm2, %v11002_v54  ;;  %8112 = vmatprep.mubr.msk.f32.mxu0 %vm9700_vm6, %v9698_v0 }
0x27aa   :  { %v5872_v42 = vpop.f32.mrb[54].mxu0 }
0x27ab   :  { %v5876_v6 = vmul.f32 0.00390625, %v5872_v42  ;;  %v8085_v1 = vpop.f32.mrb[55].mxu0 }
0x27ad   :  { %v5877_v47 = vmul.f32 %v5876_v6, %v5876_v6 }
0x27af   :  { %v5879_v38 = vrot.slane %v5877_v47, 7 }
0x27b1   :  { %v5881_v28 = vsub.f32 %v5876_v6, %v5879_v38 }
0x27b3   :  { %v5882_v53 = vadd.f32 1e-05, %v5881_v28 }
0x27b5   :  { %9257 = vrsqrt.f32 %v5882_v53 }
0x27bf   :  { %v9258_v4 = vpop.eup %9257 }
0x27c0   :  { %v5885_v17 = vrot.slane %v9258_v4, 5 }
0x27c2   :  { %v5887_v57 = vmul.f32 %v5885_v17, %v11008_v48 }
0x27c4   :  { %v5889_v30 = vrot.slane %v5887_v57, 4 }
0x27c6   :  { %v5891_v25 = vmul.f32 %v5889_v30, %v5876_v6 }
0x27c8   :  { %v5893_v31 = vrot.slane %v5891_v25, 3 }
0x27ca   :  { %v5895_v54 = vsub.f32 %v11008_v48, %v5893_v31 }
0x27cc   :  { %v5897_v49 = vrot.slane %v5895_v54, 4 }
0x27ce   :  { %v5899_v33 = vsel %vm1008_vm7, %v5889_v30, %v5897_v49 }
0x27cf   :  { %8089 = vmatmul.mubr.msk.f32.vlgmr.msra.gmra.mrb[56].mxu1 %vm5252_vm10, %v5899_v33 }
0x27d0   :  { %9060 = vmatpush3.bf16.msra.mxu1 %v10949_v35  ;;  %8107 = vmatprep.mubr.msk.f32.mxu1 %vm9700_vm6, %v9698_v0  ;;  %v5695_v35 = vmul.f32 %v5694_v12, %v11074_v20  ;;  %v5696_v0 = vmul.f32 %v5694_v12, %v11078_v61 }
0x27d1   :  { %9061 = vmatprep.subr.bf16.mxu1 %v9699_v37 }
0x27d4   :  { %9063 = vmatpush3.bf16.msra.mxu1 %v10957_v26  ;;  %v5700_v26 = vrot.slane %v11122_v27, %v10013_v41 }
0x27d5   :  { %9064 = vmatprep.subr.bf16.mxu1 %v9699_v37 }
0x27d6   :  { %v5701_v63 = vadd.f32 %v5700_v26, %v5695_v35 }
0x27d8   :  { %9066 = vmatpush3.bf16.msra.mxu1 %v10965_v51 }
0x27d9   :  { %9067 = vmatprep.subr.bf16.mxu1 %v9699_v37 }
0x27dc   :  { %9069 = vmatpush3.bf16.msra.mxu1 %v10970_v34  ;;  %v5702_v34 = vadd.f32 %v5700_v26, %v5696_v0 }
0x28a2   :  { %v5969_v21 = vpop.f32.mrb[56].mxu1 }
0x28a3   :  { %v5976_v19 = vrot.slane %v5969_v21, %v10016_v43  ;;  %v8090_v58 = vpop.f32.mrb[57].mxu1  ;;  %v5982_v37 = vrot.slane %v5969_v21, %v10013_v41 }
0x28a5   :  { %v5977_v59 = vmul.f32 %v5976_v19, %v5774_v11  ;;  %v5978_v51 = vmul.f32 %v5976_v19, %v5779_v39 }
0x28a7   :  { %v5983_v45 = vadd.f32 %v5982_v37, %v5977_v59  ;;  %v5984_v46 = vadd.f32 %v5982_v37, %v5978_v51 }
0x28a9   :  { %v5985_v23 = vadd.f32 %v5983_v45, %v5701_v63  ;;  %v5986_v15 = vadd.f32 %v5984_v46, %v5702_v34 }
0x28ab   :  { %v5987_v22 = vmul.f32 0.70710677, %v5985_v23  ;;  %v5988_v20 = vmul.f32 0.70710677, %v5986_v15  ;;  %v6035_v33 = vmul.f32 0.5, %v5985_v23  ;;  %v6036_v21 = vmul.f32 0.5, %v5986_v15 }
0x28ad   :  { %v5989_v13 = vand.u32 2147483647, %v5987_v22  ;;  %v5990_v61 = vand.u32 2147483647, %v5988_v20  ;;  %vm6029_vm1 = vcmp.ge.f32.partialorder %v5987_v22, 0.0  ;;  %vm6030_vm2 = vcmp.ge.f32.partialorder %v5988_v20, 0.0 }
0x28af   :  { %v5991_v44 = vmul.f32 0.3275911, %v5989_v13  ;;  %v5992_v5 = vmul.f32 0.3275911, %v5990_v61  ;;  %v6017_v27 = vsub.f32 0.0, %v5989_v13  ;;  %v6018_v39 = vsub.f32 0.0, %v5990_v61 }
0x28b1   :  { %v5993_v9 = vadd.f32 1.0, %v5991_v44  ;;  %v5994_v18 = vadd.f32 1.0, %v5992_v5  ;;  %v6019_v52 = vmul.f32 %v6017_v27, %v5989_v13  ;;  %v6020_v36 = vmul.f32 %v6018_v39, %v5990_v61 }
0x28b3   :  { %9259 = vrcp.f32 %v5993_v9  ;;  %v6021_v56 = vmul.f32 1.442695, %v6019_v52  ;;  %v6023_v7 = vmul.f32 1.442695, %v6020_v36 }
0x28b4   :  { %9261 = vrcp.f32 %v5994_v18 }
0x28b5   :  { %9263 = vpow2.f32 %v6021_v56 }
0x28b6   :  { %9265 = vpow2.f32 %v6023_v7 }
0x28bd   :  { %v9260_v11 = vpop.eup %9259 }
0x28be   :  { %v9262_v40 = vpop.eup %9261  ;;  %v5999_v8 = vmul.f32 1.0614054, %v9260_v11 }
0x28bf   :  { %v6000_v10 = vmul.f32 1.0614054, %v9262_v40  ;;  %v9264_v38 = vpop.eup %9263 }
0x28c0   :  { %v6001_v55 = vadd.f32 -1.4531521, %v5999_v8  ;;  %v9266_v53 = vpop.eup %9265 }
0x28c1   :  { %v6002_v14 = vadd.f32 -1.4531521, %v6000_v10 }
0x28c2   :  { %v6003_v50 = vmul.f32 %v9260_v11, %v6001_v55 }
0x28c3   :  { %v6004_v3 = vmul.f32 %v9262_v40, %v6002_v14 }
0x28c4   :  { %v6005_v32 = vadd.f32 1.4214138, %v6003_v50 }
0x28c5   :  { %v6006_v2 = vadd.f32 1.4214138, %v6004_v3 }
0x28c6   :  { %v6007_v24 = vmul.f32 %v9260_v11, %v6005_v32 }
0x28c7   :  { %v6008_v62 = vmul.f32 %v9262_v40, %v6006_v2 }
0x28c8   :  { %v6009_v60 = vadd.f32 -0.28449672, %v6007_v24 }
0x28c9   :  { %v6010_v16 = vadd.f32 -0.28449672, %v6008_v62 }
0x28ca   :  { %v6011_v29 = vmul.f32 %v9260_v11, %v6009_v60  ;;  %v6298_v60 = vld [vmem:[%s9865_s29] sm:$0xff] }
0x28cb   :  { %v6012_v42 = vmul.f32 %v9262_v40, %v6010_v16  ;;  %v6299_v16 = vld [vmem:[%s9865_s29 + $0x8] sm:$0xff] }
0x28cc   :  { %v6013_v6 = vadd.f32 0.2548296, %v6011_v29  ;;  %v9070_v29 = vpack.c.bf16 %v6299_v16, %v6298_v60 }
0x28cd   :  { %v6014_v1 = vadd.f32 0.2548296, %v6012_v42  ;;  %v6300_v42 = vld [vmem:[%s9865_s29 + $0x10] sm:$0xff] }
0x28ce   :  { %v6015_v47 = vmul.f32 %v9260_v11, %v6013_v6  ;;  %9071 = vmatprep.subr.bf16.mxu0 %v9070_v29  ;;  %v6301_v6 = vld [vmem:[%s9865_s29 + $0x18] sm:$0xff] }
0x28cf   :  { %v6016_v28 = vmul.f32 %v9262_v40, %v6014_v1  ;;  %v9074_v1 = vpack.c.bf16 %v6301_v6, %v6300_v42 }
0x28d0   :  { %v6025_v4 = vmul.f32 %v9264_v38, %v6015_v47  ;;  %v6302_v47 = vld [vmem:[%s9865_s29 + $0x20] sm:$0xff]  ;;  %v6303_v38 = vld [vmem:[%s9865_s29 + $0x28] sm:$0xff] }
0x28d1   :  { %v6026_v17 = vmul.f32 %v9266_v53, %v6016_v28  ;;  %v6304_v28 = vld [vmem:[%s9865_s29 + $0x30] sm:$0xff]  ;;  %v6305_v53 = vld [vmem:[%s9865_s29 + $0x38] sm:$0xff] }
0x28d2   :  { %v6027_v57 = vsub.f32 1.0, %v6025_v4  ;;  %v9082_v4 = vpack.c.bf16 %v6305_v53, %v6304_v28 }
0x28d3   :  { %v6028_v30 = vsub.f32 1.0, %v6026_v17 }
0x28d4   :  { %v6031_v25 = vsub.f32 0.0, %v6027_v57 }
0x28d5   :  { %v6032_v31 = vsub.f32 0.0, %v6028_v30 }
0x28d6   :  { %v6033_v54 = vsel %vm6029_vm1, %v6027_v57, %v6031_v25 }
0x28d7   :  { %v6034_v49 = vsel %vm6030_vm2, %v6028_v30, %v6032_v31  ;;  %v6037_v12 = vadd.f32 1.0, %v6033_v54 }
0x28d8   :  { %v6038_v35 = vadd.f32 1.0, %v6034_v49 }
0x28d9   :  { %v11157_v0 = vmul.f32 %v6037_v12, %v6035_v33 }
0x28da   :  { %v11159_v19 = vmul.f32 %v6038_v35, %v6036_v21 }
0x28db   :  { %v6041_v58 = vsel %vm1098_vm8, %v11157_v0, 0.0  ;;  %v6050_v26 = vmul.f32 %v11157_v0, %v11157_v0 }
0x28dc   :  { %v6042_v59 = vsel %vm1098_vm8, %v11159_v19, 0.0  ;;  %v6051_v51 = vmul.f32 %v11159_v19, %v11159_v19 }
0x28dd   :  { %v6043_v37 = vadd.f32 %v6042_v59, %v6041_v58  ;;  %v6052_v63 = vsel %vm1098_vm8, %v6050_v26, 0.0 }
0x28de   :  { %v6053_v34 = vsel %vm1098_vm8, %v6051_v51, 0.0 }
0x28df   :  { %v6044_v45 = vrot.slane %v6043_v37, 4  ;;  %v6054_v46 = vadd.f32 %v6053_v34, %v6052_v63 }
0x28e1   :  { %v6045_v23 = vadd.f32 %v6044_v45, %v6043_v37  ;;  %v6055_v15 = vrot.slane %v6054_v46, 4 }
0x28e3   :  { %v6046_v22 = vrot.slane %v6045_v23, 2  ;;  %v6056_v20 = vadd.f32 %v6055_v15, %v6054_v46 }
0x28e5   :  { %v6047_v13 = vadd.f32 %v6046_v22, %v6045_v23  ;;  %v6057_v61 = vrot.slane %v6056_v20, 2 }
0x28e7   :  { %v6048_v44 = vrot.slane %v6047_v13, 1  ;;  %v6058_v5 = vadd.f32 %v6057_v61, %v6056_v20 }
0x28e9   :  { %v6059_v9 = vrot.slane %v6058_v5, 1  ;;  %v6049_v18 = vadd.f32 %v6048_v44, %v6047_v13 }
0x28eb   :  { %v6060_v27 = vadd.f32 %v6059_v9, %v6058_v5 }
0x28ed   :  { %v6061_v39 = vsel %vm1008_vm7, %v6049_v18, %v6060_v27 }
0x28ee   :  { %8108 = vmatmul.mubr.msk.f32.vlgmr.msra.gmra.mrb[58].mxu1 %vm1098_vm8, %v6061_v39 }
0x29c1   :  { %v6131_v11 = vpop.f32.mrb[58].mxu1 }
0x29c2   :  { %v6135_v52 = vmul.f32 0.00390625, %v6131_v11  ;;  %v8109_v40 = vpop.f32.mrb[59].mxu1 }
0x29c4   :  { %v6136_v8 = vmul.f32 %v6135_v52, %v6135_v52 }
0x29c6   :  { %v6138_v36 = vrot.slane %v6136_v8, 7 }
0x29c8   :  { %v6140_v10 = vsub.f32 %v6135_v52, %v6138_v36 }
0x29ca   :  { %v6141_v55 = vadd.f32 1e-05, %v6140_v10 }
0x29cc   :  { %9267 = vrsqrt.f32 %v6141_v55 }
0x29d6   :  { %v9268_v14 = vpop.eup %9267 }
0x29d7   :  { %v6144_v56 = vrot.slane %v9268_v14, 3 }
0x29d9   :  { %v6146_v50 = vmul.f32 %v6144_v56, %v11008_v48 }
0x29db   :  { %v6148_v7 = vrot.slane %v6146_v50, 6 }
0x29dd   :  { %v6150_v3 = vmul.f32 %v6148_v7, %v6135_v52 }
0x29df   :  { %v6152_v32 = vrot.slane %v6150_v3, 1 }
0x29e1   :  { %v6154_v2 = vsub.f32 %v11008_v48, %v6152_v32  ;;  %v9078_v48 = vpack.c.bf16 %v6303_v38, %v6302_v47  ;;  %v6485_v47 = vld [vmem:[%s9870_s21] ss:$0 sm:$0xff] }
0x29e3   :  { %v6156_v24 = vrot.slane %v6154_v2, 6 }
0x29e5   :  { %v6158_v62 = vsel %vm1008_vm7, %v6148_v7, %v6156_v24 }
0x29e6   :  { %8113 = vmatmul.mubr.msk.f32.vlgmr.msra.gmra.mrb[56].mxu0 %vm5252_vm10, %v6158_v62 }
0x29e7   :  { %9073 = vmatpush3.bf16.msra.mxu0 %v9070_v29 }
0x29e8   :  { %9075 = vmatprep.subr.bf16.mxu0 %v9074_v1 }
0x29eb   :  { %9077 = vmatpush3.bf16.msra.mxu0 %v9074_v1 }
0x29ec   :  { %9079 = vmatprep.subr.bf16.mxu0 %v9078_v48 }
0x29ef   :  { %9081 = vmatpush3.bf16.msra.mxu0 %v9078_v48 }
0x29f0   :  { %9083 = vmatprep.subr.bf16.mxu0 %v9082_v4 }
0x29f3   :  { %9085 = vmatpush3.bf16.msra.mxu0 %v9082_v4 }
0x2ab9   :  { %v6228_v17 = vpop.f32.mrb[56].mxu0 }
0x2aba   :  { %v6235_v57 = vrot.slane %v6228_v17, %v10016_v43  ;;  %v8114_v30 = vpop.f32.mrb[57].mxu0  ;;  %v6241_v54 = vrot.slane %v6228_v17, %v10013_v41 }
0x2abc   :  { %v6236_v25 = vmul.f32 %v6235_v57, %v11157_v0  ;;  %v6237_v31 = vmul.f32 %v6235_v57, %v11159_v19 }
0x2abe   :  { %v6242_v49 = vadd.f32 %v6241_v54, %v6236_v25  ;;  %v6243_v33 = vadd.f32 %v6241_v54, %v6237_v31 }
0x2ac0   :  { %v6244_v12 = vmul.f32 0.70710677, %v6242_v49  ;;  %v6245_v21 = vmul.f32 0.70710677, %v6243_v33  ;;  %v6292_v60 = vmul.f32 0.5, %v6242_v49  ;;  %v6293_v29 = vmul.f32 0.5, %v6243_v33 }
0x2ac2   :  { %v6246_v35 = vand.u32 2147483647, %v6244_v12  ;;  %v6247_v58 = vand.u32 2147483647, %v6245_v21  ;;  %vm6286_vm3 = vcmp.ge.f32.partialorder %v6244_v12, 0.0  ;;  %vm6287_vm6 = vcmp.ge.f32.partialorder %v6245_v21, 0.0 }
0x2ac4   :  { %v6248_v26 = vmul.f32 0.3275911, %v6246_v35  ;;  %v6249_v59 = vmul.f32 0.3275911, %v6247_v58  ;;  %v6274_v43 = vsub.f32 0.0, %v6246_v35  ;;  %v6275_v63 = vsub.f32 0.0, %v6247_v58 }
0x2ac6   :  { %v6250_v51 = vadd.f32 1.0, %v6248_v26  ;;  %v6251_v37 = vadd.f32 1.0, %v6249_v59  ;;  %v6276_v0 = vmul.f32 %v6274_v43, %v6246_v35  ;;  %v6277_v19 = vmul.f32 %v6275_v63, %v6247_v58 }
0x2ac8   :  { %9269 = vrcp.f32 %v6250_v51  ;;  %v6278_v22 = vmul.f32 1.442695, %v6276_v0  ;;  %v6280_v20 = vmul.f32 1.442695, %v6277_v19 }
0x2ac9   :  { %9271 = vrcp.f32 %v6251_v37 }
0x2aca   :  { %9273 = vpow2.f32 %v6278_v22 }
0x2acb   :  { %9275 = vpow2.f32 %v6280_v20 }
0x2ad2   :  { %v9270_v34 = vpop.eup %9269 }
0x2ad3   :  { %v9272_v45 = vpop.eup %9271  ;;  %v6256_v46 = vmul.f32 1.0614054, %v9270_v34 }
0x2ad4   :  { %v6257_v41 = vmul.f32 1.0614054, %v9272_v45  ;;  %v9274_v10 = vpop.eup %9273 }
0x2ad5   :  { %v6258_v23 = vadd.f32 -1.4531521, %v6256_v46  ;;  %v9276_v14 = vpop.eup %9275 }
0x2ad6   :  { %v6259_v15 = vadd.f32 -1.4531521, %v6257_v41 }
0x2ad7   :  { %v6260_v13 = vmul.f32 %v9270_v34, %v6258_v23 }
0x2ad8   :  { %v6261_v61 = vmul.f32 %v9272_v45, %v6259_v15 }
0x2ad9   :  { %v6262_v44 = vadd.f32 1.4214138, %v6260_v13 }
0x2ada   :  { %v6263_v5 = vadd.f32 1.4214138, %v6261_v61 }
0x2adb   :  { %v6264_v9 = vmul.f32 %v9270_v34, %v6262_v44 }
0x2adc   :  { %v6265_v18 = vmul.f32 %v9272_v45, %v6263_v5 }
0x2add   :  { %v6266_v27 = vadd.f32 -0.28449672, %v6264_v9 }
0x2ade   :  { %v6267_v39 = vadd.f32 -0.28449672, %v6265_v18 }
0x2adf   :  { %v6268_v11 = vmul.f32 %v9270_v34, %v6266_v27 }
0x2ae0   :  { %v6269_v52 = vmul.f32 %v9272_v45, %v6267_v39 }
0x2ae1   :  { %v6270_v40 = vadd.f32 0.2548296, %v6268_v11 }
0x2ae2   :  { %v6271_v8 = vadd.f32 0.2548296, %v6269_v52 }
0x2ae3   :  { %v6272_v36 = vmul.f32 %v9270_v34, %v6270_v40 }
0x2ae4   :  { %v6273_v55 = vmul.f32 %v9272_v45, %v6271_v8 }
0x2ae5   :  { %v6282_v56 = vmul.f32 %v9274_v10, %v6272_v36 }
0x2ae6   :  { %v6283_v50 = vmul.f32 %v9276_v14, %v6273_v55 }
0x2ae7   :  { %v6284_v7 = vsub.f32 1.0, %v6282_v56 }
0x2ae8   :  { %v6285_v3 = vsub.f32 1.0, %v6283_v50 }
0x2ae9   :  { %v6288_v32 = vsub.f32 0.0, %v6284_v7 }
0x2aea   :  { %v6289_v2 = vsub.f32 0.0, %v6285_v3 }
0x2aeb   :  { %v6290_v24 = vsel %vm6286_vm3, %v6284_v7, %v6288_v32 }
0x2aec   :  { %v6291_v62 = vsel %vm6287_vm6, %v6285_v3, %v6289_v2  ;;  %v6294_v16 = vadd.f32 1.0, %v6290_v24 }
0x2aed   :  { %v6295_v42 = vadd.f32 1.0, %v6291_v62 }
0x2aee   :  { %v6296_v6 = vmul.f32 %v6294_v16, %v6292_v60 }
0x2aef   :  { %v6297_v1 = vmul.f32 %v6295_v42, %v6293_v29 }
0x2af0   :  { %8131 = vmatprep.mubr.msk.f32.mxu0 %vm1098_vm8, %v6296_v6 }
0x2af1   :  { %8132 = vmatmul.mubr.msk.f32.vlgmr.msra.gmra.mrb[58].mxu0 %vm1098_vm8, %v6297_v1 }
0x2bc4   :  { %v8133_v38 = vpop.f32.mrb[58].mxu0 }
0x2bc5   :  { %v6391_v48 = vadd.f32 %v8133_v38, %v6485_v47  ;;  %v6385_v28 = vpop.f32.mrb[59].mxu0 }
0x2bc6   :  { %v6386_v53 = vadd.f32 %v6485_v47, %v6385_v28 }
0x2bc7   :  { %6395 = vst.msk [vmem:[%s9875_s13 + $0x8] sm:$0xff] %vm3885_vm13, %v6391_v48 }
0x2bc8   :  { %6394 = vst.msk [vmem:[%s9875_s13] sm:$0xff] %vm3885_vm13, %v6386_v53 }
0x2bc9   :  { %6400 = vsyncpa [#allocation3], 1 }
0x2bca   :  { %6401 = vsyncpa [#allocation5], 1 }
0x2bcb   :  { %6402 = vsyncpa [#allocation8], 1 }
0x2bcc   :  { %6403 = vsyncpa [#allocation11], 1 }
0x2bcd   :  { %6404 = vsyncpa [#allocation14], 1 }
0x2bce   :  { %6405 = vsyncpa [#allocation17], 1 }
0x2bcf   :  { %6406 = vsyncpa [#allocation20], 1 }
0x2bd0   :  { %6407 = vsyncpa [#allocation23], 1 }
0x2bd1   :  { %6408 = vsyncpa [#allocation26], 1 }

</bundles_post_ra>
